<compile_context>
chip_gen: v7x
topology: tpu7x:2x2x1
jax: 0.10.0
libtpu: 0.0.40
codegen_flags: <defaults>
</compile_context>

<pallas_src>
import math

import numpy as np
import jax
import jax.numpy as jnp
from jax.experimental import pallas as pl
from jax.experimental.pallas import tpu as pltpu

# ------------------------- small, deterministic config -------------------------
B         = 2
SEQ_LEN   = 16
LABEL_LEN = 8
PRED_LEN  = 8
DEC_LEN   = LABEL_LEN + PRED_LEN
SPACE     = 8
ENC_IN    = 8
DEC_IN    = 8
C_OUT     = 8
D_MODEL   = 32
N_HEADS   = 4
D_HEAD    = D_MODEL // N_HEADS
E_LAYERS  = 2
D_LAYERS  = 1
D_FF      = 32
N_TIME_FEAT = 4      # embed='timeF', freq='h' -> 4 time features
N_STREAM  = 3        # the 3 data streams x[..., 0..2]

ME = N_STREAM * SEQ_LEN     # encoder rows per chunk (one batch element, 3 streams)
MD = N_STREAM * DEC_LEN     # decoder rows per chunk


# ----------------------------- in-kernel helpers --------------------------------
def _layernorm(x, g, b):
    mean = jnp.mean(x, axis=-1, keepdims=True)
    cx = x - mean
    var = jnp.mean(cx * cx, axis=-1, keepdims=True)
    return cx * jax.lax.rsqrt(var + 1e-5) * g + b


def _gelu(x):
    # exact (erf) GELU, matching torch.nn.functional.gelu default
    return 0.5 * x * (1.0 + jax.lax.erf(x * 0.7071067811865476))


def _dotf(a, b):
    return jnp.dot(a, b, preferred_element_type=jnp.float32)


def _attn_heads(q, k, v, mask):
    """Per-head full attention; q [Lq,D], k/v [Lk,D], additive mask [Lq,Lk].
    Returns list of per-head outputs [Lq, D_HEAD]."""
    scale = 1.0 / math.sqrt(D_HEAD)
    outs = []
    for h in range(N_HEADS):
        sl = slice(h * D_HEAD, (h + 1) * D_HEAD)
        s = jax.lax.dot_general(q[:, sl], k[:, sl], (((1,), (1,)), ((), ())),
                                preferred_element_type=jnp.float32)
        s = s * scale + mask
        m = jnp.max(s, axis=-1, keepdims=True)
        e = jnp.exp(s - m)
        p = e * pl.reciprocal(jnp.sum(e, axis=-1, keepdims=True), approx=True)
        outs.append(_dotf(p, v[:, sl]))
    return outs


def _embed(x, mark, perm_ref, emb_w, pos):
    """Fused Space+Token(conv k=3 circular)+timeF+positional embedding.
    x [M, SPACE], mark [M, T], perm_ref [2, M, M] (prev/next circular perms),
    emb_w [3*SPACE+T+1, D] packed (Wprev|Wcur|Wnext|Wtime|bias), pos [M, D]."""
    s = SPACE
    wp = emb_w[0:s]
    wc = emb_w[s:2 * s]
    wn = emb_w[2 * s:3 * s]
    wt = emb_w[3 * s:3 * s + N_TIME_FEAT]
    bias = emb_w[3 * s + N_TIME_FEAT:3 * s + N_TIME_FEAT + 1]
    e = _dotf(x, wc) + _dotf(mark, wt) + bias + pos
    e = e + _dotf(perm_ref[0], _dotf(x, wp))    # x[l-1] tap (circular, per stream)
    e = e + _dotf(perm_ref[1], _dotf(x, wn))    # x[l+1] tap
    return e


# --------------------------------- fused kernel ----------------------------------
def _informer_kernel(xe_ref, me_ref, xd_ref, md_ref,
                     perm_e_ref, perm_d_ref, pos_ref, emb_ref,
                     mask_e_ref, mask_d_ref, mask_x_ref,
                     mixmask_ref, mixsum_ref,
                     hmask_ref, hsum_ref, head_w_ref, head_b_ref,
                     e_wqkv_ref, e_bqkv_ref, e_wo_ref, e_w1_ref, e_b1_ref,
                     e_w2_ref, e_vec_ref,
                     d_sa_wqkv_ref, d_sa_bqkv_ref, d_sa_wo_ref,
                     d_ca_wq_ref, d_ca_wkv_ref, d_ca_bkv_ref, d_ca_wo_ref,
                     d_w1_ref, d_b1_ref, d_w2_ref, d_vec_ref,
                     norm_ref, out_ref):
    D = D_MODEL

    # ------------------------------ encoder ------------------------------
    x = _embed(xe_ref[...], me_ref[...], perm_e_ref, emb_ref[0], pos_ref[0:ME])
    mask_e = mask_e_ref[...]
    for l in range(E_LAYERS):
        vec = e_vec_ref[l]                                   # [6, D]: bo,b2,ln1g,ln1b,ln2g,ln2b
        qkv = _dotf(x, e_wqkv_ref[l]) + e_bqkv_ref[l]
        heads = _attn_heads(qkv[:, :D], qkv[:, D:2 * D], qkv[:, 2 * D:], mask_e)
        o = _dotf(jnp.concatenate(heads, axis=-1), e_wo_ref[l]) + vec[0:1]
        x = _layernorm(x + o, vec[2:3], vec[3:4])
        y = _gelu(_dotf(x, e_w1_ref[l]) + e_b1_ref[l])
        y = _dotf(y, e_w2_ref[l]) + vec[1:2]
        x = _layernorm(x + y, vec[4:5], vec[5:6])
    enc_out = _layernorm(x, norm_ref[0:1], norm_ref[1:2])    # [ME, D], stays in VMEM

    # ------------------------------ decoder ------------------------------
    x = _embed(xd_ref[...], md_ref[...], perm_d_ref, emb_ref[1], pos_ref[ME:ME + MD])
    mask_d = mask_d_ref[...]
    mask_x = mask_x_ref[...]
    mixmask = mixmask_ref[...]
    mixsum = mixsum_ref[...]
    for l in range(D_LAYERS):
        vec = d_vec_ref[l]            # [10,D]: sa_bo,ca_bq,ca_bo,b2,ln1g,ln1b,ln2g,ln2b,ln3g,ln3b
        # causal + block-diag self-attention, mix=True folded into 2 constant matmuls
        qkv = _dotf(x, d_sa_wqkv_ref[l]) + d_sa_bqkv_ref[l]
        heads = _attn_heads(qkv[:, :D], qkv[:, D:2 * D], qkv[:, 2 * D:], mask_d)
        oc = jnp.concatenate(heads, axis=0)                              # [H*MD, Dh] head-major
        u = _dotf(jnp.concatenate([oc] * N_HEADS, axis=-1) * mixmask, d_sa_wo_ref[l])
        x = x + _dotf(mixsum, u) + vec[0:1]
        x = _layernorm(x, vec[4:5], vec[5:6])
        # cross attention over the fused encoder output (no mix)
        q = _dotf(x, d_ca_wq_ref[l]) + vec[1:2]
        kv = _dotf(enc_out, d_ca_wkv_ref[l]) + d_ca_bkv_ref[l]
        heads = _attn_heads(q, kv[:, :D], kv[:, D:], mask_x)
        o = _dotf(jnp.concatenate(heads, axis=-1), d_ca_wo_ref[l]) + vec[2:3]
        y = x = _layernorm(x + o, vec[6:7], vec[7:8])
        y = _gelu(_dotf(y, d_w1_ref[l]) + d_b1_ref[l])
        y = _dotf(y, d_w2_ref[l]) + vec[3:4]
        x = _layernorm(x + y, vec[8:9], vec[9:10])
    dec_out = _layernorm(x, norm_ref[2:3], norm_ref[3:4])                # [MD, D]

    # ------------- fused heads: all = cat(streams) -> mlp_one|two|three -------------
    u2 = _dotf(jnp.concatenate([dec_out] * N_STREAM, axis=-1) * hmask_ref[...],
               head_w_ref[...])                                          # [MD, 3*C_OUT]
    out_ref[...] = _dotf(hsum_ref[...], u2) + head_b_ref[...]            # [DEC_LEN, 3*C_OUT]


# ------------------------------ pallas_call wrapper ------------------------------
_CONST_NAMES = (
    "perm_e", "perm_d", "pos", "emb",
    "mask_e", "mask_d", "mask_x",
    "mixmask", "mixsum",
    "hmask", "hsum", "head_w", "head_b",
    "e_wqkv", "e_bqkv", "e_wo", "e_w1", "e_b1", "e_w2", "e_vec",
    "d_sa_wqkv", "d_sa_bqkv", "d_sa_wo",
    "d_ca_wq", "d_ca_wkv", "d_ca_bkv", "d_ca_wo",
    "d_w1", "d_b1", "d_w2", "d_vec",
    "norm",
)


def _const_spec(a):
    nd = a.ndim
    return pl.BlockSpec(a.shape, lambda i, _nd=nd: (0,) * _nd)


def informer_uni_forward(packed, x_enc, x_mark_enc, x_dec, x_mark_dec):
    Bb = x_enc.shape[0]
    Ls = x_enc.shape[1]
    Ld = x_dec.shape[1]

    # batch-major stream folding: rows ordered (batch, stream, time)
    xe = jnp.transpose(x_enc, (0, 3, 1, 2)).reshape(Bb * N_STREAM * Ls, SPACE)
    xd = jnp.transpose(x_dec, (0, 3, 1, 2)).reshape(Bb * N_STREAM * Ld, SPACE)
    me = jnp.broadcast_to(x_mark_enc[:, None], (Bb, N_STREAM, Ls, N_TIME_FEAT)
                          ).reshape(Bb * N_STREAM * Ls, N_TIME_FEAT)
    md = jnp.broadcast_to(x_mark_dec[:, None], (Bb, N_STREAM, Ld, N_TIME_FEAT)
                          ).reshape(Bb * N_STREAM * Ld, N_TIME_FEAT)

    consts = [packed[n] for n in _CONST_NAMES]

    out2d = pl.pallas_call(
        _informer_kernel,
        grid=(Bb,),
        in_specs=([pl.BlockSpec((ME, SPACE), lambda i: (i, 0)),
                   pl.BlockSpec((ME, N_TIME_FEAT), lambda i: (i, 0)),
                   pl.BlockSpec((MD, SPACE), lambda i: (i, 0)),
                   pl.BlockSpec((MD, N_TIME_FEAT), lambda i: (i, 0))]
                  + [_const_spec(a) for a in consts]),
        out_specs=pl.BlockSpec((DEC_LEN, N_STREAM * C_OUT), lambda i: (i, 0)),
        out_shape=jax.ShapeDtypeStruct((Bb * DEC_LEN, N_STREAM * C_OUT), jnp.float32),
        compiler_params=pltpu.CompilerParams(dimension_semantics=("parallel",)),
    )(xe, me, xd, md, *consts)

    out = out2d.reshape(Bb, DEC_LEN, N_STREAM, C_OUT)[:, -PRED_LEN:]
    # torch.stack((d_one[:, -P:], d_two[:, -P:], d_three[:, -P:]), axis=3)
    return jnp.transpose(out, (0, 1, 3, 2))                  # [B, P, C_OUT, 3]


# --------------------------------- parameters ------------------------------------
def positional_embedding(L, d_model):
    pos = jnp.arange(L, dtype=jnp.float32)[:, None]
    div = jnp.exp(jnp.arange(0, d_model, 2, dtype=jnp.float32)
                  * -(math.log(10000.0) / d_model))
    pe = jnp.zeros((L, d_model), jnp.float32)
    pe = pe.at[:, 0::2].set(jnp.sin(pos * div))
    pe = pe.at[:, 1::2].set(jnp.cos(pos * div))
    return pe


def init_params(key):
    state = [key]

    def nxt():
        state[0], sub = jax.random.split(state[0])
        return sub

    def w(shape, scale=0.05):
        return jax.random.normal(nxt(), shape, jnp.float32) * scale

    def zeros(shape):
        return jnp.zeros(shape, jnp.float32)

    def ones(shape):
        return jnp.ones(shape, jnp.float32)

    def attn_params():
        return dict(wq=w((D_MODEL, D_MODEL)), bq=zeros((D_MODEL,)),
                    wk=w((D_MODEL, D_MODEL)), bk=zeros((D_MODEL,)),
                    wv=w((D_MODEL, D_MODEL)), bv=zeros((D_MODEL,)),
                    wo=w((D_MODEL, D_MODEL)), bo=zeros((D_MODEL,)))

    def emb_params(c_in):
        return dict(tok_w=w((3 * c_in, D_MODEL)), tok_b=zeros((D_MODEL,)),
                    tmp_w=w((N_TIME_FEAT, D_MODEL)), tmp_b=zeros((D_MODEL,)))

    enc_layers = [dict(attn=attn_params(),
                       ff1_w=w((D_MODEL, D_FF)), ff1_b=zeros((D_FF,)),
                       ff2_w=w((D_FF, D_MODEL)), ff2_b=zeros((D_MODEL,)),
                       ln1_g=ones((D_MODEL,)), ln1_b=zeros((D_MODEL,)),
                       ln2_g=ones((D_MODEL,)), ln2_b=zeros((D_MODEL,)))
                  for _ in range(E_LAYERS)]
    dec_layers = [dict(self_attn=attn_params(), cross_attn=attn_params(),
                       ff1_w=w((D_MODEL, D_FF)), ff1_b=zeros((D_FF,)),
                       ff2_w=w((D_FF, D_MODEL)), ff2_b=zeros((D_MODEL,)),
                       ln1_g=ones((D_MODEL,)), ln1_b=zeros((D_MODEL,)),
                       ln2_g=ones((D_MODEL,)), ln2_b=zeros((D_MODEL,)),
                       ln3_g=ones((D_MODEL,)), ln3_b=zeros((D_MODEL,)))
                  for _ in range(D_LAYERS)]

    return dict(
        space_w=w((SPACE, ENC_IN)), space_b=zeros((ENC_IN,)),
        enc_emb=emb_params(ENC_IN), dec_emb=emb_params(DEC_IN),
        encoder=dict(layers=enc_layers, norm_g=ones((D_MODEL,)), norm_b=zeros((D_MODEL,))),
        decoder=dict(layers=dec_layers, norm_g=ones((D_MODEL,)), norm_b=zeros((D_MODEL,))),
        mlp_one_w=w((3 * D_MODEL, C_OUT)), mlp_one_b=zeros((C_OUT,)),
        mlp_two_w=w((3 * D_MODEL, C_OUT)), mlp_two_b=zeros((C_OUT,)),
        mlp_three_w=w((3 * D_MODEL, C_OUT)), mlp_three_b=zeros((C_OUT,)),
    )


def pack_params(p):
    """Host-side one-time fusion of torch-granularity weights + structural constants."""
    pk = {}
    D = D_MODEL

    # --- embedding fold: Space(x) -> conv(k=3, circular) -> + timeF + bias, per tap ---
    def fold_embedding(emb, c_in):
        taps = [emb["tok_w"][i * c_in:(i + 1) * c_in] for i in range(3)]   # prev, cur, next
        wp = p["space_w"] @ taps[0]
        wc = p["space_w"] @ taps[1]
        wn = p["space_w"] @ taps[2]
        bias = p["space_b"] @ (taps[0] + taps[1] + taps[2]) + emb["tok_b"] + emb["tmp_b"]
        return jnp.concatenate([wp, wc, wn, emb["tmp_w"], bias[None, :]], axis=0)

    pk["emb"] = jnp.stack([fold_embedding(p["enc_emb"], ENC_IN),
                           fold_embedding(p["dec_emb"], DEC_IN)])          # [2, 3*S+T+1, D]

    # --- positional embedding, tiled per stream, enc rows then dec rows ---
    pos_e = jnp.tile(positional_embedding(SEQ_LEN, D), (N_STREAM, 1))
    pos_d = jnp.tile(positional_embedding(DEC_LEN, D), (N_STREAM, 1))
    pk["pos"] = jnp.concatenate([pos_e, pos_d], axis=0)                    # [ME+MD, D]

    # --- circular-window permutations (block-diag per stream) ---
    def perms(L):
        eye = jnp.eye(L, dtype=jnp.float32)
        prev = jnp.roll(eye, 1, axis=0)     # (P@x)[l] = x[(l-1) % L]
        nxt = jnp.roll(eye, -1, axis=0)     # (P@x)[l] = x[(l+1) % L]
        blk = lambda m: jnp.kron(jnp.eye(N_STREAM, dtype=jnp.float32), m)
        return jnp.stack([blk(prev), blk(nxt)])

    pk["perm_e"] = perms(SEQ_LEN)
    pk["perm_d"] = perms(DEC_LEN)

    # --- additive attention masks (block-diag over streams, + causal for dec self) ---
    neg = jnp.float32(-1e30)

    def block_mask(Lq, Lk, causal):
        base = jnp.ones((Lq, Lk), jnp.float32)
        if causal:
            base = jnp.tril(base)
        allowed = jnp.kron(jnp.eye(N_STREAM, dtype=jnp.float32), base)
        return jnp.where(allowed > 0, jnp.float32(0.0), neg)

    pk["mask_e"] = block_mask(SEQ_LEN, SEQ_LEN, False)
    pk["mask_d"] = block_mask(DEC_LEN, DEC_LEN, True)
    pk["mask_x"] = block_mask(DEC_LEN, SEQ_LEN, False)

    # --- mix=True constants: mixed = view(transpose(out)) folded with out-projection ---
    # OC row r = h*N_STREAM*Ld + s*Ld + l' is used by exactly one (i, a): i*H+a = h*Ld+l'.
    H, E, Ld = N_HEADS, D_HEAD, DEC_LEN
    mixmask = np.zeros((H * N_STREAM * Ld, H * E), np.float32)
    mixsum = np.zeros((N_STREAM * Ld, H * N_STREAM * Ld), np.float32)
    for h in range(H):
        for s in range(N_STREAM):
            for lp in range(Ld):
                r = h * N_STREAM * Ld + s * Ld + lp
                idx = h * Ld + lp
                a, i = idx % H, idx // H
                mixmask[r, a * E:(a + 1) * E] = 1.0
                mixsum[s * Ld + i, r] = 1.0
    pk["mixmask"] = jnp.asarray(mixmask)
    pk["mixsum"] = jnp.asarray(mixsum)

    # --- fused heads: all[l] = cat_s dec_out[s, l]; heads = all @ (mlp_one|two|three) ---
    hmask = np.zeros((N_STREAM * Ld, N_STREAM * D), np.float32)
    hsum = np.zeros((Ld, N_STREAM * Ld), np.float32)
    for s in range(N_STREAM):
        for l in range(Ld):
            hmask[s * Ld + l, s * D:(s + 1) * D] = 1.0
            hsum[l, s * Ld + l] = 1.0
    pk["hmask"] = jnp.asarray(hmask)
    pk["hsum"] = jnp.asarray(hsum)
    pk["head_w"] = jnp.concatenate([p["mlp_one_w"], p["mlp_two_w"], p["mlp_three_w"]],
                                   axis=1)                                 # [3D, 3*C_OUT]
    pk["head_b"] = jnp.concatenate([p["mlp_one_b"], p["mlp_two_b"],
                                    p["mlp_three_b"]])[None, :]

    # --- encoder / decoder stacked weights ---
    el = p["encoder"]["layers"]
    cat_e = lambda f: jnp.stack([f(lp) for lp in el])
    pk["e_wqkv"] = cat_e(lambda lp: jnp.concatenate(
        [lp["attn"]["wq"], lp["attn"]["wk"], lp["attn"]["wv"]], axis=1))
    pk["e_bqkv"] = cat_e(lambda lp: jnp.concatenate(
        [lp["attn"]["bq"], lp["attn"]["bk"], lp["attn"]["bv"]])[None, :])
    pk["e_wo"] = cat_e(lambda lp: lp["attn"]["wo"])
    pk["e_w1"] = cat_e(lambda lp: lp["ff1_w"])
    pk["e_b1"] = cat_e(lambda lp: lp["ff1_b"][None, :])
    pk["e_w2"] = cat_e(lambda lp: lp["ff2_w"])
    pk["e_vec"] = cat_e(lambda lp: jnp.stack(
        [lp["attn"]["bo"], lp["ff2_b"],
         lp["ln1_g"], lp["ln1_b"], lp["ln2_g"], lp["ln2_b"]]))

    dl = p["decoder"]["layers"]
    cat_d = lambda f: jnp.stack([f(lp) for lp in dl])
    pk["d_sa_wqkv"] = cat_d(lambda lp: jnp.concatenate(
        [lp["self_attn"]["wq"], lp["self_attn"]["wk"], lp["self_attn"]["wv"]], axis=1))
    pk["d_sa_bqkv"] = cat_d(lambda lp: jnp.concatenate(
        [lp["self_attn"]["bq"], lp["self_attn"]["bk"], lp["self_attn"]["bv"]])[None, :])
    pk["d_sa_wo"] = cat_d(lambda lp: lp["self_attn"]["wo"])
    pk["d_ca_wq"] = cat_d(lambda lp: lp["cross_attn"]["wq"])
    pk["d_ca_wkv"] = cat_d(lambda lp: jnp.concatenate(
        [lp["cross_attn"]["wk"], lp["cross_attn"]["wv"]], axis=1))
    pk["d_ca_bkv"] = cat_d(lambda lp: jnp.concatenate(
        [lp["cross_attn"]["bk"], lp["cross_attn"]["bv"]])[None, :])
    pk["d_ca_wo"] = cat_d(lambda lp: lp["cross_attn"]["wo"])
    pk["d_w1"] = cat_d(lambda lp: lp["ff1_w"])
    pk["d_b1"] = cat_d(lambda lp: lp["ff1_b"][None, :])
    pk["d_w2"] = cat_d(lambda lp: lp["ff2_w"])
    pk["d_vec"] = cat_d(lambda lp: jnp.stack(
        [lp["self_attn"]["bo"], lp["cross_attn"]["bq"], lp["cross_attn"]["bo"], lp["ff2_b"],
         lp["ln1_g"], lp["ln1_b"], lp["ln2_g"], lp["ln2_b"], lp["ln3_g"], lp["ln3_b"]]))

    pk["norm"] = jnp.stack([p["encoder"]["norm_g"], p["encoder"]["norm_b"],
                            p["decoder"]["norm_g"], p["decoder"]["norm_b"]])
    return pk


# ------------------------------------ main --------------------------------------
if __name__ == "__main__":
    key = jax.random.PRNGKey(0)
    kp, k1, k2, k3, k4 = jax.random.split(key, 5)
    params = init_params(kp)
    packed = pack_params(params)          # one-time host-side weight fusion / constants

    x_enc = jax.random.normal(k1, (B, SEQ_LEN, SPACE, 3), jnp.float32)
    x_mark_enc = jax.random.normal(k2, (B, SEQ_LEN, N_TIME_FEAT), jnp.float32)
    x_dec = jax.random.normal(k3, (B, DEC_LEN, SPACE, 3), jnp.float32)
    x_mark_dec = jax.random.normal(k4, (B, DEC_LEN, N_TIME_FEAT), jnp.float32)

    fwd = jax.jit(informer_uni_forward)
    out = fwd(packed, x_enc, x_mark_enc, x_dec, x_mark_dec)
    jax.block_until_ready(out)
    assert out.shape == (B, PRED_LEN, C_OUT, 3), out.shape
    print("KERNEL_OK")
</pallas_src>

<mosaic_0001>
module attributes {stable_mosaic.version = 11 : i64} {
  func.func @_informer_kernel(%arg0: i32, %arg1: memref<48x8xf32, #tpu.memory_space<vmem>>, %arg2: memref<48x4xf32, #tpu.memory_space<vmem>>, %arg3: memref<48x8xf32, #tpu.memory_space<vmem>>, %arg4: memref<48x4xf32, #tpu.memory_space<vmem>>, %arg5: memref<2x48x48xf32, #tpu.memory_space<vmem>>, %arg6: memref<2x48x48xf32, #tpu.memory_space<vmem>>, %arg7: memref<96x32xf32, #tpu.memory_space<vmem>>, %arg8: memref<2x29x32xf32, #tpu.memory_space<vmem>>, %arg9: memref<48x48xf32, #tpu.memory_space<vmem>>, %arg10: memref<48x48xf32, #tpu.memory_space<vmem>>, %arg11: memref<48x48xf32, #tpu.memory_space<vmem>>, %arg12: memref<192x32xf32, #tpu.memory_space<vmem>>, %arg13: memref<48x192xf32, #tpu.memory_space<vmem>>, %arg14: memref<48x96xf32, #tpu.memory_space<vmem>>, %arg15: memref<16x48xf32, #tpu.memory_space<vmem>>, %arg16: memref<96x24xf32, #tpu.memory_space<vmem>>, %arg17: memref<1x24xf32, #tpu.memory_space<vmem>>, %arg18: memref<2x32x96xf32, #tpu.memory_space<vmem>>, %arg19: memref<2x1x96xf32, #tpu.memory_space<vmem>>, %arg20: memref<2x32x32xf32, #tpu.memory_space<vmem>>, %arg21: memref<2x32x32xf32, #tpu.memory_space<vmem>>, %arg22: memref<2x1x32xf32, #tpu.memory_space<vmem>>, %arg23: memref<2x32x32xf32, #tpu.memory_space<vmem>>, %arg24: memref<2x6x32xf32, #tpu.memory_space<vmem>>, %arg25: memref<1x32x96xf32, #tpu.memory_space<vmem>>, %arg26: memref<1x1x96xf32, #tpu.memory_space<vmem>>, %arg27: memref<1x32x32xf32, #tpu.memory_space<vmem>>, %arg28: memref<1x32x32xf32, #tpu.memory_space<vmem>>, %arg29: memref<1x32x64xf32, #tpu.memory_space<vmem>>, %arg30: memref<1x1x64xf32, #tpu.memory_space<vmem>>, %arg31: memref<1x32x32xf32, #tpu.memory_space<vmem>>, %arg32: memref<1x32x32xf32, #tpu.memory_space<vmem>>, %arg33: memref<1x1x32xf32, #tpu.memory_space<vmem>>, %arg34: memref<1x32x32xf32, #tpu.memory_space<vmem>>, %arg35: memref<1x10x32xf32, #tpu.memory_space<vmem>>, %arg36: memref<4x32xf32, #tpu.memory_space<vmem>>, %arg37: memref<16x24xf32, #tpu.memory_space<vmem>>) attributes {dimension_semantics = [#tpu.dimension_semantics<parallel>], iteration_bounds = array<i64: 2>, scalar_prefetch = 0 : i64, scratch_operands = 0 : i64, tpu.core_type = #tpu.core_type<tc>, window_params = [{transform_indices = @transform_0, window_bounds = array<i64: 48, 8>}, {transform_indices = @transform_1, window_bounds = array<i64: 48, 4>}, {transform_indices = @transform_2, window_bounds = array<i64: 48, 8>}, {transform_indices = @transform_3, window_bounds = array<i64: 48, 4>}, {pipeline_mode = #tpu.pipeline_mode<synchronous>, transform_indices = @transform_4, window_bounds = array<i64: 2, 48, 48>}, {pipeline_mode = #tpu.pipeline_mode<synchronous>, transform_indices = @transform_5, window_bounds = array<i64: 2, 48, 48>}, {pipeline_mode = #tpu.pipeline_mode<synchronous>, transform_indices = @transform_6, window_bounds = array<i64: 96, 32>}, {pipeline_mode = #tpu.pipeline_mode<synchronous>, transform_indices = @transform_7, window_bounds = array<i64: 2, 29, 32>}, {pipeline_mode = #tpu.pipeline_mode<synchronous>, transform_indices = @transform_8, window_bounds = array<i64: 48, 48>}, {pipeline_mode = #tpu.pipeline_mode<synchronous>, transform_indices = @transform_9, window_bounds = array<i64: 48, 48>}, {pipeline_mode = #tpu.pipeline_mode<synchronous>, transform_indices = @transform_10, window_bounds = array<i64: 48, 48>}, {pipeline_mode = #tpu.pipeline_mode<synchronous>, transform_indices = @transform_11, window_bounds = array<i64: 192, 32>}, {pipeline_mode = #tpu.pipeline_mode<synchronous>, transform_indices = @transform_12, window_bounds = array<i64: 48, 192>}, {pipeline_mode = #tpu.pipeline_mode<synchronous>, transform_indices = @transform_13, window_bounds = array<i64: 48, 96>}, {pipeline_mode = #tpu.pipeline_mode<synchronous>, transform_indices = @transform_14, window_bounds = array<i64: 16, 48>}, {pipeline_mode = #tpu.pipeline_mode<synchronous>, transform_indices = @transform_15, window_bounds = array<i64: 96, 24>}, {pipeline_mode = #tpu.pipeline_mode<synchronous>, transform_indices = @transform_16, window_bounds = array<i64: 1, 24>}, {pipeline_mode = #tpu.pipeline_mode<synchronous>, transform_indices = @transform_17, window_bounds = array<i64: 2, 32, 96>}, {pipeline_mode = #tpu.pipeline_mode<synchronous>, transform_indices = @transform_18, window_bounds = array<i64: 2, 1, 96>}, {pipeline_mode = #tpu.pipeline_mode<synchronous>, transform_indices = @transform_19, window_bounds = array<i64: 2, 32, 32>}, {pipeline_mode = #tpu.pipeline_mode<synchronous>, transform_indices = @transform_20, window_bounds = array<i64: 2, 32, 32>}, {pipeline_mode = #tpu.pipeline_mode<synchronous>, transform_indices = @transform_21, window_bounds = array<i64: 2, 1, 32>}, {pipeline_mode = #tpu.pipeline_mode<synchronous>, transform_indices = @transform_22, window_bounds = array<i64: 2, 32, 32>}, {pipeline_mode = #tpu.pipeline_mode<synchronous>, transform_indices = @transform_23, window_bounds = array<i64: 2, 6, 32>}, {pipeline_mode = #tpu.pipeline_mode<synchronous>, transform_indices = @transform_24, window_bounds = array<i64: 1, 32, 96>}, {pipeline_mode = #tpu.pipeline_mode<synchronous>, transform_indices = @transform_25, window_bounds = array<i64: 1, 1, 96>}, {pipeline_mode = #tpu.pipeline_mode<synchronous>, transform_indices = @transform_26, window_bounds = array<i64: 1, 32, 32>}, {pipeline_mode = #tpu.pipeline_mode<synchronous>, transform_indices = @transform_27, window_bounds = array<i64: 1, 32, 32>}, {pipeline_mode = #tpu.pipeline_mode<synchronous>, transform_indices = @transform_28, window_bounds = array<i64: 1, 32, 64>}, {pipeline_mode = #tpu.pipeline_mode<synchronous>, transform_indices = @transform_29, window_bounds = array<i64: 1, 1, 64>}, {pipeline_mode = #tpu.pipeline_mode<synchronous>, transform_indices = @transform_30, window_bounds = array<i64: 1, 32, 32>}, {pipeline_mode = #tpu.pipeline_mode<synchronous>, transform_indices = @transform_31, window_bounds = array<i64: 1, 32, 32>}, {pipeline_mode = #tpu.pipeline_mode<synchronous>, transform_indices = @transform_32, window_bounds = array<i64: 1, 1, 32>}, {pipeline_mode = #tpu.pipeline_mode<synchronous>, transform_indices = @transform_33, window_bounds = array<i64: 1, 32, 32>}, {pipeline_mode = #tpu.pipeline_mode<synchronous>, transform_indices = @transform_34, window_bounds = array<i64: 1, 10, 32>}, {pipeline_mode = #tpu.pipeline_mode<synchronous>, transform_indices = @transform_35, window_bounds = array<i64: 4, 32>}, {transform_indices = @transform_36, window_bounds = array<i64: 16, 24>}]} {
    %c0 = arith.constant 0 : index
    %c0_0 = arith.constant 0 : index
    %0 = vector.load %arg1[%c0, %c0_0] : memref<48x8xf32, #tpu.memory_space<vmem>>, vector<48x8xf32>
    %c0_1 = arith.constant 0 : index
    %c0_2 = arith.constant 0 : index
    %1 = vector.load %arg2[%c0_1, %c0_2] : memref<48x4xf32, #tpu.memory_space<vmem>>, vector<48x4xf32>
    %c0_3 = arith.constant 0 : index
    %c0_4 = arith.constant 0 : index
    %c0_5 = arith.constant 0 : index
    %2 = vector.load %arg8[%c0_3, %c0_4, %c0_5] : memref<2x29x32xf32, #tpu.memory_space<vmem>>, vector<1x29x32xf32>
    %3 = vector.shape_cast %2 : vector<1x29x32xf32> to vector<29x32xf32>
    %c0_6 = arith.constant 0 : index
    %c0_7 = arith.constant 0 : index
    %4 = vector.load %arg7[%c0_6, %c0_7] : memref<96x32xf32, #tpu.memory_space<vmem>>, vector<48x32xf32>
    %5 = vector.extract_strided_slice %3 {offsets = [0, 0], sizes = [8, 32], strides = [1, 1]} : vector<29x32xf32> to vector<8x32xf32>
    %6 = vector.extract_strided_slice %3 {offsets = [8, 0], sizes = [8, 32], strides = [1, 1]} : vector<29x32xf32> to vector<8x32xf32>
    %7 = vector.extract_strided_slice %3 {offsets = [16, 0], sizes = [8, 32], strides = [1, 1]} : vector<29x32xf32> to vector<8x32xf32>
    %8 = vector.extract_strided_slice %3 {offsets = [24, 0], sizes = [4, 32], strides = [1, 1]} : vector<29x32xf32> to vector<4x32xf32>
    %9 = vector.extract_strided_slice %3 {offsets = [28, 0], sizes = [1, 32], strides = [1, 1]} : vector<29x32xf32> to vector<1x32xf32>
    %cst = arith.constant dense<0.000000e+00> : vector<48x32xf32>
    %10 = tpu.matmul %0, %6, %cst {dimension_numbers = #tpu.dot_dimension_numbers<[1], [0], [0], [1], [0, 0, 1, 1], [], []>} : vector<48x8xf32>, vector<8x32xf32>, vector<48x32xf32> -> vector<48x32xf32>
    %cst_8 = arith.constant dense<0.000000e+00> : vector<48x32xf32>
    %11 = tpu.matmul %1, %8, %cst_8 {dimension_numbers = #tpu.dot_dimension_numbers<[1], [0], [0], [1], [0, 0, 1, 1], [], []>} : vector<48x4xf32>, vector<4x32xf32>, vector<48x32xf32> -> vector<48x32xf32>
    %12 = arith.addf %10, %11 : vector<48x32xf32>
    %13 = vector.broadcast %9 : vector<1x32xf32> to vector<48x32xf32>
    %14 = arith.addf %12, %13 : vector<48x32xf32>
    %15 = arith.addf %14, %4 : vector<48x32xf32>
    %c0_9 = arith.constant 0 : index
    %c0_10 = arith.constant 0 : index
    %c0_11 = arith.constant 0 : index
    %16 = vector.load %arg5[%c0_9, %c0_10, %c0_11] : memref<2x48x48xf32, #tpu.memory_space<vmem>>, vector<1x48x48xf32>
    %17 = vector.shape_cast %16 : vector<1x48x48xf32> to vector<48x48xf32>
    %cst_12 = arith.constant dense<0.000000e+00> : vector<48x32xf32>
    %18 = tpu.matmul %0, %5, %cst_12 {dimension_numbers = #tpu.dot_dimension_numbers<[1], [0], [0], [1], [0, 0, 1, 1], [], []>} : vector<48x8xf32>, vector<8x32xf32>, vector<48x32xf32> -> vector<48x32xf32>
    %cst_13 = arith.constant dense<0.000000e+00> : vector<48x32xf32>
    %19 = tpu.matmul %17, %18, %cst_13 {dimension_numbers = #tpu.dot_dimension_numbers<[1], [0], [0], [1], [0, 0, 1, 1], [], []>} : vector<48x48xf32>, vector<48x32xf32>, vector<48x32xf32> -> vector<48x32xf32>
    %20 = arith.addf %15, %19 : vector<48x32xf32>
    %c1 = arith.constant 1 : index
    %c0_14 = arith.constant 0 : index
    %c0_15 = arith.constant 0 : index
    %21 = vector.load %arg5[%c1, %c0_14, %c0_15] : memref<2x48x48xf32, #tpu.memory_space<vmem>>, vector<1x48x48xf32>
    %22 = vector.shape_cast %21 : vector<1x48x48xf32> to vector<48x48xf32>
    %cst_16 = arith.constant dense<0.000000e+00> : vector<48x32xf32>
    %23 = tpu.matmul %0, %7, %cst_16 {dimension_numbers = #tpu.dot_dimension_numbers<[1], [0], [0], [1], [0, 0, 1, 1], [], []>} : vector<48x8xf32>, vector<8x32xf32>, vector<48x32xf32> -> vector<48x32xf32>
    %cst_17 = arith.constant dense<0.000000e+00> : vector<48x32xf32>
    %24 = tpu.matmul %22, %23, %cst_17 {dimension_numbers = #tpu.dot_dimension_numbers<[1], [0], [0], [1], [0, 0, 1, 1], [], []>} : vector<48x48xf32>, vector<48x32xf32>, vector<48x32xf32> -> vector<48x32xf32>
    %25 = arith.addf %20, %24 : vector<48x32xf32>
    %c0_18 = arith.constant 0 : index
    %c0_19 = arith.constant 0 : index
    %26 = vector.load %arg9[%c0_18, %c0_19] : memref<48x48xf32, #tpu.memory_space<vmem>>, vector<48x48xf32>
    %c0_20 = arith.constant 0 : index
    %c0_21 = arith.constant 0 : index
    %c0_22 = arith.constant 0 : index
    %27 = vector.load %arg24[%c0_20, %c0_21, %c0_22] : memref<2x6x32xf32, #tpu.memory_space<vmem>>, vector<1x6x32xf32>
    %28 = vector.shape_cast %27 : vector<1x6x32xf32> to vector<6x32xf32>
    %c0_23 = arith.constant 0 : index
    %c0_24 = arith.constant 0 : index
    %c0_25 = arith.constant 0 : index
    %29 = vector.load %arg18[%c0_23, %c0_24, %c0_25] : memref<2x32x96xf32, #tpu.memory_space<vmem>>, vector<1x32x96xf32>
    %30 = vector.shape_cast %29 : vector<1x32x96xf32> to vector<32x96xf32>
    %cst_26 = arith.constant dense<0.000000e+00> : vector<48x96xf32>
    %31 = tpu.matmul %25, %30, %cst_26 {dimension_numbers = #tpu.dot_dimension_numbers<[1], [0], [0], [1], [0, 0, 1, 1], [], []>} : vector<48x32xf32>, vector<32x96xf32>, vector<48x96xf32> -> vector<48x96xf32>
    %c0_27 = arith.constant 0 : index
    %c0_28 = arith.constant 0 : index
    %c0_29 = arith.constant 0 : index
    %32 = vector.load %arg19[%c0_27, %c0_28, %c0_29] : memref<2x1x96xf32, #tpu.memory_space<vmem>>, vector<1x1x96xf32>
    %33 = vector.shape_cast %32 : vector<1x1x96xf32> to vector<1x96xf32>
    %34 = vector.broadcast %33 : vector<1x96xf32> to vector<48x96xf32>
    %35 = arith.addf %31, %34 : vector<48x96xf32>
    %36 = vector.extract_strided_slice %35 {offsets = [0, 0], sizes = [48, 32], strides = [1, 1]} : vector<48x96xf32> to vector<48x32xf32>
    %37 = vector.extract_strided_slice %35 {offsets = [0, 32], sizes = [48, 32], strides = [1, 1]} : vector<48x96xf32> to vector<48x32xf32>
    %38 = vector.extract_strided_slice %35 {offsets = [0, 64], sizes = [48, 32], strides = [1, 1]} : vector<48x96xf32> to vector<48x32xf32>
    %39 = vector.extract_strided_slice %36 {offsets = [0, 0], sizes = [48, 8], strides = [1, 1]} : vector<48x32xf32> to vector<48x8xf32>
    %40 = vector.extract_strided_slice %37 {offsets = [0, 0], sizes = [48, 8], strides = [1, 1]} : vector<48x32xf32> to vector<48x8xf32>
    %cst_30 = arith.constant dense<0.000000e+00> : vector<48x48xf32>
    %41 = tpu.matmul %39, %40, %cst_30 {dimension_numbers = #tpu.dot_dimension_numbers<[1], [1], [0], [0], [0, 0, 1, 0], [], []>} : vector<48x8xf32>, vector<48x8xf32>, vector<48x48xf32> -> vector<48x48xf32>
    %cst_31 = arith.constant 0.353553385 : f32
    %42 = vector.broadcast %cst_31 : f32 to vector<48x48xf32>
    %43 = arith.mulf %41, %42 : vector<48x48xf32>
    %44 = arith.addf %43, %26 : vector<48x48xf32>
    %cst_32 = arith.constant dense<0xFF800000> : vector<48xf32>
    %45 = vector.multi_reduction <maximumf>, %44, %cst_32 [1] : vector<48x48xf32> to vector<48xf32>
    %46 = vector.shape_cast %45 : vector<48xf32> to vector<48x1xf32>
    %47 = vector.broadcast %46 : vector<48x1xf32> to vector<48x48xf32>
    %48 = arith.subf %44, %47 : vector<48x48xf32>
    %49 = math.exp %48 : vector<48x48xf32>
    %cst_33 = arith.constant dense<0.000000e+00> : vector<48xf32>
    %50 = vector.multi_reduction <add>, %49, %cst_33 [1] : vector<48x48xf32> to vector<48xf32>
    %51 = vector.shape_cast %50 : vector<48xf32> to vector<48x1xf32>
    %52 = tpu.reciprocal %51 {approx = true} : vector<48x1xf32> -> vector<48x1xf32>
    %53 = vector.broadcast %52 : vector<48x1xf32> to vector<48x48xf32>
    %54 = arith.mulf %49, %53 : vector<48x48xf32>
    %55 = vector.extract_strided_slice %38 {offsets = [0, 0], sizes = [48, 8], strides = [1, 1]} : vector<48x32xf32> to vector<48x8xf32>
    %cst_34 = arith.constant dense<0.000000e+00> : vector<48x8xf32>
    %56 = tpu.matmul %54, %55, %cst_34 {dimension_numbers = #tpu.dot_dimension_numbers<[1], [0], [0], [1], [0, 0, 1, 1], [], []>} : vector<48x48xf32>, vector<48x8xf32>, vector<48x8xf32> -> vector<48x8xf32>
    %57 = vector.extract_strided_slice %36 {offsets = [0, 8], sizes = [48, 8], strides = [1, 1]} : vector<48x32xf32> to vector<48x8xf32>
    %58 = vector.extract_strided_slice %37 {offsets = [0, 8], sizes = [48, 8], strides = [1, 1]} : vector<48x32xf32> to vector<48x8xf32>
    %cst_35 = arith.constant dense<0.000000e+00> : vector<48x48xf32>
    %59 = tpu.matmul %57, %58, %cst_35 {dimension_numbers = #tpu.dot_dimension_numbers<[1], [1], [0], [0], [0, 0, 1, 0], [], []>} : vector<48x8xf32>, vector<48x8xf32>, vector<48x48xf32> -> vector<48x48xf32>
    %cst_36 = arith.constant 0.353553385 : f32
    %60 = vector.broadcast %cst_36 : f32 to vector<48x48xf32>
    %61 = arith.mulf %59, %60 : vector<48x48xf32>
    %62 = arith.addf %61, %26 : vector<48x48xf32>
    %cst_37 = arith.constant dense<0xFF800000> : vector<48xf32>
    %63 = vector.multi_reduction <maximumf>, %62, %cst_37 [1] : vector<48x48xf32> to vector<48xf32>
    %64 = vector.shape_cast %63 : vector<48xf32> to vector<48x1xf32>
    %65 = vector.broadcast %64 : vector<48x1xf32> to vector<48x48xf32>
    %66 = arith.subf %62, %65 : vector<48x48xf32>
    %67 = math.exp %66 : vector<48x48xf32>
    %cst_38 = arith.constant dense<0.000000e+00> : vector<48xf32>
    %68 = vector.multi_reduction <add>, %67, %cst_38 [1] : vector<48x48xf32> to vector<48xf32>
    %69 = vector.shape_cast %68 : vector<48xf32> to vector<48x1xf32>
    %70 = tpu.reciprocal %69 {approx = true} : vector<48x1xf32> -> vector<48x1xf32>
    %71 = vector.broadcast %70 : vector<48x1xf32> to vector<48x48xf32>
    %72 = arith.mulf %67, %71 : vector<48x48xf32>
    %73 = vector.extract_strided_slice %38 {offsets = [0, 8], sizes = [48, 8], strides = [1, 1]} : vector<48x32xf32> to vector<48x8xf32>
    %cst_39 = arith.constant dense<0.000000e+00> : vector<48x8xf32>
    %74 = tpu.matmul %72, %73, %cst_39 {dimension_numbers = #tpu.dot_dimension_numbers<[1], [0], [0], [1], [0, 0, 1, 1], [], []>} : vector<48x48xf32>, vector<48x8xf32>, vector<48x8xf32> -> vector<48x8xf32>
    %75 = vector.extract_strided_slice %36 {offsets = [0, 16], sizes = [48, 8], strides = [1, 1]} : vector<48x32xf32> to vector<48x8xf32>
    %76 = vector.extract_strided_slice %37 {offsets = [0, 16], sizes = [48, 8], strides = [1, 1]} : vector<48x32xf32> to vector<48x8xf32>
    %cst_40 = arith.constant dense<0.000000e+00> : vector<48x48xf32>
    %77 = tpu.matmul %75, %76, %cst_40 {dimension_numbers = #tpu.dot_dimension_numbers<[1], [1], [0], [0], [0, 0, 1, 0], [], []>} : vector<48x8xf32>, vector<48x8xf32>, vector<48x48xf32> -> vector<48x48xf32>
    %cst_41 = arith.constant 0.353553385 : f32
    %78 = vector.broadcast %cst_41 : f32 to vector<48x48xf32>
    %79 = arith.mulf %77, %78 : vector<48x48xf32>
    %80 = arith.addf %79, %26 : vector<48x48xf32>
    %cst_42 = arith.constant dense<0xFF800000> : vector<48xf32>
    %81 = vector.multi_reduction <maximumf>, %80, %cst_42 [1] : vector<48x48xf32> to vector<48xf32>
    %82 = vector.shape_cast %81 : vector<48xf32> to vector<48x1xf32>
    %83 = vector.broadcast %82 : vector<48x1xf32> to vector<48x48xf32>
    %84 = arith.subf %80, %83 : vector<48x48xf32>
    %85 = math.exp %84 : vector<48x48xf32>
    %cst_43 = arith.constant dense<0.000000e+00> : vector<48xf32>
    %86 = vector.multi_reduction <add>, %85, %cst_43 [1] : vector<48x48xf32> to vector<48xf32>
    %87 = vector.shape_cast %86 : vector<48xf32> to vector<48x1xf32>
    %88 = tpu.reciprocal %87 {approx = true} : vector<48x1xf32> -> vector<48x1xf32>
    %89 = vector.broadcast %88 : vector<48x1xf32> to vector<48x48xf32>
    %90 = arith.mulf %85, %89 : vector<48x48xf32>
    %91 = vector.extract_strided_slice %38 {offsets = [0, 16], sizes = [48, 8], strides = [1, 1]} : vector<48x32xf32> to vector<48x8xf32>
    %cst_44 = arith.constant dense<0.000000e+00> : vector<48x8xf32>
    %92 = tpu.matmul %90, %91, %cst_44 {dimension_numbers = #tpu.dot_dimension_numbers<[1], [0], [0], [1], [0, 0, 1, 1], [], []>} : vector<48x48xf32>, vector<48x8xf32>, vector<48x8xf32> -> vector<48x8xf32>
    %93 = vector.extract_strided_slice %36 {offsets = [0, 24], sizes = [48, 8], strides = [1, 1]} : vector<48x32xf32> to vector<48x8xf32>
    %94 = vector.extract_strided_slice %37 {offsets = [0, 24], sizes = [48, 8], strides = [1, 1]} : vector<48x32xf32> to vector<48x8xf32>
    %cst_45 = arith.constant dense<0.000000e+00> : vector<48x48xf32>
    %95 = tpu.matmul %93, %94, %cst_45 {dimension_numbers = #tpu.dot_dimension_numbers<[1], [1], [0], [0], [0, 0, 1, 0], [], []>} : vector<48x8xf32>, vector<48x8xf32>, vector<48x48xf32> -> vector<48x48xf32>
    %cst_46 = arith.constant 0.353553385 : f32
    %96 = vector.broadcast %cst_46 : f32 to vector<48x48xf32>
    %97 = arith.mulf %95, %96 : vector<48x48xf32>
    %98 = arith.addf %97, %26 : vector<48x48xf32>
    %cst_47 = arith.constant dense<0xFF800000> : vector<48xf32>
    %99 = vector.multi_reduction <maximumf>, %98, %cst_47 [1] : vector<48x48xf32> to vector<48xf32>
    %100 = vector.shape_cast %99 : vector<48xf32> to vector<48x1xf32>
    %101 = vector.broadcast %100 : vector<48x1xf32> to vector<48x48xf32>
    %102 = arith.subf %98, %101 : vector<48x48xf32>
    %103 = math.exp %102 : vector<48x48xf32>
    %cst_48 = arith.constant dense<0.000000e+00> : vector<48xf32>
    %104 = vector.multi_reduction <add>, %103, %cst_48 [1] : vector<48x48xf32> to vector<48xf32>
    %105 = vector.shape_cast %104 : vector<48xf32> to vector<48x1xf32>
    %106 = tpu.reciprocal %105 {approx = true} : vector<48x1xf32> -> vector<48x1xf32>
    %107 = vector.broadcast %106 : vector<48x1xf32> to vector<48x48xf32>
    %108 = arith.mulf %103, %107 : vector<48x48xf32>
    %109 = vector.extract_strided_slice %38 {offsets = [0, 24], sizes = [48, 8], strides = [1, 1]} : vector<48x32xf32> to vector<48x8xf32>
    %cst_49 = arith.constant dense<0.000000e+00> : vector<48x8xf32>
    %110 = tpu.matmul %108, %109, %cst_49 {dimension_numbers = #tpu.dot_dimension_numbers<[1], [0], [0], [1], [0, 0, 1, 1], [], []>} : vector<48x48xf32>, vector<48x8xf32>, vector<48x8xf32> -> vector<48x8xf32>
    %111 = tpu.concatenate %56, %74, %92, %110 in 1 : vector<48x8xf32>, vector<48x8xf32>, vector<48x8xf32>, vector<48x8xf32> -> vector<48x32xf32>
    %c0_50 = arith.constant 0 : index
    %c0_51 = arith.constant 0 : index
    %c0_52 = arith.constant 0 : index
    %112 = vector.load %arg20[%c0_50, %c0_51, %c0_52] : memref<2x32x32xf32, #tpu.memory_space<vmem>>, vector<1x32x32xf32>
    %113 = vector.shape_cast %112 : vector<1x32x32xf32> to vector<32x32xf32>
    %cst_53 = arith.constant dense<0.000000e+00> : vector<48x32xf32>
    %114 = tpu.matmul %111, %113, %cst_53 {dimension_numbers = #tpu.dot_dimension_numbers<[1], [0], [0], [1], [0, 0, 1, 1], [], []>} : vector<48x32xf32>, vector<32x32xf32>, vector<48x32xf32> -> vector<48x32xf32>
    %115 = vector.extract_strided_slice %28 {offsets = [0, 0], sizes = [1, 32], strides = [1, 1]} : vector<6x32xf32> to vector<1x32xf32>
    %116 = vector.broadcast %115 : vector<1x32xf32> to vector<48x32xf32>
    %117 = arith.addf %114, %116 : vector<48x32xf32>
    %118 = arith.addf %25, %117 : vector<48x32xf32>
    %119 = vector.extract_strided_slice %28 {offsets = [2, 0], sizes = [1, 32], strides = [1, 1]} : vector<6x32xf32> to vector<1x32xf32>
    %120 = vector.extract_strided_slice %28 {offsets = [3, 0], sizes = [1, 32], strides = [1, 1]} : vector<6x32xf32> to vector<1x32xf32>
    %cst_54 = arith.constant dense<0.000000e+00> : vector<48xf32>
    %121 = vector.multi_reduction <add>, %118, %cst_54 [1] : vector<48x32xf32> to vector<48xf32>
    %122 = vector.shape_cast %121 : vector<48xf32> to vector<48x1xf32>
    %cst_55 = arith.constant 3.200000e+01 : f32
    %123 = vector.broadcast %cst_55 : f32 to vector<48x1xf32>
    %124 = arith.divf %122, %123 : vector<48x1xf32>
    %125 = vector.broadcast %124 : vector<48x1xf32> to vector<48x32xf32>
    %126 = arith.subf %118, %125 : vector<48x32xf32>
    %127 = arith.mulf %126, %126 : vector<48x32xf32>
    %cst_56 = arith.constant dense<0.000000e+00> : vector<48xf32>
    %128 = vector.multi_reduction <add>, %127, %cst_56 [1] : vector<48x32xf32> to vector<48xf32>
    %129 = vector.shape_cast %128 : vector<48xf32> to vector<48x1xf32>
    %cst_57 = arith.constant 3.200000e+01 : f32
    %130 = vector.broadcast %cst_57 : f32 to vector<48x1xf32>
    %131 = arith.divf %129, %130 : vector<48x1xf32>
    %cst_58 = arith.constant 9.99999974E-6 : f32
    %132 = vector.broadcast %cst_58 : f32 to vector<48x1xf32>
    %133 = arith.addf %131, %132 : vector<48x1xf32>
    %134 = math.rsqrt %133 : vector<48x1xf32>
    %135 = vector.broadcast %134 : vector<48x1xf32> to vector<48x32xf32>
    %136 = arith.mulf %126, %135 : vector<48x32xf32>
    %137 = vector.broadcast %119 : vector<1x32xf32> to vector<48x32xf32>
    %138 = arith.mulf %136, %137 : vector<48x32xf32>
    %139 = vector.broadcast %120 : vector<1x32xf32> to vector<48x32xf32>
    %140 = arith.addf %138, %139 : vector<48x32xf32>
    %c0_59 = arith.constant 0 : index
    %c0_60 = arith.constant 0 : index
    %c0_61 = arith.constant 0 : index
    %141 = vector.load %arg21[%c0_59, %c0_60, %c0_61] : memref<2x32x32xf32, #tpu.memory_space<vmem>>, vector<1x32x32xf32>
    %142 = vector.shape_cast %141 : vector<1x32x32xf32> to vector<32x32xf32>
    %cst_62 = arith.constant dense<0.000000e+00> : vector<48x32xf32>
    %143 = tpu.matmul %140, %142, %cst_62 {dimension_numbers = #tpu.dot_dimension_numbers<[1], [0], [0], [1], [0, 0, 1, 1], [], []>} : vector<48x32xf32>, vector<32x32xf32>, vector<48x32xf32> -> vector<48x32xf32>
    %c0_63 = arith.constant 0 : index
    %c0_64 = arith.constant 0 : index
    %c0_65 = arith.constant 0 : index
    %144 = vector.load %arg22[%c0_63, %c0_64, %c0_65] : memref<2x1x32xf32, #tpu.memory_space<vmem>>, vector<1x1x32xf32>
    %145 = vector.shape_cast %144 : vector<1x1x32xf32> to vector<1x32xf32>
    %146 = vector.broadcast %145 : vector<1x32xf32> to vector<48x32xf32>
    %147 = arith.addf %143, %146 : vector<48x32xf32>
    %cst_66 = arith.constant 5.000000e-01 : f32
    %148 = vector.broadcast %cst_66 : f32 to vector<48x32xf32>
    %149 = arith.mulf %148, %147 : vector<48x32xf32>
    %cst_67 = arith.constant 0.707106769 : f32
    %150 = vector.broadcast %cst_67 : f32 to vector<48x32xf32>
    %151 = arith.mulf %147, %150 : vector<48x32xf32>
    %152 = math.erf %151 : vector<48x32xf32>
    %cst_68 = arith.constant 1.000000e+00 : f32
    %153 = vector.broadcast %cst_68 : f32 to vector<48x32xf32>
    %154 = arith.addf %153, %152 : vector<48x32xf32>
    %155 = arith.mulf %149, %154 : vector<48x32xf32>
    %c0_69 = arith.constant 0 : index
    %c0_70 = arith.constant 0 : index
    %c0_71 = arith.constant 0 : index
    %156 = vector.load %arg23[%c0_69, %c0_70, %c0_71] : memref<2x32x32xf32, #tpu.memory_space<vmem>>, vector<1x32x32xf32>
    %157 = vector.shape_cast %156 : vector<1x32x32xf32> to vector<32x32xf32>
    %cst_72 = arith.constant dense<0.000000e+00> : vector<48x32xf32>
    %158 = tpu.matmul %155, %157, %cst_72 {dimension_numbers = #tpu.dot_dimension_numbers<[1], [0], [0], [1], [0, 0, 1, 1], [], []>} : vector<48x32xf32>, vector<32x32xf32>, vector<48x32xf32> -> vector<48x32xf32>
    %159 = vector.extract_strided_slice %28 {offsets = [1, 0], sizes = [1, 32], strides = [1, 1]} : vector<6x32xf32> to vector<1x32xf32>
    %160 = vector.broadcast %159 : vector<1x32xf32> to vector<48x32xf32>
    %161 = arith.addf %158, %160 : vector<48x32xf32>
    %162 = arith.addf %140, %161 : vector<48x32xf32>
    %163 = vector.extract_strided_slice %28 {offsets = [4, 0], sizes = [1, 32], strides = [1, 1]} : vector<6x32xf32> to vector<1x32xf32>
    %164 = vector.extract_strided_slice %28 {offsets = [5, 0], sizes = [1, 32], strides = [1, 1]} : vector<6x32xf32> to vector<1x32xf32>
    %cst_73 = arith.constant dense<0.000000e+00> : vector<48xf32>
    %165 = vector.multi_reduction <add>, %162, %cst_73 [1] : vector<48x32xf32> to vector<48xf32>
    %166 = vector.shape_cast %165 : vector<48xf32> to vector<48x1xf32>
    %cst_74 = arith.constant 3.200000e+01 : f32
    %167 = vector.broadcast %cst_74 : f32 to vector<48x1xf32>
    %168 = arith.divf %166, %167 : vector<48x1xf32>
    %169 = vector.broadcast %168 : vector<48x1xf32> to vector<48x32xf32>
    %170 = arith.subf %162, %169 : vector<48x32xf32>
    %171 = arith.mulf %170, %170 : vector<48x32xf32>
    %cst_75 = arith.constant dense<0.000000e+00> : vector<48xf32>
    %172 = vector.multi_reduction <add>, %171, %cst_75 [1] : vector<48x32xf32> to vector<48xf32>
    %173 = vector.shape_cast %172 : vector<48xf32> to vector<48x1xf32>
    %cst_76 = arith.constant 3.200000e+01 : f32
    %174 = vector.broadcast %cst_76 : f32 to vector<48x1xf32>
    %175 = arith.divf %173, %174 : vector<48x1xf32>
    %cst_77 = arith.constant 9.99999974E-6 : f32
    %176 = vector.broadcast %cst_77 : f32 to vector<48x1xf32>
    %177 = arith.addf %175, %176 : vector<48x1xf32>
    %178 = math.rsqrt %177 : vector<48x1xf32>
    %179 = vector.broadcast %178 : vector<48x1xf32> to vector<48x32xf32>
    %180 = arith.mulf %170, %179 : vector<48x32xf32>
    %181 = vector.broadcast %163 : vector<1x32xf32> to vector<48x32xf32>
    %182 = arith.mulf %180, %181 : vector<48x32xf32>
    %183 = vector.broadcast %164 : vector<1x32xf32> to vector<48x32xf32>
    %184 = arith.addf %182, %183 : vector<48x32xf32>
    %c1_78 = arith.constant 1 : index
    %c0_79 = arith.constant 0 : index
    %c0_80 = arith.constant 0 : index
    %185 = vector.load %arg24[%c1_78, %c0_79, %c0_80] : memref<2x6x32xf32, #tpu.memory_space<vmem>>, vector<1x6x32xf32>
    %186 = vector.shape_cast %185 : vector<1x6x32xf32> to vector<6x32xf32>
    %c1_81 = arith.constant 1 : index
    %c0_82 = arith.constant 0 : index
    %c0_83 = arith.constant 0 : index
    %187 = vector.load %arg18[%c1_81, %c0_82, %c0_83] : memref<2x32x96xf32, #tpu.memory_space<vmem>>, vector<1x32x96xf32>
    %188 = vector.shape_cast %187 : vector<1x32x96xf32> to vector<32x96xf32>
    %cst_84 = arith.constant dense<0.000000e+00> : vector<48x96xf32>
    %189 = tpu.matmul %184, %188, %cst_84 {dimension_numbers = #tpu.dot_dimension_numbers<[1], [0], [0], [1], [0, 0, 1, 1], [], []>} : vector<48x32xf32>, vector<32x96xf32>, vector<48x96xf32> -> vector<48x96xf32>
    %c1_85 = arith.constant 1 : index
    %c0_86 = arith.constant 0 : index
    %c0_87 = arith.constant 0 : index
    %190 = vector.load %arg19[%c1_85, %c0_86, %c0_87] : memref<2x1x96xf32, #tpu.memory_space<vmem>>, vector<1x1x96xf32>
    %191 = vector.shape_cast %190 : vector<1x1x96xf32> to vector<1x96xf32>
    %192 = vector.broadcast %191 : vector<1x96xf32> to vector<48x96xf32>
    %193 = arith.addf %189, %192 : vector<48x96xf32>
    %194 = vector.extract_strided_slice %193 {offsets = [0, 0], sizes = [48, 32], strides = [1, 1]} : vector<48x96xf32> to vector<48x32xf32>
    %195 = vector.extract_strided_slice %193 {offsets = [0, 32], sizes = [48, 32], strides = [1, 1]} : vector<48x96xf32> to vector<48x32xf32>
    %196 = vector.extract_strided_slice %193 {offsets = [0, 64], sizes = [48, 32], strides = [1, 1]} : vector<48x96xf32> to vector<48x32xf32>
    %197 = vector.extract_strided_slice %194 {offsets = [0, 0], sizes = [48, 8], strides = [1, 1]} : vector<48x32xf32> to vector<48x8xf32>
    %198 = vector.extract_strided_slice %195 {offsets = [0, 0], sizes = [48, 8], strides = [1, 1]} : vector<48x32xf32> to vector<48x8xf32>
    %cst_88 = arith.constant dense<0.000000e+00> : vector<48x48xf32>
    %199 = tpu.matmul %197, %198, %cst_88 {dimension_numbers = #tpu.dot_dimension_numbers<[1], [1], [0], [0], [0, 0, 1, 0], [], []>} : vector<48x8xf32>, vector<48x8xf32>, vector<48x48xf32> -> vector<48x48xf32>
    %cst_89 = arith.constant 0.353553385 : f32
    %200 = vector.broadcast %cst_89 : f32 to vector<48x48xf32>
    %201 = arith.mulf %199, %200 : vector<48x48xf32>
    %202 = arith.addf %201, %26 : vector<48x48xf32>
    %cst_90 = arith.constant dense<0xFF800000> : vector<48xf32>
    %203 = vector.multi_reduction <maximumf>, %202, %cst_90 [1] : vector<48x48xf32> to vector<48xf32>
    %204 = vector.shape_cast %203 : vector<48xf32> to vector<48x1xf32>
    %205 = vector.broadcast %204 : vector<48x1xf32> to vector<48x48xf32>
    %206 = arith.subf %202, %205 : vector<48x48xf32>
    %207 = math.exp %206 : vector<48x48xf32>
    %cst_91 = arith.constant dense<0.000000e+00> : vector<48xf32>
    %208 = vector.multi_reduction <add>, %207, %cst_91 [1] : vector<48x48xf32> to vector<48xf32>
    %209 = vector.shape_cast %208 : vector<48xf32> to vector<48x1xf32>
    %210 = tpu.reciprocal %209 {approx = true} : vector<48x1xf32> -> vector<48x1xf32>
    %211 = vector.broadcast %210 : vector<48x1xf32> to vector<48x48xf32>
    %212 = arith.mulf %207, %211 : vector<48x48xf32>
    %213 = vector.extract_strided_slice %196 {offsets = [0, 0], sizes = [48, 8], strides = [1, 1]} : vector<48x32xf32> to vector<48x8xf32>
    %cst_92 = arith.constant dense<0.000000e+00> : vector<48x8xf32>
    %214 = tpu.matmul %212, %213, %cst_92 {dimension_numbers = #tpu.dot_dimension_numbers<[1], [0], [0], [1], [0, 0, 1, 1], [], []>} : vector<48x48xf32>, vector<48x8xf32>, vector<48x8xf32> -> vector<48x8xf32>
    %215 = vector.extract_strided_slice %194 {offsets = [0, 8], sizes = [48, 8], strides = [1, 1]} : vector<48x32xf32> to vector<48x8xf32>
    %216 = vector.extract_strided_slice %195 {offsets = [0, 8], sizes = [48, 8], strides = [1, 1]} : vector<48x32xf32> to vector<48x8xf32>
    %cst_93 = arith.constant dense<0.000000e+00> : vector<48x48xf32>
    %217 = tpu.matmul %215, %216, %cst_93 {dimension_numbers = #tpu.dot_dimension_numbers<[1], [1], [0], [0], [0, 0, 1, 0], [], []>} : vector<48x8xf32>, vector<48x8xf32>, vector<48x48xf32> -> vector<48x48xf32>
    %cst_94 = arith.constant 0.353553385 : f32
    %218 = vector.broadcast %cst_94 : f32 to vector<48x48xf32>
    %219 = arith.mulf %217, %218 : vector<48x48xf32>
    %220 = arith.addf %219, %26 : vector<48x48xf32>
    %cst_95 = arith.constant dense<0xFF800000> : vector<48xf32>
    %221 = vector.multi_reduction <maximumf>, %220, %cst_95 [1] : vector<48x48xf32> to vector<48xf32>
    %222 = vector.shape_cast %221 : vector<48xf32> to vector<48x1xf32>
    %223 = vector.broadcast %222 : vector<48x1xf32> to vector<48x48xf32>
    %224 = arith.subf %220, %223 : vector<48x48xf32>
    %225 = math.exp %224 : vector<48x48xf32>
    %cst_96 = arith.constant dense<0.000000e+00> : vector<48xf32>
    %226 = vector.multi_reduction <add>, %225, %cst_96 [1] : vector<48x48xf32> to vector<48xf32>
    %227 = vector.shape_cast %226 : vector<48xf32> to vector<48x1xf32>
    %228 = tpu.reciprocal %227 {approx = true} : vector<48x1xf32> -> vector<48x1xf32>
    %229 = vector.broadcast %228 : vector<48x1xf32> to vector<48x48xf32>
    %230 = arith.mulf %225, %229 : vector<48x48xf32>
    %231 = vector.extract_strided_slice %196 {offsets = [0, 8], sizes = [48, 8], strides = [1, 1]} : vector<48x32xf32> to vector<48x8xf32>
    %cst_97 = arith.constant dense<0.000000e+00> : vector<48x8xf32>
    %232 = tpu.matmul %230, %231, %cst_97 {dimension_numbers = #tpu.dot_dimension_numbers<[1], [0], [0], [1], [0, 0, 1, 1], [], []>} : vector<48x48xf32>, vector<48x8xf32>, vector<48x8xf32> -> vector<48x8xf32>
    %233 = vector.extract_strided_slice %194 {offsets = [0, 16], sizes = [48, 8], strides = [1, 1]} : vector<48x32xf32> to vector<48x8xf32>
    %234 = vector.extract_strided_slice %195 {offsets = [0, 16], sizes = [48, 8], strides = [1, 1]} : vector<48x32xf32> to vector<48x8xf32>
    %cst_98 = arith.constant dense<0.000000e+00> : vector<48x48xf32>
    %235 = tpu.matmul %233, %234, %cst_98 {dimension_numbers = #tpu.dot_dimension_numbers<[1], [1], [0], [0], [0, 0, 1, 0], [], []>} : vector<48x8xf32>, vector<48x8xf32>, vector<48x48xf32> -> vector<48x48xf32>
    %cst_99 = arith.constant 0.353553385 : f32
    %236 = vector.broadcast %cst_99 : f32 to vector<48x48xf32>
    %237 = arith.mulf %235, %236 : vector<48x48xf32>
    %238 = arith.addf %237, %26 : vector<48x48xf32>
    %cst_100 = arith.constant dense<0xFF800000> : vector<48xf32>
    %239 = vector.multi_reduction <maximumf>, %238, %cst_100 [1] : vector<48x48xf32> to vector<48xf32>
    %240 = vector.shape_cast %239 : vector<48xf32> to vector<48x1xf32>
    %241 = vector.broadcast %240 : vector<48x1xf32> to vector<48x48xf32>
    %242 = arith.subf %238, %241 : vector<48x48xf32>
    %243 = math.exp %242 : vector<48x48xf32>
    %cst_101 = arith.constant dense<0.000000e+00> : vector<48xf32>
    %244 = vector.multi_reduction <add>, %243, %cst_101 [1] : vector<48x48xf32> to vector<48xf32>
    %245 = vector.shape_cast %244 : vector<48xf32> to vector<48x1xf32>
    %246 = tpu.reciprocal %245 {approx = true} : vector<48x1xf32> -> vector<48x1xf32>
    %247 = vector.broadcast %246 : vector<48x1xf32> to vector<48x48xf32>
    %248 = arith.mulf %243, %247 : vector<48x48xf32>
    %249 = vector.extract_strided_slice %196 {offsets = [0, 16], sizes = [48, 8], strides = [1, 1]} : vector<48x32xf32> to vector<48x8xf32>
    %cst_102 = arith.constant dense<0.000000e+00> : vector<48x8xf32>
    %250 = tpu.matmul %248, %249, %cst_102 {dimension_numbers = #tpu.dot_dimension_numbers<[1], [0], [0], [1], [0, 0, 1, 1], [], []>} : vector<48x48xf32>, vector<48x8xf32>, vector<48x8xf32> -> vector<48x8xf32>
    %251 = vector.extract_strided_slice %194 {offsets = [0, 24], sizes = [48, 8], strides = [1, 1]} : vector<48x32xf32> to vector<48x8xf32>
    %252 = vector.extract_strided_slice %195 {offsets = [0, 24], sizes = [48, 8], strides = [1, 1]} : vector<48x32xf32> to vector<48x8xf32>
    %cst_103 = arith.constant dense<0.000000e+00> : vector<48x48xf32>
    %253 = tpu.matmul %251, %252, %cst_103 {dimension_numbers = #tpu.dot_dimension_numbers<[1], [1], [0], [0], [0, 0, 1, 0], [], []>} : vector<48x8xf32>, vector<48x8xf32>, vector<48x48xf32> -> vector<48x48xf32>
    %cst_104 = arith.constant 0.353553385 : f32
    %254 = vector.broadcast %cst_104 : f32 to vector<48x48xf32>
    %255 = arith.mulf %253, %254 : vector<48x48xf32>
    %256 = arith.addf %255, %26 : vector<48x48xf32>
    %cst_105 = arith.constant dense<0xFF800000> : vector<48xf32>
    %257 = vector.multi_reduction <maximumf>, %256, %cst_105 [1] : vector<48x48xf32> to vector<48xf32>
    %258 = vector.shape_cast %257 : vector<48xf32> to vector<48x1xf32>
    %259 = vector.broadcast %258 : vector<48x1xf32> to vector<48x48xf32>
    %260 = arith.subf %256, %259 : vector<48x48xf32>
    %261 = math.exp %260 : vector<48x48xf32>
    %cst_106 = arith.constant dense<0.000000e+00> : vector<48xf32>
    %262 = vector.multi_reduction <add>, %261, %cst_106 [1] : vector<48x48xf32> to vector<48xf32>
    %263 = vector.shape_cast %262 : vector<48xf32> to vector<48x1xf32>
    %264 = tpu.reciprocal %263 {approx = true} : vector<48x1xf32> -> vector<48x1xf32>
    %265 = vector.broadcast %264 : vector<48x1xf32> to vector<48x48xf32>
    %266 = arith.mulf %261, %265 : vector<48x48xf32>
    %267 = vector.extract_strided_slice %196 {offsets = [0, 24], sizes = [48, 8], strides = [1, 1]} : vector<48x32xf32> to vector<48x8xf32>
    %cst_107 = arith.constant dense<0.000000e+00> : vector<48x8xf32>
    %268 = tpu.matmul %266, %267, %cst_107 {dimension_numbers = #tpu.dot_dimension_numbers<[1], [0], [0], [1], [0, 0, 1, 1], [], []>} : vector<48x48xf32>, vector<48x8xf32>, vector<48x8xf32> -> vector<48x8xf32>
    %269 = tpu.concatenate %214, %232, %250, %268 in 1 : vector<48x8xf32>, vector<48x8xf32>, vector<48x8xf32>, vector<48x8xf32> -> vector<48x32xf32>
    %c1_108 = arith.constant 1 : index
    %c0_109 = arith.constant 0 : index
    %c0_110 = arith.constant 0 : index
    %270 = vector.load %arg20[%c1_108, %c0_109, %c0_110] : memref<2x32x32xf32, #tpu.memory_space<vmem>>, vector<1x32x32xf32>
    %271 = vector.shape_cast %270 : vector<1x32x32xf32> to vector<32x32xf32>
    %cst_111 = arith.constant dense<0.000000e+00> : vector<48x32xf32>
    %272 = tpu.matmul %269, %271, %cst_111 {dimension_numbers = #tpu.dot_dimension_numbers<[1], [0], [0], [1], [0, 0, 1, 1], [], []>} : vector<48x32xf32>, vector<32x32xf32>, vector<48x32xf32> -> vector<48x32xf32>
    %273 = vector.extract_strided_slice %186 {offsets = [0, 0], sizes = [1, 32], strides = [1, 1]} : vector<6x32xf32> to vector<1x32xf32>
    %274 = vector.broadcast %273 : vector<1x32xf32> to vector<48x32xf32>
    %275 = arith.addf %272, %274 : vector<48x32xf32>
    %276 = arith.addf %184, %275 : vector<48x32xf32>
    %277 = vector.extract_strided_slice %186 {offsets = [2, 0], sizes = [1, 32], strides = [1, 1]} : vector<6x32xf32> to vector<1x32xf32>
    %278 = vector.extract_strided_slice %186 {offsets = [3, 0], sizes = [1, 32], strides = [1, 1]} : vector<6x32xf32> to vector<1x32xf32>
    %cst_112 = arith.constant dense<0.000000e+00> : vector<48xf32>
    %279 = vector.multi_reduction <add>, %276, %cst_112 [1] : vector<48x32xf32> to vector<48xf32>
    %280 = vector.shape_cast %279 : vector<48xf32> to vector<48x1xf32>
    %cst_113 = arith.constant 3.200000e+01 : f32
    %281 = vector.broadcast %cst_113 : f32 to vector<48x1xf32>
    %282 = arith.divf %280, %281 : vector<48x1xf32>
    %283 = vector.broadcast %282 : vector<48x1xf32> to vector<48x32xf32>
    %284 = arith.subf %276, %283 : vector<48x32xf32>
    %285 = arith.mulf %284, %284 : vector<48x32xf32>
    %cst_114 = arith.constant dense<0.000000e+00> : vector<48xf32>
    %286 = vector.multi_reduction <add>, %285, %cst_114 [1] : vector<48x32xf32> to vector<48xf32>
    %287 = vector.shape_cast %286 : vector<48xf32> to vector<48x1xf32>
    %cst_115 = arith.constant 3.200000e+01 : f32
    %288 = vector.broadcast %cst_115 : f32 to vector<48x1xf32>
    %289 = arith.divf %287, %288 : vector<48x1xf32>
    %cst_116 = arith.constant 9.99999974E-6 : f32
    %290 = vector.broadcast %cst_116 : f32 to vector<48x1xf32>
    %291 = arith.addf %289, %290 : vector<48x1xf32>
    %292 = math.rsqrt %291 : vector<48x1xf32>
    %293 = vector.broadcast %292 : vector<48x1xf32> to vector<48x32xf32>
    %294 = arith.mulf %284, %293 : vector<48x32xf32>
    %295 = vector.broadcast %277 : vector<1x32xf32> to vector<48x32xf32>
    %296 = arith.mulf %294, %295 : vector<48x32xf32>
    %297 = vector.broadcast %278 : vector<1x32xf32> to vector<48x32xf32>
    %298 = arith.addf %296, %297 : vector<48x32xf32>
    %c1_117 = arith.constant 1 : index
    %c0_118 = arith.constant 0 : index
    %c0_119 = arith.constant 0 : index
    %299 = vector.load %arg21[%c1_117, %c0_118, %c0_119] : memref<2x32x32xf32, #tpu.memory_space<vmem>>, vector<1x32x32xf32>
    %300 = vector.shape_cast %299 : vector<1x32x32xf32> to vector<32x32xf32>
    %cst_120 = arith.constant dense<0.000000e+00> : vector<48x32xf32>
    %301 = tpu.matmul %298, %300, %cst_120 {dimension_numbers = #tpu.dot_dimension_numbers<[1], [0], [0], [1], [0, 0, 1, 1], [], []>} : vector<48x32xf32>, vector<32x32xf32>, vector<48x32xf32> -> vector<48x32xf32>
    %c1_121 = arith.constant 1 : index
    %c0_122 = arith.constant 0 : index
    %c0_123 = arith.constant 0 : index
    %302 = vector.load %arg22[%c1_121, %c0_122, %c0_123] : memref<2x1x32xf32, #tpu.memory_space<vmem>>, vector<1x1x32xf32>
    %303 = vector.shape_cast %302 : vector<1x1x32xf32> to vector<1x32xf32>
    %304 = vector.broadcast %303 : vector<1x32xf32> to vector<48x32xf32>
    %305 = arith.addf %301, %304 : vector<48x32xf32>
    %cst_124 = arith.constant 5.000000e-01 : f32
    %306 = vector.broadcast %cst_124 : f32 to vector<48x32xf32>
    %307 = arith.mulf %306, %305 : vector<48x32xf32>
    %cst_125 = arith.constant 0.707106769 : f32
    %308 = vector.broadcast %cst_125 : f32 to vector<48x32xf32>
    %309 = arith.mulf %305, %308 : vector<48x32xf32>
    %310 = math.erf %309 : vector<48x32xf32>
    %cst_126 = arith.constant 1.000000e+00 : f32
    %311 = vector.broadcast %cst_126 : f32 to vector<48x32xf32>
    %312 = arith.addf %311, %310 : vector<48x32xf32>
    %313 = arith.mulf %307, %312 : vector<48x32xf32>
    %c1_127 = arith.constant 1 : index
    %c0_128 = arith.constant 0 : index
    %c0_129 = arith.constant 0 : index
    %314 = vector.load %arg23[%c1_127, %c0_128, %c0_129] : memref<2x32x32xf32, #tpu.memory_space<vmem>>, vector<1x32x32xf32>
    %315 = vector.shape_cast %314 : vector<1x32x32xf32> to vector<32x32xf32>
    %cst_130 = arith.constant dense<0.000000e+00> : vector<48x32xf32>
    %316 = tpu.matmul %313, %315, %cst_130 {dimension_numbers = #tpu.dot_dimension_numbers<[1], [0], [0], [1], [0, 0, 1, 1], [], []>} : vector<48x32xf32>, vector<32x32xf32>, vector<48x32xf32> -> vector<48x32xf32>
    %317 = vector.extract_strided_slice %186 {offsets = [1, 0], sizes = [1, 32], strides = [1, 1]} : vector<6x32xf32> to vector<1x32xf32>
    %318 = vector.broadcast %317 : vector<1x32xf32> to vector<48x32xf32>
    %319 = arith.addf %316, %318 : vector<48x32xf32>
    %320 = arith.addf %298, %319 : vector<48x32xf32>
    %321 = vector.extract_strided_slice %186 {offsets = [4, 0], sizes = [1, 32], strides = [1, 1]} : vector<6x32xf32> to vector<1x32xf32>
    %322 = vector.extract_strided_slice %186 {offsets = [5, 0], sizes = [1, 32], strides = [1, 1]} : vector<6x32xf32> to vector<1x32xf32>
    %cst_131 = arith.constant dense<0.000000e+00> : vector<48xf32>
    %323 = vector.multi_reduction <add>, %320, %cst_131 [1] : vector<48x32xf32> to vector<48xf32>
    %324 = vector.shape_cast %323 : vector<48xf32> to vector<48x1xf32>
    %cst_132 = arith.constant 3.200000e+01 : f32
    %325 = vector.broadcast %cst_132 : f32 to vector<48x1xf32>
    %326 = arith.divf %324, %325 : vector<48x1xf32>
    %327 = vector.broadcast %326 : vector<48x1xf32> to vector<48x32xf32>
    %328 = arith.subf %320, %327 : vector<48x32xf32>
    %329 = arith.mulf %328, %328 : vector<48x32xf32>
    %cst_133 = arith.constant dense<0.000000e+00> : vector<48xf32>
    %330 = vector.multi_reduction <add>, %329, %cst_133 [1] : vector<48x32xf32> to vector<48xf32>
    %331 = vector.shape_cast %330 : vector<48xf32> to vector<48x1xf32>
    %cst_134 = arith.constant 3.200000e+01 : f32
    %332 = vector.broadcast %cst_134 : f32 to vector<48x1xf32>
    %333 = arith.divf %331, %332 : vector<48x1xf32>
    %cst_135 = arith.constant 9.99999974E-6 : f32
    %334 = vector.broadcast %cst_135 : f32 to vector<48x1xf32>
    %335 = arith.addf %333, %334 : vector<48x1xf32>
    %336 = math.rsqrt %335 : vector<48x1xf32>
    %337 = vector.broadcast %336 : vector<48x1xf32> to vector<48x32xf32>
    %338 = arith.mulf %328, %337 : vector<48x32xf32>
    %339 = vector.broadcast %321 : vector<1x32xf32> to vector<48x32xf32>
    %340 = arith.mulf %338, %339 : vector<48x32xf32>
    %341 = vector.broadcast %322 : vector<1x32xf32> to vector<48x32xf32>
    %342 = arith.addf %340, %341 : vector<48x32xf32>
    %c0_136 = arith.constant 0 : index
    %c0_137 = arith.constant 0 : index
    %343 = vector.load %arg36[%c0_136, %c0_137] : memref<4x32xf32, #tpu.memory_space<vmem>>, vector<1x32xf32>
    %c1_138 = arith.constant 1 : index
    %c0_139 = arith.constant 0 : index
    %344 = vector.load %arg36[%c1_138, %c0_139] : memref<4x32xf32, #tpu.memory_space<vmem>>, vector<1x32xf32>
    %cst_140 = arith.constant dense<0.000000e+00> : vector<48xf32>
    %345 = vector.multi_reduction <add>, %342, %cst_140 [1] : vector<48x32xf32> to vector<48xf32>
    %346 = vector.shape_cast %345 : vector<48xf32> to vector<48x1xf32>
    %cst_141 = arith.constant 3.200000e+01 : f32
    %347 = vector.broadcast %cst_141 : f32 to vector<48x1xf32>
    %348 = arith.divf %346, %347 : vector<48x1xf32>
    %349 = vector.broadcast %348 : vector<48x1xf32> to vector<48x32xf32>
    %350 = arith.subf %342, %349 : vector<48x32xf32>
    %351 = arith.mulf %350, %350 : vector<48x32xf32>
    %cst_142 = arith.constant dense<0.000000e+00> : vector<48xf32>
    %352 = vector.multi_reduction <add>, %351, %cst_142 [1] : vector<48x32xf32> to vector<48xf32>
    %353 = vector.shape_cast %352 : vector<48xf32> to vector<48x1xf32>
    %cst_143 = arith.constant 3.200000e+01 : f32
    %354 = vector.broadcast %cst_143 : f32 to vector<48x1xf32>
    %355 = arith.divf %353, %354 : vector<48x1xf32>
    %cst_144 = arith.constant 9.99999974E-6 : f32
    %356 = vector.broadcast %cst_144 : f32 to vector<48x1xf32>
    %357 = arith.addf %355, %356 : vector<48x1xf32>
    %358 = math.rsqrt %357 : vector<48x1xf32>
    %359 = vector.broadcast %358 : vector<48x1xf32> to vector<48x32xf32>
    %360 = arith.mulf %350, %359 : vector<48x32xf32>
    %361 = vector.broadcast %343 : vector<1x32xf32> to vector<48x32xf32>
    %362 = arith.mulf %360, %361 : vector<48x32xf32>
    %363 = vector.broadcast %344 : vector<1x32xf32> to vector<48x32xf32>
    %364 = arith.addf %362, %363 : vector<48x32xf32>
    %c0_145 = arith.constant 0 : index
    %c0_146 = arith.constant 0 : index
    %365 = vector.load %arg3[%c0_145, %c0_146] : memref<48x8xf32, #tpu.memory_space<vmem>>, vector<48x8xf32>
    %c0_147 = arith.constant 0 : index
    %c0_148 = arith.constant 0 : index
    %366 = vector.load %arg4[%c0_147, %c0_148] : memref<48x4xf32, #tpu.memory_space<vmem>>, vector<48x4xf32>
    %c1_149 = arith.constant 1 : index
    %c0_150 = arith.constant 0 : index
    %c0_151 = arith.constant 0 : index
    %367 = vector.load %arg8[%c1_149, %c0_150, %c0_151] : memref<2x29x32xf32, #tpu.memory_space<vmem>>, vector<1x29x32xf32>
    %368 = vector.shape_cast %367 : vector<1x29x32xf32> to vector<29x32xf32>
    %c48 = arith.constant 48 : index
    %c0_152 = arith.constant 0 : index
    %369 = vector.load %arg7[%c48, %c0_152] : memref<96x32xf32, #tpu.memory_space<vmem>>, vector<48x32xf32>
    %370 = vector.extract_strided_slice %368 {offsets = [0, 0], sizes = [8, 32], strides = [1, 1]} : vector<29x32xf32> to vector<8x32xf32>
    %371 = vector.extract_strided_slice %368 {offsets = [8, 0], sizes = [8, 32], strides = [1, 1]} : vector<29x32xf32> to vector<8x32xf32>
    %372 = vector.extract_strided_slice %368 {offsets = [16, 0], sizes = [8, 32], strides = [1, 1]} : vector<29x32xf32> to vector<8x32xf32>
    %373 = vector.extract_strided_slice %368 {offsets = [24, 0], sizes = [4, 32], strides = [1, 1]} : vector<29x32xf32> to vector<4x32xf32>
    %374 = vector.extract_strided_slice %368 {offsets = [28, 0], sizes = [1, 32], strides = [1, 1]} : vector<29x32xf32> to vector<1x32xf32>
    %cst_153 = arith.constant dense<0.000000e+00> : vector<48x32xf32>
    %375 = tpu.matmul %365, %371, %cst_153 {dimension_numbers = #tpu.dot_dimension_numbers<[1], [0], [0], [1], [0, 0, 1, 1], [], []>} : vector<48x8xf32>, vector<8x32xf32>, vector<48x32xf32> -> vector<48x32xf32>
    %cst_154 = arith.constant dense<0.000000e+00> : vector<48x32xf32>
    %376 = tpu.matmul %366, %373, %cst_154 {dimension_numbers = #tpu.dot_dimension_numbers<[1], [0], [0], [1], [0, 0, 1, 1], [], []>} : vector<48x4xf32>, vector<4x32xf32>, vector<48x32xf32> -> vector<48x32xf32>
    %377 = arith.addf %375, %376 : vector<48x32xf32>
    %378 = vector.broadcast %374 : vector<1x32xf32> to vector<48x32xf32>
    %379 = arith.addf %377, %378 : vector<48x32xf32>
    %380 = arith.addf %379, %369 : vector<48x32xf32>
    %c0_155 = arith.constant 0 : index
    %c0_156 = arith.constant 0 : index
    %c0_157 = arith.constant 0 : index
    %381 = vector.load %arg6[%c0_155, %c0_156, %c0_157] : memref<2x48x48xf32, #tpu.memory_space<vmem>>, vector<1x48x48xf32>
    %382 = vector.shape_cast %381 : vector<1x48x48xf32> to vector<48x48xf32>
    %cst_158 = arith.constant dense<0.000000e+00> : vector<48x32xf32>
    %383 = tpu.matmul %365, %370, %cst_158 {dimension_numbers = #tpu.dot_dimension_numbers<[1], [0], [0], [1], [0, 0, 1, 1], [], []>} : vector<48x8xf32>, vector<8x32xf32>, vector<48x32xf32> -> vector<48x32xf32>
    %cst_159 = arith.constant dense<0.000000e+00> : vector<48x32xf32>
    %384 = tpu.matmul %382, %383, %cst_159 {dimension_numbers = #tpu.dot_dimension_numbers<[1], [0], [0], [1], [0, 0, 1, 1], [], []>} : vector<48x48xf32>, vector<48x32xf32>, vector<48x32xf32> -> vector<48x32xf32>
    %385 = arith.addf %380, %384 : vector<48x32xf32>
    %c1_160 = arith.constant 1 : index
    %c0_161 = arith.constant 0 : index
    %c0_162 = arith.constant 0 : index
    %386 = vector.load %arg6[%c1_160, %c0_161, %c0_162] : memref<2x48x48xf32, #tpu.memory_space<vmem>>, vector<1x48x48xf32>
    %387 = vector.shape_cast %386 : vector<1x48x48xf32> to vector<48x48xf32>
    %cst_163 = arith.constant dense<0.000000e+00> : vector<48x32xf32>
    %388 = tpu.matmul %365, %372, %cst_163 {dimension_numbers = #tpu.dot_dimension_numbers<[1], [0], [0], [1], [0, 0, 1, 1], [], []>} : vector<48x8xf32>, vector<8x32xf32>, vector<48x32xf32> -> vector<48x32xf32>
    %cst_164 = arith.constant dense<0.000000e+00> : vector<48x32xf32>
    %389 = tpu.matmul %387, %388, %cst_164 {dimension_numbers = #tpu.dot_dimension_numbers<[1], [0], [0], [1], [0, 0, 1, 1], [], []>} : vector<48x48xf32>, vector<48x32xf32>, vector<48x32xf32> -> vector<48x32xf32>
    %390 = arith.addf %385, %389 : vector<48x32xf32>
    %c0_165 = arith.constant 0 : index
    %c0_166 = arith.constant 0 : index
    %391 = vector.load %arg10[%c0_165, %c0_166] : memref<48x48xf32, #tpu.memory_space<vmem>>, vector<48x48xf32>
    %c0_167 = arith.constant 0 : index
    %c0_168 = arith.constant 0 : index
    %392 = vector.load %arg11[%c0_167, %c0_168] : memref<48x48xf32, #tpu.memory_space<vmem>>, vector<48x48xf32>
    %c0_169 = arith.constant 0 : index
    %c0_170 = arith.constant 0 : index
    %393 = vector.load %arg12[%c0_169, %c0_170] : memref<192x32xf32, #tpu.memory_space<vmem>>, vector<192x32xf32>
    %c0_171 = arith.constant 0 : index
    %c0_172 = arith.constant 0 : index
    %394 = vector.load %arg13[%c0_171, %c0_172] : memref<48x192xf32, #tpu.memory_space<vmem>>, vector<48x192xf32>
    %c0_173 = arith.constant 0 : index
    %c0_174 = arith.constant 0 : index
    %c0_175 = arith.constant 0 : index
    %395 = vector.load %arg35[%c0_173, %c0_174, %c0_175] : memref<1x10x32xf32, #tpu.memory_space<vmem>>, vector<1x10x32xf32>
    %396 = vector.shape_cast %395 : vector<1x10x32xf32> to vector<10x32xf32>
    %c0_176 = arith.constant 0 : index
    %c0_177 = arith.constant 0 : index
    %c0_178 = arith.constant 0 : index
    %397 = vector.load %arg25[%c0_176, %c0_177, %c0_178] : memref<1x32x96xf32, #tpu.memory_space<vmem>>, vector<1x32x96xf32>
    %398 = vector.shape_cast %397 : vector<1x32x96xf32> to vector<32x96xf32>
    %cst_179 = arith.constant dense<0.000000e+00> : vector<48x96xf32>
    %399 = tpu.matmul %390, %398, %cst_179 {dimension_numbers = #tpu.dot_dimension_numbers<[1], [0], [0], [1], [0, 0, 1, 1], [], []>} : vector<48x32xf32>, vector<32x96xf32>, vector<48x96xf32> -> vector<48x96xf32>
    %c0_180 = arith.constant 0 : index
    %c0_181 = arith.constant 0 : index
    %c0_182 = arith.constant 0 : index
    %400 = vector.load %arg26[%c0_180, %c0_181, %c0_182] : memref<1x1x96xf32, #tpu.memory_space<vmem>>, vector<1x1x96xf32>
    %401 = vector.shape_cast %400 : vector<1x1x96xf32> to vector<1x96xf32>
    %402 = vector.broadcast %401 : vector<1x96xf32> to vector<48x96xf32>
    %403 = arith.addf %399, %402 : vector<48x96xf32>
    %404 = vector.extract_strided_slice %403 {offsets = [0, 0], sizes = [48, 32], strides = [1, 1]} : vector<48x96xf32> to vector<48x32xf32>
    %405 = vector.extract_strided_slice %403 {offsets = [0, 32], sizes = [48, 32], strides = [1, 1]} : vector<48x96xf32> to vector<48x32xf32>
    %406 = vector.extract_strided_slice %403 {offsets = [0, 64], sizes = [48, 32], strides = [1, 1]} : vector<48x96xf32> to vector<48x32xf32>
    %407 = vector.extract_strided_slice %404 {offsets = [0, 0], sizes = [48, 8], strides = [1, 1]} : vector<48x32xf32> to vector<48x8xf32>
    %408 = vector.extract_strided_slice %405 {offsets = [0, 0], sizes = [48, 8], strides = [1, 1]} : vector<48x32xf32> to vector<48x8xf32>
    %cst_183 = arith.constant dense<0.000000e+00> : vector<48x48xf32>
    %409 = tpu.matmul %407, %408, %cst_183 {dimension_numbers = #tpu.dot_dimension_numbers<[1], [1], [0], [0], [0, 0, 1, 0], [], []>} : vector<48x8xf32>, vector<48x8xf32>, vector<48x48xf32> -> vector<48x48xf32>
    %cst_184 = arith.constant 0.353553385 : f32
    %410 = vector.broadcast %cst_184 : f32 to vector<48x48xf32>
    %411 = arith.mulf %409, %410 : vector<48x48xf32>
    %412 = arith.addf %411, %391 : vector<48x48xf32>
    %cst_185 = arith.constant dense<0xFF800000> : vector<48xf32>
    %413 = vector.multi_reduction <maximumf>, %412, %cst_185 [1] : vector<48x48xf32> to vector<48xf32>
    %414 = vector.shape_cast %413 : vector<48xf32> to vector<48x1xf32>
    %415 = vector.broadcast %414 : vector<48x1xf32> to vector<48x48xf32>
    %416 = arith.subf %412, %415 : vector<48x48xf32>
    %417 = math.exp %416 : vector<48x48xf32>
    %cst_186 = arith.constant dense<0.000000e+00> : vector<48xf32>
    %418 = vector.multi_reduction <add>, %417, %cst_186 [1] : vector<48x48xf32> to vector<48xf32>
    %419 = vector.shape_cast %418 : vector<48xf32> to vector<48x1xf32>
    %420 = tpu.reciprocal %419 {approx = true} : vector<48x1xf32> -> vector<48x1xf32>
    %421 = vector.broadcast %420 : vector<48x1xf32> to vector<48x48xf32>
    %422 = arith.mulf %417, %421 : vector<48x48xf32>
    %423 = vector.extract_strided_slice %406 {offsets = [0, 0], sizes = [48, 8], strides = [1, 1]} : vector<48x32xf32> to vector<48x8xf32>
    %cst_187 = arith.constant dense<0.000000e+00> : vector<48x8xf32>
    %424 = tpu.matmul %422, %423, %cst_187 {dimension_numbers = #tpu.dot_dimension_numbers<[1], [0], [0], [1], [0, 0, 1, 1], [], []>} : vector<48x48xf32>, vector<48x8xf32>, vector<48x8xf32> -> vector<48x8xf32>
    %425 = vector.extract_strided_slice %404 {offsets = [0, 8], sizes = [48, 8], strides = [1, 1]} : vector<48x32xf32> to vector<48x8xf32>
    %426 = vector.extract_strided_slice %405 {offsets = [0, 8], sizes = [48, 8], strides = [1, 1]} : vector<48x32xf32> to vector<48x8xf32>
    %cst_188 = arith.constant dense<0.000000e+00> : vector<48x48xf32>
    %427 = tpu.matmul %425, %426, %cst_188 {dimension_numbers = #tpu.dot_dimension_numbers<[1], [1], [0], [0], [0, 0, 1, 0], [], []>} : vector<48x8xf32>, vector<48x8xf32>, vector<48x48xf32> -> vector<48x48xf32>
    %cst_189 = arith.constant 0.353553385 : f32
    %428 = vector.broadcast %cst_189 : f32 to vector<48x48xf32>
    %429 = arith.mulf %427, %428 : vector<48x48xf32>
    %430 = arith.addf %429, %391 : vector<48x48xf32>
    %cst_190 = arith.constant dense<0xFF800000> : vector<48xf32>
    %431 = vector.multi_reduction <maximumf>, %430, %cst_190 [1] : vector<48x48xf32> to vector<48xf32>
    %432 = vector.shape_cast %431 : vector<48xf32> to vector<48x1xf32>
    %433 = vector.broadcast %432 : vector<48x1xf32> to vector<48x48xf32>
    %434 = arith.subf %430, %433 : vector<48x48xf32>
    %435 = math.exp %434 : vector<48x48xf32>
    %cst_191 = arith.constant dense<0.000000e+00> : vector<48xf32>
    %436 = vector.multi_reduction <add>, %435, %cst_191 [1] : vector<48x48xf32> to vector<48xf32>
    %437 = vector.shape_cast %436 : vector<48xf32> to vector<48x1xf32>
    %438 = tpu.reciprocal %437 {approx = true} : vector<48x1xf32> -> vector<48x1xf32>
    %439 = vector.broadcast %438 : vector<48x1xf32> to vector<48x48xf32>
    %440 = arith.mulf %435, %439 : vector<48x48xf32>
    %441 = vector.extract_strided_slice %406 {offsets = [0, 8], sizes = [48, 8], strides = [1, 1]} : vector<48x32xf32> to vector<48x8xf32>
    %cst_192 = arith.constant dense<0.000000e+00> : vector<48x8xf32>
    %442 = tpu.matmul %440, %441, %cst_192 {dimension_numbers = #tpu.dot_dimension_numbers<[1], [0], [0], [1], [0, 0, 1, 1], [], []>} : vector<48x48xf32>, vector<48x8xf32>, vector<48x8xf32> -> vector<48x8xf32>
    %443 = vector.extract_strided_slice %404 {offsets = [0, 16], sizes = [48, 8], strides = [1, 1]} : vector<48x32xf32> to vector<48x8xf32>
    %444 = vector.extract_strided_slice %405 {offsets = [0, 16], sizes = [48, 8], strides = [1, 1]} : vector<48x32xf32> to vector<48x8xf32>
    %cst_193 = arith.constant dense<0.000000e+00> : vector<48x48xf32>
    %445 = tpu.matmul %443, %444, %cst_193 {dimension_numbers = #tpu.dot_dimension_numbers<[1], [1], [0], [0], [0, 0, 1, 0], [], []>} : vector<48x8xf32>, vector<48x8xf32>, vector<48x48xf32> -> vector<48x48xf32>
    %cst_194 = arith.constant 0.353553385 : f32
    %446 = vector.broadcast %cst_194 : f32 to vector<48x48xf32>
    %447 = arith.mulf %445, %446 : vector<48x48xf32>
    %448 = arith.addf %447, %391 : vector<48x48xf32>
    %cst_195 = arith.constant dense<0xFF800000> : vector<48xf32>
    %449 = vector.multi_reduction <maximumf>, %448, %cst_195 [1] : vector<48x48xf32> to vector<48xf32>
    %450 = vector.shape_cast %449 : vector<48xf32> to vector<48x1xf32>
    %451 = vector.broadcast %450 : vector<48x1xf32> to vector<48x48xf32>
    %452 = arith.subf %448, %451 : vector<48x48xf32>
    %453 = math.exp %452 : vector<48x48xf32>
    %cst_196 = arith.constant dense<0.000000e+00> : vector<48xf32>
    %454 = vector.multi_reduction <add>, %453, %cst_196 [1] : vector<48x48xf32> to vector<48xf32>
    %455 = vector.shape_cast %454 : vector<48xf32> to vector<48x1xf32>
    %456 = tpu.reciprocal %455 {approx = true} : vector<48x1xf32> -> vector<48x1xf32>
    %457 = vector.broadcast %456 : vector<48x1xf32> to vector<48x48xf32>
    %458 = arith.mulf %453, %457 : vector<48x48xf32>
    %459 = vector.extract_strided_slice %406 {offsets = [0, 16], sizes = [48, 8], strides = [1, 1]} : vector<48x32xf32> to vector<48x8xf32>
    %cst_197 = arith.constant dense<0.000000e+00> : vector<48x8xf32>
    %460 = tpu.matmul %458, %459, %cst_197 {dimension_numbers = #tpu.dot_dimension_numbers<[1], [0], [0], [1], [0, 0, 1, 1], [], []>} : vector<48x48xf32>, vector<48x8xf32>, vector<48x8xf32> -> vector<48x8xf32>
    %461 = vector.extract_strided_slice %404 {offsets = [0, 24], sizes = [48, 8], strides = [1, 1]} : vector<48x32xf32> to vector<48x8xf32>
    %462 = vector.extract_strided_slice %405 {offsets = [0, 24], sizes = [48, 8], strides = [1, 1]} : vector<48x32xf32> to vector<48x8xf32>
    %cst_198 = arith.constant dense<0.000000e+00> : vector<48x48xf32>
    %463 = tpu.matmul %461, %462, %cst_198 {dimension_numbers = #tpu.dot_dimension_numbers<[1], [1], [0], [0], [0, 0, 1, 0], [], []>} : vector<48x8xf32>, vector<48x8xf32>, vector<48x48xf32> -> vector<48x48xf32>
    %cst_199 = arith.constant 0.353553385 : f32
    %464 = vector.broadcast %cst_199 : f32 to vector<48x48xf32>
    %465 = arith.mulf %463, %464 : vector<48x48xf32>
    %466 = arith.addf %465, %391 : vector<48x48xf32>
    %cst_200 = arith.constant dense<0xFF800000> : vector<48xf32>
    %467 = vector.multi_reduction <maximumf>, %466, %cst_200 [1] : vector<48x48xf32> to vector<48xf32>
    %468 = vector.shape_cast %467 : vector<48xf32> to vector<48x1xf32>
    %469 = vector.broadcast %468 : vector<48x1xf32> to vector<48x48xf32>
    %470 = arith.subf %466, %469 : vector<48x48xf32>
    %471 = math.exp %470 : vector<48x48xf32>
    %cst_201 = arith.constant dense<0.000000e+00> : vector<48xf32>
    %472 = vector.multi_reduction <add>, %471, %cst_201 [1] : vector<48x48xf32> to vector<48xf32>
    %473 = vector.shape_cast %472 : vector<48xf32> to vector<48x1xf32>
    %474 = tpu.reciprocal %473 {approx = true} : vector<48x1xf32> -> vector<48x1xf32>
    %475 = vector.broadcast %474 : vector<48x1xf32> to vector<48x48xf32>
    %476 = arith.mulf %471, %475 : vector<48x48xf32>
    %477 = vector.extract_strided_slice %406 {offsets = [0, 24], sizes = [48, 8], strides = [1, 1]} : vector<48x32xf32> to vector<48x8xf32>
    %cst_202 = arith.constant dense<0.000000e+00> : vector<48x8xf32>
    %478 = tpu.matmul %476, %477, %cst_202 {dimension_numbers = #tpu.dot_dimension_numbers<[1], [0], [0], [1], [0, 0, 1, 1], [], []>} : vector<48x48xf32>, vector<48x8xf32>, vector<48x8xf32> -> vector<48x8xf32>
    %479 = tpu.concatenate %424, %442, %460, %478 in 0 : vector<48x8xf32>, vector<48x8xf32>, vector<48x8xf32>, vector<48x8xf32> -> vector<192x8xf32>
    %480 = tpu.concatenate %479, %479, %479, %479 in 1 : vector<192x8xf32>, vector<192x8xf32>, vector<192x8xf32>, vector<192x8xf32> -> vector<192x32xf32>
    %481 = arith.mulf %480, %393 : vector<192x32xf32>
    %c0_203 = arith.constant 0 : index
    %c0_204 = arith.constant 0 : index
    %c0_205 = arith.constant 0 : index
    %482 = vector.load %arg27[%c0_203, %c0_204, %c0_205] : memref<1x32x32xf32, #tpu.memory_space<vmem>>, vector<1x32x32xf32>
    %483 = vector.shape_cast %482 : vector<1x32x32xf32> to vector<32x32xf32>
    %cst_206 = arith.constant dense<0.000000e+00> : vector<192x32xf32>
    %484 = tpu.matmul %481, %483, %cst_206 {dimension_numbers = #tpu.dot_dimension_numbers<[1], [0], [0], [1], [0, 0, 1, 1], [], []>} : vector<192x32xf32>, vector<32x32xf32>, vector<192x32xf32> -> vector<192x32xf32>
    %cst_207 = arith.constant dense<0.000000e+00> : vector<48x32xf32>
    %485 = tpu.matmul %394, %484, %cst_207 {dimension_numbers = #tpu.dot_dimension_numbers<[1], [0], [0], [1], [0, 0, 1, 1], [], []>} : vector<48x192xf32>, vector<192x32xf32>, vector<48x32xf32> -> vector<48x32xf32>
    %486 = arith.addf %390, %485 : vector<48x32xf32>
    %487 = vector.extract_strided_slice %396 {offsets = [0, 0], sizes = [1, 32], strides = [1, 1]} : vector<10x32xf32> to vector<1x32xf32>
    %488 = vector.broadcast %487 : vector<1x32xf32> to vector<48x32xf32>
    %489 = arith.addf %486, %488 : vector<48x32xf32>
    %490 = vector.extract_strided_slice %396 {offsets = [4, 0], sizes = [1, 32], strides = [1, 1]} : vector<10x32xf32> to vector<1x32xf32>
    %491 = vector.extract_strided_slice %396 {offsets = [5, 0], sizes = [1, 32], strides = [1, 1]} : vector<10x32xf32> to vector<1x32xf32>
    %cst_208 = arith.constant dense<0.000000e+00> : vector<48xf32>
    %492 = vector.multi_reduction <add>, %489, %cst_208 [1] : vector<48x32xf32> to vector<48xf32>
    %493 = vector.shape_cast %492 : vector<48xf32> to vector<48x1xf32>
    %cst_209 = arith.constant 3.200000e+01 : f32
    %494 = vector.broadcast %cst_209 : f32 to vector<48x1xf32>
    %495 = arith.divf %493, %494 : vector<48x1xf32>
    %496 = vector.broadcast %495 : vector<48x1xf32> to vector<48x32xf32>
    %497 = arith.subf %489, %496 : vector<48x32xf32>
    %498 = arith.mulf %497, %497 : vector<48x32xf32>
    %cst_210 = arith.constant dense<0.000000e+00> : vector<48xf32>
    %499 = vector.multi_reduction <add>, %498, %cst_210 [1] : vector<48x32xf32> to vector<48xf32>
    %500 = vector.shape_cast %499 : vector<48xf32> to vector<48x1xf32>
    %cst_211 = arith.constant 3.200000e+01 : f32
    %501 = vector.broadcast %cst_211 : f32 to vector<48x1xf32>
    %502 = arith.divf %500, %501 : vector<48x1xf32>
    %cst_212 = arith.constant 9.99999974E-6 : f32
    %503 = vector.broadcast %cst_212 : f32 to vector<48x1xf32>
    %504 = arith.addf %502, %503 : vector<48x1xf32>
    %505 = math.rsqrt %504 : vector<48x1xf32>
    %506 = vector.broadcast %505 : vector<48x1xf32> to vector<48x32xf32>
    %507 = arith.mulf %497, %506 : vector<48x32xf32>
    %508 = vector.broadcast %490 : vector<1x32xf32> to vector<48x32xf32>
    %509 = arith.mulf %507, %508 : vector<48x32xf32>
    %510 = vector.broadcast %491 : vector<1x32xf32> to vector<48x32xf32>
    %511 = arith.addf %509, %510 : vector<48x32xf32>
    %c0_213 = arith.constant 0 : index
    %c0_214 = arith.constant 0 : index
    %c0_215 = arith.constant 0 : index
    %512 = vector.load %arg28[%c0_213, %c0_214, %c0_215] : memref<1x32x32xf32, #tpu.memory_space<vmem>>, vector<1x32x32xf32>
    %513 = vector.shape_cast %512 : vector<1x32x32xf32> to vector<32x32xf32>
    %cst_216 = arith.constant dense<0.000000e+00> : vector<48x32xf32>
    %514 = tpu.matmul %511, %513, %cst_216 {dimension_numbers = #tpu.dot_dimension_numbers<[1], [0], [0], [1], [0, 0, 1, 1], [], []>} : vector<48x32xf32>, vector<32x32xf32>, vector<48x32xf32> -> vector<48x32xf32>
    %515 = vector.extract_strided_slice %396 {offsets = [1, 0], sizes = [1, 32], strides = [1, 1]} : vector<10x32xf32> to vector<1x32xf32>
    %516 = vector.broadcast %515 : vector<1x32xf32> to vector<48x32xf32>
    %517 = arith.addf %514, %516 : vector<48x32xf32>
    %c0_217 = arith.constant 0 : index
    %c0_218 = arith.constant 0 : index
    %c0_219 = arith.constant 0 : index
    %518 = vector.load %arg29[%c0_217, %c0_218, %c0_219] : memref<1x32x64xf32, #tpu.memory_space<vmem>>, vector<1x32x64xf32>
    %519 = vector.shape_cast %518 : vector<1x32x64xf32> to vector<32x64xf32>
    %cst_220 = arith.constant dense<0.000000e+00> : vector<48x64xf32>
    %520 = tpu.matmul %364, %519, %cst_220 {dimension_numbers = #tpu.dot_dimension_numbers<[1], [0], [0], [1], [0, 0, 1, 1], [], []>} : vector<48x32xf32>, vector<32x64xf32>, vector<48x64xf32> -> vector<48x64xf32>
    %c0_221 = arith.constant 0 : index
    %c0_222 = arith.constant 0 : index
    %c0_223 = arith.constant 0 : index
    %521 = vector.load %arg30[%c0_221, %c0_222, %c0_223] : memref<1x1x64xf32, #tpu.memory_space<vmem>>, vector<1x1x64xf32>
    %522 = vector.shape_cast %521 : vector<1x1x64xf32> to vector<1x64xf32>
    %523 = vector.broadcast %522 : vector<1x64xf32> to vector<48x64xf32>
    %524 = arith.addf %520, %523 : vector<48x64xf32>
    %525 = vector.extract_strided_slice %524 {offsets = [0, 0], sizes = [48, 32], strides = [1, 1]} : vector<48x64xf32> to vector<48x32xf32>
    %526 = vector.extract_strided_slice %524 {offsets = [0, 32], sizes = [48, 32], strides = [1, 1]} : vector<48x64xf32> to vector<48x32xf32>
    %527 = vector.extract_strided_slice %517 {offsets = [0, 0], sizes = [48, 8], strides = [1, 1]} : vector<48x32xf32> to vector<48x8xf32>
    %528 = vector.extract_strided_slice %525 {offsets = [0, 0], sizes = [48, 8], strides = [1, 1]} : vector<48x32xf32> to vector<48x8xf32>
    %cst_224 = arith.constant dense<0.000000e+00> : vector<48x48xf32>
    %529 = tpu.matmul %527, %528, %cst_224 {dimension_numbers = #tpu.dot_dimension_numbers<[1], [1], [0], [0], [0, 0, 1, 0], [], []>} : vector<48x8xf32>, vector<48x8xf32>, vector<48x48xf32> -> vector<48x48xf32>
    %cst_225 = arith.constant 0.353553385 : f32
    %530 = vector.broadcast %cst_225 : f32 to vector<48x48xf32>
    %531 = arith.mulf %529, %530 : vector<48x48xf32>
    %532 = arith.addf %531, %392 : vector<48x48xf32>
    %cst_226 = arith.constant dense<0xFF800000> : vector<48xf32>
    %533 = vector.multi_reduction <maximumf>, %532, %cst_226 [1] : vector<48x48xf32> to vector<48xf32>
    %534 = vector.shape_cast %533 : vector<48xf32> to vector<48x1xf32>
    %535 = vector.broadcast %534 : vector<48x1xf32> to vector<48x48xf32>
    %536 = arith.subf %532, %535 : vector<48x48xf32>
    %537 = math.exp %536 : vector<48x48xf32>
    %cst_227 = arith.constant dense<0.000000e+00> : vector<48xf32>
    %538 = vector.multi_reduction <add>, %537, %cst_227 [1] : vector<48x48xf32> to vector<48xf32>
    %539 = vector.shape_cast %538 : vector<48xf32> to vector<48x1xf32>
    %540 = tpu.reciprocal %539 {approx = true} : vector<48x1xf32> -> vector<48x1xf32>
    %541 = vector.broadcast %540 : vector<48x1xf32> to vector<48x48xf32>
    %542 = arith.mulf %537, %541 : vector<48x48xf32>
    %543 = vector.extract_strided_slice %526 {offsets = [0, 0], sizes = [48, 8], strides = [1, 1]} : vector<48x32xf32> to vector<48x8xf32>
    %cst_228 = arith.constant dense<0.000000e+00> : vector<48x8xf32>
    %544 = tpu.matmul %542, %543, %cst_228 {dimension_numbers = #tpu.dot_dimension_numbers<[1], [0], [0], [1], [0, 0, 1, 1], [], []>} : vector<48x48xf32>, vector<48x8xf32>, vector<48x8xf32> -> vector<48x8xf32>
    %545 = vector.extract_strided_slice %517 {offsets = [0, 8], sizes = [48, 8], strides = [1, 1]} : vector<48x32xf32> to vector<48x8xf32>
    %546 = vector.extract_strided_slice %525 {offsets = [0, 8], sizes = [48, 8], strides = [1, 1]} : vector<48x32xf32> to vector<48x8xf32>
    %cst_229 = arith.constant dense<0.000000e+00> : vector<48x48xf32>
    %547 = tpu.matmul %545, %546, %cst_229 {dimension_numbers = #tpu.dot_dimension_numbers<[1], [1], [0], [0], [0, 0, 1, 0], [], []>} : vector<48x8xf32>, vector<48x8xf32>, vector<48x48xf32> -> vector<48x48xf32>
    %cst_230 = arith.constant 0.353553385 : f32
    %548 = vector.broadcast %cst_230 : f32 to vector<48x48xf32>
    %549 = arith.mulf %547, %548 : vector<48x48xf32>
    %550 = arith.addf %549, %392 : vector<48x48xf32>
    %cst_231 = arith.constant dense<0xFF800000> : vector<48xf32>
    %551 = vector.multi_reduction <maximumf>, %550, %cst_231 [1] : vector<48x48xf32> to vector<48xf32>
    %552 = vector.shape_cast %551 : vector<48xf32> to vector<48x1xf32>
    %553 = vector.broadcast %552 : vector<48x1xf32> to vector<48x48xf32>
    %554 = arith.subf %550, %553 : vector<48x48xf32>
    %555 = math.exp %554 : vector<48x48xf32>
    %cst_232 = arith.constant dense<0.000000e+00> : vector<48xf32>
    %556 = vector.multi_reduction <add>, %555, %cst_232 [1] : vector<48x48xf32> to vector<48xf32>
    %557 = vector.shape_cast %556 : vector<48xf32> to vector<48x1xf32>
    %558 = tpu.reciprocal %557 {approx = true} : vector<48x1xf32> -> vector<48x1xf32>
    %559 = vector.broadcast %558 : vector<48x1xf32> to vector<48x48xf32>
    %560 = arith.mulf %555, %559 : vector<48x48xf32>
    %561 = vector.extract_strided_slice %526 {offsets = [0, 8], sizes = [48, 8], strides = [1, 1]} : vector<48x32xf32> to vector<48x8xf32>
    %cst_233 = arith.constant dense<0.000000e+00> : vector<48x8xf32>
    %562 = tpu.matmul %560, %561, %cst_233 {dimension_numbers = #tpu.dot_dimension_numbers<[1], [0], [0], [1], [0, 0, 1, 1], [], []>} : vector<48x48xf32>, vector<48x8xf32>, vector<48x8xf32> -> vector<48x8xf32>
    %563 = vector.extract_strided_slice %517 {offsets = [0, 16], sizes = [48, 8], strides = [1, 1]} : vector<48x32xf32> to vector<48x8xf32>
    %564 = vector.extract_strided_slice %525 {offsets = [0, 16], sizes = [48, 8], strides = [1, 1]} : vector<48x32xf32> to vector<48x8xf32>
    %cst_234 = arith.constant dense<0.000000e+00> : vector<48x48xf32>
    %565 = tpu.matmul %563, %564, %cst_234 {dimension_numbers = #tpu.dot_dimension_numbers<[1], [1], [0], [0], [0, 0, 1, 0], [], []>} : vector<48x8xf32>, vector<48x8xf32>, vector<48x48xf32> -> vector<48x48xf32>
    %cst_235 = arith.constant 0.353553385 : f32
    %566 = vector.broadcast %cst_235 : f32 to vector<48x48xf32>
    %567 = arith.mulf %565, %566 : vector<48x48xf32>
    %568 = arith.addf %567, %392 : vector<48x48xf32>
    %cst_236 = arith.constant dense<0xFF800000> : vector<48xf32>
    %569 = vector.multi_reduction <maximumf>, %568, %cst_236 [1] : vector<48x48xf32> to vector<48xf32>
    %570 = vector.shape_cast %569 : vector<48xf32> to vector<48x1xf32>
    %571 = vector.broadcast %570 : vector<48x1xf32> to vector<48x48xf32>
    %572 = arith.subf %568, %571 : vector<48x48xf32>
    %573 = math.exp %572 : vector<48x48xf32>
    %cst_237 = arith.constant dense<0.000000e+00> : vector<48xf32>
    %574 = vector.multi_reduction <add>, %573, %cst_237 [1] : vector<48x48xf32> to vector<48xf32>
    %575 = vector.shape_cast %574 : vector<48xf32> to vector<48x1xf32>
    %576 = tpu.reciprocal %575 {approx = true} : vector<48x1xf32> -> vector<48x1xf32>
    %577 = vector.broadcast %576 : vector<48x1xf32> to vector<48x48xf32>
    %578 = arith.mulf %573, %577 : vector<48x48xf32>
    %579 = vector.extract_strided_slice %526 {offsets = [0, 16], sizes = [48, 8], strides = [1, 1]} : vector<48x32xf32> to vector<48x8xf32>
    %cst_238 = arith.constant dense<0.000000e+00> : vector<48x8xf32>
    %580 = tpu.matmul %578, %579, %cst_238 {dimension_numbers = #tpu.dot_dimension_numbers<[1], [0], [0], [1], [0, 0, 1, 1], [], []>} : vector<48x48xf32>, vector<48x8xf32>, vector<48x8xf32> -> vector<48x8xf32>
    %581 = vector.extract_strided_slice %517 {offsets = [0, 24], sizes = [48, 8], strides = [1, 1]} : vector<48x32xf32> to vector<48x8xf32>
    %582 = vector.extract_strided_slice %525 {offsets = [0, 24], sizes = [48, 8], strides = [1, 1]} : vector<48x32xf32> to vector<48x8xf32>
    %cst_239 = arith.constant dense<0.000000e+00> : vector<48x48xf32>
    %583 = tpu.matmul %581, %582, %cst_239 {dimension_numbers = #tpu.dot_dimension_numbers<[1], [1], [0], [0], [0, 0, 1, 0], [], []>} : vector<48x8xf32>, vector<48x8xf32>, vector<48x48xf32> -> vector<48x48xf32>
    %cst_240 = arith.constant 0.353553385 : f32
    %584 = vector.broadcast %cst_240 : f32 to vector<48x48xf32>
    %585 = arith.mulf %583, %584 : vector<48x48xf32>
    %586 = arith.addf %585, %392 : vector<48x48xf32>
    %cst_241 = arith.constant dense<0xFF800000> : vector<48xf32>
    %587 = vector.multi_reduction <maximumf>, %586, %cst_241 [1] : vector<48x48xf32> to vector<48xf32>
    %588 = vector.shape_cast %587 : vector<48xf32> to vector<48x1xf32>
    %589 = vector.broadcast %588 : vector<48x1xf32> to vector<48x48xf32>
    %590 = arith.subf %586, %589 : vector<48x48xf32>
    %591 = math.exp %590 : vector<48x48xf32>
    %cst_242 = arith.constant dense<0.000000e+00> : vector<48xf32>
    %592 = vector.multi_reduction <add>, %591, %cst_242 [1] : vector<48x48xf32> to vector<48xf32>
    %593 = vector.shape_cast %592 : vector<48xf32> to vector<48x1xf32>
    %594 = tpu.reciprocal %593 {approx = true} : vector<48x1xf32> -> vector<48x1xf32>
    %595 = vector.broadcast %594 : vector<48x1xf32> to vector<48x48xf32>
    %596 = arith.mulf %591, %595 : vector<48x48xf32>
    %597 = vector.extract_strided_slice %526 {offsets = [0, 24], sizes = [48, 8], strides = [1, 1]} : vector<48x32xf32> to vector<48x8xf32>
    %cst_243 = arith.constant dense<0.000000e+00> : vector<48x8xf32>
    %598 = tpu.matmul %596, %597, %cst_243 {dimension_numbers = #tpu.dot_dimension_numbers<[1], [0], [0], [1], [0, 0, 1, 1], [], []>} : vector<48x48xf32>, vector<48x8xf32>, vector<48x8xf32> -> vector<48x8xf32>
    %599 = tpu.concatenate %544, %562, %580, %598 in 1 : vector<48x8xf32>, vector<48x8xf32>, vector<48x8xf32>, vector<48x8xf32> -> vector<48x32xf32>
    %c0_244 = arith.constant 0 : index
    %c0_245 = arith.constant 0 : index
    %c0_246 = arith.constant 0 : index
    %600 = vector.load %arg31[%c0_244, %c0_245, %c0_246] : memref<1x32x32xf32, #tpu.memory_space<vmem>>, vector<1x32x32xf32>
    %601 = vector.shape_cast %600 : vector<1x32x32xf32> to vector<32x32xf32>
    %cst_247 = arith.constant dense<0.000000e+00> : vector<48x32xf32>
    %602 = tpu.matmul %599, %601, %cst_247 {dimension_numbers = #tpu.dot_dimension_numbers<[1], [0], [0], [1], [0, 0, 1, 1], [], []>} : vector<48x32xf32>, vector<32x32xf32>, vector<48x32xf32> -> vector<48x32xf32>
    %603 = vector.extract_strided_slice %396 {offsets = [2, 0], sizes = [1, 32], strides = [1, 1]} : vector<10x32xf32> to vector<1x32xf32>
    %604 = vector.broadcast %603 : vector<1x32xf32> to vector<48x32xf32>
    %605 = arith.addf %602, %604 : vector<48x32xf32>
    %606 = arith.addf %511, %605 : vector<48x32xf32>
    %607 = vector.extract_strided_slice %396 {offsets = [6, 0], sizes = [1, 32], strides = [1, 1]} : vector<10x32xf32> to vector<1x32xf32>
    %608 = vector.extract_strided_slice %396 {offsets = [7, 0], sizes = [1, 32], strides = [1, 1]} : vector<10x32xf32> to vector<1x32xf32>
    %cst_248 = arith.constant dense<0.000000e+00> : vector<48xf32>
    %609 = vector.multi_reduction <add>, %606, %cst_248 [1] : vector<48x32xf32> to vector<48xf32>
    %610 = vector.shape_cast %609 : vector<48xf32> to vector<48x1xf32>
    %cst_249 = arith.constant 3.200000e+01 : f32
    %611 = vector.broadcast %cst_249 : f32 to vector<48x1xf32>
    %612 = arith.divf %610, %611 : vector<48x1xf32>
    %613 = vector.broadcast %612 : vector<48x1xf32> to vector<48x32xf32>
    %614 = arith.subf %606, %613 : vector<48x32xf32>
    %615 = arith.mulf %614, %614 : vector<48x32xf32>
    %cst_250 = arith.constant dense<0.000000e+00> : vector<48xf32>
    %616 = vector.multi_reduction <add>, %615, %cst_250 [1] : vector<48x32xf32> to vector<48xf32>
    %617 = vector.shape_cast %616 : vector<48xf32> to vector<48x1xf32>
    %cst_251 = arith.constant 3.200000e+01 : f32
    %618 = vector.broadcast %cst_251 : f32 to vector<48x1xf32>
    %619 = arith.divf %617, %618 : vector<48x1xf32>
    %cst_252 = arith.constant 9.99999974E-6 : f32
    %620 = vector.broadcast %cst_252 : f32 to vector<48x1xf32>
    %621 = arith.addf %619, %620 : vector<48x1xf32>
    %622 = math.rsqrt %621 : vector<48x1xf32>
    %623 = vector.broadcast %622 : vector<48x1xf32> to vector<48x32xf32>
    %624 = arith.mulf %614, %623 : vector<48x32xf32>
    %625 = vector.broadcast %607 : vector<1x32xf32> to vector<48x32xf32>
    %626 = arith.mulf %624, %625 : vector<48x32xf32>
    %627 = vector.broadcast %608 : vector<1x32xf32> to vector<48x32xf32>
    %628 = arith.addf %626, %627 : vector<48x32xf32>
    %c0_253 = arith.constant 0 : index
    %c0_254 = arith.constant 0 : index
    %c0_255 = arith.constant 0 : index
    %629 = vector.load %arg32[%c0_253, %c0_254, %c0_255] : memref<1x32x32xf32, #tpu.memory_space<vmem>>, vector<1x32x32xf32>
    %630 = vector.shape_cast %629 : vector<1x32x32xf32> to vector<32x32xf32>
    %cst_256 = arith.constant dense<0.000000e+00> : vector<48x32xf32>
    %631 = tpu.matmul %628, %630, %cst_256 {dimension_numbers = #tpu.dot_dimension_numbers<[1], [0], [0], [1], [0, 0, 1, 1], [], []>} : vector<48x32xf32>, vector<32x32xf32>, vector<48x32xf32> -> vector<48x32xf32>
    %c0_257 = arith.constant 0 : index
    %c0_258 = arith.constant 0 : index
    %c0_259 = arith.constant 0 : index
    %632 = vector.load %arg33[%c0_257, %c0_258, %c0_259] : memref<1x1x32xf32, #tpu.memory_space<vmem>>, vector<1x1x32xf32>
    %633 = vector.shape_cast %632 : vector<1x1x32xf32> to vector<1x32xf32>
    %634 = vector.broadcast %633 : vector<1x32xf32> to vector<48x32xf32>
    %635 = arith.addf %631, %634 : vector<48x32xf32>
    %cst_260 = arith.constant 5.000000e-01 : f32
    %636 = vector.broadcast %cst_260 : f32 to vector<48x32xf32>
    %637 = arith.mulf %636, %635 : vector<48x32xf32>
    %cst_261 = arith.constant 0.707106769 : f32
    %638 = vector.broadcast %cst_261 : f32 to vector<48x32xf32>
    %639 = arith.mulf %635, %638 : vector<48x32xf32>
    %640 = math.erf %639 : vector<48x32xf32>
    %cst_262 = arith.constant 1.000000e+00 : f32
    %641 = vector.broadcast %cst_262 : f32 to vector<48x32xf32>
    %642 = arith.addf %641, %640 : vector<48x32xf32>
    %643 = arith.mulf %637, %642 : vector<48x32xf32>
    %c0_263 = arith.constant 0 : index
    %c0_264 = arith.constant 0 : index
    %c0_265 = arith.constant 0 : index
    %644 = vector.load %arg34[%c0_263, %c0_264, %c0_265] : memref<1x32x32xf32, #tpu.memory_space<vmem>>, vector<1x32x32xf32>
    %645 = vector.shape_cast %644 : vector<1x32x32xf32> to vector<32x32xf32>
    %cst_266 = arith.constant dense<0.000000e+00> : vector<48x32xf32>
    %646 = tpu.matmul %643, %645, %cst_266 {dimension_numbers = #tpu.dot_dimension_numbers<[1], [0], [0], [1], [0, 0, 1, 1], [], []>} : vector<48x32xf32>, vector<32x32xf32>, vector<48x32xf32> -> vector<48x32xf32>
    %647 = vector.extract_strided_slice %396 {offsets = [3, 0], sizes = [1, 32], strides = [1, 1]} : vector<10x32xf32> to vector<1x32xf32>
    %648 = vector.broadcast %647 : vector<1x32xf32> to vector<48x32xf32>
    %649 = arith.addf %646, %648 : vector<48x32xf32>
    %650 = arith.addf %628, %649 : vector<48x32xf32>
    %651 = vector.extract_strided_slice %396 {offsets = [8, 0], sizes = [1, 32], strides = [1, 1]} : vector<10x32xf32> to vector<1x32xf32>
    %652 = vector.extract_strided_slice %396 {offsets = [9, 0], sizes = [1, 32], strides = [1, 1]} : vector<10x32xf32> to vector<1x32xf32>
    %cst_267 = arith.constant dense<0.000000e+00> : vector<48xf32>
    %653 = vector.multi_reduction <add>, %650, %cst_267 [1] : vector<48x32xf32> to vector<48xf32>
    %654 = vector.shape_cast %653 : vector<48xf32> to vector<48x1xf32>
    %cst_268 = arith.constant 3.200000e+01 : f32
    %655 = vector.broadcast %cst_268 : f32 to vector<48x1xf32>
    %656 = arith.divf %654, %655 : vector<48x1xf32>
    %657 = vector.broadcast %656 : vector<48x1xf32> to vector<48x32xf32>
    %658 = arith.subf %650, %657 : vector<48x32xf32>
    %659 = arith.mulf %658, %658 : vector<48x32xf32>
    %cst_269 = arith.constant dense<0.000000e+00> : vector<48xf32>
    %660 = vector.multi_reduction <add>, %659, %cst_269 [1] : vector<48x32xf32> to vector<48xf32>
    %661 = vector.shape_cast %660 : vector<48xf32> to vector<48x1xf32>
    %cst_270 = arith.constant 3.200000e+01 : f32
    %662 = vector.broadcast %cst_270 : f32 to vector<48x1xf32>
    %663 = arith.divf %661, %662 : vector<48x1xf32>
    %cst_271 = arith.constant 9.99999974E-6 : f32
    %664 = vector.broadcast %cst_271 : f32 to vector<48x1xf32>
    %665 = arith.addf %663, %664 : vector<48x1xf32>
    %666 = math.rsqrt %665 : vector<48x1xf32>
    %667 = vector.broadcast %666 : vector<48x1xf32> to vector<48x32xf32>
    %668 = arith.mulf %658, %667 : vector<48x32xf32>
    %669 = vector.broadcast %651 : vector<1x32xf32> to vector<48x32xf32>
    %670 = arith.mulf %668, %669 : vector<48x32xf32>
    %671 = vector.broadcast %652 : vector<1x32xf32> to vector<48x32xf32>
    %672 = arith.addf %670, %671 : vector<48x32xf32>
    %c2 = arith.constant 2 : index
    %c0_272 = arith.constant 0 : index
    %673 = vector.load %arg36[%c2, %c0_272] : memref<4x32xf32, #tpu.memory_space<vmem>>, vector<1x32xf32>
    %c3 = arith.constant 3 : index
    %c0_273 = arith.constant 0 : index
    %674 = vector.load %arg36[%c3, %c0_273] : memref<4x32xf32, #tpu.memory_space<vmem>>, vector<1x32xf32>
    %cst_274 = arith.constant dense<0.000000e+00> : vector<48xf32>
    %675 = vector.multi_reduction <add>, %672, %cst_274 [1] : vector<48x32xf32> to vector<48xf32>
    %676 = vector.shape_cast %675 : vector<48xf32> to vector<48x1xf32>
    %cst_275 = arith.constant 3.200000e+01 : f32
    %677 = vector.broadcast %cst_275 : f32 to vector<48x1xf32>
    %678 = arith.divf %676, %677 : vector<48x1xf32>
    %679 = vector.broadcast %678 : vector<48x1xf32> to vector<48x32xf32>
    %680 = arith.subf %672, %679 : vector<48x32xf32>
    %681 = arith.mulf %680, %680 : vector<48x32xf32>
    %cst_276 = arith.constant dense<0.000000e+00> : vector<48xf32>
    %682 = vector.multi_reduction <add>, %681, %cst_276 [1] : vector<48x32xf32> to vector<48xf32>
    %683 = vector.shape_cast %682 : vector<48xf32> to vector<48x1xf32>
    %cst_277 = arith.constant 3.200000e+01 : f32
    %684 = vector.broadcast %cst_277 : f32 to vector<48x1xf32>
    %685 = arith.divf %683, %684 : vector<48x1xf32>
    %cst_278 = arith.constant 9.99999974E-6 : f32
    %686 = vector.broadcast %cst_278 : f32 to vector<48x1xf32>
    %687 = arith.addf %685, %686 : vector<48x1xf32>
    %688 = math.rsqrt %687 : vector<48x1xf32>
    %689 = vector.broadcast %688 : vector<48x1xf32> to vector<48x32xf32>
    %690 = arith.mulf %680, %689 : vector<48x32xf32>
    %691 = vector.broadcast %673 : vector<1x32xf32> to vector<48x32xf32>
    %692 = arith.mulf %690, %691 : vector<48x32xf32>
    %693 = vector.broadcast %674 : vector<1x32xf32> to vector<48x32xf32>
    %694 = arith.addf %692, %693 : vector<48x32xf32>
    %695 = tpu.concatenate %694, %694, %694 in 1 : vector<48x32xf32>, vector<48x32xf32>, vector<48x32xf32> -> vector<48x96xf32>
    %c0_279 = arith.constant 0 : index
    %c0_280 = arith.constant 0 : index
    %696 = vector.load %arg14[%c0_279, %c0_280] : memref<48x96xf32, #tpu.memory_space<vmem>>, vector<48x96xf32>
    %697 = arith.mulf %695, %696 : vector<48x96xf32>
    %c0_281 = arith.constant 0 : index
    %c0_282 = arith.constant 0 : index
    %698 = vector.load %arg16[%c0_281, %c0_282] : memref<96x24xf32, #tpu.memory_space<vmem>>, vector<96x24xf32>
    %cst_283 = arith.constant dense<0.000000e+00> : vector<48x24xf32>
    %699 = tpu.matmul %697, %698, %cst_283 {dimension_numbers = #tpu.dot_dimension_numbers<[1], [0], [0], [1], [0, 0, 1, 1], [], []>} : vector<48x96xf32>, vector<96x24xf32>, vector<48x24xf32> -> vector<48x24xf32>
    %c0_284 = arith.constant 0 : index
    %c0_285 = arith.constant 0 : index
    %700 = vector.load %arg15[%c0_284, %c0_285] : memref<16x48xf32, #tpu.memory_space<vmem>>, vector<16x48xf32>
    %cst_286 = arith.constant dense<0.000000e+00> : vector<16x24xf32>
    %701 = tpu.matmul %700, %699, %cst_286 {dimension_numbers = #tpu.dot_dimension_numbers<[1], [0], [0], [1], [0, 0, 1, 1], [], []>} : vector<16x48xf32>, vector<48x24xf32>, vector<16x24xf32> -> vector<16x24xf32>
    %c0_287 = arith.constant 0 : index
    %c0_288 = arith.constant 0 : index
    %702 = vector.load %arg17[%c0_287, %c0_288] : memref<1x24xf32, #tpu.memory_space<vmem>>, vector<1x24xf32>
    %703 = vector.broadcast %702 : vector<1x24xf32> to vector<16x24xf32>
    %704 = arith.addf %701, %703 : vector<16x24xf32>
    %c0_289 = arith.constant 0 : index
    %c0_290 = arith.constant 0 : index
    %705 = vector.load %arg37[%c0_289, %c0_290] : memref<16x24xf32, #tpu.memory_space<vmem>>, vector<16x24xf32>
    tpu.vector_store %arg37[%c0_289, %c0_290], %704 {strides = array<i32>} : memref<16x24xf32, #tpu.memory_space<vmem>>, vector<16x24xf32>,
    return
  }
  func.func @transform_0(%arg0: i32) -> (i32, i32) {
    %c0_i32 = arith.constant 0 : i32
    %c0_i32_0 = arith.constant 0 : i32
    return %arg0, %c0_i32 : i32, i32
  }
  func.func @transform_1(%arg0: i32) -> (i32, i32) {
    %c0_i32 = arith.constant 0 : i32
    %c0_i32_0 = arith.constant 0 : i32
    return %arg0, %c0_i32 : i32, i32
  }
  func.func @transform_2(%arg0: i32) -> (i32, i32) {
    %c0_i32 = arith.constant 0 : i32
    %c0_i32_0 = arith.constant 0 : i32
    return %arg0, %c0_i32 : i32, i32
  }
  func.func @transform_3(%arg0: i32) -> (i32, i32) {
    %c0_i32 = arith.constant 0 : i32
    %c0_i32_0 = arith.constant 0 : i32
    return %arg0, %c0_i32 : i32, i32
  }
  func.func @transform_4(%arg0: i32) -> (i32, i32, i32) {
    %c0_i32 = arith.constant 0 : i32
    %c0_i32_0 = arith.constant 0 : i32
    %c0_i32_1 = arith.constant 0 : i32
    %c0_i32_2 = arith.constant 0 : i32
    return %c0_i32, %c0_i32_0, %c0_i32_1 : i32, i32, i32
  }
  func.func @transform_5(%arg0: i32) -> (i32, i32, i32) {
    %c0_i32 = arith.constant 0 : i32
    %c0_i32_0 = arith.constant 0 : i32
    %c0_i32_1 = arith.constant 0 : i32
    %c0_i32_2 = arith.constant 0 : i32
    return %c0_i32, %c0_i32_0, %c0_i32_1 : i32, i32, i32
  }
  func.func @transform_6(%arg0: i32) -> (i32, i32) {
    %c0_i32 = arith.constant 0 : i32
    %c0_i32_0 = arith.constant 0 : i32
    %c0_i32_1 = arith.constant 0 : i32
    return %c0_i32, %c0_i32_0 : i32, i32
  }
  func.func @transform_7(%arg0: i32) -> (i32, i32, i32) {
    %c0_i32 = arith.constant 0 : i32
    %c0_i32_0 = arith.constant 0 : i32
    %c0_i32_1 = arith.constant 0 : i32
    %c0_i32_2 = arith.constant 0 : i32
    return %c0_i32, %c0_i32_0, %c0_i32_1 : i32, i32, i32
  }
  func.func @transform_8(%arg0: i32) -> (i32, i32) {
    %c0_i32 = arith.constant 0 : i32
    %c0_i32_0 = arith.constant 0 : i32
    %c0_i32_1 = arith.constant 0 : i32
    return %c0_i32, %c0_i32_0 : i32, i32
  }
  func.func @transform_9(%arg0: i32) -> (i32, i32) {
    %c0_i32 = arith.constant 0 : i32
    %c0_i32_0 = arith.constant 0 : i32
    %c0_i32_1 = arith.constant 0 : i32
    return %c0_i32, %c0_i32_0 : i32, i32
  }
  func.func @transform_10(%arg0: i32) -> (i32, i32) {
    %c0_i32 = arith.constant 0 : i32
    %c0_i32_0 = arith.constant 0 : i32
    %c0_i32_1 = arith.constant 0 : i32
    return %c0_i32, %c0_i32_0 : i32, i32
  }
  func.func @transform_11(%arg0: i32) -> (i32, i32) {
    %c0_i32 = arith.constant 0 : i32
    %c0_i32_0 = arith.constant 0 : i32
    %c0_i32_1 = arith.constant 0 : i32
    return %c0_i32, %c0_i32_0 : i32, i32
  }
  func.func @transform_12(%arg0: i32) -> (i32, i32) {
    %c0_i32 = arith.constant 0 : i32
    %c0_i32_0 = arith.constant 0 : i32
    %c0_i32_1 = arith.constant 0 : i32
    return %c0_i32, %c0_i32_0 : i32, i32
  }
  func.func @transform_13(%arg0: i32) -> (i32, i32) {
    %c0_i32 = arith.constant 0 : i32
    %c0_i32_0 = arith.constant 0 : i32
    %c0_i32_1 = arith.constant 0 : i32
    return %c0_i32, %c0_i32_0 : i32, i32
  }
  func.func @transform_14(%arg0: i32) -> (i32, i32) {
    %c0_i32 = arith.constant 0 : i32
    %c0_i32_0 = arith.constant 0 : i32
    %c0_i32_1 = arith.constant 0 : i32
    return %c0_i32, %c0_i32_0 : i32, i32
  }
  func.func @transform_15(%arg0: i32) -> (i32, i32) {
    %c0_i32 = arith.constant 0 : i32
    %c0_i32_0 = arith.constant 0 : i32
    %c0_i32_1 = arith.constant 0 : i32
    return %c0_i32, %c0_i32_0 : i32, i32
  }
  func.func @transform_16(%arg0: i32) -> (i32, i32) {
    %c0_i32 = arith.constant 0 : i32
    %c0_i32_0 = arith.constant 0 : i32
    %c0_i32_1 = arith.constant 0 : i32
    return %c0_i32, %c0_i32_0 : i32, i32
  }
  func.func @transform_17(%arg0: i32) -> (i32, i32, i32) {
    %c0_i32 = arith.constant 0 : i32
    %c0_i32_0 = arith.constant 0 : i32
    %c0_i32_1 = arith.constant 0 : i32
    %c0_i32_2 = arith.constant 0 : i32
    return %c0_i32, %c0_i32_0, %c0_i32_1 : i32, i32, i32
  }
  func.func @transform_18(%arg0: i32) -> (i32, i32, i32) {
    %c0_i32 = arith.constant 0 : i32
    %c0_i32_0 = arith.constant 0 : i32
    %c0_i32_1 = arith.constant 0 : i32
    %c0_i32_2 = arith.constant 0 : i32
    return %c0_i32, %c0_i32_0, %c0_i32_1 : i32, i32, i32
  }
  func.func @transform_19(%arg0: i32) -> (i32, i32, i32) {
    %c0_i32 = arith.constant 0 : i32
    %c0_i32_0 = arith.constant 0 : i32
    %c0_i32_1 = arith.constant 0 : i32
    %c0_i32_2 = arith.constant 0 : i32
    return %c0_i32, %c0_i32_0, %c0_i32_1 : i32, i32, i32
  }
  func.func @transform_20(%arg0: i32) -> (i32, i32, i32) {
    %c0_i32 = arith.constant 0 : i32
    %c0_i32_0 = arith.constant 0 : i32
    %c0_i32_1 = arith.constant 0 : i32
    %c0_i32_2 = arith.constant 0 : i32
    return %c0_i32, %c0_i32_0, %c0_i32_1 : i32, i32, i32
  }
  func.func @transform_21(%arg0: i32) -> (i32, i32, i32) {
    %c0_i32 = arith.constant 0 : i32
    %c0_i32_0 = arith.constant 0 : i32
    %c0_i32_1 = arith.constant 0 : i32
    %c0_i32_2 = arith.constant 0 : i32
    return %c0_i32, %c0_i32_0, %c0_i32_1 : i32, i32, i32
  }
  func.func @transform_22(%arg0: i32) -> (i32, i32, i32) {
    %c0_i32 = arith.constant 0 : i32
    %c0_i32_0 = arith.constant 0 : i32
    %c0_i32_1 = arith.constant 0 : i32
    %c0_i32_2 = arith.constant 0 : i32
    return %c0_i32, %c0_i32_0, %c0_i32_1 : i32, i32, i32
  }
  func.func @transform_23(%arg0: i32) -> (i32, i32, i32) {
    %c0_i32 = arith.constant 0 : i32
    %c0_i32_0 = arith.constant 0 : i32
    %c0_i32_1 = arith.constant 0 : i32
    %c0_i32_2 = arith.constant 0 : i32
    return %c0_i32, %c0_i32_0, %c0_i32_1 : i32, i32, i32
  }
  func.func @transform_24(%arg0: i32) -> (i32, i32, i32) {
    %c0_i32 = arith.constant 0 : i32
    %c0_i32_0 = arith.constant 0 : i32
    %c0_i32_1 = arith.constant 0 : i32
    %c0_i32_2 = arith.constant 0 : i32
    return %c0_i32, %c0_i32_0, %c0_i32_1 : i32, i32, i32
  }
  func.func @transform_25(%arg0: i32) -> (i32, i32, i32) {
    %c0_i32 = arith.constant 0 : i32
    %c0_i32_0 = arith.constant 0 : i32
    %c0_i32_1 = arith.constant 0 : i32
    %c0_i32_2 = arith.constant 0 : i32
    return %c0_i32, %c0_i32_0, %c0_i32_1 : i32, i32, i32
  }
  func.func @transform_26(%arg0: i32) -> (i32, i32, i32) {
    %c0_i32 = arith.constant 0 : i32
    %c0_i32_0 = arith.constant 0 : i32
    %c0_i32_1 = arith.constant 0 : i32
    %c0_i32_2 = arith.constant 0 : i32
    return %c0_i32, %c0_i32_0, %c0_i32_1 : i32, i32, i32
  }
  func.func @transform_27(%arg0: i32) -> (i32, i32, i32) {
    %c0_i32 = arith.constant 0 : i32
    %c0_i32_0 = arith.constant 0 : i32
    %c0_i32_1 = arith.constant 0 : i32
    %c0_i32_2 = arith.constant 0 : i32
    return %c0_i32, %c0_i32_0, %c0_i32_1 : i32, i32, i32
  }
  func.func @transform_28(%arg0: i32) -> (i32, i32, i32) {
    %c0_i32 = arith.constant 0 : i32
    %c0_i32_0 = arith.constant 0 : i32
    %c0_i32_1 = arith.constant 0 : i32
    %c0_i32_2 = arith.constant 0 : i32
    return %c0_i32, %c0_i32_0, %c0_i32_1 : i32, i32, i32
  }
  func.func @transform_29(%arg0: i32) -> (i32, i32, i32) {
    %c0_i32 = arith.constant 0 : i32
    %c0_i32_0 = arith.constant 0 : i32
    %c0_i32_1 = arith.constant 0 : i32
    %c0_i32_2 = arith.constant 0 : i32
    return %c0_i32, %c0_i32_0, %c0_i32_1 : i32, i32, i32
  }
  func.func @transform_30(%arg0: i32) -> (i32, i32, i32) {
    %c0_i32 = arith.constant 0 : i32
    %c0_i32_0 = arith.constant 0 : i32
    %c0_i32_1 = arith.constant 0 : i32
    %c0_i32_2 = arith.constant 0 : i32
    return %c0_i32, %c0_i32_0, %c0_i32_1 : i32, i32, i32
  }
  func.func @transform_31(%arg0: i32) -> (i32, i32, i32) {
    %c0_i32 = arith.constant 0 : i32
    %c0_i32_0 = arith.constant 0 : i32
    %c0_i32_1 = arith.constant 0 : i32
    %c0_i32_2 = arith.constant 0 : i32
    return %c0_i32, %c0_i32_0, %c0_i32_1 : i32, i32, i32
  }
  func.func @transform_32(%arg0: i32) -> (i32, i32, i32) {
    %c0_i32 = arith.constant 0 : i32
    %c0_i32_0 = arith.constant 0 : i32
    %c0_i32_1 = arith.constant 0 : i32
    %c0_i32_2 = arith.constant 0 : i32
    return %c0_i32, %c0_i32_0, %c0_i32_1 : i32, i32, i32
  }
  func.func @transform_33(%arg0: i32) -> (i32, i32, i32) {
    %c0_i32 = arith.constant 0 : i32
    %c0_i32_0 = arith.constant 0 : i32
    %c0_i32_1 = arith.constant 0 : i32
    %c0_i32_2 = arith.constant 0 : i32
    return %c0_i32, %c0_i32_0, %c0_i32_1 : i32, i32, i32
  }
  func.func @transform_34(%arg0: i32) -> (i32, i32, i32) {
    %c0_i32 = arith.constant 0 : i32
    %c0_i32_0 = arith.constant 0 : i32
    %c0_i32_1 = arith.constant 0 : i32
    %c0_i32_2 = arith.constant 0 : i32
    return %c0_i32, %c0_i32_0, %c0_i32_1 : i32, i32, i32
  }
  func.func @transform_35(%arg0: i32) -> (i32, i32) {
    %c0_i32 = arith.constant 0 : i32
    %c0_i32_0 = arith.constant 0 : i32
    %c0_i32_1 = arith.constant 0 : i32
    return %c0_i32, %c0_i32_0 : i32, i32
  }
  func.func @transform_36(%arg0: i32) -> (i32, i32) {
    %c0_i32 = arith.constant 0 : i32
    %c0_i32_0 = arith.constant 0 : i32
    return %arg0, %c0_i32 : i32, i32
  }
}

</mosaic_0001>

<bundles_post_ra>
// kernel: informer_uni_forward.1
= control target key start
LH: loop header
LB: loop body
LE: loop exit
PB: predicated region body
PF: predicated region fallthrough
CT: control target
= control target key end

     0   :  { %s16663_s6 = smov 1   ;;  %s16664_s10 = smov 2   ;;  %s19993_s0 = inlined_call_operand.smem [shape: u32[37], index: -1, kind: input, shape index: {}] }
   0x1   :  { %s16723_s5 = sld [smem:[%s19993_s0]]   ;;  %s16665_s14 = smov 3  }
   0x2   :  { %s16728_s9 = sld [smem:[%s19993_s0 + %s16663_s6]]   ;;  %s16666_s18 = smov 4  }
   0x3   :  { %s16733_s13 = sld [smem:[%s19993_s0 + %s16664_s10]]   ;;  %s16667_s22 = smov 5  }
   0x4   :  { %s16738_s17 = sld [smem:[%s19993_s0 + %s16665_s14]]   ;;  %s16668_s26 = smov 6  }
   0x5   :  { %s16743_s21 = sld [smem:[%s19993_s0 + %s16666_s18]]   ;;  %s16669_s30 = smov 7  }
   0x6   :  { %s16748_s25 = sld [smem:[%s19993_s0 + %s16667_s22]]   ;;  %s16670_s4 = smov 8  }
   0x7   :  { %s16753_s29 = sld [smem:[%s19993_s0 + %s16668_s26]]   ;;  %s16671_s10 = smov 9  }
   0x8   :  { %s16758_s3 = sld [smem:[%s19993_s0 + %s16669_s30]]   ;;  %s16672_s15 = smov 10  }
   0x9   :  { %s16763_s8 = sld [smem:[%s19993_s0 + %s16670_s4]]   ;;  %s16673_s20 = smov 11  }
   0xa   :  { %20053 = sst [smem:[#allocation2_spill]] %s16738_s17  ;;  %s16674_s26 = smov 12  }
   0xb   :  { %s16768_s14 = sld [smem:[%s19993_s0 + %s16671_s10]]   ;;  %s16675_s1 = smov 13  }
   0xc   :  { %20054 = sst [smem:[#allocation3_spill]] %s16748_s25  ;;  %s16676_s7 = smov 14  }
   0xd   :  { %s16773_s19 = sld [smem:[%s19993_s0 + %s16672_s15]]   ;;  %s16677_s15 = smov 15  }
   0xe   :  { %20055 = sst [smem:[#allocation4_spill]] %s16758_s3  ;;  %s16678_s22 = smov 16  }
   0xf   :  { %s16778_s24 = sld [smem:[%s19993_s0 + %s16673_s20]]   ;;  %s16679_s28 = smov 17  }
  0x10   :  { %s16783_s30 = sld [smem:[%s19993_s0 + %s16674_s26]]  }
  0x11   :  { %20056 = sst [smem:[#allocation5_spill]] %s16768_s14 }
  0x12   :  { %s16788_s6 = sld [smem:[%s19993_s0 + %s16675_s1]]  }
  0x13   :  { %20057 = sst [smem:[#allocation6_spill]] %s16773_s19 }
  0x14   :  { %s16793_s12 = sld [smem:[%s19993_s0 + %s16676_s7]]   ;;  %s16680_s7 = smov 18  }
  0x15   :  { %20058 = sst [smem:[#allocation7_spill]] %s16778_s24 }
  0x16   :  { %20059 = sst [smem:[#allocation8_spill]] %s16783_s30 }
  0x17   :  { %s16798_s20 = sld [smem:[%s19993_s0 + %s16677_s15]]   ;;  %s16681_s15 = smov 19  }
  0x18   :  { %20060 = sst [smem:[#allocation9_spill]] %s16788_s6 }
  0x19   :  { %s16803_s27 = sld [smem:[%s19993_s0 + %s16678_s22]]   ;;  %s16682_s22 = smov 20  }
  0x1a   :  { %20061 = sst [smem:[#allocation10_spill]] %s16793_s12 }
  0x1b   :  { %s16808_s4 = sld [smem:[%s19993_s0 + %s16679_s28]]   ;;  %s16683_s28 = smov 21  }
  0x1c   :  { %s16813_s12 = sld [smem:[%s19993_s0 + %s16680_s7]]   ;;  %s16684_s7 = smov 22  }
  0x1d   :  { %20062 = sst [smem:[#allocation11_spill]] %s16798_s20 }
  0x1e   :  { %s16818_s6 = sld [smem:[%s19993_s0 + %s16681_s15]]   ;;  %s16685_s15 = smov 23  }
  0x1f   :  { %20063 = sst [smem:[#allocation12_spill]] %s16803_s27 }
  0x20   :  { %s16823_s27 = sld [smem:[%s19993_s0 + %s16682_s22]]   ;;  %s16686_s22 = smov 24  }
  0x21   :  { %s16828_s20 = sld [smem:[%s19993_s0 + %s16683_s28]]   ;;  %s16687_s28 = smov 25  }
  0x22   :  { %s16833_s19 = sld [smem:[%s19993_s0 + %s16684_s7]]   ;;  %s16688_s7 = smov 26  }
  0x23   :  { %s16838_s30 = sld [smem:[%s19993_s0 + %s16685_s15]]   ;;  %s16689_s15 = smov 27  }
  0x24   :  { %s16843_s24 = sld [smem:[%s19993_s0 + %s16686_s22]]   ;;  %s16690_s22 = smov 28  }
  0x25   :  { %s16848_s14 = sld [smem:[%s19993_s0 + %s16687_s28]]   ;;  %s16691_s28 = smov 29  }
  0x26   :  { %s16853_s25 = sld [smem:[%s19993_s0 + %s16688_s7]]   ;;  %s16692_s7 = smov 30  }
  0x27   :  { %s16858_s17 = sld [smem:[%s19993_s0 + %s16689_s15]]   ;;  %s16693_s15 = smov 31  }
  0x2a   :  { %20064 = sst [smem:[#allocation13_spill]] %s16843_s24 }
  0x2b   :  { %20065 = sst [smem:[#allocation14_spill]] %s16848_s14 }
  0x2c   :  { %20066 = sst [smem:[#allocation15_spill]] %s16853_s25 }
  0x2d   :  { %20067 = sst [smem:[#allocation16_spill]] %s16858_s17 }
  0x2e   :  { %s16863_s24 = sld [smem:[%s19993_s0 + %s16690_s22]]   ;;  %s16694_s22 = smov 32  }
  0x2f   :  { %s16868_s14 = sld [smem:[%s19993_s0 + %s16691_s28]]   ;;  %s16695_s28 = smov 33  }
  0x30   :  { %s16873_s25 = sld [smem:[%s19993_s0 + %s16692_s7]]   ;;  %s16696_s7 = smov 34  }
  0x31   :  { %s16878_s17 = sld [smem:[%s19993_s0 + %s16693_s15]]   ;;  %s16697_s15 = smov 35  }
  0x34   :  { %20068 = sst [smem:[#allocation17_spill]] %s16863_s24 }
  0x35   :  { %20069 = sst [smem:[#allocation18_spill]] %s16868_s14 }
  0x36   :  { %20070 = sst [smem:[#allocation19_spill]] %s16873_s25 }
  0x37   :  { %20071 = sst [smem:[#allocation20_spill]] %s16878_s17 }
  0x38   :  { %s16883_s24 = sld [smem:[%s19993_s0 + %s16694_s22]]   ;;  %s16698_s22 = smov 36  }
  0x39   :  { %s16888_s14 = sld [smem:[%s19993_s0 + %s16695_s28]]   ;;  %s16905_s28 = smov 0  }
  0x3a   :  { %s16893_s25 = sld [smem:[%s19993_s0 + %s16696_s7]]  }
  0x3b   :  { %s16898_s17 = sld [smem:[%s19993_s0 + %s16697_s15]]  }
  0x3e   :  { %20072 = sst [smem:[#allocation21_spill]] %s16883_s24 }
  0x3f   :  { %s16903_s24 = sld [smem:[%s19993_s0 + %s16698_s22]]  }
  0x40 LB: > { %s20073_s3 = sld [smem:[#allocation4_spill]]  ;;  %s20008_s1 = sadd.s32 4294967295, %s16661_s28   ;;  %s16661_s28 = sphi %s16905_s28, %s83_s28  }
  0x41   : > { %p12400_p0 = scmp.ge.s32.totalorder %s16661_s28, 1  ;;  %p1033_p1 = scmp.lt.s32.totalorder %s16661_s28, 3 }
  0x43   : > { %p1034_p2 = pnand %p12400_p0, %p1033_p1 }
  0x45   : > { %1037 = sbr.rel (%p1034_p2) target bundleno = 17507 (0x4463), region = 164 }
  0x4c   : > { %v16914_v0 = vld [vmem:[%s20073_s3 + $0x18] sm:$0x1f]  ;;  %vm1209_vm0 = vcmask 1043456   ;;  %s1138_s0 = smul.u32 6, %s20008_s1  ;;  %v1180_v1 = vld [vmem:[%s20073_s3] sm:$0xff]  ;;  %vm1190_vm1 = vcmask 31744   ;;  %v1422_v23 = vlaneseq }
  0x4d   : > { %13622 = vmatprep.subr.msk.mxu1 %vm1209_vm0, %v16914_v0  ;;  %v1182_v5 = vld [vmem:[%s20073_s3 + $0x10] sm:$0xff]  ;;  %vm1308_vm2 = vcmask 64512   ;;  %v1181_v15 = vld [vmem:[%s20073_s3 + $0x8] sm:$0xff]  ;;  %v1438_v16 = vld [vmem:[%s16743_s21] sm:$0xff]  ;;  %vm1539_vm3 = vcmask 392192   ;;  %vm1898_vm4 = vcmask 261120  }
  0x4e   : > { %13623 = vmatpush3.msk.msra.mxu1 %vm1209_vm0, %v16914_v0  ;;  %p1139_p3 = scmp.lt.s32.totalorder %s1138_s0, 11  ;;  %13633 = vmatprep.subr.mxu0 %v1181_v15  ;;  %v1887_v17 = vld [vmem:[%s16808_s4] sm:$0xff]  ;;  %v1888_v18 = vld [vmem:[%s16808_s4 + $0x8] sm:$0xff]  ;;  %v1889_v19 = vld [vmem:[%s16808_s4 + $0x10] sm:$0xff]  ;;  %v16961_v24 = vshrl.u32 %v1422_v23, 7  ;;  %s20042_s11 = smov 96  }
  0x4f   : > { %13644 = vmatprep.subr.mxu1 %v1180_v1  ;;  %13634 = vmatpush3.msra.mxu0 %v1181_v15  ;;  %v14820_v20 = vpack.c.bf16 %v1888_v18, %v1887_v17  ;;  %v1890_v21 = vld [vmem:[%s16808_s4 + $0x18] sm:$0xff]  ;;  %v1185_v26 = vld [vmem:[%s16753_s29 + $0x8] sm:$0xff]  ;;  %v1184_v28 = vld [vmem:[%s16753_s29] sm:$0xff]  ;;  %s20038_s15 = smov 64   ;;  %s20040_s16 = smov 88   ;;  %vm3492_vm6 = vcmask 130048  }
  0x50   : > { %s20125_s0 = smov (!%p1139_p3, %s1138_s0), 11  ;;  %v14824_v22 = vpack.c.bf16 %v1890_v21, %v1889_v19  ;;  %20074 = vst [vmem:[#allocation22_spill] sm:$0xff] %v16961_v24  ;;  %v16964_v25 = vsub.s32 4, %v16961_v24  ;;  %v1187_v33 = vld [vmem:[%s16753_s29 + $0x18] sm:$0xff]  ;;  %v1186_v34 = vld [vmem:[%s16753_s29 + $0x10] sm:$0xff]  ;;  %v1189_v41 = vld [vmem:[%s16753_s29 + $0x28] sm:$0xff] }
  0x51   : > { %s16923_s2 = sshll.u32 %s20125_s0, 3  ;;  %v1188_v42 = vld [vmem:[%s16753_s29 + $0x20] sm:$0xff]  ;;  %v1439_v62 = vld [vmem:[%s16743_s21 + $0x8] sm:$0xff]  ;;  %v12437_v15 = vld [vmem:[%s16743_s21 + $0x58] sm:$0xff]  ;;  %s20044_s18 = smov 120   ;;  %vm3499_vm7 = vcmask 195584  }
  0x52   : > { %s1148_s7 = scalar_lea.vmem %s16728_s9, %s16923_s2  ;;  %s1142_s10 = scalar_lea.vmem %s16723_s5, %s16923_s2  ;;  %v1425_v27 = vrot.slane %v16914_v0, %v16964_v25  ;;  %v1440_v0 = vld [vmem:[%s16743_s21 + $0x10] sm:$0xff]  ;;  %vm17075_vm5 = vmpackc.low %vm1308_vm2, %vm1308_vm2  ;;  %vm9321_vm8 = vcmask 523264   ;;  %vm12062_vm9 = vcmask 785408  }
  0x53   : > { %v1174_v2 = vld [vmem:[%s1148_s7] sm:$0xff]  ;;  %v1175_v3 = vld [vmem:[%s1148_s7 + $0x8] sm:$0xff]  ;;  %v1176_v4 = vld [vmem:[%s1148_s7 + $0x10] sm:$0xff]  ;;  %s20027_s22 = smov 56   ;;  %s20019_s23 = smov 80  }
  0x54   : > { %13624 = vmatprep.mubr.msk.f32.mxu1 %vm1190_vm1, %v1174_v2  ;;  %v1177_v6 = vld [vmem:[%s1148_s7 + $0x18] sm:$0xff]  ;;  %v1168_v7 = vld [vmem:[%s1142_s10] sm:$0xff]  ;;  %v1179_v9 = vld [vmem:[%s1148_s7 + $0x28] sm:$0xff]  ;;  %s20015_s26 = smov 112   ;;  %s20017_s0 = smov 48  }
  0x55   : > { %13625 = vmatmul.mubr.msk.f32.vlgmr.msra.gmra.mrb[0].mxu1 %vm1190_vm1, %v1175_v3  ;;  %v1178_v8 = vld [vmem:[%s1148_s7 + $0x20] sm:$0xff]  ;;  %13635 = vmatprep.mubr.msk.f32.mxu0 %vm1308_vm2, %v1168_v7  ;;  %v1169_v10 = vld [vmem:[%s1142_s10 + $0x8] sm:$0xff]  ;;  %v1170_v11 = vld [vmem:[%s1142_s10 + $0x10] sm:$0xff]  ;;  %s20011_s7 = smov 72   ;;  %s20013_s1 = smov 40  }
  0x56   : > { %13645 = vmatpush3.msra.mxu1 %v1180_v1  ;;  %13627 = vmatprep.mubr.msk.f32.mxu1 %vm1190_vm1, %v1176_v4  ;;  %v1171_v12 = vld [vmem:[%s1142_s10 + $0x18] sm:$0xff]  ;;  %v1172_v13 = vld [vmem:[%s1142_s10 + $0x20] sm:$0xff]  ;;  %v1173_v14 = vld [vmem:[%s1142_s10 + $0x28] sm:$0xff]  ;;  %s20009_s10 = smov 104  }
  0x57   : > { %13676 = vmatprep.subr.mxu1 %v1182_v5  ;;  %13636 = vmatmul.mubr.msk.f32.vlgmr.msra.gmra.mrb[0].mxu0 %vm1308_vm2, %v1169_v10  ;;  %v1441_v3 = vld [vmem:[%s16743_s21 + $0x18] sm:$0xff] }
  0x58   : > { %13638 = vmatprep.mubr.msk.f32.mxu0 %vm1308_vm2, %v1170_v11 }
  0x59   : > { %13628 = vmatmul.mubr.msk.f32.gmra.mrb[2].mxu1 %vm1190_vm1, %v1177_v6 }
  0x5a   : > { %13630 = vmatprep.mubr.msk.f32.mxu1 %vm1190_vm1, %v1178_v8  ;;  %v1443_v8 = vld [vmem:[%s16743_s21 + $0x28] sm:$0xff] }
  0x5b   : > { %13639 = vmatmul.mubr.msk.f32.gmra.mrb[2].mxu0 %vm1308_vm2, %v1171_v12 }
  0x5c   : > { %13641 = vmatprep.mubr.msk.f32.mxu0 %vm1308_vm2, %v1172_v13 }
  0x5d   : > { %13631 = vmatmul.mubr.msk.f32.gmra.mrb[4].mxu1 %vm1190_vm1, %v1179_v9 }
  0x5e   : > { %13646 = vmatprep.mubr.msk.f32.mxu1 %vm1308_vm2, %v1168_v7 }
  0x5f   : > { %13642 = vmatmul.mubr.msk.f32.gmra.mrb[4].mxu0 %vm1308_vm2, %v1173_v14 }
  0x60   : > { %13667 = vmatprep.mubr.msk.f32.mxu0 %vm1539_vm3, %v1438_v16 }
  0x61   : > { %13647 = vmatmul.mubr.msk.f32.vlgmr.msra.gmra.mrb[6].mxu1 %vm1308_vm2, %v1169_v10 }
  0x62   : > { %13677 = vmatpush3.msra.mxu1 %v1182_v5  ;;  %13649 = vmatprep.mubr.msk.f32.mxu1 %vm1308_vm2, %v1170_v11  ;;  %v1442_v5 = vld [vmem:[%s16743_s21 + $0x20] sm:$0xff] }
  0x63   : > { %14821 = vmatprep.subr.bf16.mxu1 %v14820_v20 }
  0x65   : > { %13650 = vmatmul.mubr.msk.f32.gmra.mrb[8].mxu1 %vm1308_vm2, %v1171_v12 }
  0x66   : > { %13652 = vmatprep.mubr.msk.f32.mxu1 %vm1308_vm2, %v1172_v13 }
  0x69   : > { %13653 = vmatmul.mubr.msk.f32.gmra.mrb[10].mxu1 %vm1308_vm2, %v1173_v14 }
  0x6a   : > { %13678 = vmatprep.mubr.msk.f32.mxu1 %vm1308_vm2, %v1168_v7 }
  0x6d   : > { %13679 = vmatmul.mubr.msk.f32.vlgmr.msra.gmra.mrb[12].mxu1 %vm1308_vm2, %v1169_v10  ;;  %v12432_v10 = vld [vmem:[%s16743_s21 + $0x30] sm:$0xff] }
  0x6e   : > { %13681 = vmatprep.mubr.msk.f32.mxu1 %vm1308_vm2, %v1170_v11  ;;  %14823 = vmatpush3.bf16.msra.mxu1 %v14820_v20  ;;  %v12433_v11 = vld [vmem:[%s16743_s21 + $0x38] sm:$0xff] }
  0x6f   : > { %14825 = vmatprep.subr.bf16.mxu1 %v14824_v22 }
  0x71   : > { %13682 = vmatmul.mubr.msk.f32.gmra.mrb[14].mxu1 %vm1308_vm2, %v1171_v12  ;;  %v12434_v12 = vld [vmem:[%s16743_s21 + $0x40] sm:$0xff] }
  0x72   : > { %13684 = vmatprep.mubr.msk.f32.mxu1 %vm1308_vm2, %v1172_v13  ;;  %14827 = vmatpush3.bf16.msra.mxu1 %v14824_v22  ;;  %v12435_v13 = vld [vmem:[%s16743_s21 + $0x48] sm:$0xff] }
  0x75   : > { %13685 = vmatmul.mubr.msk.f32.gmra.mrb[16].mxu1 %vm1308_vm2, %v1173_v14  ;;  %v12436_v14 = vld [vmem:[%s16743_s21 + $0x50] sm:$0xff] }
 0x128   : > { %v13626_v29 = vpop.f32.mrb[0].mxu1 }
 0x129   : > { %v15516_v30 = vadd.f32 %v13626_v29, %v1185_v26  ;;  %v1279_v31 = vpop.f32.mrb[1].mxu1 }
 0x12a   : > { %v15519_v32 = vadd.f32 %v1279_v31, %v1184_v28 }
 0x12b   : > { %v16972_v35 = vadd.f32 %v15516_v30, %v1425_v27  ;;  %v12450_v30 = vld [vmem:[%s16813_s12] ss:$0 sm:$0xff] }
 0x12c   : > { %v13629_v36 = vpop.f32.mrb[2].mxu1  ;;  %v16974_v37 = vadd.f32 %v15519_v32, %v1425_v27 }
 0x12d   : > { %v15522_v38 = vadd.f32 %v13629_v36, %v1187_v33  ;;  %v1289_v39 = vpop.f32.mrb[3].mxu1 }
 0x12e   : > { %v15525_v40 = vadd.f32 %v1289_v39, %v1186_v34 }
 0x12f   : > { %v16978_v43 = vadd.f32 %v15522_v38, %v1425_v27 }
 0x130   : > { %v13632_v44 = vpop.f32.mrb[4].mxu1  ;;  %v16980_v45 = vadd.f32 %v15525_v40, %v1425_v27 }
 0x131   : > { %v15528_v46 = vadd.f32 %v13632_v44, %v1189_v41  ;;  %v1299_v47 = vpop.f32.mrb[5].mxu1 }
 0x132   : > { %v15531_v48 = vadd.f32 %v1299_v47, %v1188_v42 }
 0x133   : > { %v16982_v49 = vadd.f32 %v15528_v46, %v1425_v27 }
 0x134   : > { %v13648_v50 = vpop.f32.mrb[6].mxu1  ;;  %v16984_v51 = vadd.f32 %v15531_v48, %v1425_v27 }
 0x135   : > { %v1510_v52 = vpop.f32.mrb[7].mxu1 }
 0x136   : > { %v14796_v53 = vpack.c.bf16 %v13648_v50, %v1510_v52 }
 0x138   : > { %v13651_v54 = vpop.f32.mrb[8].mxu1  ;;  %14797 = vmatprep.subr.bf16.mxu0 %v14796_v53 }
 0x139   : > { %v1520_v55 = vpop.f32.mrb[9].mxu1  ;;  %14799 = vmatpush3.bf16.msra.mxu0 %v14796_v53 }
 0x13a   : > { %v14800_v56 = vpack.c.bf16 %v13651_v54, %v1520_v55 }
 0x13c   : > { %v13654_v57 = vpop.f32.mrb[10].mxu1  ;;  %14801 = vmatprep.subr.bf16.mxu0 %v14800_v56 }
 0x13d   : > { %v1530_v58 = vpop.f32.mrb[11].mxu1  ;;  %14803 = vmatpush3.bf16.msra.mxu0 %v14800_v56 }
 0x13e   : > { %v14804_v59 = vpack.c.bf16 %v13654_v57, %v1530_v58 }
 0x140   : > { %14805 = vmatprep.subr.bf16.mxu0 %v14804_v59  ;;  %v13680_v60 = vpop.f32.mrb[12].mxu1 }
 0x141   : > { %14807 = vmatpush3.bf16.msra.mxu0 %v14804_v59  ;;  %v1732_v61 = vpop.f32.mrb[13].mxu1 }
 0x142   : > { %v14808_v63 = vpack.c.bf16 %v13680_v60, %v1732_v61 }
 0x144   : > { %13668 = vmatmul.mubr.msk.f32.vlgmr.msra.gmra.mrb[0].mxu0 %vm1539_vm3, %v1439_v62  ;;  %v13683_v1 = vpop.f32.mrb[14].mxu1  ;;  %14809 = vmatprep.subr.bf16.mxu0 %v14808_v63 }
 0x145   : > { %v1742_v2 = vpop.f32.mrb[15].mxu1  ;;  %14811 = vmatpush3.bf16.msra.mxu0 %v14808_v63  ;;  %13670 = vmatprep.mubr.msk.f32.mxu0 %vm1539_vm3, %v1440_v0  ;;  %v17102_v0 = vld [vmem:[%s16763_s8 + $0x8] sm:$0xff] }
 0x146   : > { %v14812_v4 = vpack.c.bf16 %v13683_v1, %v1742_v2 }
 0x148   : > { %13671 = vmatmul.mubr.msk.f32.gmra.mrb[2].mxu0 %vm1539_vm3, %v1441_v3  ;;  %v13686_v6 = vpop.f32.mrb[16].mxu1  ;;  %14813 = vmatprep.subr.bf16.mxu0 %v14812_v4  ;;  %v17105_v3 = vld [vmem:[%s16763_s8] sm:$0xff] }
 0x149   : > { %v1752_v7 = vpop.f32.mrb[17].mxu1  ;;  %14815 = vmatpush3.bf16.msra.mxu0 %v14812_v4  ;;  %13673 = vmatprep.mubr.msk.f32.mxu0 %vm1539_vm3, %v1442_v5 }
 0x14a   : > { %v14816_v9 = vpack.c.bf16 %v13686_v6, %v1752_v7 }
 0x14c   : > { %13674 = vmatmul.mubr.msk.f32.gmra.mrb[4].mxu0 %vm1539_vm3, %v1443_v8  ;;  %14817 = vmatprep.subr.bf16.mxu0 %v14816_v9  ;;  %v17110_v8 = vld [vmem:[%s16763_s8 + $0x18] sm:$0xff] }
 0x14d   : > { %14819 = vmatpush3.bf16.msra.mxu0 %v14816_v9  ;;  %13699 = vmatprep.mubr.msk.f32.mxu0 %vm1539_vm3, %v12432_v10 }
 0x150   : > { %13700 = vmatmul.mubr.msk.f32.vlgmr.msra.gmra.mrb[0].mxu0 %vm1539_vm3, %v12433_v11 }
 0x151   : > { %13702 = vmatprep.mubr.msk.f32.mxu0 %vm1539_vm3, %v12434_v12  ;;  %v17114_v12 = vld [vmem:[%s16763_s8 + $0x10] sm:$0xff] }
 0x154   : > { %13703 = vmatmul.mubr.msk.f32.gmra.mrb[2].mxu0 %vm1539_vm3, %v12435_v13 }
 0x155   : > { %13705 = vmatprep.mubr.msk.f32.mxu0 %vm1539_vm3, %v12436_v14 }
 0x158   : > { %13706 = vmatmul.mubr.msk.f32.gmra.mrb[4].mxu0 %vm1539_vm3, %v12437_v15 }
 0x223   : > { %v13701_v16 = vpop.f32.mrb[0].mxu0 }
 0x224   : > { %v17009_v17 = vadd.f32 %v16972_v35, %v13701_v16  ;;  %v1845_v18 = vpop.f32.mrb[1].mxu0 }
 0x225   : > { %v17012_v19 = vadd.f32 %v16974_v37, %v1845_v18 }
 0x227   : > { %v13704_v20 = vpop.f32.mrb[2].mxu0  ;;  %13716 = vmatprep.mubr.msk.f32.mxu1 %vm1898_vm4, %v17012_v19 }
 0x228   : > { %v17017_v21 = vadd.f32 %v16978_v43, %v13704_v20  ;;  %v1855_v22 = vpop.f32.mrb[3].mxu0  ;;  %13717 = vmatmul.mubr.msk.f32.vlgmr.msra.gmra.mrb[18].mxu1 %vm1898_vm4, %v17009_v17  ;;  %v17120_v20 = vld [vmem:[%s16763_s8 + $0x28] sm:$0xff] }
 0x229   : > { %v17022_v23 = vadd.f32 %v16980_v45, %v1855_v22 }
 0x22b   : > { %v13707_v26 = vpop.f32.mrb[4].mxu0  ;;  %13719 = vmatprep.mubr.msk.f32.mxu1 %vm1898_vm4, %v17022_v23 }
 0x22c   : > { %v17027_v27 = vadd.f32 %v16982_v49, %v13707_v26  ;;  %v1865_v28 = vpop.f32.mrb[5].mxu0  ;;  %13720 = vmatmul.mubr.msk.f32.gmra.mrb[20].mxu1 %vm1898_vm4, %v17017_v21 }
 0x22d   : > { %v17032_v29 = vadd.f32 %v16984_v51, %v1865_v28 }
 0x22f   : > { %13722 = vmatprep.mubr.msk.f32.mxu1 %vm1898_vm4, %v17032_v29 }
 0x230   : > { %13723 = vmatmul.mubr.msk.f32.gmra.mrb[22].mxu1 %vm1898_vm4, %v17027_v27 }
 0x2fb   : > { %v13718_v31 = vpop.f32.mrb[18].mxu1 }
 0x2fc   : > { %v17039_v32 = vadd.f32 %v13718_v31, %v12450_v30  ;;  %v1983_v33 = vpop.f32.mrb[19].mxu1 }
 0x2fd   : > { %v17041_v34 = vadd.f32 %v12450_v30, %v1983_v33 }
 0x2ff   : > { %v13721_v35 = vpop.f32.mrb[20].mxu1  ;;  %13737 = vmatprep.mubr.msk.f32.mxu1 %vm1308_vm2, %v17041_v34  ;;  %v17047_v36 = vpack.i.bf16 %v17039_v32, %v17041_v34 }
 0x300   : > { %v17049_v37 = vadd.f32 %v13721_v35, %v12450_v30  ;;  %v1993_v38 = vpop.f32.mrb[21].mxu1 }
 0x301   : > { %v17051_v39 = vadd.f32 %v12450_v30, %v1993_v38  ;;  %15637 = vrot.lane.b32.xlu0 %v17047_v36, %s20042_s11 }
 0x303   : > { %v13724_v40 = vpop.f32.mrb[22].mxu1  ;;  %v17057_v41 = vpack.i.bf16 %v17049_v37, %v17051_v39 }
 0x304   : > { %v17059_v42 = vadd.f32 %v13724_v40, %v12450_v30  ;;  %v2003_v43 = vpop.f32.mrb[23].mxu1 }
 0x305   : > { %v17061_v44 = vadd.f32 %v12450_v30, %v2003_v43  ;;  %15642 = vrot.lane.b32.xlu0 %v17057_v41, %s20042_s11  ;;  %v17124_v30 = vld [vmem:[%s16763_s8 + $0x20] sm:$0xff] }
 0x307   : > { %v17067_v45 = vpack.i.bf16 %v17059_v42, %v17061_v44 }
 0x309   : > { %15652 = vrot.lane.b32.xlu0 %v17047_v36, %s20038_s15  ;;  %15647 = vrot.lane.b32.xlu1 %v17067_v45, %s20042_s11 }
 0x373   : > { %v15638_v46 = vpop.permute.xlu0 %15637 }
 0x374   : > { %v15640_v47 = vunpack.i.h.bf16 %v15638_v46  ;;  %v15639_v48 = vunpack.i.l.bf16 %v15638_v46 }
 0x376   : > { %v14828_v50 = vpack.c.bf16 %v15640_v47, %v15639_v48 }
 0x377   : > { %v15643_v51 = vpop.permute.xlu0 %15642 }
 0x378   : > { %v15645_v52 = vunpack.i.h.bf16 %v15643_v51  ;;  %v15644_v53 = vunpack.i.l.bf16 %v15643_v51  ;;  %14830 = vmatprep.subr.msk.bf16.mxu1 %vm17075_vm5, %v14828_v50 }
 0x379   : > { %14833 = vmatpush3.bf16.xpose.msk.msra.mxu1 %vm17075_vm5, %v14828_v50 }
 0x37a   : > { %v14834_v54 = vpack.c.bf16 %v15645_v52, %v15644_v53 }
 0x37b   : > { %v15653_v55 = vpop.permute.xlu0 %15652  ;;  %v15648_v56 = vpop.permute.xlu1 %15647 }
 0x37c   : > { %v15655_v57 = vunpack.i.h.bf16 %v15653_v55  ;;  %v15654_v58 = vunpack.i.l.bf16 %v15653_v55  ;;  %v15650_v59 = vunpack.i.h.bf16 %v15648_v56  ;;  %v15649_v60 = vunpack.i.l.bf16 %v15648_v56  ;;  %14836 = vmatprep.subr.msk.bf16.mxu1 %vm17075_vm5, %v14834_v54 }
 0x37e   : > { %v14846_v61 = vpack.c.bf16 %v15655_v57, %v15654_v58  ;;  %v14840_v62 = vpack.c.bf16 %v15650_v59, %v15649_v60 }
 0x380   : > { %14847 = vmatprep.subr.bf16.mxu0 %v14846_v61 }
 0x381   : > { %14839 = vmatpush3.bf16.xpose.msk.msra.mxu1 %vm17075_vm5, %v14834_v54  ;;  %14849 = vmatpush3.bf16.msra.mxu0 %v14846_v61 }
 0x382   : > { %14842 = vmatprep.subr.msk.bf16.mxu1 %vm17075_vm5, %v14840_v62 }
 0x389   : > { %14845 = vmatpush3.bf16.xpose.msk.msra.mxu1 %vm17075_vm5, %v14840_v62 }
 0x390   : > { %13738 = vmatmul.mubr.msk.f32.vlgmr.msra.gmra.mrb[24].mxu1 %vm1308_vm2, %v17039_v32 }
 0x391   : > { %13740 = vmatprep.mubr.msk.f32.mxu1 %vm1308_vm2, %v17051_v39 }
 0x394   : > { %13741 = vmatmul.mubr.msk.f32.gmra.mrb[26].mxu1 %vm1308_vm2, %v17049_v37 }
 0x395   : > { %13743 = vmatprep.mubr.msk.f32.mxu1 %vm1308_vm2, %v17061_v44 }
 0x398   : > { %13744 = vmatmul.mubr.msk.f32.gmra.mrb[28].mxu1 %vm1308_vm2, %v17059_v42 }
 0x463   : > { %v13739_v63 = vpop.f32.mrb[24].mxu1 }
 0x464   : > { %v2150_v1 = vmul.f32 0.35355338, %v13739_v63  ;;  %v2120_v2 = vpop.f32.mrb[25].mxu1 }
 0x465   : > { %v2149_v4 = vmul.f32 0.35355338, %v2120_v2 }
 0x466   : > { %v2156_v5 = vadd.f32 %v2150_v1, %v17102_v0 }
 0x467   : > { %v13742_v6 = vpop.f32.mrb[26].mxu1  ;;  %v2155_v7 = vadd.f32 %v2149_v4, %v17105_v3 }
 0x468   : > { %v2152_v9 = vmul.f32 0.35355338, %v13742_v6  ;;  %v2130_v10 = vpop.f32.mrb[27].mxu1  ;;  %v2164_v11 = vsel %vm1539_vm3, %v2156_v5, -inf }
 0x469   : > { %v2151_v13 = vmul.f32 0.35355338, %v2130_v10  ;;  %2165 = vmax.xlane.f32.xlu0 %v2164_v11  ;;  %v2161_v14 = vsel %vm1539_vm3, %v2155_v7, -inf }
 0x46a   : > { %2162 = vmax.xlane.f32.xlu1 %v2161_v14  ;;  %v2158_v15 = vadd.f32 %v2152_v9, %v17110_v8 }
 0x46b   : > { %v13745_v16 = vpop.f32.mrb[28].mxu1  ;;  %v2157_v18 = vadd.f32 %v2151_v13, %v17114_v12 }
 0x46c   : > { %v2154_v22 = vmul.f32 0.35355338, %v13745_v16  ;;  %v2140_v26 = vpop.f32.mrb[29].mxu1  ;;  %v2170_v28 = vsel %vm1539_vm3, %v2158_v15, -inf }
 0x46d   : > { %v2153_v31 = vmul.f32 0.35355338, %v2140_v26  ;;  %v2167_v33 = vsel %vm1539_vm3, %v2157_v18, -inf }
 0x46e   : > { %2171 = vmax.xlane.f32.xlu1 %v2170_v28  ;;  %2168 = vmax.xlane.f32.xlu0 %v2167_v33  ;;  %v2160_v35 = vadd.f32 %v2154_v22, %v17120_v20 }
 0x46f   : > { %v2159_v38 = vadd.f32 %v2153_v31, %v17124_v30 }
 0x470   : > { %v2176_v40 = vsel %vm1539_vm3, %v2160_v35, -inf }
 0x471   : > { %v2173_v43 = vsel %vm1539_vm3, %v2159_v38, -inf }
 0x472   : > { %2177 = vmax.xlane.f32.xlu1 %v2176_v40  ;;  %2174 = vmax.xlane.f32.xlu0 %v2173_v43 }
 0x483   : > { %15657 = vrot.lane.b32.xlu1 %v17057_v41, %s20038_s15 }
 0x488   : > { %15662 = vrot.lane.b32.xlu0 %v17067_v45, %s20038_s15 }
 0x4f6   : > { %v2166_v46 = vpop.xlane.xlu0 %2165 }
 0x4f7   : > { %v2180_v47 = vsub.f32 %v2156_v5, %v2166_v46  ;;  %v2163_v48 = vpop.xlane.xlu1 %2162 }
 0x4f8   : > { %v2179_v50 = vsub.f32 %v2155_v7, %v2163_v48 }
 0x4f9   : > { %v2187_v51 = vmul.f32 1.442695, %v2180_v47 }
 0x4fa   : > { %v2185_v52 = vmul.f32 1.442695, %v2179_v50 }
 0x4fb   : > { %16101 = vpow2.f32 %v2187_v51  ;;  %v2172_v53 = vpop.xlane.xlu1 %2171  ;;  %v2169_v54 = vpop.xlane.xlu0 %2168 }
 0x4fc   : > { %16103 = vpow2.f32 %v2185_v52  ;;  %v2181_v7 = vsub.f32 %v2157_v18, %v2169_v54  ;;  %v2182_v9 = vsub.f32 %v2158_v15, %v2172_v53 }
 0x4fe   : > { %v2189_v10 = vmul.f32 1.442695, %v2181_v7  ;;  %v2191_v13 = vmul.f32 1.442695, %v2182_v9 }
 0x4ff   : > { %v2178_v55 = vpop.xlane.xlu1 %2177  ;;  %v2175_v56 = vpop.xlane.xlu0 %2174 }
 0x500   : > { %v2184_v11 = vsub.f32 %v2160_v35, %v2178_v55  ;;  %16105 = vpow2.f32 %v2189_v10  ;;  %v2183_v16 = vsub.f32 %v2159_v38, %v2175_v56 }
 0x501   : > { %16107 = vpow2.f32 %v2191_v13 }
 0x502   : > { %v2195_v14 = vmul.f32 1.442695, %v2184_v11  ;;  %v2193_v22 = vmul.f32 1.442695, %v2183_v16 }
 0x503   : > { %v15658_v57 = vpop.permute.xlu1 %15657  ;;  %v15663_v58 = vpop.permute.xlu0 %15662 }
 0x504   : > { %v15660_v59 = vunpack.i.h.bf16 %v15658_v57  ;;  %v15659_v60 = vunpack.i.l.bf16 %v15658_v57  ;;  %v15665_v61 = vunpack.i.h.bf16 %v15663_v58  ;;  %v15664_v63 = vunpack.i.l.bf16 %v15663_v58 }
 0x505   : > { %v17135_v62 = vpop.eup %16101  ;;  %16109 = vpow2.f32 %v2195_v14 }
 0x506   : > { %v16104_v1 = vpop.eup %16103  ;;  %v2200_v2 = vsel %vm1539_vm3, %v17135_v62, 0.0  ;;  %v14850_v4 = vpack.c.bf16 %v15660_v59, %v15659_v60  ;;  %v14854_v6 = vpack.c.bf16 %v15665_v61, %v15664_v63  ;;  %16111 = vpow2.f32 %v2193_v22 }
 0x507   : > { %2201 = vadd.xlane.f32.xlu1 %v2200_v2  ;;  %v2197_v5 = vsel %vm1539_vm3, %v16104_v1, 0.0 }
 0x508   : > { %14851 = vmatprep.subr.bf16.mxu0 %v14850_v4  ;;  %2198 = vadd.xlane.f32.xlu0 %v2197_v5 }
 0x509   : > { %14853 = vmatpush3.bf16.msra.mxu0 %v14850_v4 }
 0x50a   : > { %14855 = vmatprep.subr.bf16.mxu0 %v14854_v6  ;;  %v16106_v26 = vpop.eup %16105 }
 0x50b   : > { %v16108_v28 = vpop.eup %16107  ;;  %v2203_v31 = vsel %vm1539_vm3, %v16106_v26, 0.0 }
 0x50c   : > { %v2206_v18 = vsel %vm1539_vm3, %v16108_v28, 0.0 }
 0x50d   : > { %14857 = vmatpush3.bf16.msra.mxu0 %v14854_v6 }
 0x50f   : > { %v17145_v33 = vpop.eup %16109 }
 0x510   : > { %v2212_v15 = vsel %vm1539_vm3, %v17145_v33, 0.0  ;;  %v16112_v35 = vpop.eup %16111 }
 0x511   : > { %v2209_v38 = vsel %vm1539_vm3, %v16112_v35, 0.0 }
 0x518   : > { %15667 = vrot.lane.b32.xlu1 %v17047_v36, %s20040_s16 }
 0x51e   : > { %15672 = vrot.lane.b32.xlu0 %v17057_v41, %s20040_s16 }
 0x53c   : > { %2204 = vadd.xlane.f32.xlu1 %v2203_v31 }
 0x53d   : > { %2207 = vadd.xlane.f32.xlu0 %v2206_v18 }
 0x540   : > { %2213 = vadd.xlane.f32.xlu1 %v2212_v15 }
 0x544   : > { %2210 = vadd.xlane.f32.xlu1 %v2209_v38 }
 0x553   : > { %15677 = vrot.lane.b32.xlu0 %v17067_v45, %s20040_s16 }
 0x555   : > { %2358 = vrot.lane.b32.xlu1 %v17041_v34, %s20044_s18 }
 0x557   : > { %2360 = vrot.lane.b32.xlu0 %v17039_v32, %s20044_s18 }
 0x559   : > { %2362 = vrot.lane.b32.xlu1 %v17051_v39, %s20044_s18 }
 0x55b   : > { %2364 = vrot.lane.b32.xlu0 %v17049_v37, %s20044_s18 }
 0x55d   : > { %2366 = vrot.lane.b32.xlu1 %v17061_v44, %s20044_s18 }
 0x55f   : > { %2368 = vrot.lane.b32.xlu0 %v17059_v42, %s20044_s18 }
 0x563   : > { %15682 = vrot.lane.b32.xlu0 %v17047_v36, %s20027_s22 }
 0x594   : > { %v2202_v40 = vpop.xlane.xlu1 %2201 }
 0x595   : > { %16113 = vrcp.f32 %v2202_v40  ;;  %v2199_v43 = vpop.xlane.xlu0 %2198 }
 0x596   : > { %16115 = vrcp.f32 %v2199_v43 }
 0x598   : > { %v15668_v46 = vpop.permute.xlu1 %15667 }
 0x599   : > { %v15670_v47 = vunpack.i.h.bf16 %v15668_v46  ;;  %v15669_v48 = vunpack.i.l.bf16 %v15668_v46  ;;  %v15673_v51 = vpop.permute.xlu0 %15672 }
 0x59a   : > { %v15675_v54 = vunpack.i.h.bf16 %v15673_v51  ;;  %v15674_v55 = vunpack.i.l.bf16 %v15673_v51 }
 0x59b   : > { %v14858_v50 = vpack.c.bf16 %v15670_v47, %v15669_v48 }
 0x59c   : > { %v14864_v58 = vpack.c.bf16 %v15675_v54, %v15674_v55 }
 0x59d   : > { %14860 = vmatprep.subr.msk.bf16.mxu0 %vm17075_vm5, %v14858_v50 }
 0x59f   : > { %v16114_v52 = vpop.eup %16113 }
 0x5a0   : > { %v16116_v53 = vpop.eup %16115  ;;  %v2222_v57 = vmul.f32 %v16114_v52, %v17135_v62 }
 0x5a1   : > { %v2221_v56 = vmul.f32 %v16116_v53, %v16104_v1 }
 0x5a3   : > { %13758 = vmatprep.mubr.msk.f32.mxu0 %vm1539_vm3, %v2221_v56 }
 0x5a4   : > { %13759 = vmatmul.mubr.msk.f32.vlgmr.msra.gmra.mrb[6].mxu0 %vm1539_vm3, %v2222_v57 }
 0x5a5   : > { %14863 = vmatpush3.bf16.xpose.msk.msra.mxu0 %vm17075_vm5, %v14858_v50 }
 0x5a6   : > { %14866 = vmatprep.subr.msk.bf16.mxu0 %vm17075_vm5, %v14864_v58 }
 0x5ad   : > { %14869 = vmatpush3.bf16.xpose.msk.msra.mxu0 %vm17075_vm5, %v14864_v58 }
 0x5c9   : > { %v2205_v59 = vpop.xlane.xlu1 %2204 }
 0x5ca   : > { %16117 = vrcp.f32 %v2205_v59  ;;  %v2208_v60 = vpop.xlane.xlu0 %2207 }
 0x5cb   : > { %16119 = vrcp.f32 %v2208_v60 }
 0x5cd   : > { %v2214_v61 = vpop.xlane.xlu1 %2213 }
 0x5ce   : > { %v15678_v62 = vpop.permute.xlu0 %15677  ;;  %16121 = vrcp.f32 %v2214_v61 }
 0x5cf   : > { %v15680_v63 = vunpack.i.h.bf16 %v15678_v62  ;;  %v15679_v1 = vunpack.i.l.bf16 %v15678_v62 }
 0x5d1   : > { %v14870_v2 = vpack.c.bf16 %v15680_v63, %v15679_v1  ;;  %v2211_v4 = vpop.xlane.xlu1 %2210 }
 0x5d2   : > { %16123 = vrcp.f32 %v2211_v4  ;;  %v2361_v5 = vpop.permute.xlu0 %2360 }
 0x5d3   : > { %14872 = vmatprep.subr.msk.bf16.mxu0 %vm17075_vm5, %v14870_v2 }
 0x5d4   : > { %v16118_v6 = vpop.eup %16117  ;;  %14875 = vmatpush3.bf16.xpose.msk.msra.mxu0 %vm17075_vm5, %v14870_v2 }
 0x5d5   : > { %v16120_v7 = vpop.eup %16119  ;;  %v2223_v9 = vmul.f32 %v16118_v6, %v16106_v26  ;;  %v2359_v22 = vpop.permute.xlu1 %2358 }
 0x5d6   : > { %v2365_v10 = vpop.permute.xlu0 %2364  ;;  %v2224_v11 = vmul.f32 %v16120_v7, %v16108_v28 }
 0x5d7   : > { %13761 = vmatprep.mubr.msk.f32.mxu0 %vm1539_vm3, %v2223_v9 }
 0x5d8   : > { %13762 = vmatmul.mubr.msk.f32.gmra.mrb[8].mxu0 %vm1539_vm3, %v2224_v11  ;;  %v16122_v14 = vpop.eup %16121 }
 0x5d9   : > { %v2226_v15 = vmul.f32 %v16122_v14, %v17145_v33  ;;  %v2363_v28 = vpop.permute.xlu1 %2362 }
 0x5da   : > { %v2369_v13 = vpop.permute.xlu0 %2368 }
 0x5dc   : > { %v16124_v16 = vpop.eup %16123 }
 0x5dd   : > { %v2225_v31 = vmul.f32 %v16124_v16, %v16112_v35  ;;  %v2367_v35 = vpop.permute.xlu1 %2366 }
 0x5de   : > { %v15683_v18 = vpop.permute.xlu0 %15682 }
 0x5df   : > { %v15685_v38 = vunpack.i.h.bf16 %v15683_v18  ;;  %v15684_v40 = vunpack.i.l.bf16 %v15683_v18  ;;  %13764 = vmatprep.mubr.msk.f32.mxu0 %vm1539_vm3, %v2225_v31 }
 0x5e0   : > { %13765 = vmatmul.mubr.msk.f32.gmra.mrb[10].mxu0 %vm1539_vm3, %v2226_v15 }
 0x5e1   : > { %13779 = vmatprep.mubr.msk.f32.mxu0 %vm1308_vm2, %v2359_v22  ;;  %v14876_v26 = vpack.c.bf16 %v15685_v38, %v15684_v40 }
 0x5e3   : > { %14877 = vmatprep.subr.bf16.mxu1 %v14876_v26 }
 0x5e4   : > { %13780 = vmatmul.mubr.msk.f32.vlgmr.msra.gmra.mrb[12].mxu0 %vm1308_vm2, %v2361_v5  ;;  %14879 = vmatpush3.bf16.msra.mxu1 %v14876_v26 }
 0x5e5   : > { %13782 = vmatprep.mubr.msk.f32.mxu0 %vm1308_vm2, %v2363_v28 }
 0x5e8   : > { %13783 = vmatmul.mubr.msk.f32.gmra.mrb[14].mxu0 %vm1308_vm2, %v2365_v10 }
 0x5e9   : > { %13785 = vmatprep.mubr.msk.f32.mxu0 %vm1308_vm2, %v2367_v35 }
 0x5ec   : > { %13786 = vmatmul.mubr.msk.f32.gmra.mrb[16].mxu0 %vm1308_vm2, %v2369_v13 }
 0x677   : > { %v17193_v33 = vpop.f32.mrb[6].mxu0 }
 0x678   : > { %v17195_v43 = vpop.f32.mrb[7].mxu0 }
 0x6ab   : > { %v17197_v46 = vpop.f32.mrb[8].mxu0 }
 0x6ac   : > { %v17199_v47 = vpop.f32.mrb[9].mxu0 }
 0x6b3   : > { %v17201_v48 = vpop.f32.mrb[10].mxu0 }
 0x6b4   : > { %v17203_v50 = vpop.f32.mrb[11].mxu0 }
 0x6b7   : > { %v13781_v51 = vpop.f32.mrb[12].mxu0 }
 0x6b8   : > { %v2502_v52 = vmul.f32 0.35355338, %v13781_v51  ;;  %v2472_v53 = vpop.f32.mrb[13].mxu0 }
 0x6b9   : > { %v2501_v54 = vmul.f32 0.35355338, %v2472_v53 }
 0x6ba   : > { %v2508_v55 = vadd.f32 %v2502_v52, %v17102_v0 }
 0x6bb   : > { %v13784_v56 = vpop.f32.mrb[14].mxu0  ;;  %v2507_v57 = vadd.f32 %v2501_v54, %v17105_v3 }
 0x6bc   : > { %v2504_v58 = vmul.f32 0.35355338, %v13784_v56  ;;  %v2482_v59 = vpop.f32.mrb[15].mxu0  ;;  %v2516_v60 = vsel %vm1539_vm3, %v2508_v55, -inf }
 0x6bd   : > { %v2503_v61 = vmul.f32 0.35355338, %v2482_v59  ;;  %2517 = vmax.xlane.f32.xlu0 %v2516_v60  ;;  %v2513_v62 = vsel %vm1539_vm3, %v2507_v57, -inf }
 0x6be   : > { %2514 = vmax.xlane.f32.xlu1 %v2513_v62  ;;  %v2510_v63 = vadd.f32 %v2504_v58, %v17110_v8 }
 0x6bf   : > { %v13787_v1 = vpop.f32.mrb[16].mxu0  ;;  %v2509_v2 = vadd.f32 %v2503_v61, %v17114_v12 }
 0x6c0   : > { %v2506_v4 = vmul.f32 0.35355338, %v13787_v1  ;;  %v2492_v5 = vpop.f32.mrb[17].mxu0  ;;  %v2522_v6 = vsel %vm1539_vm3, %v2510_v63, -inf }
 0x6c1   : > { %v2505_v7 = vmul.f32 0.35355338, %v2492_v5  ;;  %v2519_v9 = vsel %vm1539_vm3, %v2509_v2, -inf }
 0x6c2   : > { %2523 = vmax.xlane.f32.xlu1 %v2522_v6  ;;  %2520 = vmax.xlane.f32.xlu0 %v2519_v9  ;;  %v2512_v10 = vadd.f32 %v2506_v4, %v17120_v20 }
 0x6c3   : > { %v2511_v11 = vadd.f32 %v2505_v7, %v17124_v30 }
 0x6c4   : > { %v2528_v13 = vsel %vm1539_vm3, %v2512_v10, -inf }
 0x6c5   : > { %v2525_v14 = vsel %vm1539_vm3, %v2511_v11, -inf }
 0x6c6   : > { %2529 = vmax.xlane.f32.xlu1 %v2528_v13  ;;  %2526 = vmax.xlane.f32.xlu0 %v2525_v14 }
 0x6d7   : > { %15687 = vrot.lane.b32.xlu1 %v17057_v41, %s20027_s22 }
 0x6dc   : > { %15692 = vrot.lane.b32.xlu0 %v17067_v45, %s20027_s22 }
 0x74a   : > { %v2518_v16 = vpop.xlane.xlu0 %2517 }
 0x74b   : > { %v2532_v22 = vsub.f32 %v2508_v55, %v2518_v16  ;;  %v2515_v31 = vpop.xlane.xlu1 %2514 }
 0x74c   : > { %v2531_v18 = vsub.f32 %v2507_v57, %v2515_v31 }
 0x74d   : > { %v2539_v15 = vmul.f32 1.442695, %v2532_v22 }
 0x74e   : > { %v2537_v38 = vmul.f32 1.442695, %v2531_v18 }
 0x74f   : > { %16125 = vpow2.f32 %v2539_v15  ;;  %v2524_v40 = vpop.xlane.xlu1 %2523  ;;  %v2521_v26 = vpop.xlane.xlu0 %2520 }
 0x750   : > { %16127 = vpow2.f32 %v2537_v38  ;;  %v2533_v1 = vsub.f32 %v2509_v2, %v2521_v26  ;;  %v2534_v4 = vsub.f32 %v2510_v63, %v2524_v40 }
 0x752   : > { %v2541_v5 = vmul.f32 1.442695, %v2533_v1  ;;  %v2543_v7 = vmul.f32 1.442695, %v2534_v4 }
 0x753   : > { %v2530_v28 = vpop.xlane.xlu1 %2529  ;;  %v2527_v35 = vpop.xlane.xlu0 %2526 }
 0x754   : > { %v2536_v6 = vsub.f32 %v2512_v10, %v2530_v28  ;;  %16129 = vpow2.f32 %v2541_v5  ;;  %v2535_v13 = vsub.f32 %v2511_v11, %v2527_v35 }
 0x755   : > { %16131 = vpow2.f32 %v2543_v7 }
 0x756   : > { %v2547_v9 = vmul.f32 1.442695, %v2536_v6  ;;  %v2545_v14 = vmul.f32 1.442695, %v2535_v13 }
 0x757   : > { %v15688_v51 = vpop.permute.xlu1 %15687  ;;  %v15693_v52 = vpop.permute.xlu0 %15692 }
 0x758   : > { %v15690_v53 = vunpack.i.h.bf16 %v15688_v51  ;;  %v15689_v54 = vunpack.i.l.bf16 %v15688_v51  ;;  %v15695_v56 = vunpack.i.h.bf16 %v15693_v52  ;;  %v15694_v59 = vunpack.i.l.bf16 %v15693_v52 }
 0x759   : > { %v17221_v58 = vpop.eup %16125  ;;  %16133 = vpow2.f32 %v2547_v9 }
 0x75a   : > { %v16128_v60 = vpop.eup %16127  ;;  %v2552_v55 = vsel %vm1539_vm3, %v17221_v58, 0.0  ;;  %v14880_v57 = vpack.c.bf16 %v15690_v53, %v15689_v54  ;;  %v14884_v62 = vpack.c.bf16 %v15695_v56, %v15694_v59  ;;  %16135 = vpow2.f32 %v2545_v14 }
 0x75b   : > { %2553 = vadd.xlane.f32.xlu1 %v2552_v55  ;;  %v2549_v61 = vsel %vm1539_vm3, %v16128_v60, 0.0 }
 0x75c   : > { %14881 = vmatprep.subr.bf16.mxu1 %v14880_v57  ;;  %2550 = vadd.xlane.f32.xlu0 %v2549_v61 }
 0x75d   : > { %14883 = vmatpush3.bf16.msra.mxu1 %v14880_v57 }
 0x75e   : > { %14885 = vmatprep.subr.bf16.mxu1 %v14884_v62  ;;  %v16130_v16 = vpop.eup %16129 }
 0x75f   : > { %v16132_v22 = vpop.eup %16131  ;;  %v2555_v31 = vsel %vm1539_vm3, %v16130_v16, 0.0 }
 0x760   : > { %v2558_v2 = vsel %vm1539_vm3, %v16132_v22, 0.0 }
 0x761   : > { %14887 = vmatpush3.bf16.msra.mxu1 %v14884_v62 }
 0x763   : > { %v17231_v18 = vpop.eup %16133 }
 0x764   : > { %v2564_v63 = vsel %vm1539_vm3, %v17231_v18, 0.0  ;;  %v16136_v10 = vpop.eup %16135 }
 0x765   : > { %v2561_v11 = vsel %vm1539_vm3, %v16136_v10, 0.0 }
 0x76c   : > { %15697 = vrot.lane.b32.xlu1 %v17047_v36, %s20019_s23 }
 0x772   : > { %15702 = vrot.lane.b32.xlu0 %v17057_v41, %s20019_s23 }
 0x790   : > { %2556 = vadd.xlane.f32.xlu1 %v2555_v31 }
 0x791   : > { %2559 = vadd.xlane.f32.xlu0 %v2558_v2 }
 0x794   : > { %2565 = vadd.xlane.f32.xlu1 %v2564_v63 }
 0x798   : > { %2562 = vadd.xlane.f32.xlu1 %v2561_v11 }
 0x7a7   : > { %15707 = vrot.lane.b32.xlu0 %v17067_v45, %s20019_s23 }
 0x7a9   : > { %2710 = vrot.lane.b32.xlu1 %v17041_v34, %s20015_s26 }
 0x7ab   : > { %2712 = vrot.lane.b32.xlu0 %v17039_v32, %s20015_s26 }
 0x7ad   : > { %2714 = vrot.lane.b32.xlu1 %v17051_v39, %s20015_s26 }
 0x7af   : > { %2716 = vrot.lane.b32.xlu0 %v17049_v37, %s20015_s26 }
 0x7b1   : > { %2718 = vrot.lane.b32.xlu1 %v17061_v44, %s20015_s26 }
 0x7b3   : > { %2720 = vrot.lane.b32.xlu0 %v17059_v42, %s20015_s26 }
 0x7b7   : > { %15712 = vrot.lane.b32.xlu0 %v17047_v36, %s20017_s0 }
 0x7e8   : > { %v2554_v15 = vpop.xlane.xlu1 %2553 }
 0x7e9   : > { %16137 = vrcp.f32 %v2554_v15  ;;  %v2551_v38 = vpop.xlane.xlu0 %2550 }
 0x7ea   : > { %16139 = vrcp.f32 %v2551_v38 }
 0x7ec   : > { %v15698_v40 = vpop.permute.xlu1 %15697 }
 0x7ed   : > { %v15700_v26 = vunpack.i.h.bf16 %v15698_v40  ;;  %v15699_v28 = vunpack.i.l.bf16 %v15698_v40  ;;  %v15703_v51 = vpop.permute.xlu0 %15702 }
 0x7ee   : > { %v15705_v54 = vunpack.i.h.bf16 %v15703_v51  ;;  %v15704_v56 = vunpack.i.l.bf16 %v15703_v51 }
 0x7ef   : > { %v14888_v35 = vpack.c.bf16 %v15700_v26, %v15699_v28 }
 0x7f0   : > { %v14894_v57 = vpack.c.bf16 %v15705_v54, %v15704_v56 }
 0x7f1   : > { %14890 = vmatprep.subr.msk.bf16.mxu1 %vm17075_vm5, %v14888_v35 }
 0x7f3   : > { %v16138_v52 = vpop.eup %16137 }
 0x7f4   : > { %v16140_v53 = vpop.eup %16139  ;;  %v2574_v55 = vmul.f32 %v16138_v52, %v17221_v58 }
 0x7f5   : > { %v2573_v59 = vmul.f32 %v16140_v53, %v16128_v60 }
 0x7f7   : > { %13800 = vmatprep.mubr.msk.f32.mxu1 %vm1539_vm3, %v2573_v59 }
 0x7f8   : > { %13801 = vmatmul.mubr.msk.f32.vlgmr.msra.gmra.mrb[30].mxu1 %vm1539_vm3, %v2574_v55 }
 0x7f9   : > { %14893 = vmatpush3.bf16.xpose.msk.msra.mxu1 %vm17075_vm5, %v14888_v35 }
 0x7fa   : > { %14896 = vmatprep.subr.msk.bf16.mxu1 %vm17075_vm5, %v14894_v57 }
 0x801   : > { %14899 = vmatpush3.bf16.xpose.msk.msra.mxu1 %vm17075_vm5, %v14894_v57 }
 0x81d   : > { %v2557_v61 = vpop.xlane.xlu1 %2556 }
 0x81e   : > { %16141 = vrcp.f32 %v2557_v61  ;;  %v2560_v62 = vpop.xlane.xlu0 %2559 }
 0x81f   : > { %16143 = vrcp.f32 %v2560_v62 }
 0x821   : > { %v2566_v60 = vpop.xlane.xlu1 %2565 }
 0x822   : > { %v15708_v58 = vpop.permute.xlu0 %15707  ;;  %16145 = vrcp.f32 %v2566_v60 }
 0x823   : > { %v15710_v1 = vunpack.i.h.bf16 %v15708_v58  ;;  %v15709_v4 = vunpack.i.l.bf16 %v15708_v58 }
 0x825   : > { %v14900_v5 = vpack.c.bf16 %v15710_v1, %v15709_v4  ;;  %v2563_v6 = vpop.xlane.xlu1 %2562 }
 0x826   : > { %16147 = vrcp.f32 %v2563_v6  ;;  %v2713_v7 = vpop.permute.xlu0 %2712 }
 0x827   : > { %14902 = vmatprep.subr.msk.bf16.mxu1 %vm17075_vm5, %v14900_v5 }
 0x828   : > { %v16142_v9 = vpop.eup %16141  ;;  %14905 = vmatpush3.bf16.xpose.msk.msra.mxu1 %vm17075_vm5, %v14900_v5 }
 0x829   : > { %v16144_v13 = vpop.eup %16143  ;;  %v2575_v14 = vmul.f32 %v16142_v9, %v16130_v16  ;;  %v2711_v38 = vpop.permute.xlu1 %2710 }
 0x82a   : > { %v2717_v31 = vpop.permute.xlu0 %2716  ;;  %v2576_v2 = vmul.f32 %v16144_v13, %v16132_v22 }
 0x82b   : > { %13803 = vmatprep.mubr.msk.f32.mxu1 %vm1539_vm3, %v2575_v14 }
 0x82c   : > { %13804 = vmatmul.mubr.msk.f32.gmra.mrb[32].mxu1 %vm1539_vm3, %v2576_v2  ;;  %v16146_v11 = vpop.eup %16145 }
 0x82d   : > { %v2578_v28 = vmul.f32 %v16146_v11, %v17231_v18  ;;  %v2715_v22 = vpop.permute.xlu1 %2714 }
 0x82e   : > { %v2721_v63 = vpop.permute.xlu0 %2720 }
 0x830   : > { %v16148_v15 = vpop.eup %16147 }
 0x831   : > { %v2577_v40 = vmul.f32 %v16148_v15, %v16136_v10  ;;  %v2719_v10 = vpop.permute.xlu1 %2718 }
 0x832   : > { %v15713_v26 = vpop.permute.xlu0 %15712 }
 0x833   : > { %v15715_v35 = vunpack.i.h.bf16 %v15713_v26  ;;  %v15714_v51 = vunpack.i.l.bf16 %v15713_v26  ;;  %13806 = vmatprep.mubr.msk.f32.mxu1 %vm1539_vm3, %v2577_v40 }
 0x834   : > { %13807 = vmatmul.mubr.msk.f32.gmra.mrb[34].mxu1 %vm1539_vm3, %v2578_v28 }
 0x835   : > { %13821 = vmatprep.mubr.msk.f32.mxu1 %vm1308_vm2, %v2711_v38  ;;  %v14906_v16 = vpack.c.bf16 %v15715_v35, %v15714_v51 }
 0x837   : > { %14907 = vmatprep.subr.bf16.mxu0 %v14906_v16 }
 0x838   : > { %13822 = vmatmul.mubr.msk.f32.vlgmr.msra.gmra.mrb[36].mxu1 %vm1308_vm2, %v2713_v7  ;;  %14909 = vmatpush3.bf16.msra.mxu0 %v14906_v16 }
 0x839   : > { %13824 = vmatprep.mubr.msk.f32.mxu1 %vm1308_vm2, %v2715_v22 }
 0x83c   : > { %13825 = vmatmul.mubr.msk.f32.gmra.mrb[38].mxu1 %vm1308_vm2, %v2717_v31 }
 0x83d   : > { %13827 = vmatprep.mubr.msk.f32.mxu1 %vm1308_vm2, %v2719_v10 }
 0x840   : > { %13828 = vmatmul.mubr.msk.f32.gmra.mrb[40].mxu1 %vm1308_vm2, %v2721_v63 }
 0x8cb   : > { %v17279_v18 = vpop.f32.mrb[30].mxu1 }
 0x8cc   : > { %v17281_v52 = vpop.f32.mrb[31].mxu1 }
 0x8ff   : > { %v17283_v53 = vpop.f32.mrb[32].mxu1 }
 0x900   : > { %v17285_v54 = vpop.f32.mrb[33].mxu1 }
 0x907   : > { %v17287_v56 = vpop.f32.mrb[34].mxu1 }
 0x908   : > { %v17289_v59 = vpop.f32.mrb[35].mxu1 }
 0x90b   : > { %v13823_v55 = vpop.f32.mrb[36].mxu1 }
 0x90c   : > { %v2854_v57 = vmul.f32 0.35355338, %v13823_v55  ;;  %v2824_v61 = vpop.f32.mrb[37].mxu1 }
 0x90d   : > { %v2853_v62 = vmul.f32 0.35355338, %v2824_v61 }
 0x90e   : > { %v2860_v60 = vadd.f32 %v2854_v57, %v17102_v0 }
 0x90f   : > { %v13826_v58 = vpop.f32.mrb[38].mxu1  ;;  %v2859_v1 = vadd.f32 %v2853_v62, %v17105_v3 }
 0x910   : > { %v2856_v4 = vmul.f32 0.35355338, %v13826_v58  ;;  %v2834_v5 = vpop.f32.mrb[39].mxu1  ;;  %v2868_v6 = vsel %vm1539_vm3, %v2860_v60, -inf }
 0x911   : > { %v2855_v7 = vmul.f32 0.35355338, %v2834_v5  ;;  %2869 = vmax.xlane.f32.xlu0 %v2868_v6  ;;  %v2865_v9 = vsel %vm1539_vm3, %v2859_v1, -inf }
 0x912   : > { %2866 = vmax.xlane.f32.xlu1 %v2865_v9  ;;  %v2862_v13 = vadd.f32 %v2856_v4, %v17110_v8 }
 0x913   : > { %v13829_v14 = vpop.f32.mrb[40].mxu1  ;;  %v2861_v31 = vadd.f32 %v2855_v7, %v17114_v12 }
 0x914   : > { %v2858_v2 = vmul.f32 0.35355338, %v13829_v14  ;;  %v2844_v63 = vpop.f32.mrb[41].mxu1  ;;  %v2874_v0 = vsel %vm1539_vm3, %v2862_v13, -inf }
 0x915   : > { %v2857_v11 = vmul.f32 0.35355338, %v2844_v63  ;;  %v2871_v3 = vsel %vm1539_vm3, %v2861_v31, -inf }
 0x916   : > { %2875 = vmax.xlane.f32.xlu1 %v2874_v0  ;;  %2872 = vmax.xlane.f32.xlu0 %v2871_v3  ;;  %v2864_v15 = vadd.f32 %v2858_v2, %v17120_v20 }
 0x917   : > { %v2863_v38 = vadd.f32 %v2857_v11, %v17124_v30 }
 0x918   : > { %v2880_v40 = vsel %vm1539_vm3, %v2864_v15, -inf }
 0x919   : > { %v2877_v8 = vsel %vm1539_vm3, %v2863_v38, -inf }
 0x91a   : > { %2881 = vmax.xlane.f32.xlu1 %v2880_v40  ;;  %2878 = vmax.xlane.f32.xlu0 %v2877_v8 }
 0x92b   : > { %15717 = vrot.lane.b32.xlu1 %v17057_v41, %s20017_s0 }
 0x930   : > { %15722 = vrot.lane.b32.xlu0 %v17067_v45, %s20017_s0 }
 0x99e   : > { %v2870_v12 = vpop.xlane.xlu0 %2869 }
 0x99f   : > { %v2884_v26 = vsub.f32 %v2860_v60, %v2870_v12  ;;  %v2867_v28 = vpop.xlane.xlu1 %2866 }
 0x9a0   : > { %v2883_v35 = vsub.f32 %v2859_v1, %v2867_v28 }
 0x9a1   : > { %v2891_v51 = vmul.f32 1.442695, %v2884_v26 }
 0x9a2   : > { %v2889_v20 = vmul.f32 1.442695, %v2883_v35 }
 0x9a3   : > { %16149 = vpow2.f32 %v2891_v51  ;;  %v2876_v30 = vpop.xlane.xlu1 %2875  ;;  %v2873_v16 = vpop.xlane.xlu0 %2872 }
 0x9a4   : > { %16151 = vpow2.f32 %v2889_v20  ;;  %v2885_v14 = vsub.f32 %v2861_v31, %v2873_v16  ;;  %v2886_v2 = vsub.f32 %v2862_v13, %v2876_v30 }
 0x9a6   : > { %v2893_v63 = vmul.f32 1.442695, %v2885_v14  ;;  %v2895_v11 = vmul.f32 1.442695, %v2886_v2 }
 0x9a7   : > { %v2882_v22 = vpop.xlane.xlu1 %2881  ;;  %v2879_v10 = vpop.xlane.xlu0 %2878 }
 0x9a8   : > { %v2888_v0 = vsub.f32 %v2864_v15, %v2882_v22  ;;  %16153 = vpow2.f32 %v2893_v63  ;;  %v2887_v40 = vsub.f32 %v2863_v38, %v2879_v10 }
 0x9a9   : > { %16155 = vpow2.f32 %v2895_v11 }
 0x9aa   : > { %v2899_v3 = vmul.f32 1.442695, %v2888_v0  ;;  %v2897_v8 = vmul.f32 1.442695, %v2887_v40 }
 0x9ab   : > { %v15718_v55 = vpop.permute.xlu1 %15717  ;;  %v15723_v57 = vpop.permute.xlu0 %15722 }
 0x9ac   : > { %v15720_v61 = vunpack.i.h.bf16 %v15718_v55  ;;  %v15719_v62 = vunpack.i.l.bf16 %v15718_v55  ;;  %v15725_v58 = vunpack.i.h.bf16 %v15723_v57  ;;  %v15724_v5 = vunpack.i.l.bf16 %v15723_v57 }
 0x9ad   : > { %v17307_v4 = vpop.eup %16149  ;;  %16157 = vpow2.f32 %v2899_v3 }
 0x9ae   : > { %v16152_v6 = vpop.eup %16151  ;;  %v2904_v60 = vsel %vm1539_vm3, %v17307_v4, 0.0  ;;  %v14910_v1 = vpack.c.bf16 %v15720_v61, %v15719_v62  ;;  %v14914_v9 = vpack.c.bf16 %v15725_v58, %v15724_v5  ;;  %16159 = vpow2.f32 %v2897_v8 }
 0x9af   : > { %2905 = vadd.xlane.f32.xlu1 %v2904_v60  ;;  %v2901_v7 = vsel %vm1539_vm3, %v16152_v6, 0.0 }
 0x9b0   : > { %14911 = vmatprep.subr.bf16.mxu0 %v14910_v1  ;;  %2902 = vadd.xlane.f32.xlu0 %v2901_v7 }
 0x9b1   : > { %14913 = vmatpush3.bf16.msra.mxu0 %v14910_v1 }
 0x9b2   : > { %14915 = vmatprep.subr.bf16.mxu0 %v14914_v9  ;;  %v16154_v12 = vpop.eup %16153 }
 0x9b3   : > { %v16156_v26 = vpop.eup %16155  ;;  %v2907_v28 = vsel %vm1539_vm3, %v16154_v12, 0.0 }
 0x9b4   : > { %v2910_v31 = vsel %vm1539_vm3, %v16156_v26, 0.0 }
 0x9b5   : > { %14917 = vmatpush3.bf16.msra.mxu0 %v14914_v9 }
 0x9b7   : > { %v17317_v35 = vpop.eup %16157 }
 0x9b8   : > { %v2916_v13 = vsel %vm1539_vm3, %v17317_v35, 0.0  ;;  %v16160_v15 = vpop.eup %16159 }
 0x9b9   : > { %v2913_v38 = vsel %vm1539_vm3, %v16160_v15, 0.0 }
 0x9c0   : > { %15727 = vrot.lane.b32.xlu1 %v17047_v36, %s20011_s7 }
 0x9c6   : > { %15732 = vrot.lane.b32.xlu0 %v17057_v41, %s20011_s7 }
 0x9e4   : > { %2908 = vadd.xlane.f32.xlu1 %v2907_v28 }
 0x9e5   : > { %2911 = vadd.xlane.f32.xlu0 %v2910_v31 }
 0x9e8   : > { %2917 = vadd.xlane.f32.xlu1 %v2916_v13 }
 0x9ec   : > { %2914 = vadd.xlane.f32.xlu1 %v2913_v38 }
 0x9fb   : > { %15737 = vrot.lane.b32.xlu0 %v17067_v45, %s20011_s7  ;;  %s20023_s7 = smov 16  }
 0x9fd   : > { %3062 = vrot.lane.b32.xlu1 %v17041_v34, %s20009_s10 }
 0x9ff   : > { %3064 = vrot.lane.b32.xlu0 %v17039_v32, %s20009_s10 }
 0xa01   : > { %3066 = vrot.lane.b32.xlu1 %v17051_v39, %s20009_s10 }
 0xa03   : > { %3068 = vrot.lane.b32.xlu0 %v17049_v37, %s20009_s10 }
 0xa05   : > { %3070 = vrot.lane.b32.xlu1 %v17061_v44, %s20009_s10 }
 0xa07   : > { %3072 = vrot.lane.b32.xlu0 %v17059_v42, %s20009_s10  ;;  %s20025_s10 = smov 8  }
 0xa3c   : > { %v2906_v51 = vpop.xlane.xlu1 %2905 }
 0xa3d   : > { %16161 = vrcp.f32 %v2906_v51  ;;  %v2903_v20 = vpop.xlane.xlu0 %2902 }
 0xa3e   : > { %16163 = vrcp.f32 %v2903_v20 }
 0xa40   : > { %v15728_v34 = vpop.permute.xlu1 %15727 }
 0xa41   : > { %v15730_v30 = vunpack.i.h.bf16 %v15728_v34  ;;  %v15729_v16 = vunpack.i.l.bf16 %v15728_v34  ;;  %v15733_v22 = vpop.permute.xlu0 %15732 }
 0xa42   : > { %v15735_v10 = vunpack.i.h.bf16 %v15733_v22  ;;  %v15734_v55 = vunpack.i.l.bf16 %v15733_v22  ;;  %v16629_v22 = vld [vmem:[%s16763_s8 + $0x8] sm:$0xff] }
 0xa43   : > { %v14918_v32 = vpack.c.bf16 %v15730_v30, %v15729_v16 }
 0xa44   : > { %v14924_v42 = vpack.c.bf16 %v15735_v10, %v15734_v55  ;;  %v16630_v10 = vld [vmem:[%s16763_s8] sm:$0xff] }
 0xa45   : > { %14920 = vmatprep.subr.msk.bf16.mxu0 %vm17075_vm5, %v14918_v32 }
 0xa47   : > { %v16162_v39 = vpop.eup %16161 }
 0xa48   : > { %v16164_v37 = vpop.eup %16163  ;;  %v2926_v57 = vmul.f32 %v16162_v39, %v17307_v4 }
 0xa49   : > { %v2925_v44 = vmul.f32 %v16164_v37, %v16152_v6 }
 0xa4b   : > { %13842 = vmatprep.mubr.msk.f32.mxu0 %vm1539_vm3, %v2925_v44 }
 0xa4c   : > { %13843 = vmatmul.mubr.msk.f32.vlgmr.msra.gmra.mrb[18].mxu0 %vm1539_vm3, %v2926_v57 }
 0xa4d   : > { %14923 = vmatpush3.bf16.xpose.msk.msra.mxu0 %vm17075_vm5, %v14918_v32 }
 0xa4e   : > { %14926 = vmatprep.subr.msk.bf16.mxu0 %vm17075_vm5, %v14924_v42 }
 0xa55   : > { %14929 = vmatpush3.bf16.xpose.msk.msra.mxu0 %vm17075_vm5, %v14924_v42 }
 0xa71   : > { %v2909_v61 = vpop.xlane.xlu1 %2908 }
 0xa72   : > { %16165 = vrcp.f32 %v2909_v61  ;;  %v2912_v62 = vpop.xlane.xlu0 %2911 }
 0xa73   : > { %16167 = vrcp.f32 %v2912_v62 }
 0xa75   : > { %v2918_v58 = vpop.xlane.xlu1 %2917 }
 0xa76   : > { %v15738_v4 = vpop.permute.xlu0 %15737  ;;  %16169 = vrcp.f32 %v2918_v58  ;;  %v16631_v58 = vld [vmem:[%s16763_s8 + $0x18] sm:$0xff] }
 0xa77   : > { %v15740_v5 = vunpack.i.h.bf16 %v15738_v4  ;;  %v15739_v6 = vunpack.i.l.bf16 %v15738_v4 }
 0xa79   : > { %v14930_v60 = vpack.c.bf16 %v15740_v5, %v15739_v6  ;;  %v2915_v1 = vpop.xlane.xlu1 %2914  ;;  %v16632_v6 = vld [vmem:[%s16763_s8 + $0x10] sm:$0xff] }
 0xa7a   : > { %16171 = vrcp.f32 %v2915_v1  ;;  %v3065_v8 = vpop.permute.xlu0 %3064 }
 0xa7b   : > { %14932 = vmatprep.subr.msk.bf16.mxu0 %vm17075_vm5, %v14930_v60 }
 0xa7c   : > { %v16166_v7 = vpop.eup %16165  ;;  %14935 = vmatpush3.bf16.xpose.msk.msra.mxu0 %vm17075_vm5, %v14930_v60 }
 0xa7d   : > { %v16168_v9 = vpop.eup %16167  ;;  %v2927_v14 = vmul.f32 %v16166_v7, %v16154_v12  ;;  %v3063_v11 = vpop.permute.xlu1 %3062 }
 0xa7e   : > { %v2928_v2 = vmul.f32 %v16168_v9, %v16156_v26  ;;  %v3069_v12 = vpop.permute.xlu0 %3068 }
 0xa7f   : > { %13845 = vmatprep.mubr.msk.f32.mxu0 %vm1539_vm3, %v2927_v14 }
 0xa80   : > { %13846 = vmatmul.mubr.msk.f32.gmra.mrb[20].mxu0 %vm1539_vm3, %v2928_v2  ;;  %v16170_v63 = vpop.eup %16169 }
 0xa81   : > { %v2930_v40 = vmul.f32 %v16170_v63, %v17317_v35  ;;  %v3067_v28 = vpop.permute.xlu1 %3066  ;;  %v16633_v63 = vld [vmem:[%s16763_s8 + $0x28] sm:$0xff] }
 0xa82   : > { %v3073_v35 = vpop.permute.xlu0 %3072 }
 0xa84   : > { %v16172_v0 = vpop.eup %16171 }
 0xa85   : > { %v2929_v3 = vmul.f32 %v16172_v0, %v16160_v15  ;;  %v3071_v26 = vpop.permute.xlu1 %3070 }
 0xa87   : > { %13848 = vmatprep.mubr.msk.f32.mxu0 %vm1539_vm3, %v2929_v3 }
 0xa88   : > { %13849 = vmatmul.mubr.msk.f32.gmra.mrb[22].mxu0 %vm1539_vm3, %v2930_v40 }
 0xa89   : > { %13863 = vmatprep.mubr.msk.f32.mxu0 %vm1308_vm2, %v3063_v11  ;;  %v16634_v11 = vld [vmem:[%s16763_s8 + $0x20] sm:$0xff] }
 0xa8c   : > { %13864 = vmatmul.mubr.msk.f32.vlgmr.msra.gmra.mrb[24].mxu0 %vm1308_vm2, %v3065_v8 }
 0xa8d   : > { %13866 = vmatprep.mubr.msk.f32.mxu0 %vm1308_vm2, %v3067_v28 }
 0xa90   : > { %13867 = vmatmul.mubr.msk.f32.gmra.mrb[26].mxu0 %vm1308_vm2, %v3069_v12 }
 0xa91   : > { %13869 = vmatprep.mubr.msk.f32.mxu0 %vm1308_vm2, %v3071_v26 }
 0xa94   : > { %13870 = vmatmul.mubr.msk.f32.gmra.mrb[28].mxu0 %vm1308_vm2, %v3073_v35 }
 0xb1f   : > { %v17363_v31 = vpop.f32.mrb[18].mxu0 }
 0xb20   : > { %v17365_v13 = vpop.f32.mrb[19].mxu0 }
 0xb53   : > { %v17367_v15 = vpop.f32.mrb[20].mxu0 }
 0xb54   : > { %v17369_v38 = vpop.f32.mrb[21].mxu0 }
 0xb5b   : > { %v17371_v51 = vpop.f32.mrb[22].mxu0 }
 0xb5c   : > { %v17373_v20 = vpop.f32.mrb[23].mxu0 }
 0xb5f   : > { %v13865_v34 = vpop.f32.mrb[24].mxu0 }
 0xb60   : > { %v3206_v30 = vmul.f32 0.35355338, %v13865_v34  ;;  %v3176_v16 = vpop.f32.mrb[25].mxu0 }
 0xb61   : > { %v3205_v32 = vmul.f32 0.35355338, %v3176_v16 }
 0xb62   : > { %v3212_v39 = vadd.f32 %v16629_v22, %v3206_v30 }
 0xb63   : > { %v13868_v37 = vpop.f32.mrb[26].mxu0  ;;  %v3211_v55 = vadd.f32 %v16630_v10, %v3205_v32 }
 0xb64   : > { %v3208_v44 = vmul.f32 0.35355338, %v13868_v37  ;;  %v3186_v57 = vpop.f32.mrb[27].mxu0  ;;  %v3220_v42 = vsel %vm1539_vm3, %v3212_v39, -inf }
 0xb65   : > { %v3207_v61 = vmul.f32 0.35355338, %v3186_v57  ;;  %3221 = vmax.xlane.f32.xlu0 %v3220_v42  ;;  %v3217_v62 = vsel %vm1539_vm3, %v3211_v55, -inf }
 0xb66   : > { %3218 = vmax.xlane.f32.xlu1 %v3217_v62  ;;  %v3214_v4 = vadd.f32 %v16631_v58, %v3208_v44 }
 0xb67   : > { %v13871_v5 = vpop.f32.mrb[28].mxu0  ;;  %v3213_v60 = vadd.f32 %v16632_v6, %v3207_v61 }
 0xb68   : > { %v3210_v1 = vmul.f32 0.35355338, %v13871_v5  ;;  %v3196_v7 = vpop.f32.mrb[29].mxu0  ;;  %v3226_v9 = vsel %vm1539_vm3, %v3214_v4, -inf }
 0xb69   : > { %v3209_v14 = vmul.f32 0.35355338, %v3196_v7  ;;  %v3223_v2 = vsel %vm1539_vm3, %v3213_v60, -inf }
 0xb6a   : > { %3227 = vmax.xlane.f32.xlu1 %v3226_v9  ;;  %3224 = vmax.xlane.f32.xlu0 %v3223_v2  ;;  %v3216_v0 = vadd.f32 %v16633_v63, %v3210_v1 }
 0xb6b   : > { %v3215_v3 = vadd.f32 %v16634_v11, %v3209_v14 }
 0xb6c   : > { %v3232_v40 = vsel %vm1539_vm3, %v3216_v0, -inf }
 0xb6d   : > { %v3229_v8 = vsel %vm1539_vm3, %v3215_v3, -inf }
 0xb6e   : > { %3233 = vmax.xlane.f32.xlu1 %v3232_v40  ;;  %3230 = vmax.xlane.f32.xlu0 %v3229_v8 }
 0xb84   : > { %15742 = vrot.lane.b32.xlu0 %v17047_v36, %s20013_s1 }
 0xbf2   : > { %v3222_v28 = vpop.xlane.xlu0 %3221 }
 0xbf3   : > { %v3236_v12 = vsub.f32 %v3212_v39, %v3222_v28  ;;  %v3219_v26 = vpop.xlane.xlu1 %3218 }
 0xbf4   : > { %v3235_v35 = vsub.f32 %v3211_v55, %v3219_v26 }
 0xbf5   : > { %v3243_v34 = vmul.f32 1.442695, %v3236_v12 }
 0xbf6   : > { %v3241_v30 = vmul.f32 1.442695, %v3235_v35 }
 0xbf7   : > { %16173 = vpow2.f32 %v3243_v34  ;;  %v3228_v16 = vpop.xlane.xlu1 %3227  ;;  %v3225_v32 = vpop.xlane.xlu0 %3224 }
 0xbf8   : > { %16175 = vpow2.f32 %v3241_v30  ;;  %v3238_v22 = vsub.f32 %v3214_v4, %v3228_v16  ;;  %v3237_v37 = vsub.f32 %v3213_v60, %v3225_v32 }
 0xbfa   : > { %v3247_v10 = vmul.f32 1.442695, %v3238_v22  ;;  %v3245_v44 = vmul.f32 1.442695, %v3237_v37 }
 0xbfb   : > { %v3234_v57 = vpop.xlane.xlu1 %3233  ;;  %v3231_v42 = vpop.xlane.xlu0 %3230 }
 0xbfc   : > { %16177 = vpow2.f32 %v3247_v10  ;;  %v3240_v61 = vsub.f32 %v3216_v0, %v3234_v57  ;;  %v3239_v62 = vsub.f32 %v3215_v3, %v3231_v42 }
 0xbfd   : > { %16179 = vpow2.f32 %v3245_v44 }
 0xbfe   : > { %v3251_v36 = vmul.f32 1.442695, %v3240_v61  ;;  %v3249_v39 = vmul.f32 1.442695, %v3239_v62  ;;  %v3506_v62 = vld [vmem:[%s16818_s6] sm:$0xff] }
 0xbff   : > { %v15743_v58 = vpop.permute.xlu0 %15742 }
 0xc00   : > { %16181 = vpow2.f32 %v3251_v36  ;;  %v15745_v55 = vunpack.i.h.bf16 %v15743_v58  ;;  %v15744_v5 = vunpack.i.l.bf16 %v15743_v58  ;;  %v3507_v36 = vld [vmem:[%s16818_s6 + $0x8] sm:$0xff] }
 0xc01   : > { %v17389_v6 = vpop.eup %16173  ;;  %16183 = vpow2.f32 %v3249_v39  ;;  %v3508_v39 = vld [vmem:[%s16818_s6 + $0x10] sm:$0xff]  ;;  %v14948_v58 = vpack.c.bf16 %v3507_v36, %v3506_v62 }
 0xc02   : > { %v16176_v1 = vpop.eup %16175  ;;  %v3256_v4 = vsel %vm1539_vm3, %v17389_v6, 0.0  ;;  %v14936_v60 = vpack.c.bf16 %v15745_v55, %v15744_v5  ;;  %v3509_v55 = vld [vmem:[%s16818_s6 + $0x18] sm:$0xff] }
 0xc03   : > { %3257 = vadd.xlane.f32.xlu1 %v3256_v4  ;;  %v3253_v7 = vsel %vm1539_vm3, %v16176_v1, 0.0  ;;  %v14952_v5 = vpack.c.bf16 %v3509_v55, %v3508_v39 }
 0xc04   : > { %3254 = vadd.xlane.f32.xlu0 %v3253_v7  ;;  %14937 = vmatprep.subr.bf16.mxu1 %v14936_v60 }
 0xc05   : > { %14939 = vmatpush3.bf16.msra.mxu1 %v14936_v60 }
 0xc06   : > { %v16178_v9 = vpop.eup %16177 }
 0xc07   : > { %v16180_v14 = vpop.eup %16179  ;;  %v3262_v2 = vsel %vm1539_vm3, %v16178_v9, 0.0 }
 0xc08   : > { %3263 = vadd.xlane.f32.xlu1 %v3262_v2  ;;  %v3259_v63 = vsel %vm1539_vm3, %v16180_v14, 0.0 }
 0xc09   : > { %3260 = vadd.xlane.f32.xlu0 %v3259_v63 }
 0xc0a   : > { %v16182_v0 = vpop.eup %16181 }
 0xc0b   : > { %v3268_v11 = vsel %vm1539_vm3, %v16182_v0, 0.0  ;;  %v16184_v3 = vpop.eup %16183 }
 0xc0c   : > { %3269 = vadd.xlane.f32.xlu1 %v3268_v11  ;;  %v3265_v40 = vsel %vm1539_vm3, %v16184_v3, 0.0 }
 0xc10   : > { %3266 = vadd.xlane.f32.xlu1 %v3265_v40 }
 0xc1f   : > { %15752 = vrot.lane.b32.xlu0 %v17067_v45, %s20013_s1 }
 0xc21   : > { %15747 = vrot.lane.b32.xlu1 %v17057_v41, %s20013_s1  ;;  %s20021_s1 = smov 24  }
 0xc23   : > { %3420 = vrot.lane.b32.xlu0 %v17281_v52, %s20025_s10 }
 0xc25   : > { %3422 = vrot.lane.b32.xlu1 %v17279_v18, %s20025_s10 }
 0xc27   : > { %3444 = vrot.lane.b32.xlu0 %v17365_v13, %s20023_s7 }
 0xc29   : > { %3446 = vrot.lane.b32.xlu1 %v17363_v31, %s20023_s7 }
 0xc2b   : > { %3424 = vrot.lane.b32.xlu0 %v17285_v54, %s20025_s10 }
 0xc2d   : > { %3426 = vrot.lane.b32.xlu1 %v17283_v53, %s20025_s10 }
 0xc2f   : > { %3448 = vrot.lane.b32.xlu0 %v17369_v38, %s20023_s7 }
 0xc31   : > { %3450 = vrot.lane.b32.xlu1 %v17367_v15, %s20023_s7 }
 0xc90   : > { %v3258_v41 = vpop.xlane.xlu1 %3257 }
 0xc91   : > { %v3255_v45 = vpop.xlane.xlu0 %3254 }
 0xc92   : > { %16185 = vrcp.f32 %v3255_v45 }
 0xc93   : > { %16187 = vrcp.f32 %v3258_v41 }
 0xc95   : > { %v3264_v18 = vpop.xlane.xlu1 %3263 }
 0xc96   : > { %v3261_v52 = vpop.xlane.xlu0 %3260 }
 0xc97   : > { %16189 = vrcp.f32 %v3261_v52 }
 0xc98   : > { %16191 = vrcp.f32 %v3264_v18 }
 0xc99   : > { %v3270_v13 = vpop.xlane.xlu1 %3269 }
 0xc9a   : > { %v15753_v54 = vpop.permute.xlu0 %15752 }
 0xc9b   : > { %v15755_v12 = vunpack.i.h.bf16 %v15753_v54  ;;  %v15754_v38 = vunpack.i.l.bf16 %v15753_v54 }
 0xc9c   : > { %v16186_v8 = vpop.eup %16185 }
 0xc9d   : > { %v3267_v31 = vpop.xlane.xlu1 %3266  ;;  %v3277_v28 = vmul.f32 %v16186_v8, %v16176_v1  ;;  %v14944_v34 = vpack.c.bf16 %v15755_v12, %v15754_v38  ;;  %v16188_v30 = vpop.eup %16187 }
 0xc9e   : > { %16193 = vrcp.f32 %v3267_v31  ;;  %v3278_v32 = vmul.f32 %v16188_v30, %v17389_v6 }
 0xc9f   : > { %13884 = vmatprep.mubr.msk.f32.mxu1 %vm1539_vm3, %v3277_v28  ;;  %16195 = vrcp.f32 %v3270_v13 }
 0xca1   : > { %v15748_v53 = vpop.permute.xlu1 %15747  ;;  %v16190_v16 = vpop.eup %16189 }
 0xca2   : > { %v15750_v26 = vunpack.i.h.bf16 %v15748_v53  ;;  %v15749_v35 = vunpack.i.l.bf16 %v15748_v53  ;;  %v16192_v22 = vpop.eup %16191  ;;  %v3279_v37 = vmul.f32 %v16190_v16, %v16180_v14  ;;  %v3421_v14 = vpop.permute.xlu0 %3420 }
 0xca3   : > { %v3280_v44 = vmul.f32 %v16192_v22, %v16178_v9 }
 0xca4   : > { %v14940_v15 = vpack.c.bf16 %v15750_v26, %v15749_v35 }
 0xca6   : > { %14941 = vmatprep.subr.bf16.mxu1 %v14940_v15 }
 0xca7   : > { %14943 = vmatpush3.bf16.msra.mxu1 %v14940_v15 }
 0xca8   : > { %14945 = vmatprep.subr.bf16.mxu1 %v14944_v34  ;;  %v16194_v10 = vpop.eup %16193 }
 0xca9   : > { %v16196_v57 = vpop.eup %16195  ;;  %v3281_v42 = vmul.f32 %v16194_v10, %v16184_v3  ;;  %v17474_v10 = vsub.s32 0, %v16961_v24 }
 0xcaa   : > { %v3282_v61 = vmul.f32 %v16196_v57, %v16182_v0 }
 0xcab   : > { %14947 = vmatpush3.bf16.msra.mxu1 %v14944_v34 }
 0xcac   : > { %14949 = vmatprep.subr.bf16.mxu1 %v14948_v58 }
 0xcae   : > { %13885 = vmatmul.mubr.msk.f32.vlgmr.msra.gmra.mrb[42].mxu1 %vm1539_vm3, %v3278_v32 }
 0xcaf   : > { %13887 = vmatprep.mubr.msk.f32.mxu1 %vm1539_vm3, %v3279_v37  ;;  %14951 = vmatpush3.bf16.msra.mxu1 %v14948_v58 }
 0xcb0   : > { %14953 = vmatprep.subr.bf16.mxu1 %v14952_v5 }
 0xcb2   : > { %13888 = vmatmul.mubr.msk.f32.gmra.mrb[44].mxu1 %vm1539_vm3, %v3280_v44 }
 0xcb3   : > { %13890 = vmatprep.mubr.msk.f32.mxu1 %vm1539_vm3, %v3281_v42  ;;  %14955 = vmatpush3.bf16.msra.mxu1 %v14952_v5 }
 0xcb6   : > { %13891 = vmatmul.mubr.msk.f32.gmra.mrb[46].mxu1 %vm1539_vm3, %v3282_v61 }
 0xd81   : > { %v13886_v6 = vpop.f32.mrb[42].mxu1 }
 0xd82   : > { %3470 = vrot.lane.b32.xlu1 %v13886_v6, %s20021_s1  ;;  %v3385_v1 = vpop.f32.mrb[43].mxu1 }
 0xd83   : > { %3468 = vrot.lane.b32.xlu0 %v3385_v1, %s20021_s1 }
 0xd85   : > { %v13889_v4 = vpop.f32.mrb[44].mxu1 }
 0xd86   : > { %3430 = vrot.lane.b32.xlu1 %v17287_v56, %s20025_s10  ;;  %v3395_v60 = vpop.f32.mrb[45].mxu1  ;;  %v3423_v56 = vpop.permute.xlu1 %3422 }
 0xd87   : > { %3428 = vrot.lane.b32.xlu0 %v17289_v59, %s20025_s10  ;;  %v3445_v59 = vpop.permute.xlu0 %3444  ;;  %v3487_v41 = vsel %vm1308_vm2, %v17193_v33, %v3423_v56 }
 0xd89   : > { %v13892_v7 = vpop.f32.mrb[46].mxu1 }
 0xd8a   : > { %3474 = vrot.lane.b32.xlu1 %v13889_v4, %s20021_s1  ;;  %v3405_v9 = vpop.f32.mrb[47].mxu1  ;;  %v3447_v2 = vpop.permute.xlu1 %3446 }
 0xd8b   : > { %3472 = vrot.lane.b32.xlu0 %v3395_v60, %s20021_s1  ;;  %v3425_v0 = vpop.permute.xlu0 %3424  ;;  %v3494_v18 = vsel %vm3492_vm6, %v3487_v41, %v3447_v2 }
 0xd8e   : > { %3454 = vrot.lane.b32.xlu1 %v17371_v51, %s20023_s7  ;;  %v3427_v63 = vpop.permute.xlu1 %3426  ;;  %v3486_v51 = vsel %vm1308_vm2, %v17195_v43, %v3421_v14  ;;  %v3488_v43 = vsel %vm1308_vm2, %v17199_v47, %v3425_v0 }
 0xd8f   : > { %3452 = vrot.lane.b32.xlu0 %v17373_v20, %s20023_s7  ;;  %v3449_v3 = vpop.permute.xlu0 %3448  ;;  %v3493_v20 = vsel %vm3492_vm6, %v3486_v51, %v3445_v59  ;;  %v3489_v33 = vsel %vm1308_vm2, %v17197_v46, %v3427_v63 }
 0xd90   : > { %v3495_v54 = vsel %vm3492_vm6, %v3488_v43, %v3449_v3 }
 0xd92   : > { %3478 = vrot.lane.b32.xlu1 %v13892_v7, %s20021_s1  ;;  %v3451_v11 = vpop.permute.xlu1 %3450 }
 0xd93   : > { %3476 = vrot.lane.b32.xlu0 %v3405_v9, %s20021_s1  ;;  %v3496_v12 = vsel %vm3492_vm6, %v3489_v33, %v3451_v11 }
 0xdf4   : > { %v3471_v40 = vpop.permute.xlu1 %3470 }
 0xdf5   : > { %v3469_v45 = vpop.permute.xlu0 %3468  ;;  %v3501_v13 = vsel %vm3499_vm7, %v3494_v18, %v3471_v40 }
 0xdf6   : > { %v3500_v52 = vsel %vm3499_vm7, %v3493_v20, %v3469_v45 }
 0xdf7   : > { %13901 = vmatprep.mubr.msk.f32.mxu1 %vm1898_vm4, %v3500_v52 }
 0xdf8   : > { %v3431_v8 = vpop.permute.xlu1 %3430  ;;  %13902 = vmatmul.mubr.msk.f32.vlgmr.msra.gmra.mrb[48].mxu1 %vm1898_vm4, %v3501_v13 }
 0xdf9   : > { %v3429_v31 = vpop.permute.xlu0 %3428  ;;  %v3491_v46 = vsel %vm1308_vm2, %v17201_v48, %v3431_v8 }
 0xdfa   : > { %v3490_v15 = vsel %vm1308_vm2, %v17203_v50, %v3429_v31  ;;  %v17477_v50 = vld [vmem:[%s16838_s30] sm:$0x3f] }
 0xdfb   : > { %v3513_v48 = vrot.slane %v17477_v50, %v17474_v10 }
 0xdfc   : > { %v3475_v28 = vpop.permute.xlu1 %3474 }
 0xdfd   : > { %v3473_v53 = vpop.permute.xlu0 %3472  ;;  %v3503_v26 = vsel %vm3499_vm7, %v3496_v12, %v3475_v28 }
 0xdfe   : > { %v3502_v38 = vsel %vm3499_vm7, %v3495_v54, %v3473_v53 }
 0xdff   : > { %13904 = vmatprep.mubr.msk.f32.mxu1 %vm1898_vm4, %v3502_v38 }
 0xe00   : > { %v3455_v35 = vpop.permute.xlu1 %3454  ;;  %13905 = vmatmul.mubr.msk.f32.gmra.mrb[50].mxu1 %vm1898_vm4, %v3503_v26 }
 0xe01   : > { %v3453_v47 = vpop.permute.xlu0 %3452  ;;  %v3498_v32 = vsel %vm3492_vm6, %v3491_v46, %v3455_v35 }
 0xe02   : > { %v3497_v30 = vsel %vm3492_vm6, %v3490_v15, %v3453_v47 }
 0xe04   : > { %v3479_v34 = vpop.permute.xlu1 %3478 }
 0xe05   : > { %v3477_v16 = vpop.permute.xlu0 %3476  ;;  %v3505_v37 = vsel %vm3499_vm7, %v3498_v32, %v3479_v34  ;;  %v3733_v32 = vld [vmem:[%s16823_s27 + $0x8] sm:$0xff] }
 0xe06   : > { %v3504_v22 = vsel %vm3499_vm7, %v3497_v30, %v3477_v16  ;;  %v3732_v16 = vld [vmem:[%s16823_s27] sm:$0xff] }
 0xe07   : > { %13907 = vmatprep.mubr.msk.f32.mxu1 %vm1898_vm4, %v3504_v22  ;;  %v14956_v22 = vpack.c.bf16 %v3733_v32, %v3732_v16 }
 0xe08   : > { %13908 = vmatmul.mubr.msk.f32.gmra.mrb[52].mxu1 %vm1898_vm4, %v3505_v37  ;;  %v3734_v37 = vld [vmem:[%s16823_s27 + $0x10] sm:$0xff] }
 0xe09   : > { %14957 = vmatprep.subr.bf16.mxu0 %v14956_v22 }
 0xe0a   : > { %14959 = vmatpush3.bf16.msra.mxu0 %v14956_v22 }
 0xecb   : > { %v13903_v44 = vpop.f32.mrb[48].mxu1 }
 0xecc   : > { %v3604_v57 = vadd.f32 %v13903_v44, %v3513_v48  ;;  %v3598_v42 = vpop.f32.mrb[49].mxu1 }
 0xecd   : > { %v3599_v61 = vadd.f32 %v3598_v42, %v3513_v48 }
 0xece   : > { %v3628_v62 = vadd.f32 %v17009_v17, %v3604_v57 }
 0xecf   : > { %v3627_v36 = vadd.f32 %v17012_v19, %v3599_v61 }
 0xed0   : > { %v3636_v39 = vsel %vm1898_vm4, %v3628_v62, 0.0 }
 0xed1   : > { %3637 = vadd.xlane.f32.xlu1 %v3636_v39  ;;  %v3633_v58 = vsel %vm1898_vm4, %v3627_v36, 0.0 }
 0xed2   : > { %3634 = vadd.xlane.f32.xlu0 %v3633_v58 }
 0xed3   : > { %v13906_v55 = vpop.f32.mrb[50].mxu1 }
 0xed4   : > { %v3608_v5 = vpop.f32.mrb[51].mxu1  ;;  %v3614_v6 = vadd.f32 %v13906_v55, %v3513_v48  ;;  %v17524_v55 = vsub.s32 2, %v16961_v24 }
 0xed5   : > { %v3609_v1 = vadd.f32 %v3608_v5, %v3513_v48 }
 0xed6   : > { %v3630_v60 = vadd.f32 %v17017_v21, %v3614_v6  ;;  %20077 = vst [vmem:[#allocation23_spill] sm:$0xff] %v17524_v55 }
 0xed7   : > { %v3629_v4 = vadd.f32 %v17022_v23, %v3609_v1 }
 0xed8   : > { %v3642_v14 = vsel %vm1898_vm4, %v3630_v60, 0.0 }
 0xed9   : > { %v3639_v7 = vsel %vm1898_vm4, %v3629_v4, 0.0 }
 0xeda   : > { %3640 = vadd.xlane.f32.xlu0 %v3639_v7 }
 0xedb   : > { %v13909_v17 = vpop.f32.mrb[52].mxu1 }
 0xedc   : > { %v3624_v9 = vadd.f32 %v13909_v17, %v3513_v48  ;;  %v3618_v19 = vpop.f32.mrb[53].mxu1 }
 0xedd   : > { %v3619_v56 = vadd.f32 %v3618_v19, %v3513_v48  ;;  %v3735_v48 = vld [vmem:[%s16823_s27 + $0x18] sm:$0xff] }
 0xede   : > { %v3632_v2 = vadd.f32 %v17027_v27, %v3624_v9  ;;  %3643 = vadd.xlane.f32.xlu0 %v3642_v14  ;;  %v14960_v44 = vpack.c.bf16 %v3735_v48, %v3734_v37 }
 0xedf   : > { %v3631_v59 = vadd.f32 %v17032_v29, %v3619_v56 }
 0xee0   : > { %v3648_v63 = vsel %vm1898_vm4, %v3632_v2, 0.0  ;;  %14961 = vmatprep.subr.bf16.mxu0 %v14960_v44 }
 0xee1   : > { %v3645_v23 = vsel %vm1898_vm4, %v3631_v59, 0.0  ;;  %14963 = vmatpush3.bf16.msra.mxu0 %v14960_v44 }
 0xee2   : > { %3646 = vadd.xlane.f32.xlu1 %v3645_v23  ;;  %3649 = vadd.xlane.f32.xlu0 %v3648_v63 }
 0xf5e   : > { %v3638_v21 = vpop.xlane.xlu1 %3637 }
 0xf5f   : > { %v3653_v0 = vmul.f32 0.03125, %v3638_v21  ;;  %v3635_v11 = vpop.xlane.xlu0 %3634 }
 0xf60   : > { %v3652_v3 = vmul.f32 0.03125, %v3635_v11 }
 0xf61   : > { %v3659_v51 = vsub.f32 %v3628_v62, %v3653_v0 }
 0xf62   : > { %v17493_v40 = vsub.f32 %v3627_v36, %v3652_v3 }
 0xf63   : > { %v3665_v20 = vmul.f32 %v3659_v51, %v3659_v51 }
 0xf64   : > { %v3664_v27 = vmul.f32 %v17493_v40, %v17493_v40 }
 0xf65   : > { %v3673_v41 = vsel %vm1898_vm4, %v3665_v20, 0.0 }
 0xf66   : > { %3674 = vadd.xlane.f32.xlu0 %v3673_v41  ;;  %v3670_v29 = vsel %vm1898_vm4, %v3664_v27, 0.0 }
 0xf67   : > { %3671 = vadd.xlane.f32.xlu1 %v3670_v29  ;;  %v3641_v45 = vpop.xlane.xlu0 %3640 }
 0xf68   : > { %v3654_v18 = vmul.f32 0.03125, %v3641_v45 }
 0xf6a   : > { %v17499_v52 = vsub.f32 %v3629_v4, %v3654_v18  ;;  %v17527_v4 = vsub.s32 3, %v16961_v24 }
 0xf6b   : > { %v3644_v13 = vpop.xlane.xlu0 %3643 }
 0xf6c   : > { %v3655_v8 = vmul.f32 0.03125, %v3644_v13  ;;  %v3666_v31 = vmul.f32 %v17499_v52, %v17499_v52  ;;  %20078 = vst [vmem:[#allocation24_spill] sm:$0xff] %v17527_v4  ;;  %v3725_v63 = vrot.slane %v17477_v50, %v17527_v4 }
 0xf6e   : > { %v17503_v43 = vsub.f32 %v3630_v60, %v3655_v8  ;;  %v3676_v28 = vsel %vm1898_vm4, %v3666_v31, 0.0  ;;  %v3715_v60 = vrot.slane %v17477_v50, %v17524_v55 }
 0xf6f   : > { %v3647_v54 = vpop.xlane.xlu1 %3646  ;;  %3677 = vadd.xlane.f32.xlu1 %v3676_v28  ;;  %v3650_v33 = vpop.xlane.xlu0 %3649 }
 0xf70   : > { %v3656_v53 = vmul.f32 0.03125, %v3647_v54  ;;  %v3657_v12 = vmul.f32 0.03125, %v3650_v33  ;;  %v3667_v38 = vmul.f32 %v17503_v43, %v17503_v43 }
 0xf72   : > { %v17508_v26 = vsub.f32 %v3631_v59, %v3656_v53  ;;  %v17510_v35 = vsub.f32 %v3632_v2, %v3657_v12  ;;  %v3679_v47 = vsel %vm1898_vm4, %v3667_v38, 0.0 }
 0xf73   : > { %3680 = vadd.xlane.f32.xlu0 %v3679_v47  ;;  %v3886_v47 = vld [vmem:[%s16833_s19] sm:$0xff] }
 0xf74   : > { %v3668_v15 = vmul.f32 %v17508_v26, %v17508_v26  ;;  %v3669_v34 = vmul.f32 %v17510_v35, %v17510_v35 }
 0xf76   : > { %v3682_v46 = vsel %vm1898_vm4, %v3668_v15, 0.0  ;;  %v3685_v30 = vsel %vm1898_vm4, %v3669_v34, 0.0  ;;  %v3889_v34 = vld [vmem:[%s16833_s19 + $0x18] sm:$0xff] }
 0xf77   : > { %3683 = vadd.xlane.f32.xlu1 %v3682_v46  ;;  %3686 = vadd.xlane.f32.xlu0 %v3685_v30  ;;  %v12535_v30 = vld [vmem:[%s16828_s20] ss:$0 sm:$0xff] }
 0xff3   : > { %v3675_v57 = vpop.xlane.xlu0 %3674 }
 0xff4   : > { %v3689_v42 = vmul.f32 0.03125, %v3675_v57  ;;  %v3672_v61 = vpop.xlane.xlu1 %3671 }
 0xff5   : > { %v3688_v62 = vmul.f32 0.03125, %v3672_v61 }
 0xff6   : > { %v3695_v36 = vadd.f32 1e-05, %v3689_v42 }
 0xff7   : > { %v3694_v39 = vadd.f32 1e-05, %v3688_v62 }
 0xff8   : > { %16197 = vrsqrt.f32 %v3695_v36 }
 0xff9   : > { %16199 = vrsqrt.f32 %v3694_v39 }
 0xffc   : > { %v3678_v58 = vpop.xlane.xlu1 %3677 }
 0xffd   : > { %v3690_v5 = vmul.f32 0.03125, %v3678_v58 }
 0xfff   : > { %v3696_v6 = vadd.f32 1e-05, %v3690_v5 }
0x1000   : > { %v3681_v1 = vpop.xlane.xlu0 %3680 }
0x1001   : > { %16201 = vrsqrt.f32 %v3696_v6  ;;  %v3691_v7 = vmul.f32 0.03125, %v3681_v1 }
0x1002   : > { %v16198_v17 = vpop.eup %16197 }
0x1003   : > { %v16200_v9 = vpop.eup %16199  ;;  %v3707_v19 = vmul.f32 %v16198_v17, %v3659_v51  ;;  %v3697_v56 = vadd.f32 1e-05, %v3691_v7 }
0x1004   : > { %v3684_v14 = vpop.xlane.xlu1 %3683  ;;  %v3687_v2 = vpop.xlane.xlu0 %3686  ;;  %v3706_v59 = vmul.f32 %v16200_v9, %v17493_v40 }
0x1005   : > { %v3717_v23 = vmul.f32 %v3715_v60, %v3707_v19  ;;  %16203 = vrsqrt.f32 %v3697_v56  ;;  %v3692_v21 = vmul.f32 0.03125, %v3684_v14  ;;  %v3693_v0 = vmul.f32 0.03125, %v3687_v2 }
0x1006   : > { %v3716_v11 = vmul.f32 %v3715_v60, %v3706_v59 }
0x1007   : > { %v3698_v3 = vadd.f32 1e-05, %v3692_v21  ;;  %v3699_v20 = vadd.f32 1e-05, %v3693_v0  ;;  %v17536_v41 = vadd.f32 %v3725_v63, %v3717_v23 }
0x1008   : > { %v17534_v27 = vadd.f32 %v3725_v63, %v3716_v11 }
0x1009   : > { %16205 = vrsqrt.f32 %v3698_v3 }
0x100a   : > { %16207 = vrsqrt.f32 %v3699_v20  ;;  %13918 = vmatprep.mubr.msk.f32.mxu0 %vm1898_vm4, %v17534_v27 }
0x100b   : > { %v16202_v51 = vpop.eup %16201  ;;  %13919 = vmatmul.mubr.msk.f32.vlgmr.msra.gmra.mrb[30].mxu0 %vm1898_vm4, %v17536_v41 }
0x100c   : > { %v3708_v40 = vmul.f32 %v16202_v51, %v17499_v52 }
0x100e   : > { %v3718_v29 = vmul.f32 %v3715_v60, %v3708_v40 }
0x100f   : > { %v16204_v45 = vpop.eup %16203 }
0x1010   : > { %v17543_v18 = vadd.f32 %v3725_v63, %v3718_v29  ;;  %v3709_v13 = vmul.f32 %v16204_v45, %v17503_v43 }
0x1012   : > { %13921 = vmatprep.mubr.msk.f32.mxu0 %vm1898_vm4, %v17543_v18  ;;  %v3719_v8 = vmul.f32 %v3715_v60, %v3709_v13 }
0x1013   : > { %v16206_v31 = vpop.eup %16205 }
0x1014   : > { %v16208_v28 = vpop.eup %16207  ;;  %v17548_v54 = vadd.f32 %v3725_v63, %v3719_v8  ;;  %v3710_v52 = vmul.f32 %v16206_v31, %v17508_v26  ;;  %v3887_v26 = vld [vmem:[%s16833_s19 + $0x8] sm:$0xff] }
0x1015   : > { %v3711_v33 = vmul.f32 %v16208_v28, %v17510_v35  ;;  %v14964_v15 = vpack.c.bf16 %v3887_v26, %v3886_v47  ;;  %v3888_v35 = vld [vmem:[%s16833_s19 + $0x10] sm:$0xff] }
0x1016   : > { %13922 = vmatmul.mubr.msk.f32.gmra.mrb[32].mxu0 %vm1898_vm4, %v17548_v54  ;;  %v3720_v53 = vmul.f32 %v3715_v60, %v3710_v52  ;;  %v14968_v46 = vpack.c.bf16 %v3889_v34, %v3888_v35 }
0x1017   : > { %v3721_v43 = vmul.f32 %v3715_v60, %v3711_v33  ;;  %14965 = vmatprep.subr.bf16.mxu1 %v14964_v15 }
0x1018   : > { %v17554_v12 = vadd.f32 %v3725_v63, %v3720_v53  ;;  %14967 = vmatpush3.bf16.msra.mxu1 %v14964_v15  ;;  %v17574_v53 = vsub.s32 1, %v16961_v24 }
0x1019   : > { %v17556_v38 = vadd.f32 %v3725_v63, %v3721_v43  ;;  %14969 = vmatprep.subr.bf16.mxu1 %v14968_v46 }
0x101a   : > { %13924 = vmatprep.mubr.msk.f32.mxu0 %vm1898_vm4, %v17554_v12  ;;  %v3893_v43 = vrot.slane %v17477_v50, %v17574_v53 }
0x101b   : > { %13925 = vmatmul.mubr.msk.f32.gmra.mrb[34].mxu0 %vm1898_vm4, %v17556_v38 }
0x101c   : > { %14971 = vmatpush3.bf16.msra.mxu1 %v14968_v46 }
0x10de   : > { %v13920_v16 = vpop.f32.mrb[30].mxu0 }
0x10df   : > { %v3833_v32 = vadd.f32 %v13920_v16, %v12535_v30  ;;  %v3827_v22 = vpop.f32.mrb[31].mxu0 }
0x10e0   : > { %v3828_v37 = vadd.f32 %v12535_v30, %v3827_v22 }
0x10e1   : > { %v3863_v48 = vmul.f32 0.70710677, %v3833_v32  ;;  %v3857_v19 = vmul.f32 0.5, %v3833_v32 }
0x10e2   : > { %v3862_v44 = vmul.f32 0.70710677, %v3828_v37  ;;  %v3856_v60 = vmul.f32 0.5, %v3828_v37 }
0x10e3   : > { %16209 = verf.f32 %v3863_v48 }
0x10e4   : > { %16211 = verf.f32 %v3862_v44 }
0x10e9   : > { %v13923_v57 = vpop.f32.mrb[32].mxu0 }
0x10ea   : > { %v3843_v42 = vadd.f32 %v13923_v57, %v12535_v30  ;;  %v3837_v61 = vpop.f32.mrb[33].mxu0 }
0x10eb   : > { %v3838_v62 = vadd.f32 %v12535_v30, %v3837_v61 }
0x10ec   : > { %v3865_v36 = vmul.f32 0.70710677, %v3843_v42  ;;  %v3859_v20 = vmul.f32 0.5, %v3843_v42 }
0x10ed   : > { %v16210_v39 = vpop.eup %16209  ;;  %v3864_v58 = vmul.f32 0.70710677, %v3838_v62  ;;  %v3858_v11 = vmul.f32 0.5, %v3838_v62 }
0x10ee   : > { %v16212_v5 = vpop.eup %16211  ;;  %v3875_v6 = vadd.f32 1.0, %v16210_v39  ;;  %16213 = verf.f32 %v3865_v36  ;;  %v13926_v1 = vpop.f32.mrb[34].mxu0 }
0x10ef   : > { %v3874_v7 = vadd.f32 1.0, %v16212_v5  ;;  %16215 = verf.f32 %v3864_v58  ;;  %v3853_v17 = vadd.f32 %v13926_v1, %v12535_v30  ;;  %v3847_v9 = vpop.f32.mrb[35].mxu0 }
0x10f0   : > { %v3848_v56 = vadd.f32 %v12535_v30, %v3847_v9  ;;  %v3881_v59 = vmul.f32 %v3875_v6, %v3857_v19 }
0x10f1   : > { %v3880_v14 = vmul.f32 %v3874_v7, %v3856_v60  ;;  %v3867_v2 = vmul.f32 0.70710677, %v3853_v17  ;;  %v3861_v28 = vmul.f32 0.5, %v3853_v17 }
0x10f2   : > { %v3866_v63 = vmul.f32 0.70710677, %v3848_v56  ;;  %v3860_v8 = vmul.f32 0.5, %v3848_v56 }
0x10f3   : > { %16217 = verf.f32 %v3867_v2  ;;  %13935 = vmatprep.mubr.msk.f32.mxu1 %vm1898_vm4, %v3880_v14 }
0x10f4   : > { %16219 = verf.f32 %v3866_v63  ;;  %13936 = vmatmul.mubr.msk.f32.vlgmr.msra.gmra.mrb[54].mxu1 %vm1898_vm4, %v3881_v59 }
0x10f8   : > { %v16214_v23 = vpop.eup %16213 }
0x10f9   : > { %v16216_v21 = vpop.eup %16215  ;;  %v3877_v0 = vadd.f32 1.0, %v16214_v23 }
0x10fa   : > { %v3876_v3 = vadd.f32 1.0, %v16216_v21 }
0x10fb   : > { %v3883_v29 = vmul.f32 %v3877_v0, %v3859_v20 }
0x10fc   : > { %v3882_v51 = vmul.f32 %v3876_v3, %v3858_v11 }
0x10fd   : > { %v16218_v40 = vpop.eup %16217 }
0x10fe   : > { %v16220_v45 = vpop.eup %16219  ;;  %v3879_v13 = vadd.f32 1.0, %v16218_v40  ;;  %13938 = vmatprep.mubr.msk.f32.mxu1 %vm1898_vm4, %v3882_v51 }
0x10ff   : > { %v3878_v31 = vadd.f32 1.0, %v16220_v45  ;;  %13939 = vmatmul.mubr.msk.f32.gmra.mrb[56].mxu1 %vm1898_vm4, %v3883_v29 }
0x1100   : > { %v3885_v33 = vmul.f32 %v3879_v13, %v3861_v28 }
0x1101   : > { %v3884_v52 = vmul.f32 %v3878_v31, %v3860_v8 }
0x1103   : > { %13941 = vmatprep.mubr.msk.f32.mxu1 %vm1898_vm4, %v3884_v52 }
0x1104   : > { %13942 = vmatmul.mubr.msk.f32.gmra.mrb[58].mxu1 %vm1898_vm4, %v3885_v33  ;;  %v12549_v33 = vld [vmem:[%s16808_s4 + $0x20] sm:$0xff] }
0x11c7   : > { %v13937_v47 = vpop.f32.mrb[54].mxu1 }
0x11c8   : > { %v3984_v26 = vadd.f32 %v13937_v47, %v3893_v43  ;;  %v3978_v15 = vpop.f32.mrb[55].mxu1 }
0x11c9   : > { %v3979_v35 = vadd.f32 %v3978_v15, %v3893_v43  ;;  %v12552_v15 = vld [vmem:[%s16808_s4 + $0x38] sm:$0xff] }
0x11ca   : > { %v4008_v34 = vadd.f32 %v3984_v26, %v17536_v41  ;;  %v12551_v26 = vld [vmem:[%s16808_s4 + $0x30] sm:$0xff] }
0x11cb   : > { %v4007_v46 = vadd.f32 %v3979_v35, %v17534_v27  ;;  %v14976_v35 = vpack.c.bf16 %v12552_v15, %v12551_v26 }
0x11cc   : > { %v4016_v30 = vsel %vm1898_vm4, %v4008_v34, 0.0 }
0x11cd   : > { %4017 = vadd.xlane.f32.xlu0 %v4016_v30  ;;  %v4013_v16 = vsel %vm1898_vm4, %v4007_v46, 0.0 }
0x11ce   : > { %4014 = vadd.xlane.f32.xlu1 %v4013_v16 }
0x11d2   : > { %v13940_v32 = vpop.f32.mrb[56].mxu1 }
0x11d3   : > { %v3994_v22 = vadd.f32 %v13940_v32, %v3893_v43  ;;  %v3988_v37 = vpop.f32.mrb[57].mxu1 }
0x11d4   : > { %v3989_v48 = vadd.f32 %v3988_v37, %v3893_v43 }
0x11d5   : > { %v4010_v44 = vadd.f32 %v3994_v22, %v17548_v54 }
0x11d6   : > { %v4009_v57 = vadd.f32 %v3989_v48, %v17543_v18 }
0x11d7   : > { %v13943_v42 = vpop.f32.mrb[58].mxu1  ;;  %v4022_v61 = vsel %vm1898_vm4, %v4010_v44, 0.0 }
0x11d8   : > { %v4004_v41 = vadd.f32 %v13943_v42, %v3893_v43  ;;  %4023 = vadd.xlane.f32.xlu0 %v4022_v61  ;;  %v3998_v27 = vpop.f32.mrb[59].mxu1  ;;  %v4019_v62 = vsel %vm1898_vm4, %v4009_v57, 0.0  ;;  %v17621_v42 = vsub.s32 5, %v16961_v24  ;;  %v4094_v61 = vrot.slane %v17477_v50, %v16964_v25 }
0x11d9   : > { %v3999_v36 = vadd.f32 %v3998_v27, %v3893_v43  ;;  %4020 = vadd.xlane.f32.xlu1 %v4019_v62  ;;  %v12550_v43 = vld [vmem:[%s16808_s4 + $0x28] sm:$0xff] }
0x11da   : > { %v4012_v39 = vadd.f32 %v4004_v41, %v17556_v38  ;;  %v14972_v47 = vpack.c.bf16 %v12550_v43, %v12549_v33  ;;  %20079 = vst [vmem:[#allocation25_spill] sm:$0xff] %v17621_v42 }
0x11db   : > { %v4011_v58 = vadd.f32 %v3999_v36, %v17554_v12 }
0x11dc   : > { %v4028_v5 = vsel %vm1898_vm4, %v4012_v39, 0.0  ;;  %14973 = vmatprep.subr.bf16.mxu0 %v14972_v47 }
0x11dd   : > { %4029 = vadd.xlane.f32.xlu0 %v4028_v5  ;;  %v4025_v54 = vsel %vm1898_vm4, %v4011_v58, 0.0  ;;  %14975 = vmatpush3.bf16.msra.mxu0 %v14972_v47 }
0x11de   : > { %4026 = vadd.xlane.f32.xlu1 %v4025_v54  ;;  %14977 = vmatprep.subr.bf16.mxu0 %v14976_v35 }
0x11e1   : > { %14979 = vmatpush3.bf16.msra.mxu0 %v14976_v35 }
0x125a   : > { %v4018_v18 = vpop.xlane.xlu0 %4017 }
0x125b   : > { %v4032_v6 = vmul.f32 0.03125, %v4018_v18  ;;  %v4015_v1 = vpop.xlane.xlu1 %4014 }
0x125c   : > { %v4031_v60 = vmul.f32 0.03125, %v4015_v1 }
0x125d   : > { %v4038_v7 = vsub.f32 %v4008_v34, %v4032_v6  ;;  %v4104_v6 = vrot.slane %v17477_v50, %v17621_v42 }
0x125e   : > { %v17590_v17 = vsub.f32 %v4007_v46, %v4031_v60 }
0x125f   : > { %v4044_v9 = vmul.f32 %v4038_v7, %v4038_v7 }
0x1260   : > { %v4043_v19 = vmul.f32 %v17590_v17, %v17590_v17 }
0x1261   : > { %v4052_v38 = vsel %vm1898_vm4, %v4044_v9, 0.0 }
0x1262   : > { %4053 = vadd.xlane.f32.xlu0 %v4052_v38  ;;  %v4049_v12 = vsel %vm1898_vm4, %v4043_v19, 0.0 }
0x1263   : > { %4050 = vadd.xlane.f32.xlu1 %v4049_v12 }
0x1265   : > { %v4024_v56 = vpop.xlane.xlu0 %4023 }
0x1266   : > { %v4034_v14 = vmul.f32 0.03125, %v4024_v56  ;;  %v4021_v2 = vpop.xlane.xlu1 %4020 }
0x1267   : > { %v4033_v59 = vmul.f32 0.03125, %v4021_v2 }
0x1268   : > { %v17596_v63 = vsub.f32 %v4010_v44, %v4034_v14 }
0x1269   : > { %v17598_v23 = vsub.f32 %v4009_v57, %v4033_v59 }
0x126a   : > { %v4030_v21 = vpop.xlane.xlu0 %4029  ;;  %v4046_v0 = vmul.f32 %v17596_v63, %v17596_v63 }
0x126b   : > { %v4036_v11 = vmul.f32 0.03125, %v4030_v21  ;;  %v4027_v3 = vpop.xlane.xlu1 %4026  ;;  %v4045_v20 = vmul.f32 %v17598_v23, %v17598_v23 }
0x126c   : > { %v4035_v51 = vmul.f32 0.03125, %v4027_v3  ;;  %v4058_v40 = vsel %vm1898_vm4, %v4046_v0, 0.0 }
0x126d   : > { %v17605_v29 = vsub.f32 %v4012_v39, %v4036_v11  ;;  %4059 = vadd.xlane.f32.xlu0 %v4058_v40  ;;  %v4055_v45 = vsel %vm1898_vm4, %v4045_v20, 0.0 }
0x126e   : > { %v17608_v13 = vsub.f32 %v4011_v58, %v4035_v51  ;;  %4056 = vadd.xlane.f32.xlu1 %v4055_v45 }
0x126f   : > { %v4048_v8 = vmul.f32 %v17605_v29, %v17605_v29 }
0x1270   : > { %v4047_v31 = vmul.f32 %v17608_v13, %v17608_v13 }
0x1271   : > { %v4064_v28 = vsel %vm1898_vm4, %v4048_v8, 0.0 }
0x1272   : > { %4065 = vadd.xlane.f32.xlu0 %v4064_v28  ;;  %v4061_v52 = vsel %vm1898_vm4, %v4047_v31, 0.0 }
0x1273   : > { %4062 = vadd.xlane.f32.xlu1 %v4061_v52 }
0x12ef   : > { %v4054_v34 = vpop.xlane.xlu0 %4053 }
0x12f0   : > { %v4068_v46 = vmul.f32 0.03125, %v4054_v34  ;;  %v4051_v30 = vpop.xlane.xlu1 %4050 }
0x12f1   : > { %v4067_v16 = vmul.f32 0.03125, %v4051_v30 }
0x12f2   : > { %v4074_v32 = vadd.f32 1e-05, %v4068_v46 }
0x12f3   : > { %v4073_v22 = vadd.f32 1e-05, %v4067_v16 }
0x12f4   : > { %16221 = vrsqrt.f32 %v4074_v32 }
0x12f5   : > { %16223 = vrsqrt.f32 %v4073_v22 }
0x12fa   : > { %v4060_v37 = vpop.xlane.xlu0 %4059 }
0x12fb   : > { %v4070_v48 = vmul.f32 0.03125, %v4060_v37  ;;  %v4057_v44 = vpop.xlane.xlu1 %4056 }
0x12fc   : > { %v4069_v57 = vmul.f32 0.03125, %v4057_v44 }
0x12fd   : > { %v4076_v41 = vadd.f32 1e-05, %v4070_v48 }
0x12fe   : > { %v16222_v27 = vpop.eup %16221  ;;  %v4075_v62 = vadd.f32 1e-05, %v4069_v57 }
0x12ff   : > { %v16224_v36 = vpop.eup %16223  ;;  %v4086_v39 = vmul.f32 %v16222_v27, %v4038_v7  ;;  %16225 = vrsqrt.f32 %v4076_v41  ;;  %v4066_v58 = vpop.xlane.xlu0 %4065 }
0x1300   : > { %16227 = vrsqrt.f32 %v4075_v62  ;;  %v4072_v5 = vmul.f32 0.03125, %v4066_v58  ;;  %v4063_v54 = vpop.xlane.xlu1 %4062  ;;  %v4085_v18 = vmul.f32 %v16224_v36, %v17590_v17 }
0x1301   : > { %v4096_v1 = vmul.f32 %v4094_v61, %v4086_v39  ;;  %v4071_v60 = vmul.f32 0.03125, %v4063_v54 }
0x1302   : > { %v4078_v9 = vadd.f32 1e-05, %v4072_v5  ;;  %v4095_v19 = vmul.f32 %v4094_v61, %v4085_v18 }
0x1303   : > { %v4077_v38 = vadd.f32 1e-05, %v4071_v60  ;;  %v17630_v7 = vadd.f32 %v4104_v6, %v4096_v1 }
0x1304   : > { %16229 = vrsqrt.f32 %v4078_v9  ;;  %v17628_v12 = vadd.f32 %v4104_v6, %v4095_v19  ;;  %v17714_v19 = vld [vmem:[%s16763_s8 + $0x8] sm:$0xff] }
0x1305   : > { %16231 = vrsqrt.f32 %v4077_v38 }
0x1306   : > { %13952 = vmatprep.mubr.msk.f32.mxu0 %vm1898_vm4, %v17628_v12 }
0x1307   : > { %13953 = vmatmul.mubr.msk.f32.vlgmr.msra.gmra.mrb[36].mxu0 %vm1898_vm4, %v17630_v7 }
0x1309   : > { %v16226_v17 = vpop.eup %16225 }
0x130a   : > { %v16228_v56 = vpop.eup %16227  ;;  %v4088_v50 = vmul.f32 %v16226_v17, %v17596_v63  ;;  %v17718_v17 = vld [vmem:[%s16763_s8] sm:$0xff] }
0x130b   : > { %v4087_v14 = vmul.f32 %v16228_v56, %v17598_v23 }
0x130c   : > { %v4098_v2 = vmul.f32 %v4094_v61, %v4088_v50 }
0x130d   : > { %v4097_v59 = vmul.f32 %v4094_v61, %v4087_v14 }
0x130e   : > { %v16230_v21 = vpop.eup %16229  ;;  %v17641_v20 = vadd.f32 %v4104_v6, %v4098_v2 }
0x130f   : > { %v16232_v0 = vpop.eup %16231  ;;  %v17638_v11 = vadd.f32 %v4104_v6, %v4097_v59  ;;  %v4090_v3 = vmul.f32 %v16230_v21, %v17605_v29  ;;  %v12554_v29 = vld [vmem:[%s16813_s12 + $0x1] ss:$0 sm:$0xff] }
0x1310   : > { %v4089_v51 = vmul.f32 %v16232_v0, %v17608_v13 }
0x1311   : > { %13955 = vmatprep.mubr.msk.f32.mxu0 %vm1898_vm4, %v17638_v11  ;;  %v4100_v40 = vmul.f32 %v4094_v61, %v4090_v3  ;;  %v17724_v3 = vld [vmem:[%s16763_s8 + $0x18] sm:$0xff] }
0x1312   : > { %13956 = vmatmul.mubr.msk.f32.gmra.mrb[38].mxu0 %vm1898_vm4, %v17641_v20  ;;  %v4099_v63 = vmul.f32 %v4094_v61, %v4089_v51 }
0x1313   : > { %v17650_v45 = vadd.f32 %v4104_v6, %v4100_v40  ;;  %v17728_v40 = vld [vmem:[%s16763_s8 + $0x10] sm:$0xff] }
0x1314   : > { %v17648_v23 = vadd.f32 %v4104_v6, %v4099_v63 }
0x1316   : > { %13958 = vmatprep.mubr.msk.f32.mxu0 %vm1898_vm4, %v17648_v23 }
0x1317   : > { %13959 = vmatmul.mubr.msk.f32.gmra.mrb[40].mxu0 %vm1898_vm4, %v17650_v45 }
0x13da   : > { %v13954_v13 = vpop.f32.mrb[36].mxu0 }
0x13db   : > { %v17657_v8 = vadd.f32 %v13954_v13, %v12554_v29  ;;  %v4210_v31 = vpop.f32.mrb[37].mxu0 }
0x13dc   : > { %v17659_v28 = vadd.f32 %v12554_v29, %v4210_v31 }
0x13de   : > { %13973 = vmatprep.mubr.msk.f32.mxu1 %vm1308_vm2, %v17659_v28  ;;  %v17665_v52 = vpack.i.bf16 %v17657_v8, %v17659_v28 }
0x13e0   : > { %15757 = vrot.lane.b32.xlu1 %v17665_v52, %s20042_s11 }
0x13e5   : > { %v13957_v33 = vpop.f32.mrb[38].mxu0 }
0x13e6   : > { %v17669_v43 = vadd.f32 %v13957_v33, %v12554_v29  ;;  %v4220_v47 = vpop.f32.mrb[39].mxu0 }
0x13e7   : > { %v17671_v26 = vadd.f32 %v12554_v29, %v4220_v47 }
0x13e9   : > { %v17675_v15 = vpack.i.bf16 %v17669_v43, %v17671_v26 }
0x13ea   : > { %v13960_v35 = vpop.f32.mrb[40].mxu0 }
0x13eb   : > { %v17677_v34 = vadd.f32 %v13960_v35, %v12554_v29  ;;  %15762 = vrot.lane.b32.xlu0 %v17675_v15, %s20042_s11  ;;  %v4230_v46 = vpop.f32.mrb[41].mxu0 }
0x13ec   : > { %v17681_v30 = vadd.f32 %v12554_v29, %v4230_v46  ;;  %v17734_v46 = vld [vmem:[%s16763_s8 + $0x28] sm:$0xff] }
0x13ee   : > { %v17685_v16 = vpack.i.bf16 %v17677_v34, %v17681_v30 }
0x13ef   : > { %15772 = vrot.lane.b32.xlu0 %v17665_v52, %s20038_s15 }
0x13f0   : > { %15767 = vrot.lane.b32.xlu1 %v17685_v16, %s20042_s11 }
0x1452   : > { %v15758_v32 = vpop.permute.xlu1 %15757 }
0x1453   : > { %v15760_v22 = vunpack.i.h.bf16 %v15758_v32  ;;  %v15759_v37 = vunpack.i.l.bf16 %v15758_v32 }
0x1455   : > { %v14980_v48 = vpack.c.bf16 %v15760_v22, %v15759_v37  ;;  %v17738_v22 = vld [vmem:[%s16763_s8 + $0x20] sm:$0xff] }
0x1457   : > { %14982 = vmatprep.subr.msk.bf16.mxu1 %vm17075_vm5, %v14980_v48 }
0x1458   : > { %14985 = vmatpush3.bf16.xpose.msk.msra.mxu1 %vm17075_vm5, %v14980_v48 }
0x145d   : > { %v15763_v44 = vpop.permute.xlu0 %15762 }
0x145e   : > { %v15765_v57 = vunpack.i.h.bf16 %v15763_v44  ;;  %v15764_v61 = vunpack.i.l.bf16 %v15763_v44 }
0x1460   : > { %v14986_v41 = vpack.c.bf16 %v15765_v57, %v15764_v61 }
0x1461   : > { %v15773_v27 = vpop.permute.xlu0 %15772 }
0x1462   : > { %v15775_v62 = vunpack.i.h.bf16 %v15773_v27  ;;  %v15774_v36 = vunpack.i.l.bf16 %v15773_v27  ;;  %v15768_v39 = vpop.permute.xlu1 %15767  ;;  %14988 = vmatprep.subr.msk.bf16.mxu1 %vm17075_vm5, %v14986_v41 }
0x1463   : > { %v15770_v58 = vunpack.i.h.bf16 %v15768_v39  ;;  %v15769_v5 = vunpack.i.l.bf16 %v15768_v39  ;;  %14991 = vmatpush3.bf16.xpose.msk.msra.mxu1 %vm17075_vm5, %v14986_v41 }
0x1464   : > { %v14998_v54 = vpack.c.bf16 %v15775_v62, %v15774_v36 }
0x1465   : > { %v14992_v18 = vpack.c.bf16 %v15770_v58, %v15769_v5 }
0x1466   : > { %14999 = vmatprep.subr.bf16.mxu0 %v14998_v54 }
0x1467   : > { %14994 = vmatprep.subr.msk.bf16.mxu1 %vm17075_vm5, %v14992_v18  ;;  %15001 = vmatpush3.bf16.msra.mxu0 %v14998_v54 }
0x146b   : > { %14997 = vmatpush3.bf16.xpose.msk.msra.mxu1 %vm17075_vm5, %v14992_v18 }
0x1472   : > { %13974 = vmatmul.mubr.msk.f32.vlgmr.msra.gmra.mrb[60].mxu1 %vm1308_vm2, %v17657_v8 }
0x1473   : > { %13976 = vmatprep.mubr.msk.f32.mxu1 %vm1308_vm2, %v17671_v26 }
0x1476   : > { %13977 = vmatmul.mubr.msk.f32.gmra.mrb[62].mxu1 %vm1308_vm2, %v17669_v43 }
0x1477   : > { %13979 = vmatprep.mubr.msk.f32.mxu1 %vm1308_vm2, %v17681_v30 }
0x147a   : > { %13980 = vmatmul.mubr.msk.f32.gmra.mrb[64].mxu1 %vm1308_vm2, %v17677_v34 }
0x1545   : > { %v13975_v6 = vpop.f32.mrb[60].mxu1 }
0x1546   : > { %v4377_v1 = vmul.f32 0.35355338, %v13975_v6  ;;  %v4347_v60 = vpop.f32.mrb[61].mxu1 }
0x1547   : > { %v4376_v9 = vmul.f32 0.35355338, %v4347_v60 }
0x1548   : > { %v4383_v38 = vadd.f32 %v17714_v19, %v4377_v1 }
0x1549   : > { %v4382_v56 = vadd.f32 %v17718_v17, %v4376_v9  ;;  %v13978_v50 = vpop.f32.mrb[62].mxu1 }
0x154a   : > { %v4379_v14 = vmul.f32 0.35355338, %v13978_v50  ;;  %v4357_v2 = vpop.f32.mrb[63].mxu1  ;;  %v4391_v59 = vsel %vm1539_vm3, %v4383_v38, -inf }
0x154b   : > { %v4378_v21 = vmul.f32 0.35355338, %v4357_v2  ;;  %4392 = vmax.xlane.f32.xlu0 %v4391_v59  ;;  %v4388_v0 = vsel %vm1539_vm3, %v4382_v56, -inf }
0x154c   : > { %v4385_v51 = vadd.f32 %v17724_v3, %v4379_v14  ;;  %4389 = vmax.xlane.f32.xlu1 %v4388_v0 }
0x154d   : > { %v4384_v63 = vadd.f32 %v17728_v40, %v4378_v21  ;;  %v13981_v29 = vpop.f32.mrb[64].mxu1 }
0x154e   : > { %v4381_v13 = vmul.f32 0.35355338, %v13981_v29  ;;  %v4367_v31 = vpop.f32.mrb[65].mxu1  ;;  %v4397_v33 = vsel %vm1539_vm3, %v4385_v51, -inf }
0x154f   : > { %v4380_v47 = vmul.f32 0.35355338, %v4367_v31  ;;  %v4394_v35 = vsel %vm1539_vm3, %v4384_v63, -inf }
0x1550   : > { %v4387_v32 = vadd.f32 %v17734_v46, %v4381_v13  ;;  %4398 = vmax.xlane.f32.xlu1 %v4397_v33  ;;  %4395 = vmax.xlane.f32.xlu0 %v4394_v35 }
0x1551   : > { %v4386_v37 = vadd.f32 %v17738_v22, %v4380_v47 }
0x1552   : > { %v4403_v48 = vsel %vm1539_vm3, %v4387_v32, -inf }
0x1553   : > { %v4400_v44 = vsel %vm1539_vm3, %v4386_v37, -inf }
0x1554   : > { %4404 = vmax.xlane.f32.xlu1 %v4403_v48  ;;  %4401 = vmax.xlane.f32.xlu0 %v4400_v44 }
0x1565   : > { %15777 = vrot.lane.b32.xlu1 %v17675_v15, %s20038_s15 }
0x156a   : > { %15782 = vrot.lane.b32.xlu0 %v17685_v16, %s20038_s15 }
0x15d8   : > { %v4393_v57 = vpop.xlane.xlu0 %4392 }
0x15d9   : > { %v4407_v61 = vsub.f32 %v4383_v38, %v4393_v57  ;;  %v4390_v41 = vpop.xlane.xlu1 %4389 }
0x15da   : > { %v4406_v27 = vsub.f32 %v4382_v56, %v4390_v41 }
0x15db   : > { %v4414_v62 = vmul.f32 1.442695, %v4407_v61 }
0x15dc   : > { %v4412_v36 = vmul.f32 1.442695, %v4406_v27 }
0x15dd   : > { %16233 = vpow2.f32 %v4414_v62  ;;  %v4399_v39 = vpop.xlane.xlu1 %4398  ;;  %v4396_v58 = vpop.xlane.xlu0 %4395 }
0x15de   : > { %16235 = vpow2.f32 %v4412_v36  ;;  %v4408_v0 = vsub.f32 %v4384_v63, %v4396_v58  ;;  %v4409_v29 = vsub.f32 %v4385_v51, %v4399_v39 }
0x15e0   : > { %v4416_v13 = vmul.f32 1.442695, %v4408_v0  ;;  %v4418_v33 = vmul.f32 1.442695, %v4409_v29 }
0x15e1   : > { %v4405_v5 = vpop.xlane.xlu1 %4404  ;;  %v4402_v54 = vpop.xlane.xlu0 %4401 }
0x15e2   : > { %v4411_v31 = vsub.f32 %v4387_v32, %v4405_v5  ;;  %16237 = vpow2.f32 %v4416_v13  ;;  %v4410_v35 = vsub.f32 %v4386_v37, %v4402_v54 }
0x15e3   : > { %16239 = vpow2.f32 %v4418_v33 }
0x15e4   : > { %v4422_v47 = vmul.f32 1.442695, %v4411_v31  ;;  %v4420_v48 = vmul.f32 1.442695, %v4410_v35 }
0x15e5   : > { %v15778_v18 = vpop.permute.xlu1 %15777  ;;  %v15783_v6 = vpop.permute.xlu0 %15782 }
0x15e6   : > { %v15780_v1 = vunpack.i.h.bf16 %v15778_v18  ;;  %v15779_v60 = vunpack.i.l.bf16 %v15778_v18  ;;  %v15785_v9 = vunpack.i.h.bf16 %v15783_v6  ;;  %v15784_v14 = vunpack.i.l.bf16 %v15783_v6 }
0x15e7   : > { %v16234_v50 = vpop.eup %16233  ;;  %16241 = vpow2.f32 %v4422_v47 }
0x15e8   : > { %v16236_v2 = vpop.eup %16235  ;;  %v4427_v38 = vsel %vm1539_vm3, %v16234_v50, 0.0  ;;  %v15002_v59 = vpack.c.bf16 %v15780_v1, %v15779_v60  ;;  %v15006_v21 = vpack.c.bf16 %v15785_v9, %v15784_v14  ;;  %16243 = vpow2.f32 %v4420_v48 }
0x15e9   : > { %4428 = vadd.xlane.f32.xlu1 %v4427_v38  ;;  %v4424_v56 = vsel %vm1539_vm3, %v16236_v2, 0.0 }
0x15ea   : > { %15003 = vmatprep.subr.bf16.mxu0 %v15002_v59  ;;  %4425 = vadd.xlane.f32.xlu0 %v4424_v56 }
0x15eb   : > { %15005 = vmatpush3.bf16.msra.mxu0 %v15002_v59 }
0x15ec   : > { %15007 = vmatprep.subr.bf16.mxu0 %v15006_v21  ;;  %v16238_v44 = vpop.eup %16237 }
0x15ed   : > { %v16240_v57 = vpop.eup %16239  ;;  %v4430_v61 = vsel %vm1539_vm3, %v16238_v44, 0.0 }
0x15ee   : > { %v4433_v63 = vsel %vm1539_vm3, %v16240_v57, 0.0 }
0x15ef   : > { %15009 = vmatpush3.bf16.msra.mxu0 %v15006_v21 }
0x15f1   : > { %v17754_v41 = vpop.eup %16241 }
0x15f2   : > { %v4439_v51 = vsel %vm1539_vm3, %v17754_v41, 0.0  ;;  %v16244_v32 = vpop.eup %16243 }
0x15f3   : > { %v4436_v37 = vsel %vm1539_vm3, %v16244_v32, 0.0 }
0x15fa   : > { %15787 = vrot.lane.b32.xlu1 %v17665_v52, %s20040_s16 }
0x1600   : > { %15792 = vrot.lane.b32.xlu0 %v17675_v15, %s20040_s16 }
0x161e   : > { %4431 = vadd.xlane.f32.xlu1 %v4430_v61 }
0x161f   : > { %4434 = vadd.xlane.f32.xlu0 %v4433_v63 }
0x1622   : > { %4440 = vadd.xlane.f32.xlu1 %v4439_v51 }
0x1626   : > { %4437 = vadd.xlane.f32.xlu1 %v4436_v37 }
0x1635   : > { %15797 = vrot.lane.b32.xlu0 %v17685_v16, %s20040_s16 }
0x1637   : > { %4585 = vrot.lane.b32.xlu1 %v17659_v28, %s20044_s18 }
0x1639   : > { %4587 = vrot.lane.b32.xlu0 %v17657_v8, %s20044_s18 }
0x163b   : > { %4589 = vrot.lane.b32.xlu1 %v17671_v26, %s20044_s18 }
0x163d   : > { %4591 = vrot.lane.b32.xlu0 %v17669_v43, %s20044_s18 }
0x163f   : > { %4593 = vrot.lane.b32.xlu1 %v17681_v30, %s20044_s18 }
0x1641   : > { %4595 = vrot.lane.b32.xlu0 %v17677_v34, %s20044_s18 }
0x1645   : > { %15802 = vrot.lane.b32.xlu0 %v17665_v52, %s20027_s22 }
0x1676   : > { %v4429_v27 = vpop.xlane.xlu1 %4428 }
0x1677   : > { %16245 = vrcp.f32 %v4429_v27  ;;  %v4426_v62 = vpop.xlane.xlu0 %4425 }
0x1678   : > { %16247 = vrcp.f32 %v4426_v62 }
0x167a   : > { %v15788_v36 = vpop.permute.xlu1 %15787 }
0x167b   : > { %v15790_v39 = vunpack.i.h.bf16 %v15788_v36  ;;  %v15789_v58 = vunpack.i.l.bf16 %v15788_v36  ;;  %v15793_v54 = vpop.permute.xlu0 %15792 }
0x167c   : > { %v15795_v1 = vunpack.i.h.bf16 %v15793_v54  ;;  %v15794_v60 = vunpack.i.l.bf16 %v15793_v54 }
0x167d   : > { %v15010_v5 = vpack.c.bf16 %v15790_v39, %v15789_v58 }
0x167e   : > { %v15016_v38 = vpack.c.bf16 %v15795_v1, %v15794_v60 }
0x167f   : > { %15012 = vmatprep.subr.msk.bf16.mxu0 %vm17075_vm5, %v15010_v5 }
0x1681   : > { %v16246_v18 = vpop.eup %16245 }
0x1682   : > { %v16248_v6 = vpop.eup %16247  ;;  %v4449_v14 = vmul.f32 %v16246_v18, %v16234_v50 }
0x1683   : > { %v4448_v9 = vmul.f32 %v16248_v6, %v16236_v2 }
0x1685   : > { %13994 = vmatprep.mubr.msk.f32.mxu0 %vm1539_vm3, %v4448_v9 }
0x1686   : > { %13995 = vmatmul.mubr.msk.f32.vlgmr.msra.gmra.mrb[42].mxu0 %vm1539_vm3, %v4449_v14 }
0x1687   : > { %15015 = vmatpush3.bf16.xpose.msk.msra.mxu0 %vm17075_vm5, %v15010_v5 }
0x1688   : > { %15018 = vmatprep.subr.msk.bf16.mxu0 %vm17075_vm5, %v15016_v38 }
0x168f   : > { %15021 = vmatpush3.bf16.xpose.msk.msra.mxu0 %vm17075_vm5, %v15016_v38 }
0x16ab   : > { %v4432_v59 = vpop.xlane.xlu1 %4431 }
0x16ac   : > { %16249 = vrcp.f32 %v4432_v59  ;;  %v4435_v56 = vpop.xlane.xlu0 %4434 }
0x16ad   : > { %16251 = vrcp.f32 %v4435_v56 }
0x16af   : > { %v4441_v2 = vpop.xlane.xlu1 %4440 }
0x16b0   : > { %v15798_v50 = vpop.permute.xlu0 %15797  ;;  %16253 = vrcp.f32 %v4441_v2 }
0x16b1   : > { %v15800_v21 = vunpack.i.h.bf16 %v15798_v50  ;;  %v15799_v0 = vunpack.i.l.bf16 %v15798_v50 }
0x16b3   : > { %v15022_v29 = vpack.c.bf16 %v15800_v21, %v15799_v0  ;;  %v4438_v13 = vpop.xlane.xlu1 %4437 }
0x16b4   : > { %16255 = vrcp.f32 %v4438_v13  ;;  %v4588_v31 = vpop.permute.xlu0 %4587 }
0x16b5   : > { %15024 = vmatprep.subr.msk.bf16.mxu0 %vm17075_vm5, %v15022_v29 }
0x16b6   : > { %v16250_v33 = vpop.eup %16249  ;;  %15027 = vmatpush3.bf16.xpose.msk.msra.mxu0 %vm17075_vm5, %v15022_v29 }
0x16b7   : > { %v16252_v47 = vpop.eup %16251  ;;  %v4450_v35 = vmul.f32 %v16250_v33, %v16238_v44  ;;  %v4586_v27 = vpop.permute.xlu1 %4585 }
0x16b8   : > { %v4592_v48 = vpop.permute.xlu0 %4591  ;;  %v4451_v61 = vmul.f32 %v16252_v47, %v16240_v57 }
0x16b9   : > { %13997 = vmatprep.mubr.msk.f32.mxu0 %vm1539_vm3, %v4450_v35 }
0x16ba   : > { %13998 = vmatmul.mubr.msk.f32.gmra.mrb[44].mxu0 %vm1539_vm3, %v4451_v61  ;;  %v16254_v51 = vpop.eup %16253 }
0x16bb   : > { %v4453_v39 = vmul.f32 %v16254_v51, %v17754_v41  ;;  %v4590_v57 = vpop.permute.xlu1 %4589 }
0x16bc   : > { %v4596_v63 = vpop.permute.xlu0 %4595 }
0x16be   : > { %v16256_v37 = vpop.eup %16255 }
0x16bf   : > { %v4452_v62 = vmul.f32 %v16256_v37, %v16244_v32  ;;  %v4594_v32 = vpop.permute.xlu1 %4593 }
0x16c0   : > { %v15803_v36 = vpop.permute.xlu0 %15802 }
0x16c1   : > { %v15805_v58 = vunpack.i.h.bf16 %v15803_v36  ;;  %v15804_v5 = vunpack.i.l.bf16 %v15803_v36  ;;  %14000 = vmatprep.mubr.msk.f32.mxu0 %vm1539_vm3, %v4452_v62 }
0x16c2   : > { %14001 = vmatmul.mubr.msk.f32.gmra.mrb[46].mxu0 %vm1539_vm3, %v4453_v39 }
0x16c3   : > { %14015 = vmatprep.mubr.msk.f32.mxu0 %vm1308_vm2, %v4586_v27  ;;  %v15028_v44 = vpack.c.bf16 %v15805_v58, %v15804_v5 }
0x16c5   : > { %15029 = vmatprep.subr.bf16.mxu1 %v15028_v44 }
0x16c6   : > { %14016 = vmatmul.mubr.msk.f32.vlgmr.msra.gmra.mrb[48].mxu0 %vm1308_vm2, %v4588_v31  ;;  %15031 = vmatpush3.bf16.msra.mxu1 %v15028_v44 }
0x16c7   : > { %14018 = vmatprep.mubr.msk.f32.mxu0 %vm1308_vm2, %v4590_v57 }
0x16ca   : > { %14019 = vmatmul.mubr.msk.f32.gmra.mrb[50].mxu0 %vm1308_vm2, %v4592_v48 }
0x16cb   : > { %14021 = vmatprep.mubr.msk.f32.mxu0 %vm1308_vm2, %v4594_v32 }
0x16ce   : > { %14022 = vmatmul.mubr.msk.f32.gmra.mrb[52].mxu0 %vm1308_vm2, %v4596_v63 }
0x1759   : > { %v17801_v41 = vpop.f32.mrb[42].mxu0 }
0x175a   : > { %v17803_v54 = vpop.f32.mrb[43].mxu0 }
0x178d   : > { %v17805_v18 = vpop.f32.mrb[44].mxu0 }
0x178e   : > { %v17807_v6 = vpop.f32.mrb[45].mxu0 }
0x1795   : > { %v17809_v1 = vpop.f32.mrb[46].mxu0 }
0x1796   : > { %v17811_v60 = vpop.f32.mrb[47].mxu0 }
0x1799   : > { %v14017_v9 = vpop.f32.mrb[48].mxu0 }
0x179a   : > { %v4729_v14 = vmul.f32 0.35355338, %v14017_v9  ;;  %v4699_v38 = vpop.f32.mrb[49].mxu0 }
0x179b   : > { %v4728_v59 = vmul.f32 0.35355338, %v4699_v38 }
0x179c   : > { %v4735_v56 = vadd.f32 %v17714_v19, %v4729_v14 }
0x179d   : > { %v4734_v2 = vadd.f32 %v17718_v17, %v4728_v59  ;;  %v14020_v50 = vpop.f32.mrb[50].mxu0 }
0x179e   : > { %v4731_v21 = vmul.f32 0.35355338, %v14020_v50  ;;  %v4709_v0 = vpop.f32.mrb[51].mxu0  ;;  %v4743_v29 = vsel %vm1539_vm3, %v4735_v56, -inf }
0x179f   : > { %v4730_v13 = vmul.f32 0.35355338, %v4709_v0  ;;  %4744 = vmax.xlane.f32.xlu0 %v4743_v29  ;;  %v4740_v31 = vsel %vm1539_vm3, %v4734_v2, -inf }
0x17a0   : > { %v4737_v33 = vadd.f32 %v17724_v3, %v4731_v21  ;;  %4741 = vmax.xlane.f32.xlu1 %v4740_v31 }
0x17a1   : > { %v4736_v47 = vadd.f32 %v17728_v40, %v4730_v13  ;;  %v14023_v35 = vpop.f32.mrb[52].mxu0 }
0x17a2   : > { %v4733_v48 = vmul.f32 0.35355338, %v14023_v35  ;;  %v4719_v61 = vpop.f32.mrb[53].mxu0  ;;  %v4749_v63 = vsel %vm1539_vm3, %v4737_v33, -inf }
0x17a3   : > { %v4732_v51 = vmul.f32 0.35355338, %v4719_v61  ;;  %v4746_v37 = vsel %vm1539_vm3, %v4736_v47, -inf }
0x17a4   : > { %v4739_v27 = vadd.f32 %v17734_v46, %v4733_v48  ;;  %4750 = vmax.xlane.f32.xlu1 %v4749_v63  ;;  %4747 = vmax.xlane.f32.xlu0 %v4746_v37 }
0x17a5   : > { %v4738_v62 = vadd.f32 %v17738_v22, %v4732_v51 }
0x17a6   : > { %v4755_v36 = vsel %vm1539_vm3, %v4739_v27, -inf }
0x17a7   : > { %v4752_v39 = vsel %vm1539_vm3, %v4738_v62, -inf }
0x17a8   : > { %4756 = vmax.xlane.f32.xlu1 %v4755_v36  ;;  %4753 = vmax.xlane.f32.xlu0 %v4752_v39 }
0x17b9   : > { %15807 = vrot.lane.b32.xlu1 %v17675_v15, %s20027_s22 }
0x17be   : > { %15812 = vrot.lane.b32.xlu0 %v17685_v16, %s20027_s22  ;;  %s20085_s22 = sld [smem:[#allocation13_spill]] }
0x182c   : > { %v4745_v58 = vpop.xlane.xlu0 %4744 }
0x182d   : > { %v4759_v5 = vsub.f32 %v4735_v56, %v4745_v58  ;;  %v4742_v44 = vpop.xlane.xlu1 %4741 }
0x182e   : > { %v4758_v57 = vsub.f32 %v4734_v2, %v4742_v44 }
0x182f   : > { %v4766_v32 = vmul.f32 1.442695, %v4759_v5 }
0x1830   : > { %v4764_v9 = vmul.f32 1.442695, %v4758_v57 }
0x1831   : > { %16257 = vpow2.f32 %v4766_v32  ;;  %v4751_v14 = vpop.xlane.xlu1 %4750  ;;  %v4748_v38 = vpop.xlane.xlu0 %4747 }
0x1832   : > { %16259 = vpow2.f32 %v4764_v9  ;;  %v4760_v37 = vsub.f32 %v4736_v47, %v4748_v38  ;;  %v4761_v36 = vsub.f32 %v4737_v33, %v4751_v14 }
0x1834   : > { %v4768_v39 = vmul.f32 1.442695, %v4760_v37  ;;  %v4770_v5 = vmul.f32 1.442695, %v4761_v36 }
0x1835   : > { %v4757_v59 = vpop.xlane.xlu1 %4756  ;;  %v4754_v50 = vpop.xlane.xlu0 %4753 }
0x1836   : > { %v4763_v58 = vsub.f32 %v4739_v27, %v4757_v59  ;;  %16261 = vpow2.f32 %v4768_v39  ;;  %v4762_v57 = vsub.f32 %v4738_v62, %v4754_v50 }
0x1837   : > { %16263 = vpow2.f32 %v4770_v5 }
0x1838   : > { %v4774_v44 = vmul.f32 1.442695, %v4763_v58  ;;  %v4772_v32 = vmul.f32 1.442695, %v4762_v57 }
0x1839   : > { %v15808_v21 = vpop.permute.xlu1 %15807  ;;  %v15813_v0 = vpop.permute.xlu0 %15812 }
0x183a   : > { %v15810_v29 = vunpack.i.h.bf16 %v15808_v21  ;;  %v15809_v13 = vunpack.i.l.bf16 %v15808_v21  ;;  %v15815_v31 = vunpack.i.h.bf16 %v15813_v0  ;;  %v15814_v48 = vunpack.i.l.bf16 %v15813_v0 }
0x183b   : > { %v17829_v35 = vpop.eup %16257  ;;  %16265 = vpow2.f32 %v4774_v44 }
0x183c   : > { %v16260_v61 = vpop.eup %16259  ;;  %v4779_v56 = vsel %vm1539_vm3, %v17829_v35, 0.0  ;;  %v15032_v2 = vpack.c.bf16 %v15810_v29, %v15809_v13  ;;  %v15036_v51 = vpack.c.bf16 %v15815_v31, %v15814_v48  ;;  %16267 = vpow2.f32 %v4772_v32 }
0x183d   : > { %4780 = vadd.xlane.f32.xlu1 %v4779_v56  ;;  %v4776_v63 = vsel %vm1539_vm3, %v16260_v61, 0.0 }
0x183e   : > { %15033 = vmatprep.subr.bf16.mxu1 %v15032_v2  ;;  %4777 = vadd.xlane.f32.xlu0 %v4776_v63 }
0x183f   : > { %15035 = vmatpush3.bf16.msra.mxu1 %v15032_v2 }
0x1840   : > { %15037 = vmatprep.subr.bf16.mxu1 %v15036_v51  ;;  %v16262_v9 = vpop.eup %16261 }
0x1841   : > { %v16264_v21 = vpop.eup %16263  ;;  %v4782_v0 = vsel %vm1539_vm3, %v16262_v9, 0.0 }
0x1842   : > { %v4785_v47 = vsel %vm1539_vm3, %v16264_v21, 0.0 }
0x1843   : > { %15039 = vmatpush3.bf16.msra.mxu1 %v15036_v51 }
0x1845   : > { %v17839_v29 = vpop.eup %16265 }
0x1846   : > { %v4791_v33 = vsel %vm1539_vm3, %v17839_v29, 0.0  ;;  %v17844_v27 = vpop.eup %16267 }
0x1847   : > { %v4788_v62 = vsel %vm1539_vm3, %v17844_v27, 0.0 }
0x184e   : > { %15817 = vrot.lane.b32.xlu1 %v17665_v52, %s20019_s23 }
0x1854   : > { %15822 = vrot.lane.b32.xlu0 %v17675_v15, %s20019_s23 }
0x1872   : > { %4783 = vadd.xlane.f32.xlu1 %v4782_v0 }
0x1873   : > { %4786 = vadd.xlane.f32.xlu0 %v4785_v47 }
0x1876   : > { %4792 = vadd.xlane.f32.xlu1 %v4791_v33 }
0x187a   : > { %4789 = vadd.xlane.f32.xlu1 %v4788_v62 }
0x1889   : > { %15827 = vrot.lane.b32.xlu0 %v17685_v16, %s20019_s23  ;;  %s20082_s23 = smov 40  }
0x188b   : > { %4937 = vrot.lane.b32.xlu1 %v17659_v28, %s20015_s26 }
0x188d   : > { %4939 = vrot.lane.b32.xlu0 %v17657_v8, %s20015_s26 }
0x188f   : > { %4941 = vrot.lane.b32.xlu1 %v17671_v26, %s20015_s26 }
0x1891   : > { %4943 = vrot.lane.b32.xlu0 %v17669_v43, %s20015_s26 }
0x1893   : > { %4945 = vrot.lane.b32.xlu1 %v17681_v30, %s20015_s26 }
0x1895   : > { %4947 = vrot.lane.b32.xlu0 %v17677_v34, %s20015_s26  ;;  %s20080_s26 = smov 72  }
0x1897   : > { %15837 = vrot.lane.b32.xlu1 %v17675_v15, %s20017_s0 }
0x1899   : > { %15832 = vrot.lane.b32.xlu0 %v17665_v52, %s20017_s0 }
0x18ca   : > { %v4781_v14 = vpop.xlane.xlu1 %4780 }
0x18cb   : > { %16269 = vrcp.f32 %v4781_v14  ;;  %v4778_v38 = vpop.xlane.xlu0 %4777 }
0x18cc   : > { %16271 = vrcp.f32 %v4778_v38 }
0x18ce   : > { %v15818_v59 = vpop.permute.xlu1 %15817 }
0x18cf   : > { %v15820_v50 = vunpack.i.h.bf16 %v15818_v59  ;;  %v15819_v13 = vunpack.i.l.bf16 %v15818_v59  ;;  %v15823_v48 = vpop.permute.xlu0 %15822 }
0x18d0   : > { %v15825_v63 = vunpack.i.h.bf16 %v15823_v48  ;;  %v15824_v51 = vunpack.i.l.bf16 %v15823_v48 }
0x18d1   : > { %v15040_v31 = vpack.c.bf16 %v15820_v50, %v15819_v13 }
0x18d2   : > { %v15046_v39 = vpack.c.bf16 %v15825_v63, %v15824_v51 }
0x18d3   : > { %15042 = vmatprep.subr.msk.bf16.mxu1 %vm17075_vm5, %v15040_v31 }
0x18d5   : > { %v16270_v56 = vpop.eup %16269 }
0x18d6   : > { %v16272_v2 = vpop.eup %16271  ;;  %v4801_v36 = vmul.f32 %v16270_v56, %v17829_v35 }
0x18d7   : > { %v4800_v37 = vmul.f32 %v16272_v2, %v16260_v61 }
0x18d9   : > { %14036 = vmatprep.mubr.msk.f32.mxu1 %vm1539_vm3, %v4800_v37 }
0x18da   : > { %14037 = vmatmul.mubr.msk.f32.vlgmr.msra.gmra.mrb[66].mxu1 %vm1539_vm3, %v4801_v36 }
0x18db   : > { %15045 = vmatpush3.bf16.xpose.msk.msra.mxu1 %vm17075_vm5, %v15040_v31 }
0x18dc   : > { %15048 = vmatprep.subr.msk.bf16.mxu1 %vm17075_vm5, %v15046_v39 }
0x18e3   : > { %15051 = vmatpush3.bf16.xpose.msk.msra.mxu1 %vm17075_vm5, %v15046_v39 }
0x18ff   : > { %v4784_v58 = vpop.xlane.xlu1 %4783 }
0x1900   : > { %16273 = vrcp.f32 %v4784_v58  ;;  %v4787_v5 = vpop.xlane.xlu0 %4786 }
0x1901   : > { %16275 = vrcp.f32 %v4787_v5 }
0x1903   : > { %v4793_v61 = vpop.xlane.xlu1 %4792 }
0x1904   : > { %v15828_v35 = vpop.permute.xlu0 %15827  ;;  %16277 = vrcp.f32 %v4793_v61 }
0x1905   : > { %v15830_v44 = vunpack.i.h.bf16 %v15828_v35  ;;  %v15829_v57 = vunpack.i.l.bf16 %v15828_v35 }
0x1907   : > { %v15052_v32 = vpack.c.bf16 %v15830_v44, %v15829_v57  ;;  %v4790_v0 = vpop.xlane.xlu1 %4789 }
0x1908   : > { %16279 = vrcp.f32 %v4790_v0  ;;  %v4940_v47 = vpop.permute.xlu0 %4939 }
0x1909   : > { %15054 = vmatprep.subr.msk.bf16.mxu1 %vm17075_vm5, %v15052_v32 }
0x190a   : > { %v16274_v33 = vpop.eup %16273  ;;  %15057 = vmatpush3.bf16.xpose.msk.msra.mxu1 %vm17075_vm5, %v15052_v32 }
0x190b   : > { %v16276_v62 = vpop.eup %16275  ;;  %v4938_v14 = vpop.permute.xlu1 %4937  ;;  %v4802_v38 = vmul.f32 %v16274_v33, %v16262_v9 }
0x190c   : > { %v4944_v59 = vpop.permute.xlu0 %4943  ;;  %v4803_v50 = vmul.f32 %v16276_v62, %v16264_v21 }
0x190d   : > { %14039 = vmatprep.mubr.msk.f32.mxu1 %vm1539_vm3, %v4802_v38 }
0x190e   : > { %14040 = vmatmul.mubr.msk.f32.gmra.mrb[68].mxu1 %vm1539_vm3, %v4803_v50  ;;  %v16278_v48 = vpop.eup %16277 }
0x190f   : > { %v4942_v13 = vpop.permute.xlu1 %4941  ;;  %v4805_v37 = vmul.f32 %v16278_v48, %v17839_v29 }
0x1910   : > { %v4948_v31 = vpop.permute.xlu0 %4947 }
0x1912   : > { %v16280_v56 = vpop.eup %16279 }
0x1913   : > { %v4946_v2 = vpop.permute.xlu1 %4945  ;;  %v4804_v63 = vmul.f32 %v16280_v56, %v17844_v27 }
0x1914   : > { %v15833_v51 = vpop.permute.xlu0 %15832 }
0x1915   : > { %v15835_v36 = vunpack.i.h.bf16 %v15833_v51  ;;  %v15834_v39 = vunpack.i.l.bf16 %v15833_v51  ;;  %14042 = vmatprep.mubr.msk.f32.mxu1 %vm1539_vm3, %v4804_v63 }
0x1916   : > { %14043 = vmatmul.mubr.msk.f32.gmra.mrb[70].mxu1 %vm1539_vm3, %v4805_v37 }
0x1917   : > { %v15838_v9 = vpop.permute.xlu1 %15837  ;;  %14057 = vmatprep.mubr.msk.f32.mxu1 %vm1308_vm2, %v4938_v14  ;;  %v15058_v21 = vpack.c.bf16 %v15835_v36, %v15834_v39 }
0x1918   : > { %v15840_v58 = vunpack.i.h.bf16 %v15838_v9  ;;  %v15839_v5 = vunpack.i.l.bf16 %v15838_v9 }
0x1919   : > { %15059 = vmatprep.subr.bf16.mxu0 %v15058_v21 }
0x191a   : > { %14058 = vmatmul.mubr.msk.f32.vlgmr.msra.gmra.mrb[72].mxu1 %vm1308_vm2, %v4940_v47  ;;  %15061 = vmatpush3.bf16.msra.mxu0 %v15058_v21  ;;  %v15062_v27 = vpack.c.bf16 %v15840_v58, %v15839_v5 }
0x191b   : > { %14060 = vmatprep.mubr.msk.f32.mxu1 %vm1308_vm2, %v4942_v13 }
0x191c   : > { %15063 = vmatprep.subr.bf16.mxu0 %v15062_v27 }
0x191e   : > { %14061 = vmatmul.mubr.msk.f32.gmra.mrb[74].mxu1 %vm1308_vm2, %v4944_v59  ;;  %15065 = vmatpush3.bf16.msra.mxu0 %v15062_v27 }
0x191f   : > { %14063 = vmatprep.mubr.msk.f32.mxu1 %vm1308_vm2, %v4946_v2 }
0x1922   : > { %14064 = vmatmul.mubr.msk.f32.gmra.mrb[76].mxu1 %vm1308_vm2, %v4948_v31 }
0x19ad   : > { %v17893_v29 = vpop.f32.mrb[66].mxu1 }
0x19ae   : > { %v17895_v61 = vpop.f32.mrb[67].mxu1 }
0x19e1   : > { %v17897_v35 = vpop.f32.mrb[68].mxu1 }
0x19e2   : > { %v17899_v44 = vpop.f32.mrb[69].mxu1 }
0x19e9   : > { %v17901_v57 = vpop.f32.mrb[70].mxu1 }
0x19ea   : > { %v17903_v32 = vpop.f32.mrb[71].mxu1 }
0x19ed   : > { %v14059_v0 = vpop.f32.mrb[72].mxu1 }
0x19ee   : > { %v5081_v47 = vmul.f32 0.35355338, %v14059_v0  ;;  %v5051_v33 = vpop.f32.mrb[73].mxu1 }
0x19ef   : > { %v5080_v62 = vmul.f32 0.35355338, %v5051_v33 }
0x19f0   : > { %v5087_v14 = vadd.f32 %v17714_v19, %v5081_v47 }
0x19f1   : > { %v5086_v38 = vadd.f32 %v17718_v17, %v5080_v62  ;;  %v14062_v59 = vpop.f32.mrb[74].mxu1 }
0x19f2   : > { %v5083_v50 = vmul.f32 0.35355338, %v14062_v59  ;;  %v5061_v13 = vpop.f32.mrb[75].mxu1  ;;  %v5095_v31 = vsel %vm1539_vm3, %v5087_v14, -inf }
0x19f3   : > { %v5082_v48 = vmul.f32 0.35355338, %v5061_v13  ;;  %5096 = vmax.xlane.f32.xlu0 %v5095_v31  ;;  %v5092_v56 = vsel %vm1539_vm3, %v5086_v38, -inf }
0x19f4   : > { %v5089_v2 = vadd.f32 %v17724_v3, %v5083_v50  ;;  %5093 = vmax.xlane.f32.xlu1 %v5092_v56 }
0x19f5   : > { %v5088_v63 = vadd.f32 %v17728_v40, %v5082_v48  ;;  %v14065_v51 = vpop.f32.mrb[76].mxu1 }
0x19f6   : > { %v5085_v37 = vmul.f32 0.35355338, %v14065_v51  ;;  %v5071_v36 = vpop.f32.mrb[77].mxu1  ;;  %v5101_v19 = vsel %vm1539_vm3, %v5089_v2, -inf }
0x19f7   : > { %v5084_v17 = vmul.f32 0.35355338, %v5071_v36  ;;  %v5098_v39 = vsel %vm1539_vm3, %v5088_v63, -inf }
0x19f8   : > { %v5091_v9 = vadd.f32 %v17734_v46, %v5085_v37  ;;  %5102 = vmax.xlane.f32.xlu1 %v5101_v19  ;;  %5099 = vmax.xlane.f32.xlu0 %v5098_v39 }
0x19f9   : > { %v5090_v21 = vadd.f32 %v17738_v22, %v5084_v17 }
0x19fa   : > { %v5107_v58 = vsel %vm1539_vm3, %v5091_v9, -inf }
0x19fb   : > { %v5104_v3 = vsel %vm1539_vm3, %v5090_v21, -inf }
0x19fc   : > { %5108 = vmax.xlane.f32.xlu1 %v5107_v58  ;;  %5105 = vmax.xlane.f32.xlu0 %v5104_v3 }
0x1a0d   : > { %15847 = vrot.lane.b32.xlu1 %v17665_v52, %s20080_s26 }
0x1a12   : > { %15842 = vrot.lane.b32.xlu0 %v17685_v16, %s20017_s0  ;;  %s20081_s0 = smov 104  }
0x1a80   : > { %v5097_v40 = vpop.xlane.xlu0 %5096 }
0x1a81   : > { %v5111_v5 = vsub.f32 %v5087_v14, %v5097_v40  ;;  %v5094_v27 = vpop.xlane.xlu1 %5093 }
0x1a82   : > { %v5110_v46 = vsub.f32 %v5086_v38, %v5094_v27 }
0x1a83   : > { %v5118_v0 = vmul.f32 1.442695, %v5111_v5 }
0x1a84   : > { %v5116_v47 = vmul.f32 1.442695, %v5110_v46 }
0x1a85   : > { %16281 = vpow2.f32 %v5118_v0  ;;  %v5103_v22 = vpop.xlane.xlu1 %5102  ;;  %v5100_v33 = vpop.xlane.xlu0 %5099 }
0x1a86   : > { %16283 = vpow2.f32 %v5116_v47  ;;  %v5112_v39 = vsub.f32 %v5088_v63, %v5100_v33  ;;  %v5113_v58 = vsub.f32 %v5089_v2, %v5103_v22 }
0x1a88   : > { %v5120_v3 = vmul.f32 1.442695, %v5112_v39  ;;  %v5122_v5 = vmul.f32 1.442695, %v5113_v58 }
0x1a89   : > { %v5109_v62 = vpop.xlane.xlu1 %5108  ;;  %v5106_v59 = vpop.xlane.xlu0 %5105 }
0x1a8a   : > { %v5115_v40 = vsub.f32 %v5091_v9, %v5109_v62  ;;  %16285 = vpow2.f32 %v5120_v3  ;;  %v5114_v46 = vsub.f32 %v5090_v21, %v5106_v59 }
0x1a8b   : > { %16287 = vpow2.f32 %v5122_v5 }
0x1a8c   : > { %v5126_v27 = vmul.f32 1.442695, %v5115_v40  ;;  %v5124_v0 = vmul.f32 1.442695, %v5114_v46 }
0x1a8d   : > { %v15848_v50 = vpop.permute.xlu1 %15847  ;;  %v15843_v13 = vpop.permute.xlu0 %15842 }
0x1a8e   : > { %v15845_v31 = vunpack.i.h.bf16 %v15843_v13  ;;  %v15850_v56 = vunpack.i.h.bf16 %v15848_v50  ;;  %v15849_v51 = vunpack.i.l.bf16 %v15848_v50  ;;  %v15844_v37 = vunpack.i.l.bf16 %v15843_v13 }
0x1a8f   : > { %v16282_v48 = vpop.eup %16281  ;;  %16289 = vpow2.f32 %v5126_v27 }
0x1a90   : > { %v16284_v36 = vpop.eup %16283  ;;  %v5131_v14 = vsel %vm1539_vm3, %v16282_v48, 0.0  ;;  %v15066_v19 = vpack.c.bf16 %v15845_v31, %v15844_v37  ;;  %v15070_v17 = vpack.c.bf16 %v15850_v56, %v15849_v51  ;;  %16291 = vpow2.f32 %v5124_v0 }
0x1a91   : > { %5132 = vadd.xlane.f32.xlu1 %v5131_v14  ;;  %v5128_v38 = vsel %vm1539_vm3, %v16284_v36, 0.0 }
0x1a92   : > { %5129 = vadd.xlane.f32.xlu0 %v5128_v38  ;;  %15067 = vmatprep.subr.bf16.mxu0 %v15066_v19 }
0x1a93   : > { %15069 = vmatpush3.bf16.msra.mxu0 %v15066_v19 }
0x1a94   : > { %15072 = vmatprep.subr.msk.bf16.mxu0 %vm17075_vm5, %v15070_v17  ;;  %v16286_v47 = vpop.eup %16285 }
0x1a95   : > { %v16288_v50 = vpop.eup %16287  ;;  %v5134_v13 = vsel %vm1539_vm3, %v16286_v47, 0.0 }
0x1a96   : > { %v5137_v31 = vsel %vm1539_vm3, %v16288_v50, 0.0 }
0x1aa2   : > { %5289 = vrot.lane.b32.xlu1 %v17659_v28, %s20081_s0  ;;  %v16290_v28 = vpop.eup %16289 }
0x1aa3   : > { %v5143_v2 = vsel %vm1539_vm3, %v16290_v28, 0.0  ;;  %v16292_v63 = vpop.eup %16291 }
0x1aa4   : > { %v5140_v9 = vsel %vm1539_vm3, %v16292_v63, 0.0 }
0x1aa8   : > { %15852 = vrot.lane.b32.xlu0 %v17675_v15, %s20080_s26 }
0x1ac6   : > { %5135 = vadd.xlane.f32.xlu1 %v5134_v13 }
0x1ac7   : > { %5138 = vadd.xlane.f32.xlu0 %v5137_v31 }
0x1aca   : > { %5144 = vadd.xlane.f32.xlu1 %v5143_v2 }
0x1ace   : > { %5141 = vadd.xlane.f32.xlu1 %v5140_v9 }
0x1add   : > { %15857 = vrot.lane.b32.xlu0 %v17685_v16, %s20080_s26 }
0x1adf   : > { %5293 = vrot.lane.b32.xlu1 %v17671_v26, %s20081_s0 }
0x1ae1   : > { %5291 = vrot.lane.b32.xlu0 %v17657_v8, %s20081_s0 }
0x1ae3   : > { %5297 = vrot.lane.b32.xlu1 %v17681_v30, %s20081_s0 }
0x1ae5   : > { %5295 = vrot.lane.b32.xlu0 %v17669_v43, %s20081_s0 }
0x1ae9   : > { %5299 = vrot.lane.b32.xlu0 %v17677_v34, %s20081_s0 }
0x1b1e   : > { %v5133_v21 = vpop.xlane.xlu1 %5132 }
0x1b1f   : > { %16293 = vrcp.f32 %v5133_v21  ;;  %v5130_v22 = vpop.xlane.xlu0 %5129 }
0x1b20   : > { %16295 = vrcp.f32 %v5130_v22 }
0x1b22   : > { %v5290_v43 = vpop.permute.xlu1 %5289 }
0x1b23   : > { %v15853_v33 = vpop.permute.xlu0 %15852 }
0x1b24   : > { %v15855_v26 = vunpack.i.h.bf16 %v15853_v33  ;;  %v15854_v56 = vunpack.i.l.bf16 %v15853_v33 }
0x1b26   : > { %v15076_v30 = vpack.c.bf16 %v15855_v26, %v15854_v56 }
0x1b29   : > { %v16294_v62 = vpop.eup %16293 }
0x1b2a   : > { %v16296_v59 = vpop.eup %16295  ;;  %v5153_v8 = vmul.f32 %v16294_v62, %v16282_v48 }
0x1b2b   : > { %v5152_v51 = vmul.f32 %v16296_v59, %v16284_v36 }
0x1b2d   : > { %14078 = vmatprep.mubr.msk.f32.mxu0 %vm1539_vm3, %v5152_v51  ;;  %v16641_v51 = vld [vmem:[%s16763_s8 + $0x8] sm:$0xff] }
0x1b2e   : > { %14079 = vmatmul.mubr.msk.f32.vlgmr.msra.gmra.mrb[54].mxu0 %vm1539_vm3, %v5153_v8 }
0x1b2f   : > { %15075 = vmatpush3.bf16.xpose.msk.msra.mxu0 %vm17075_vm5, %v15070_v17 }
0x1b30   : > { %15078 = vmatprep.subr.msk.bf16.mxu0 %vm17075_vm5, %v15076_v30 }
0x1b37   : > { %15081 = vmatpush3.bf16.xpose.msk.msra.mxu0 %vm17075_vm5, %v15076_v30  ;;  %v16642_v30 = vld [vmem:[%s16763_s8] sm:$0xff] }
0x1b53   : > { %v5136_v34 = vpop.xlane.xlu1 %5135 }
0x1b54   : > { %16297 = vrcp.f32 %v5136_v34  ;;  %v5139_v37 = vpop.xlane.xlu0 %5138 }
0x1b55   : > { %16299 = vrcp.f32 %v5139_v37 }
0x1b57   : > { %v5145_v48 = vpop.xlane.xlu1 %5144 }
0x1b58   : > { %v15858_v36 = vpop.permute.xlu0 %15857  ;;  %16301 = vrcp.f32 %v5145_v48 }
0x1b59   : > { %v15860_v14 = vunpack.i.h.bf16 %v15858_v36  ;;  %v15859_v38 = vunpack.i.l.bf16 %v15858_v36 }
0x1b5b   : > { %v15082_v19 = vpack.c.bf16 %v15860_v14, %v15859_v38  ;;  %v5142_v39 = vpop.xlane.xlu1 %5141 }
0x1b5c   : > { %16303 = vrcp.f32 %v5142_v39  ;;  %v5292_v13 = vpop.permute.xlu0 %5291 }
0x1b5d   : > { %15084 = vmatprep.subr.msk.bf16.mxu0 %vm17075_vm5, %v15082_v19 }
0x1b5e   : > { %v16298_v17 = vpop.eup %16297  ;;  %15087 = vmatpush3.bf16.xpose.msk.msra.mxu0 %vm17075_vm5, %v15082_v19  ;;  %v16643_v19 = vld [vmem:[%s16763_s8 + $0x18] sm:$0xff] }
0x1b5f   : > { %v16300_v58 = vpop.eup %16299  ;;  %v5154_v3 = vmul.f32 %v16298_v17, %v16286_v47  ;;  %v5294_v31 = vpop.permute.xlu1 %5293  ;;  %v16644_v17 = vld [vmem:[%s16763_s8 + $0x10] sm:$0xff] }
0x1b60   : > { %v5155_v40 = vmul.f32 %v16300_v58, %v16288_v50  ;;  %v5296_v47 = vpop.permute.xlu0 %5295 }
0x1b61   : > { %14081 = vmatprep.mubr.msk.f32.mxu0 %vm1539_vm3, %v5154_v3 }
0x1b62   : > { %14082 = vmatmul.mubr.msk.f32.gmra.mrb[56].mxu0 %vm1539_vm3, %v5155_v40  ;;  %v16302_v5 = vpop.eup %16301 }
0x1b63   : > { %v5157_v0 = vmul.f32 %v16302_v5, %v16290_v28  ;;  %v5298_v50 = vpop.permute.xlu1 %5297 }
0x1b64   : > { %v5300_v28 = vpop.permute.xlu0 %5299 }
0x1b66   : > { %v16304_v27 = vpop.eup %16303 }
0x1b67   : > { %v5156_v46 = vmul.f32 %v16304_v27, %v16292_v63 }
0x1b69   : > { %14084 = vmatprep.mubr.msk.f32.mxu0 %vm1539_vm3, %v5156_v46 }
0x1b6a   : > { %14085 = vmatmul.mubr.msk.f32.gmra.mrb[58].mxu0 %vm1539_vm3, %v5157_v0 }
0x1b6b   : > { %14099 = vmatprep.mubr.msk.f32.mxu0 %vm1308_vm2, %v5290_v43 }
0x1b6e   : > { %14100 = vmatmul.mubr.msk.f32.vlgmr.msra.gmra.mrb[60].mxu0 %vm1308_vm2, %v5292_v13  ;;  %v16645_v13 = vld [vmem:[%s16763_s8 + $0x28] sm:$0xff] }
0x1b6f   : > { %14102 = vmatprep.mubr.msk.f32.mxu0 %vm1308_vm2, %v5294_v31 }
0x1b72   : > { %14103 = vmatmul.mubr.msk.f32.gmra.mrb[62].mxu0 %vm1308_vm2, %v5296_v47  ;;  %v16646_v47 = vld [vmem:[%s16763_s8 + $0x20] sm:$0xff] }
0x1b73   : > { %14105 = vmatprep.mubr.msk.f32.mxu0 %vm1308_vm2, %v5298_v50 }
0x1b76   : > { %14106 = vmatmul.mubr.msk.f32.gmra.mrb[64].mxu0 %vm1308_vm2, %v5300_v28 }
0x1c01   : > { %v17967_v2 = vpop.f32.mrb[54].mxu0 }
0x1c02   : > { %v17969_v63 = vpop.f32.mrb[55].mxu0 }
0x1c35   : > { %v17971_v9 = vpop.f32.mrb[56].mxu0 }
0x1c36   : > { %v17973_v21 = vpop.f32.mrb[57].mxu0 }
0x1c3d   : > { %v17975_v22 = vpop.f32.mrb[58].mxu0 }
0x1c3e   : > { %v17977_v33 = vpop.f32.mrb[59].mxu0 }
0x1c41   : > { %v14101_v62 = vpop.f32.mrb[60].mxu0 }
0x1c42   : > { %v5433_v59 = vmul.f32 0.35355338, %v14101_v62  ;;  %v5403_v26 = vpop.f32.mrb[61].mxu0 }
0x1c43   : > { %v5432_v56 = vmul.f32 0.35355338, %v5403_v26 }
0x1c44   : > { %v5439_v8 = vadd.f32 %v16641_v51, %v5433_v59 }
0x1c45   : > { %v5438_v43 = vadd.f32 %v16642_v30, %v5432_v56  ;;  %v14104_v34 = vpop.f32.mrb[62].mxu0 }
0x1c46   : > { %v5435_v37 = vmul.f32 0.35355338, %v14104_v34  ;;  %v5413_v48 = vpop.f32.mrb[63].mxu0  ;;  %v5447_v36 = vsel %vm1539_vm3, %v5439_v8, -inf }
0x1c47   : > { %v5434_v14 = vmul.f32 0.35355338, %v5413_v48  ;;  %5448 = vmax.xlane.f32.xlu0 %v5447_v36  ;;  %v5444_v38 = vsel %vm1539_vm3, %v5438_v43, -inf }
0x1c48   : > { %v5441_v39 = vadd.f32 %v16643_v19, %v5435_v37  ;;  %5445 = vmax.xlane.f32.xlu1 %v5444_v38 }
0x1c49   : > { %v5440_v58 = vadd.f32 %v16644_v17, %v5434_v14  ;;  %v14107_v3 = vpop.f32.mrb[64].mxu0 }
0x1c4a   : > { %v5437_v40 = vmul.f32 0.35355338, %v14107_v3  ;;  %v5423_v5 = vpop.f32.mrb[65].mxu0  ;;  %v5453_v27 = vsel %vm1539_vm3, %v5441_v39, -inf }
0x1c4b   : > { %v5436_v46 = vmul.f32 0.35355338, %v5423_v5  ;;  %v5450_v0 = vsel %vm1539_vm3, %v5440_v58, -inf }
0x1c4c   : > { %v5443_v31 = vadd.f32 %v16645_v13, %v5437_v40  ;;  %5454 = vmax.xlane.f32.xlu1 %v5453_v27  ;;  %5451 = vmax.xlane.f32.xlu0 %v5450_v0 }
0x1c4d   : > { %v5442_v50 = vadd.f32 %v16646_v47, %v5436_v46 }
0x1c4e   : > { %v5459_v28 = vsel %vm1539_vm3, %v5443_v31, -inf }
0x1c4f   : > { %v5456_v62 = vsel %vm1539_vm3, %v5442_v50, -inf }
0x1c50   : > { %5460 = vmax.xlane.f32.xlu1 %v5459_v28  ;;  %5457 = vmax.xlane.f32.xlu0 %v5456_v62 }
0x1cd4   : > { %v5449_v59 = vpop.xlane.xlu0 %5448 }
0x1cd5   : > { %v5463_v26 = vsub.f32 %v5439_v8, %v5449_v59  ;;  %v5446_v56 = vpop.xlane.xlu1 %5445 }
0x1cd6   : > { %v5462_v51 = vsub.f32 %v5438_v43, %v5446_v56 }
0x1cd7   : > { %v5470_v30 = vmul.f32 1.442695, %v5463_v26 }
0x1cd8   : > { %v5468_v34 = vmul.f32 1.442695, %v5462_v51 }
0x1cd9   : > { %16305 = vpow2.f32 %v5470_v30  ;;  %v5455_v37 = vpop.xlane.xlu1 %5454  ;;  %v5452_v48 = vpop.xlane.xlu0 %5451 }
0x1cda   : > { %16307 = vpow2.f32 %v5468_v34  ;;  %v5465_v36 = vsub.f32 %v5441_v39, %v5455_v37  ;;  %v5464_v14 = vsub.f32 %v5440_v58, %v5452_v48 }
0x1cdc   : > { %v5474_v38 = vmul.f32 1.442695, %v5465_v36  ;;  %v5472_v19 = vmul.f32 1.442695, %v5464_v14 }
0x1cdd   : > { %v5461_v17 = vpop.xlane.xlu1 %5460  ;;  %v5458_v3 = vpop.xlane.xlu0 %5457 }
0x1cde   : > { %16309 = vpow2.f32 %v5474_v38  ;;  %v5467_v40 = vsub.f32 %v5443_v31, %v5461_v17  ;;  %v5466_v5 = vsub.f32 %v5442_v50, %v5458_v3 }
0x1cdf   : > { %16311 = vpow2.f32 %v5472_v19 }
0x1ce0   : > { %v5478_v27 = vmul.f32 1.442695, %v5467_v40  ;;  %v5476_v8 = vmul.f32 1.442695, %v5466_v5 }
0x1ce2   : > { %16313 = vpow2.f32 %v5478_v27  ;;  %v12633_v27 = vld [vmem:[%s16818_s6 + $0x20] sm:$0xff] }
0x1ce3   : > { %v17991_v43 = vpop.eup %16305  ;;  %16315 = vpow2.f32 %v5476_v8  ;;  %v12634_v8 = vld [vmem:[%s16818_s6 + $0x28] sm:$0xff] }
0x1ce4   : > { %v16308_v46 = vpop.eup %16307  ;;  %v5483_v0 = vsel %vm1539_vm3, %v17991_v43, 0.0 }
0x1ce5   : > { %5484 = vadd.xlane.f32.xlu1 %v5483_v0  ;;  %v5480_v39 = vsel %vm1539_vm3, %v16308_v46, 0.0  ;;  %v12636_v0 = vld [vmem:[%s16818_s6 + $0x38] sm:$0xff] }
0x1ce6   : > { %5481 = vadd.xlane.f32.xlu0 %v5480_v39 }
0x1ce8   : > { %v17996_v58 = vpop.eup %16309 }
0x1ce9   : > { %v17998_v13 = vpop.eup %16311  ;;  %v5489_v31 = vsel %vm1539_vm3, %v17996_v58, 0.0 }
0x1cea   : > { %5490 = vadd.xlane.f32.xlu1 %v5489_v31  ;;  %v5486_v47 = vsel %vm1539_vm3, %v17998_v13, 0.0 }
0x1ceb   : > { %5487 = vadd.xlane.f32.xlu0 %v5486_v47 }
0x1cec   : > { %v18004_v50 = vpop.eup %16313 }
0x1ced   : > { %v18006_v28 = vpop.eup %16315  ;;  %v5495_v62 = vsel %vm1539_vm3, %v18004_v50, 0.0 }
0x1cee   : > { %5496 = vadd.xlane.f32.xlu1 %v5495_v62  ;;  %v5492_v59 = vsel %vm1539_vm3, %v18006_v28, 0.0 }
0x1cef   : > { %5493 = vadd.xlane.f32.xlu0 %v5492_v59 }
0x1cff   : > { %15867 = vrot.lane.b32.xlu1 %v17675_v15, %s20082_s23 }
0x1d03   : > { %15872 = vrot.lane.b32.xlu1 %v17685_v16, %s20082_s23 }
0x1d05   : > { %15862 = vrot.lane.b32.xlu0 %v17665_v52, %s20082_s23 }
0x1d07   : > { %5649 = vrot.lane.b32.xlu1 %v17893_v29, %s20025_s10 }
0x1d09   : > { %5647 = vrot.lane.b32.xlu0 %v17895_v61, %s20025_s10 }
0x1d0b   : > { %5673 = vrot.lane.b32.xlu1 %v17967_v2, %s20023_s7 }
0x1d0d   : > { %5671 = vrot.lane.b32.xlu0 %v17969_v63, %s20023_s7 }
0x1d0f   : > { %5653 = vrot.lane.b32.xlu1 %v17897_v35, %s20025_s10 }
0x1d11   : > { %5651 = vrot.lane.b32.xlu0 %v17899_v44, %s20025_s10 }
0x1d13   : > { %5677 = vrot.lane.b32.xlu1 %v17971_v9, %s20023_s7 }
0x1d15   : > { %5675 = vrot.lane.b32.xlu0 %v17973_v21, %s20023_s7 }
0x1d17   : > { %5657 = vrot.lane.b32.xlu1 %v17901_v57, %s20025_s10 }
0x1d19   : > { %5655 = vrot.lane.b32.xlu0 %v17903_v32, %s20025_s10 }
0x1d1b   : > { %5681 = vrot.lane.b32.xlu1 %v17975_v22, %s20023_s7 }
0x1d1d   : > { %5679 = vrot.lane.b32.xlu0 %v17977_v33, %s20023_s7  ;;  %s20083_s7 = sld [smem:[#allocation2_spill]] }
0x1d23   : > { %s1160_s10 = scalar_lea.vmem %s20083_s7, %s16923_s2  ;;  %s20090_s7 = sld [smem:[#allocation5_spill]] }
0x1d72   : > { %v5485_v52 = vpop.xlane.xlu1 %5484 }
0x1d73   : > { %v5482_v15 = vpop.xlane.xlu0 %5481 }
0x1d74   : > { %16317 = vrcp.f32 %v5482_v15 }
0x1d75   : > { %16319 = vrcp.f32 %v5485_v52 }
0x1d77   : > { %v5491_v16 = vpop.xlane.xlu1 %5490 }
0x1d78   : > { %v5488_v29 = vpop.xlane.xlu0 %5487 }
0x1d79   : > { %16321 = vrcp.f32 %v5488_v29 }
0x1d7a   : > { %16323 = vrcp.f32 %v5491_v16 }
0x1d7b   : > { %v5497_v61 = vpop.xlane.xlu1 %5496 }
0x1d7c   : > { %v5494_v35 = vpop.xlane.xlu0 %5493 }
0x1d7d   : > { %16325 = vrcp.f32 %v5494_v35 }
0x1d7e   : > { %v16318_v44 = vpop.eup %16317  ;;  %16327 = vrcp.f32 %v5497_v61 }
0x1d7f   : > { %v15868_v2 = vpop.permute.xlu1 %15867  ;;  %v5504_v63 = vmul.f32 %v16318_v44, %v16308_v46  ;;  %v16320_v37 = vpop.eup %16319  ;;  %v15100_v46 = vpack.c.bf16 %v12634_v8, %v12633_v27 }
0x1d80   : > { %v15863_v57 = vpop.permute.xlu0 %15862  ;;  %v15870_v9 = vunpack.i.h.bf16 %v15868_v2  ;;  %v15869_v21 = vunpack.i.l.bf16 %v15868_v2  ;;  %v5505_v36 = vmul.f32 %v16320_v37, %v17991_v43  ;;  %v12635_v43 = vld [vmem:[%s16818_s6 + $0x30] sm:$0xff] }
0x1d81   : > { %v15865_v32 = vunpack.i.h.bf16 %v15863_v57  ;;  %v15864_v26 = vunpack.i.l.bf16 %v15863_v57  ;;  %14120 = vmatprep.mubr.msk.f32.mxu1 %vm1539_vm3, %v5504_v63  ;;  %v15104_v39 = vpack.c.bf16 %v12636_v0, %v12635_v43 }
0x1d82   : > { %v15092_v30 = vpack.c.bf16 %v15870_v9, %v15869_v21 }
0x1d83   : > { %v15873_v22 = vpop.permute.xlu1 %15872  ;;  %v15088_v33 = vpack.c.bf16 %v15865_v32, %v15864_v26  ;;  %v16322_v48 = vpop.eup %16321 }
0x1d84   : > { %v15875_v56 = vunpack.i.h.bf16 %v15873_v22  ;;  %v15874_v51 = vunpack.i.l.bf16 %v15873_v22  ;;  %v16324_v14 = vpop.eup %16323  ;;  %v5506_v38 = vmul.f32 %v16322_v48, %v17998_v13  ;;  %v5648_v59 = vpop.permute.xlu0 %5647 }
0x1d85   : > { %15089 = vmatprep.subr.bf16.mxu1 %v15088_v33  ;;  %v5507_v17 = vmul.f32 %v16324_v14, %v17996_v58  ;;  %v5713_v9 = vsel %vm1308_vm2, %v17803_v54, %v5648_v59 }
0x1d86   : > { %15091 = vmatpush3.bf16.msra.mxu1 %v15088_v33  ;;  %v15096_v34 = vpack.c.bf16 %v15875_v56, %v15874_v51 }
0x1d87   : > { %15093 = vmatprep.subr.bf16.mxu1 %v15092_v30  ;;  %v16326_v19 = vpop.eup %16325  ;;  %v5650_v62 = vpop.permute.xlu1 %5649 }
0x1d88   : > { %v16328_v3 = vpop.eup %16327  ;;  %v5508_v40 = vmul.f32 %v16326_v19, %v18006_v28  ;;  %v5672_v15 = vpop.permute.xlu0 %5671  ;;  %v5714_v32 = vsel %vm1308_vm2, %v17801_v41, %v5650_v62 }
0x1d89   : > { %v5509_v5 = vmul.f32 %v16328_v3, %v18004_v50  ;;  %v5719_v26 = vsel %vm3492_vm6, %v5713_v9, %v5672_v15 }
0x1d8a   : > { %15095 = vmatpush3.bf16.msra.mxu1 %v15092_v30 }
0x1d8b   : > { %15097 = vmatprep.subr.bf16.mxu1 %v15096_v34  ;;  %v5674_v52 = vpop.permute.xlu1 %5673 }
0x1d8c   : > { %v5652_v29 = vpop.permute.xlu0 %5651  ;;  %v5720_v33 = vsel %vm3492_vm6, %v5714_v32, %v5674_v52 }
0x1d8d   : > { %v5715_v30 = vsel %vm1308_vm2, %v17807_v6, %v5652_v29 }
0x1d8e   : > { %15099 = vmatpush3.bf16.msra.mxu1 %v15096_v34 }
0x1d8f   : > { %15101 = vmatprep.subr.bf16.mxu1 %v15100_v46  ;;  %v5654_v16 = vpop.permute.xlu1 %5653 }
0x1d90   : > { %v5676_v35 = vpop.permute.xlu0 %5675  ;;  %v5716_v41 = vsel %vm1308_vm2, %v17805_v18, %v5654_v16 }
0x1d91   : > { %14121 = vmatmul.mubr.msk.f32.vlgmr.msra.gmra.mrb[78].mxu1 %vm1539_vm3, %v5505_v36  ;;  %v5721_v34 = vsel %vm3492_vm6, %v5715_v30, %v5676_v35 }
0x1d92   : > { %14123 = vmatprep.mubr.msk.f32.mxu1 %vm1539_vm3, %v5506_v38  ;;  %15103 = vmatpush3.bf16.msra.mxu1 %v15100_v46 }
0x1d93   : > { %15105 = vmatprep.subr.bf16.mxu1 %v15104_v39  ;;  %v5678_v61 = vpop.permute.xlu1 %5677 }
0x1d94   : > { %v5656_v2 = vpop.permute.xlu0 %5655  ;;  %v5722_v48 = vsel %vm3492_vm6, %v5716_v41, %v5678_v61 }
0x1d95   : > { %14124 = vmatmul.mubr.msk.f32.gmra.mrb[80].mxu1 %vm1539_vm3, %v5507_v17  ;;  %v5717_v6 = vsel %vm1308_vm2, %v17811_v60, %v5656_v2  ;;  %v18094_v60 = vld [vmem:[%s16838_s30 + $0x8] sm:$0x3f] }
0x1d96   : > { %14126 = vmatprep.mubr.msk.f32.mxu1 %vm1539_vm3, %v5508_v40  ;;  %15107 = vmatpush3.bf16.msra.mxu1 %v15104_v39  ;;  %v5739_v27 = vrot.slane %v18094_v60, %v17474_v10 }
0x1d97   : > { %v5658_v44 = vpop.permute.xlu1 %5657 }
0x1d98   : > { %v5680_v57 = vpop.permute.xlu0 %5679  ;;  %v5718_v18 = vsel %vm1308_vm2, %v17809_v1, %v5658_v44 }
0x1d99   : > { %14127 = vmatmul.mubr.msk.f32.gmra.mrb[82].mxu1 %vm1539_vm3, %v5509_v5  ;;  %v5723_v19 = vsel %vm3492_vm6, %v5717_v6, %v5680_v57 }
0x1d9b   : > { %v5682_v63 = vpop.permute.xlu1 %5681 }
0x1d9c   : > { %v5724_v3 = vsel %vm3492_vm6, %v5718_v18, %v5682_v63 }
0x1e64   : > { %v14122_v58 = vpop.f32.mrb[78].mxu1 }
0x1e65   : > { %5697 = vrot.lane.b32.xlu1 %v14122_v58, %s20021_s1  ;;  %v5612_v13 = vpop.f32.mrb[79].mxu1 }
0x1e66   : > { %5695 = vrot.lane.b32.xlu0 %v5612_v13, %s20021_s1 }
0x1e68   : > { %v14125_v31 = vpop.f32.mrb[80].mxu1 }
0x1e69   : > { %5701 = vrot.lane.b32.xlu1 %v14125_v31, %s20021_s1  ;;  %v5622_v47 = vpop.f32.mrb[81].mxu1 }
0x1e6a   : > { %5699 = vrot.lane.b32.xlu0 %v5622_v47, %s20021_s1 }
0x1e6c   : > { %v14128_v50 = vpop.f32.mrb[82].mxu1 }
0x1e6d   : > { %5705 = vrot.lane.b32.xlu1 %v14128_v50, %s20021_s1  ;;  %v5632_v28 = vpop.f32.mrb[83].mxu1 }
0x1e6e   : > { %5703 = vrot.lane.b32.xlu0 %v5632_v28, %s20021_s1  ;;  %s1154_s1 = scalar_lea.vmem %s16733_s13, %s16923_s2  ;;  %s20086_s2 = sld [smem:[#allocation14_spill]] }
0x1ed7   : > { %v5698_v21 = vpop.permute.xlu1 %5697 }
0x1ed8   : > { %v5696_v22 = vpop.permute.xlu0 %5695  ;;  %v5726_v51 = vsel %vm3499_vm7, %v5720_v33, %v5698_v21 }
0x1ed9   : > { %v5725_v56 = vsel %vm3499_vm7, %v5719_v26, %v5696_v22 }
0x1eda   : > { %14137 = vmatprep.mubr.msk.f32.mxu1 %vm1898_vm4, %v5725_v56 }
0x1edb   : > { %14138 = vmatmul.mubr.msk.f32.vlgmr.msra.gmra.mrb[84].mxu1 %vm1898_vm4, %v5726_v51  ;;  %v5702_v54 = vpop.permute.xlu1 %5701 }
0x1edc   : > { %v5700_v37 = vpop.permute.xlu0 %5699  ;;  %v5728_v14 = vsel %vm3499_vm7, %v5722_v48, %v5702_v54 }
0x1edd   : > { %v5727_v36 = vsel %vm3499_vm7, %v5721_v34, %v5700_v37 }
0x1ede   : > { %14140 = vmatprep.mubr.msk.f32.mxu1 %vm1898_vm4, %v5727_v36 }
0x1edf   : > { %14141 = vmatmul.mubr.msk.f32.gmra.mrb[86].mxu1 %vm1898_vm4, %v5728_v14  ;;  %v5706_v38 = vpop.permute.xlu1 %5705 }
0x1ee0   : > { %v5704_v17 = vpop.permute.xlu0 %5703  ;;  %v5730_v5 = vsel %vm3499_vm7, %v5724_v3, %v5706_v38 }
0x1ee1   : > { %v5729_v40 = vsel %vm3499_vm7, %v5723_v19, %v5704_v17 }
0x1ee2   : > { %14143 = vmatprep.mubr.msk.f32.mxu1 %vm1898_vm4, %v5729_v40 }
0x1ee3   : > { %14144 = vmatmul.mubr.msk.f32.gmra.mrb[88].mxu1 %vm1898_vm4, %v5730_v5 }
0x1fae   : > { %v14139_v8 = vpop.f32.mrb[84].mxu1 }
0x1faf   : > { %v5830_v1 = vadd.f32 %v14139_v8, %v5739_v27  ;;  %v5824_v43 = vpop.f32.mrb[85].mxu1  ;;  %v12644_v8 = vld [vmem:[%s16823_s27 + $0x28] sm:$0xff] }
0x1fb0   : > { %v5825_v46 = vadd.f32 %v5824_v43, %v5739_v27  ;;  %v12645_v43 = vld [vmem:[%s16823_s27 + $0x30] sm:$0xff] }
0x1fb1   : > { %v5854_v0 = vadd.f32 %v5830_v1, %v17630_v7 }
0x1fb2   : > { %v5853_v39 = vadd.f32 %v5825_v46, %v17628_v12  ;;  %v14142_v58 = vpop.f32.mrb[86].mxu1  ;;  %v12646_v46 = vld [vmem:[%s16823_s27 + $0x38] sm:$0xff] }
0x1fb3   : > { %v5834_v13 = vpop.f32.mrb[87].mxu1  ;;  %v5862_v31 = vsel %vm1898_vm4, %v5854_v0, 0.0  ;;  %v5840_v47 = vadd.f32 %v14142_v58, %v5739_v27 }
0x1fb4   : > { %v5835_v50 = vadd.f32 %v5834_v13, %v5739_v27  ;;  %5863 = vadd.xlane.f32.xlu1 %v5862_v31  ;;  %v5859_v28 = vsel %vm1898_vm4, %v5853_v39, 0.0 }
0x1fb5   : > { %5860 = vadd.xlane.f32.xlu0 %v5859_v28  ;;  %v5856_v15 = vadd.f32 %v5840_v47, %v17641_v20 }
0x1fb6   : > { %v5855_v62 = vadd.f32 %v5835_v50, %v17638_v11  ;;  %v14145_v59 = vpop.f32.mrb[88].mxu1 }
0x1fb7   : > { %v5844_v52 = vpop.f32.mrb[89].mxu1  ;;  %v5850_v16 = vadd.f32 %v14145_v59, %v5739_v27  ;;  %v5868_v44 = vsel %vm1898_vm4, %v5856_v15, 0.0 }
0x1fb8   : > { %v5845_v7 = vadd.f32 %v5844_v52, %v5739_v27  ;;  %v5865_v12 = vsel %vm1898_vm4, %v5855_v62, 0.0  ;;  %v12643_v27 = vld [vmem:[%s16823_s27 + $0x20] sm:$0xff] }
0x1fb9   : > { %5866 = vadd.xlane.f32.xlu0 %v5865_v12  ;;  %v5858_v61 = vadd.f32 %v5850_v16, %v17650_v45  ;;  %v15108_v1 = vpack.c.bf16 %v12644_v8, %v12643_v27  ;;  %v12667_v27 = vld [vmem:[%s20073_s3 + $0x20] sm:$0xff]  ;;  %v18184_v8 = vld [vmem:[%s20073_s3 + $0x38] sm:$0x1f] }
0x1fba   : > { %v5857_v29 = vadd.f32 %v5845_v7, %v17648_v23 }
0x1fbb   : > { %v5874_v11 = vsel %vm1898_vm4, %v5858_v61, 0.0  ;;  %15109 = vmatprep.subr.bf16.mxu0 %v15108_v1 }
0x1fbc   : > { %v5871_v35 = vsel %vm1898_vm4, %v5857_v29, 0.0  ;;  %15111 = vmatpush3.bf16.msra.mxu0 %v15108_v1  ;;  %v12648_v1 = vld [vmem:[%s16828_s20 + $0x1] ss:$0 sm:$0xff] }
0x1fbd   : > { %5872 = vadd.xlane.f32.xlu1 %v5871_v35  ;;  %5869 = vadd.xlane.f32.xlu0 %v5868_v44  ;;  %v5940_v35 = vrot.slane %v18094_v60, %v17524_v55 }
0x1fc1   : > { %5875 = vadd.xlane.f32.xlu0 %v5874_v11 }
0x2041   : > { %v5864_v2 = vpop.xlane.xlu1 %5863 }
0x2042   : > { %v5878_v20 = vmul.f32 0.03125, %v5864_v2  ;;  %v5861_v63 = vpop.xlane.xlu0 %5860 }
0x2043   : > { %v5877_v57 = vmul.f32 0.03125, %v5861_v63 }
0x2044   : > { %v18110_v9 = vsub.f32 %v5854_v0, %v5878_v20  ;;  %v15112_v0 = vpack.c.bf16 %v12646_v46, %v12645_v43 }
0x2045   : > { %v18112_v21 = vsub.f32 %v5853_v39, %v5877_v57 }
0x2046   : > { %v5867_v23 = vpop.xlane.xlu0 %5866  ;;  %v5890_v45 = vmul.f32 %v18110_v9, %v18110_v9  ;;  %15113 = vmatprep.subr.bf16.mxu0 %v15112_v0 }
0x2047   : > { %v5879_v32 = vmul.f32 0.03125, %v5867_v23  ;;  %v5889_v26 = vmul.f32 %v18112_v21, %v18112_v21  ;;  %15115 = vmatpush3.bf16.msra.mxu0 %v15112_v0  ;;  %v5950_v23 = vrot.slane %v18094_v60, %v17527_v4 }
0x2048   : > { %v5898_v22 = vsel %vm1898_vm4, %v5890_v45, 0.0  ;;  %14180 = vmatprep.subr.msk.mxu0 %vm1209_vm0, %v18184_v8 }
0x2049   : > { %v18119_v33 = vsub.f32 %v5855_v62, %v5879_v32  ;;  %5899 = vadd.xlane.f32.xlu0 %v5898_v22  ;;  %v5895_v56 = vsel %vm1898_vm4, %v5889_v26, 0.0 }
0x204a   : > { %v5873_v51 = vpop.xlane.xlu1 %5872  ;;  %5896 = vadd.xlane.f32.xlu1 %v5895_v56  ;;  %v5870_v30 = vpop.xlane.xlu0 %5869 }
0x204b   : > { %v5881_v54 = vmul.f32 0.03125, %v5873_v51  ;;  %v5880_v41 = vmul.f32 0.03125, %v5870_v30  ;;  %v5891_v34 = vmul.f32 %v18119_v33, %v18119_v33 }
0x204d   : > { %v18124_v37 = vsub.f32 %v5857_v29, %v5881_v54  ;;  %v18126_v48 = vsub.f32 %v5856_v15, %v5880_v41  ;;  %v5901_v36 = vsel %vm1898_vm4, %v5891_v34, 0.0 }
0x204e   : > { %5902 = vadd.xlane.f32.xlu1 %v5901_v36  ;;  %v5876_v14 = vpop.xlane.xlu0 %5875 }
0x204f   : > { %v5882_v6 = vmul.f32 0.03125, %v5876_v14  ;;  %v5893_v38 = vmul.f32 %v18124_v37, %v18124_v37  ;;  %v5892_v18 = vmul.f32 %v18126_v48, %v18126_v48 }
0x2051   : > { %v18133_v19 = vsub.f32 %v5858_v61, %v5882_v6  ;;  %v5907_v17 = vsel %vm1898_vm4, %v5893_v38, 0.0  ;;  %v5904_v3 = vsel %vm1898_vm4, %v5892_v18, 0.0 }
0x2052   : > { %5908 = vadd.xlane.f32.xlu1 %v5907_v17  ;;  %5905 = vadd.xlane.f32.xlu0 %v5904_v3  ;;  %v12656_v17 = vld [vmem:[%s16833_s19 + $0x28] sm:$0xff]  ;;  %v12657_v3 = vld [vmem:[%s16833_s19 + $0x30] sm:$0xff] }
0x2053   : > { %v5894_v40 = vmul.f32 %v18133_v19, %v18133_v19 }
0x2055   : > { %v5910_v5 = vsel %vm1898_vm4, %v5894_v40, 0.0  ;;  %v12658_v40 = vld [vmem:[%s16833_s19 + $0x38] sm:$0xff] }
0x2056   : > { %5911 = vadd.xlane.f32.xlu0 %v5910_v5  ;;  %v15120_v5 = vpack.c.bf16 %v12658_v40, %v12657_v3  ;;  %v6440_v3 = vld [vmem:[%s1154_s1 + $0x8] sm:$0xff]  ;;  %v6441_v40 = vld [vmem:[%s1154_s1 + $0x10] sm:$0xff] }
0x20d6   : > { %v5900_v39 = vpop.xlane.xlu0 %5899 }
0x20d7   : > { %v5914_v58 = vmul.f32 0.03125, %v5900_v39  ;;  %v5897_v13 = vpop.xlane.xlu1 %5896 }
0x20d8   : > { %v5913_v31 = vmul.f32 0.03125, %v5897_v13 }
0x20d9   : > { %v5920_v47 = vadd.f32 1e-05, %v5914_v58 }
0x20da   : > { %v5919_v50 = vadd.f32 1e-05, %v5913_v31 }
0x20db   : > { %16329 = vrsqrt.f32 %v5920_v47  ;;  %v5903_v28 = vpop.xlane.xlu1 %5902 }
0x20dc   : > { %16331 = vrsqrt.f32 %v5919_v50  ;;  %v5915_v62 = vmul.f32 0.03125, %v5903_v28 }
0x20de   : > { %v5921_v59 = vadd.f32 1e-05, %v5915_v62 }
0x20df   : > { %v5909_v52 = vpop.xlane.xlu1 %5908  ;;  %v5906_v15 = vpop.xlane.xlu0 %5905 }
0x20e0   : > { %16333 = vrsqrt.f32 %v5921_v59  ;;  %v5917_v16 = vmul.f32 0.03125, %v5909_v52  ;;  %v5916_v7 = vmul.f32 0.03125, %v5906_v15 }
0x20e2   : > { %v5923_v12 = vadd.f32 1e-05, %v5917_v16  ;;  %v5922_v29 = vadd.f32 1e-05, %v5916_v7 }
0x20e3   : > { %v5912_v61 = vpop.xlane.xlu0 %5911 }
0x20e4   : > { %16335 = vrsqrt.f32 %v5923_v12  ;;  %v5918_v44 = vmul.f32 0.03125, %v5912_v61 }
0x20e5   : > { %v16330_v11 = vpop.eup %16329  ;;  %16337 = vrsqrt.f32 %v5922_v29 }
0x20e6   : > { %v16332_v2 = vpop.eup %16331  ;;  %v5932_v20 = vmul.f32 %v16330_v11, %v18110_v9  ;;  %v5924_v63 = vadd.f32 1e-05, %v5918_v44 }
0x20e7   : > { %v5931_v57 = vmul.f32 %v16332_v2, %v18112_v21 }
0x20e8   : > { %v5942_v45 = vmul.f32 %v5940_v35, %v5932_v20  ;;  %16339 = vrsqrt.f32 %v5924_v63 }
0x20e9   : > { %v5941_v32 = vmul.f32 %v5940_v35, %v5931_v57 }
0x20ea   : > { %v16334_v26 = vpop.eup %16333  ;;  %v18153_v51 = vadd.f32 %v5950_v23, %v5942_v45 }
0x20eb   : > { %v18150_v22 = vadd.f32 %v5950_v23, %v5941_v32  ;;  %v5933_v56 = vmul.f32 %v16334_v26, %v18119_v33 }
0x20ed   : > { %14154 = vmatprep.mubr.msk.f32.mxu0 %vm1898_vm4, %v18150_v22  ;;  %v5943_v9 = vmul.f32 %v5940_v35, %v5933_v56 }
0x20ee   : > { %v16336_v30 = vpop.eup %16335  ;;  %14155 = vmatmul.mubr.msk.f32.vlgmr.msra.gmra.mrb[66].mxu0 %vm1898_vm4, %v18153_v51 }
0x20ef   : > { %v16338_v21 = vpop.eup %16337  ;;  %v18159_v60 = vadd.f32 %v5950_v23, %v5943_v9  ;;  %v5935_v54 = vmul.f32 %v16336_v30, %v18124_v37  ;;  %14181 = vmatpush3.msk.msra.mxu0 %vm1209_vm0, %v18184_v8 }
0x20f0   : > { %v5934_v41 = vmul.f32 %v16338_v21, %v18126_v48  ;;  %v12655_v48 = vld [vmem:[%s16833_s19 + $0x20] sm:$0xff] }
0x20f1   : > { %14157 = vmatprep.mubr.msk.f32.mxu0 %vm1898_vm4, %v18159_v60  ;;  %v5945_v33 = vmul.f32 %v5940_v35, %v5935_v54 }
0x20f2   : > { %v16340_v34 = vpop.eup %16339  ;;  %v5944_v36 = vmul.f32 %v5940_v35, %v5934_v41 }
0x20f3   : > { %v18165_v14 = vadd.f32 %v5950_v23, %v5945_v33  ;;  %v5936_v6 = vmul.f32 %v16340_v34, %v18133_v19  ;;  %v15116_v19 = vpack.c.bf16 %v12656_v17, %v12655_v48 }
0x20f4   : > { %v18168_v38 = vadd.f32 %v5950_v23, %v5944_v36 }
0x20f5   : > { %v5946_v18 = vmul.f32 %v5940_v35, %v5936_v6  ;;  %15117 = vmatprep.subr.bf16.mxu1 %v15116_v19 }
0x20f6   : > { %14158 = vmatmul.mubr.msk.f32.gmra.mrb[68].mxu0 %vm1898_vm4, %v18168_v38  ;;  %15119 = vmatpush3.bf16.msra.mxu1 %v15116_v19  ;;  %v6439_v19 = vld [vmem:[%s1154_s1] sm:$0xff] }
0x20f7   : > { %14160 = vmatprep.mubr.msk.f32.mxu0 %vm1898_vm4, %v18165_v14  ;;  %v18174_v37 = vadd.f32 %v5950_v23, %v5946_v18  ;;  %15121 = vmatprep.subr.bf16.mxu1 %v15120_v5  ;;  %v12669_v23 = vld [vmem:[%s20073_s3 + $0x30] sm:$0xff] }
0x20fa   : > { %14161 = vmatmul.mubr.msk.f32.gmra.mrb[70].mxu0 %vm1898_vm4, %v18174_v37  ;;  %15123 = vmatpush3.bf16.msra.mxu1 %v15120_v5  ;;  %v6442_v5 = vld [vmem:[%s1154_s1 + $0x18] sm:$0xff] }
0x20fb   : > { %14202 = vmatprep.subr.mxu1 %v12667_v27 }
0x21c1   : > { %v14156_v43 = vpop.f32.mrb[66].mxu0 }
0x21c2   : > { %v6060_v46 = vadd.f32 %v14156_v43, %v12648_v1  ;;  %v6054_v0 = vpop.f32.mrb[67].mxu0  ;;  %v6445_v43 = vld [vmem:[%s1160_s10] sm:$0xff] }
0x21c3   : > { %v6055_v39 = vadd.f32 %v12648_v1, %v6054_v0  ;;  %14182 = vmatprep.mubr.msk.f32.mxu0 %vm1190_vm1, %v6445_v43  ;;  %v6447_v0 = vld [vmem:[%s1160_s10 + $0x10] sm:$0xff]  ;;  %v6694_v43 = vrot.slane %v18184_v8, %v16964_v25 }
0x21c4   : > { %v6090_v58 = vmul.f32 0.70710677, %v6060_v46  ;;  %v6084_v20 = vmul.f32 0.5, %v6060_v46  ;;  %v6446_v46 = vld [vmem:[%s1160_s10 + $0x8] sm:$0xff] }
0x21c5   : > { %v6089_v13 = vmul.f32 0.70710677, %v6055_v39  ;;  %v6083_v11 = vmul.f32 0.5, %v6055_v39  ;;  %14183 = vmatmul.mubr.msk.f32.vlgmr.msra.gmra.mrb[72].mxu0 %vm1190_vm1, %v6446_v46  ;;  %v12668_v39 = vld [vmem:[%s20073_s3 + $0x28] sm:$0xff]  ;;  %v6457_v46 = vld [vmem:[%s16753_s29 + $0x38] sm:$0xff]  ;;  %s20106_s3 = sld [smem:[#allocation17_spill]] }
0x21c6   : > { %16341 = verf.f32 %v6090_v58  ;;  %14185 = vmatprep.mubr.msk.f32.mxu0 %vm1190_vm1, %v6447_v0  ;;  %v6448_v58 = vld [vmem:[%s1160_s10 + $0x18] sm:$0xff]  ;;  %14191 = vmatprep.subr.mxu0 %v12668_v39  ;;  %v6456_v0 = vld [vmem:[%s16753_s29 + $0x30] sm:$0xff] }
0x21c7   : > { %16343 = verf.f32 %v6089_v13  ;;  %14192 = vmatpush3.msra.mxu0 %v12668_v39  ;;  %v6449_v13 = vld [vmem:[%s1160_s10 + $0x20] sm:$0xff]  ;;  %v15534_v39 = vadd.f32 %v6694_v43, %v6457_v46 }
0x21c9   : > { %v14159_v31 = vpop.f32.mrb[68].mxu0  ;;  %14186 = vmatmul.mubr.msk.f32.gmra.mrb[74].mxu0 %vm1190_vm1, %v6448_v58  ;;  %v15536_v58 = vadd.f32 %v6694_v43, %v6456_v0 }
0x21ca   : > { %v6070_v47 = vadd.f32 %v14159_v31, %v12648_v1  ;;  %v6064_v50 = vpop.f32.mrb[69].mxu0  ;;  %14188 = vmatprep.mubr.msk.f32.mxu0 %vm1190_vm1, %v6449_v13  ;;  %v6450_v31 = vld [vmem:[%s1160_s10 + $0x28] sm:$0xff]  ;;  %s20091_s10 = smov 56  }
0x21cb   : > { %v6065_v28 = vadd.f32 %v12648_v1, %v6064_v50  ;;  %v7198_v50 = vld [vmem:[%s20085_s22] sm:$0xff]  ;;  %v6459_v13 = vld [vmem:[%s16753_s29 + $0x48] sm:$0xff] }
0x21cc   : > { %v6092_v62 = vmul.f32 0.70710677, %v6070_v47  ;;  %v6086_v30 = vmul.f32 0.5, %v6070_v47 }
0x21cd   : > { %v6091_v59 = vmul.f32 0.70710677, %v6065_v28  ;;  %v14162_v52 = vpop.f32.mrb[70].mxu0  ;;  %v6085_v56 = vmul.f32 0.5, %v6065_v28  ;;  %14189 = vmatmul.mubr.msk.f32.gmra.mrb[76].mxu0 %vm1190_vm1, %v6450_v31  ;;  %v7199_v28 = vld [vmem:[%s20085_s22 + $0x8] sm:$0xff]  ;;  %v6458_v31 = vld [vmem:[%s16753_s29 + $0x40] sm:$0xff] }
0x21ce   : > { %16345 = verf.f32 %v6092_v62  ;;  %v6080_v15 = vadd.f32 %v14162_v52, %v12648_v1  ;;  %v6074_v16 = vpop.f32.mrb[71].mxu0  ;;  %14193 = vmatprep.mubr.msk.f32.mxu0 %vm1308_vm2, %v6439_v19  ;;  %v7200_v62 = vld [vmem:[%s20085_s22 + $0x10] sm:$0xff]  ;;  %v7201_v52 = vld [vmem:[%s20085_s22 + $0x18] sm:$0xff] }
0x21cf   : > { %16347 = verf.f32 %v6091_v59  ;;  %v6075_v7 = vadd.f32 %v12648_v1, %v6074_v16  ;;  %v6444_v1 = vld [vmem:[%s1154_s1 + $0x28] sm:$0xff]  ;;  %v15148_v59 = vpack.c.bf16 %v7199_v28, %v7198_v50 }
0x21d0   : > { %v16342_v12 = vpop.eup %16341  ;;  %v6094_v29 = vmul.f32 0.70710677, %v6080_v15  ;;  %v6088_v18 = vmul.f32 0.5, %v6080_v15  ;;  %v15152_v15 = vpack.c.bf16 %v7201_v52, %v7200_v62  ;;  %v15538_v62 = vadd.f32 %v6694_v43, %v6459_v13 }
0x21d1   : > { %v16344_v61 = vpop.eup %16343  ;;  %v6102_v35 = vadd.f32 1.0, %v16342_v12  ;;  %v6093_v44 = vmul.f32 0.70710677, %v6075_v7  ;;  %v6087_v36 = vmul.f32 0.5, %v6075_v7  ;;  %14194 = vmatmul.mubr.msk.f32.vlgmr.msra.gmra.mrb[72].mxu0 %vm1308_vm2, %v6440_v3  ;;  %v15540_v52 = vadd.f32 %v6694_v43, %v6458_v31 }
0x21d2   : > { %v6101_v2 = vadd.f32 1.0, %v16344_v61  ;;  %16349 = verf.f32 %v6094_v29  ;;  %14196 = vmatprep.mubr.msk.f32.mxu0 %vm1308_vm2, %v6441_v40 }
0x21d3   : > { %16351 = verf.f32 %v6093_v44  ;;  %v6108_v57 = vmul.f32 %v6102_v35, %v6084_v20 }
0x21d4   : > { %v6107_v63 = vmul.f32 %v6101_v2, %v6083_v11 }
0x21d5   : > { %14197 = vmatmul.mubr.msk.f32.gmra.mrb[74].mxu0 %vm1308_vm2, %v6442_v5 }
0x21d6   : > { %14171 = vmatprep.mubr.msk.f32.mxu1 %vm1898_vm4, %v6107_v63 }
0x21d7   : > { %14172 = vmatmul.mubr.msk.f32.vlgmr.msra.gmra.mrb[90].mxu1 %vm1898_vm4, %v6108_v57 }
0x21d8   : > { %v16346_v45 = vpop.eup %16345  ;;  %14203 = vmatpush3.msra.mxu1 %v12667_v27  ;;  %v6443_v27 = vld [vmem:[%s1154_s1 + $0x20] sm:$0xff]  ;;  %s20084_s1 = sld [smem:[#allocation3_spill]] }
0x21d9   : > { %v16348_v32 = vpop.eup %16347  ;;  %v6104_v26 = vadd.f32 1.0, %v16346_v45  ;;  %14234 = vmatprep.subr.mxu1 %v12669_v23  ;;  %14199 = vmatprep.mubr.msk.f32.mxu0 %vm1308_vm2, %v6443_v27 }
0x21da   : > { %v6103_v9 = vadd.f32 1.0, %v16348_v32  ;;  %14200 = vmatmul.mubr.msk.f32.gmra.mrb[76].mxu0 %vm1308_vm2, %v6444_v1 }
0x21db   : > { %v6110_v33 = vmul.f32 %v6104_v26, %v6086_v30 }
0x21dc   : > { %v16350_v21 = vpop.eup %16349  ;;  %v6109_v54 = vmul.f32 %v6103_v9, %v6085_v56 }
0x21dd   : > { %v16352_v41 = vpop.eup %16351  ;;  %v6106_v34 = vadd.f32 1.0, %v16350_v21 }
0x21de   : > { %v6105_v6 = vadd.f32 1.0, %v16352_v41  ;;  %14174 = vmatprep.mubr.msk.f32.mxu1 %vm1898_vm4, %v6109_v54  ;;  %v6707_v47 = vld [vmem:[%s20084_s1] sm:$0xff]  ;;  %v6708_v9 = vld [vmem:[%s20084_s1 + $0x8] sm:$0xff]  ;;  %v6709_v21 = vld [vmem:[%s20084_s1 + $0x10] sm:$0xff] }
0x21df   : > { %14175 = vmatmul.mubr.msk.f32.gmra.mrb[92].mxu1 %vm1898_vm4, %v6110_v33  ;;  %v6112_v17 = vmul.f32 %v6106_v34, %v6088_v18  ;;  %14225 = vmatprep.mubr.msk.f32.mxu0 %vm1539_vm3, %v6707_v47  ;;  %v6710_v33 = vld [vmem:[%s20084_s1 + $0x18] sm:$0xff] }
0x21e0   : > { %v6111_v48 = vmul.f32 %v6105_v6, %v6087_v36  ;;  %v6711_v36 = vld [vmem:[%s20084_s1 + $0x20] sm:$0xff] }
0x21e2   : > { %14177 = vmatprep.mubr.msk.f32.mxu1 %vm1898_vm4, %v6111_v48  ;;  %v6712_v48 = vld [vmem:[%s20084_s1 + $0x28] sm:$0xff] }
0x21e3   : > { %14178 = vmatmul.mubr.msk.f32.gmra.mrb[94].mxu1 %vm1898_vm4, %v6112_v17 }
0x21e4   : > { %14204 = vmatprep.mubr.msk.f32.mxu1 %vm1308_vm2, %v6439_v19 }
0x21e7   : > { %14205 = vmatmul.mubr.msk.f32.vlgmr.msra.gmra.mrb[96].mxu1 %vm1308_vm2, %v6440_v3 }
0x21e8   : > { %14235 = vmatpush3.msra.mxu1 %v12669_v23  ;;  %14207 = vmatprep.mubr.msk.f32.mxu1 %vm1308_vm2, %v6441_v40 }
0x21e9   : > { %15149 = vmatprep.subr.bf16.mxu1 %v15148_v59 }
0x21eb   : > { %14208 = vmatmul.mubr.msk.f32.gmra.mrb[98].mxu1 %vm1308_vm2, %v6442_v5 }
0x21ec   : > { %14210 = vmatprep.mubr.msk.f32.mxu1 %vm1308_vm2, %v6443_v27 }
0x21ef   : > { %14211 = vmatmul.mubr.msk.f32.gmra.mrb[100].mxu1 %vm1308_vm2, %v6444_v1 }
0x21f0   : > { %14236 = vmatprep.mubr.msk.f32.mxu1 %vm1308_vm2, %v6439_v19  ;;  %v12696_v19 = vld [vmem:[%s20084_s1 + $0x30] sm:$0xff] }
0x21f3   : > { %14237 = vmatmul.mubr.msk.f32.vlgmr.msra.gmra.mrb[102].mxu1 %vm1308_vm2, %v6440_v3  ;;  %v12697_v3 = vld [vmem:[%s20084_s1 + $0x38] sm:$0xff] }
0x21f4   : > { %14239 = vmatprep.mubr.msk.f32.mxu1 %vm1308_vm2, %v6441_v40  ;;  %15151 = vmatpush3.bf16.msra.mxu1 %v15148_v59  ;;  %v12698_v40 = vld [vmem:[%s20084_s1 + $0x40] sm:$0xff] }
0x21f5   : > { %15153 = vmatprep.subr.bf16.mxu1 %v15152_v15 }
0x21f7   : > { %14240 = vmatmul.mubr.msk.f32.gmra.mrb[104].mxu1 %vm1308_vm2, %v6442_v5  ;;  %v12699_v5 = vld [vmem:[%s20084_s1 + $0x48] sm:$0xff] }
0x21f8   : > { %14242 = vmatprep.mubr.msk.f32.mxu1 %vm1308_vm2, %v6443_v27  ;;  %15155 = vmatpush3.bf16.msra.mxu1 %v15152_v15  ;;  %v12700_v27 = vld [vmem:[%s20084_s1 + $0x50] sm:$0xff]  ;;  %v6461_v15 = vld [vmem:[%s16753_s29 + $0x58] sm:$0xff] }
0x21fb   : > { %14243 = vmatmul.mubr.msk.f32.gmra.mrb[106].mxu1 %vm1308_vm2, %v6444_v1  ;;  %v12701_v1 = vld [vmem:[%s20084_s1 + $0x58] sm:$0xff]  ;;  %s20100_s1 = sld [smem:[#allocation8_spill]] }
0x22aa   : > { %v18233_v16 = vpop.f32.mrb[90].mxu1 }
0x22ab   : > { %v18235_v7 = vpop.f32.mrb[91].mxu1 }
0x22b2   : > { %v18237_v12 = vpop.f32.mrb[92].mxu1 }
0x22b3   : > { %v18239_v29 = vpop.f32.mrb[93].mxu1 }
0x22b6   : > { %v18241_v61 = vpop.f32.mrb[94].mxu1 }
0x22b7   : > { %v18243_v35 = vpop.f32.mrb[95].mxu1 }
0x22ba   : > { %v14206_v44 = vpop.f32.mrb[96].mxu1 }
0x22bb   : > { %v6779_v11 = vpop.f32.mrb[97].mxu1 }
0x22bc   : > { %v15124_v2 = vpack.c.bf16 %v14206_v44, %v6779_v11  ;;  %v6460_v44 = vld [vmem:[%s16753_s29 + $0x50] sm:$0xff] }
0x22be   : > { %v14209_v20 = vpop.f32.mrb[98].mxu1  ;;  %15125 = vmatprep.subr.bf16.mxu0 %v15124_v2 }
0x22bf   : > { %v6789_v63 = vpop.f32.mrb[99].mxu1  ;;  %15127 = vmatpush3.bf16.msra.mxu0 %v15124_v2 }
0x22c0   : > { %v15128_v57 = vpack.c.bf16 %v14209_v20, %v6789_v63  ;;  %v15542_v20 = vadd.f32 %v6694_v43, %v6461_v15 }
0x22c2   : > { %v14212_v23 = vpop.f32.mrb[100].mxu1  ;;  %15129 = vmatprep.subr.bf16.mxu0 %v15128_v57 }
0x22c3   : > { %v6799_v45 = vpop.f32.mrb[101].mxu1  ;;  %15131 = vmatpush3.bf16.msra.mxu0 %v15128_v57  ;;  %v15544_v57 = vadd.f32 %v6694_v43, %v6460_v44 }
0x22c4   : > { %v15132_v32 = vpack.c.bf16 %v14212_v23, %v6799_v45 }
0x22c6   : > { %15133 = vmatprep.subr.bf16.mxu0 %v15132_v32  ;;  %v14238_v26 = vpop.f32.mrb[102].mxu1 }
0x22c7   : > { %15135 = vmatpush3.bf16.msra.mxu0 %v15132_v32  ;;  %v7000_v56 = vpop.f32.mrb[103].mxu1 }
0x22c8   : > { %v15136_v30 = vpack.c.bf16 %v14238_v26, %v7000_v56  ;;  %v12714_v56 = vld [vmem:[%s20086_s2] ss:$0 sm:$0xff]  ;;  %s20092_s2 = smov 80  }
0x22ca   : > { %14226 = vmatmul.mubr.msk.f32.vlgmr.msra.gmra.mrb[72].mxu0 %vm1539_vm3, %v6708_v9  ;;  %v14241_v54 = vpop.f32.mrb[104].mxu1  ;;  %15137 = vmatprep.subr.bf16.mxu0 %v15136_v30 }
0x22cb   : > { %v7010_v41 = vpop.f32.mrb[105].mxu1  ;;  %15139 = vmatpush3.bf16.msra.mxu0 %v15136_v30  ;;  %14228 = vmatprep.mubr.msk.f32.mxu0 %vm1539_vm3, %v6709_v21 }
0x22cc   : > { %v15140_v34 = vpack.c.bf16 %v14241_v54, %v7010_v41 }
0x22ce   : > { %14229 = vmatmul.mubr.msk.f32.gmra.mrb[74].mxu0 %vm1539_vm3, %v6710_v33  ;;  %v14244_v6 = vpop.f32.mrb[106].mxu1  ;;  %15141 = vmatprep.subr.bf16.mxu0 %v15140_v34 }
0x22cf   : > { %v7020_v18 = vpop.f32.mrb[107].mxu1  ;;  %15143 = vmatpush3.bf16.msra.mxu0 %v15140_v34  ;;  %14231 = vmatprep.mubr.msk.f32.mxu0 %vm1539_vm3, %v6711_v36 }
0x22d0   : > { %v15144_v17 = vpack.c.bf16 %v14244_v6, %v7020_v18 }
0x22d2   : > { %14232 = vmatmul.mubr.msk.f32.gmra.mrb[76].mxu0 %vm1539_vm3, %v6712_v48  ;;  %15145 = vmatprep.subr.bf16.mxu0 %v15144_v17 }
0x22d3   : > { %15147 = vmatpush3.bf16.msra.mxu0 %v15144_v17  ;;  %14257 = vmatprep.mubr.msk.f32.mxu0 %vm1539_vm3, %v12696_v19 }
0x22d6   : > { %14258 = vmatmul.mubr.msk.f32.vlgmr.msra.gmra.mrb[72].mxu0 %vm1539_vm3, %v12697_v3 }
0x22d7   : > { %14260 = vmatprep.mubr.msk.f32.mxu0 %vm1539_vm3, %v12698_v40 }
0x22da   : > { %14261 = vmatmul.mubr.msk.f32.gmra.mrb[74].mxu0 %vm1539_vm3, %v12699_v5 }
0x22db   : > { %14263 = vmatprep.mubr.msk.f32.mxu0 %vm1539_vm3, %v12700_v27 }
0x22de   : > { %14264 = vmatmul.mubr.msk.f32.gmra.mrb[76].mxu0 %vm1539_vm3, %v12701_v1 }
0x23a9   : > { %v14259_v47 = vpop.f32.mrb[72].mxu0 }
0x23aa   : > { %v18273_v50 = vadd.f32 %v15534_v39, %v14259_v47  ;;  %v7113_v28 = vpop.f32.mrb[73].mxu0 }
0x23ab   : > { %v18275_v59 = vadd.f32 %v15536_v58, %v7113_v28 }
0x23ad   : > { %v14262_v11 = vpop.f32.mrb[74].mxu0  ;;  %14274 = vmatprep.mubr.msk.f32.mxu1 %vm1898_vm4, %v18275_v59 }
0x23ae   : > { %v18281_v8 = vadd.f32 %v15538_v62, %v14262_v11  ;;  %v7123_v2 = vpop.f32.mrb[75].mxu0  ;;  %14275 = vmatmul.mubr.msk.f32.vlgmr.msra.gmra.mrb[108].mxu1 %vm1898_vm4, %v18273_v50  ;;  %v18357_v11 = vld [vmem:[%s20090_s7 + $0x8] sm:$0xff] }
0x23af   : > { %v18285_v63 = vadd.f32 %v15540_v52, %v7123_v2 }
0x23b0   : > { %20087 = vst [vmem:[#allocation26_spill] sm:$0xff] %v18281_v8 }
0x23b1   : > { %v14265_v23 = vpop.f32.mrb[76].mxu0  ;;  %14277 = vmatprep.mubr.msk.f32.mxu1 %vm1898_vm4, %v18285_v63 }
0x23b2   : > { %v18289_v45 = vadd.f32 %v15542_v20, %v14265_v23  ;;  %v7133_v32 = vpop.f32.mrb[77].mxu0  ;;  %14278 = vmatmul.mubr.msk.f32.gmra.mrb[110].mxu1 %vm1898_vm4, %v18281_v8 }
0x23b3   : > { %v18293_v26 = vadd.f32 %v15544_v57, %v7133_v32  ;;  %v18360_v57 = vld [vmem:[%s20090_s7] sm:$0xff] }
0x23b4   : > { %20088 = vst [vmem:[#allocation27_spill] sm:$0xff] %v18289_v45 }
0x23b5   : > { %20089 = vst [vmem:[#allocation28_spill] sm:$0xff] %v18293_v26  ;;  %14280 = vmatprep.mubr.msk.f32.mxu1 %vm1898_vm4, %v18293_v26 }
0x23b6   : > { %14281 = vmatmul.mubr.msk.f32.gmra.mrb[112].mxu1 %vm1898_vm4, %v18289_v45 }
0x2481   : > { %v14276_v9 = vpop.f32.mrb[108].mxu1 }
0x2482   : > { %v18300_v30 = vadd.f32 %v14276_v9, %v12714_v56  ;;  %v7293_v21 = vpop.f32.mrb[109].mxu1 }
0x2483   : > { %v18302_v54 = vadd.f32 %v12714_v56, %v7293_v21  ;;  %v18365_v21 = vld [vmem:[%s20090_s7 + $0x18] sm:$0xff] }
0x2485   : > { %v14279_v41 = vpop.f32.mrb[110].mxu1  ;;  %14295 = vmatprep.mubr.msk.f32.mxu1 %vm1308_vm2, %v18302_v54  ;;  %v18308_v33 = vpack.i.bf16 %v18300_v30, %v18302_v54 }
0x2486   : > { %v18310_v34 = vadd.f32 %v14279_v41, %v12714_v56  ;;  %v7303_v36 = vpop.f32.mrb[111].mxu1 }
0x2487   : > { %v18312_v6 = vadd.f32 %v12714_v56, %v7303_v36  ;;  %15877 = vrot.lane.b32.xlu1 %v18308_v33, %s20042_s11 }
0x2489   : > { %v14282_v18 = vpop.f32.mrb[112].mxu1  ;;  %v18318_v48 = vpack.i.bf16 %v18310_v34, %v18312_v6 }
0x248a   : > { %v18320_v17 = vadd.f32 %v14282_v18, %v12714_v56  ;;  %v7313_v19 = vpop.f32.mrb[113].mxu1  ;;  %v18368_v18 = vld [vmem:[%s20090_s7 + $0x10] sm:$0xff] }
0x248b   : > { %v18322_v3 = vadd.f32 %v12714_v56, %v7313_v19  ;;  %15882 = vrot.lane.b32.xlu0 %v18318_v48, %s20042_s11 }
0x248d   : > { %v18328_v40 = vpack.i.bf16 %v18320_v17, %v18322_v3 }
0x248f   : > { %15892 = vrot.lane.b32.xlu0 %v18308_v33, %s20038_s15  ;;  %15887 = vrot.lane.b32.xlu1 %v18328_v40, %s20042_s11  ;;  %s20097_s11 = smov 24  }
0x24f9   : > { %v15878_v5 = vpop.permute.xlu1 %15877 }
0x24fa   : > { %v15880_v27 = vunpack.i.h.bf16 %v15878_v5  ;;  %v15879_v1 = vunpack.i.l.bf16 %v15878_v5 }
0x24fc   : > { %v15156_v43 = vpack.c.bf16 %v15880_v27, %v15879_v1 }
0x24fd   : > { %v15883_v46 = vpop.permute.xlu0 %15882 }
0x24fe   : > { %v15885_v0 = vunpack.i.h.bf16 %v15883_v46  ;;  %v15884_v39 = vunpack.i.l.bf16 %v15883_v46  ;;  %15158 = vmatprep.subr.msk.bf16.mxu1 %vm17075_vm5, %v15156_v43 }
0x24ff   : > { %15161 = vmatpush3.bf16.xpose.msk.msra.mxu1 %vm17075_vm5, %v15156_v43 }
0x2500   : > { %v15162_v58 = vpack.c.bf16 %v15885_v0, %v15884_v39  ;;  %v18375_v0 = vld [vmem:[%s20090_s7 + $0x28] sm:$0xff] }
0x2501   : > { %v15893_v13 = vpop.permute.xlu0 %15892  ;;  %v15888_v31 = vpop.permute.xlu1 %15887 }
0x2502   : > { %v15895_v47 = vunpack.i.h.bf16 %v15893_v13  ;;  %v15894_v28 = vunpack.i.l.bf16 %v15893_v13  ;;  %v15890_v62 = vunpack.i.h.bf16 %v15888_v31  ;;  %v15889_v52 = vunpack.i.l.bf16 %v15888_v31  ;;  %15164 = vmatprep.subr.msk.bf16.mxu1 %vm17075_vm5, %v15162_v58  ;;  %v18378_v13 = vld [vmem:[%s20090_s7 + $0x20] sm:$0xff] }
0x2504   : > { %v15174_v15 = vpack.c.bf16 %v15895_v47, %v15894_v28  ;;  %v15168_v44 = vpack.c.bf16 %v15890_v62, %v15889_v52 }
0x2506   : > { %15175 = vmatprep.subr.bf16.mxu0 %v15174_v15 }
0x2507   : > { %15167 = vmatpush3.bf16.xpose.msk.msra.mxu1 %vm17075_vm5, %v15162_v58  ;;  %15177 = vmatpush3.bf16.msra.mxu0 %v15174_v15 }
0x2508   : > { %15170 = vmatprep.subr.msk.bf16.mxu1 %vm17075_vm5, %v15168_v44 }
0x250f   : > { %15173 = vmatpush3.bf16.xpose.msk.msra.mxu1 %vm17075_vm5, %v15168_v44 }
0x2516   : > { %14296 = vmatmul.mubr.msk.f32.vlgmr.msra.gmra.mrb[114].mxu1 %vm1308_vm2, %v18300_v30 }
0x2517   : > { %14298 = vmatprep.mubr.msk.f32.mxu1 %vm1308_vm2, %v18312_v6 }
0x251a   : > { %14299 = vmatmul.mubr.msk.f32.gmra.mrb[116].mxu1 %vm1308_vm2, %v18310_v34 }
0x251b   : > { %14301 = vmatprep.mubr.msk.f32.mxu1 %vm1308_vm2, %v18322_v3 }
0x251e   : > { %14302 = vmatmul.mubr.msk.f32.gmra.mrb[118].mxu1 %vm1308_vm2, %v18320_v17 }
0x25e9   : > { %v14297_v2 = vpop.f32.mrb[114].mxu1 }
0x25ea   : > { %v7460_v20 = vmul.f32 0.35355338, %v14297_v2  ;;  %v7430_v23 = vpop.f32.mrb[115].mxu1 }
0x25eb   : > { %v7459_v32 = vmul.f32 0.35355338, %v7430_v23 }
0x25ec   : > { %v7466_v56 = vadd.f32 %v7460_v20, %v18357_v11 }
0x25ed   : > { %v7465_v9 = vadd.f32 %v7459_v32, %v18360_v57  ;;  %v14300_v41 = vpop.f32.mrb[116].mxu1 }
0x25ee   : > { %v7462_v36 = vmul.f32 0.35355338, %v14300_v41  ;;  %v7440_v19 = vpop.f32.mrb[117].mxu1  ;;  %v7474_v5 = vsel %vm1539_vm3, %v7466_v56, -inf }
0x25ef   : > { %v7461_v27 = vmul.f32 0.35355338, %v7440_v19  ;;  %7475 = vmax.xlane.f32.xlu0 %v7474_v5  ;;  %v7471_v1 = vsel %vm1539_vm3, %v7465_v9, -inf }
0x25f0   : > { %v7468_v43 = vadd.f32 %v7462_v36, %v18365_v21  ;;  %7472 = vmax.xlane.f32.xlu1 %v7471_v1 }
0x25f1   : > { %v7467_v46 = vadd.f32 %v7461_v27, %v18368_v18  ;;  %v14303_v39 = vpop.f32.mrb[118].mxu1 }
0x25f2   : > { %v7464_v58 = vmul.f32 0.35355338, %v14303_v39  ;;  %v7450_v31 = vpop.f32.mrb[119].mxu1  ;;  %v7480_v47 = vsel %vm1539_vm3, %v7468_v43, -inf }
0x25f3   : > { %v7463_v28 = vmul.f32 0.35355338, %v7450_v31  ;;  %v7477_v62 = vsel %vm1539_vm3, %v7467_v46, -inf }
0x25f4   : > { %v7470_v52 = vadd.f32 %v7464_v58, %v18375_v0  ;;  %7481 = vmax.xlane.f32.xlu1 %v7480_v47  ;;  %7478 = vmax.xlane.f32.xlu0 %v7477_v62 }
0x25f5   : > { %v7469_v15 = vadd.f32 %v7463_v28, %v18378_v13 }
0x25f6   : > { %v7486_v44 = vsel %vm1539_vm3, %v7470_v52, -inf }
0x25f7   : > { %v7483_v2 = vsel %vm1539_vm3, %v7469_v15, -inf }
0x25f8   : > { %7487 = vmax.xlane.f32.xlu1 %v7486_v44  ;;  %7484 = vmax.xlane.f32.xlu0 %v7483_v2 }
0x2609   : > { %15897 = vrot.lane.b32.xlu1 %v18318_v48, %s20038_s15 }
0x260e   : > { %15902 = vrot.lane.b32.xlu0 %v18328_v40, %s20038_s15  ;;  %s20094_s15 = smov 48  }
0x267c   : > { %v7476_v20 = vpop.xlane.xlu0 %7475 }
0x267d   : > { %v7490_v23 = vsub.f32 %v7466_v56, %v7476_v20  ;;  %v7473_v32 = vpop.xlane.xlu1 %7472 }
0x267e   : > { %v7489_v41 = vsub.f32 %v7465_v9, %v7473_v32 }
0x267f   : > { %v7497_v36 = vmul.f32 1.442695, %v7490_v23 }
0x2680   : > { %v7495_v19 = vmul.f32 1.442695, %v7489_v41 }
0x2681   : > { %16353 = vpow2.f32 %v7497_v36  ;;  %v7482_v5 = vpop.xlane.xlu1 %7481  ;;  %v7479_v27 = vpop.xlane.xlu0 %7478 }
0x2682   : > { %16355 = vpow2.f32 %v7495_v19  ;;  %v7491_v32 = vsub.f32 %v7467_v46, %v7479_v27  ;;  %v7492_v41 = vsub.f32 %v7468_v43, %v7482_v5 }
0x2684   : > { %v7499_v36 = vmul.f32 1.442695, %v7491_v32 }
0x2685   : > { %v7488_v1 = vpop.xlane.xlu1 %7487  ;;  %v7485_v39 = vpop.xlane.xlu0 %7484 }
0x2686   : > { %v7494_v19 = vsub.f32 %v7470_v52, %v7488_v1  ;;  %16357 = vpow2.f32 %v7499_v36 }
0x2689   : > { %v15898_v58 = vpop.permute.xlu1 %15897  ;;  %v15903_v31 = vpop.permute.xlu0 %15902 }
0x268a   : > { %v15900_v47 = vunpack.i.h.bf16 %v15898_v58  ;;  %v15899_v28 = vunpack.i.l.bf16 %v15898_v58  ;;  %v15905_v62 = vunpack.i.h.bf16 %v15903_v31  ;;  %v15904_v2 = vunpack.i.l.bf16 %v15903_v31 }
0x268b   : > { %v16354_v44 = vpop.eup %16353  ;;  %v7501_v58 = vmul.f32 1.442695, %v7492_v41  ;;  %v7505_v31 = vmul.f32 1.442695, %v7494_v19 }
0x268c   : > { %v16356_v4 = vpop.eup %16355  ;;  %v7510_v56 = vsel %vm1539_vm3, %v16354_v44, 0.0  ;;  %v15178_v20 = vpack.c.bf16 %v15900_v47, %v15899_v28  ;;  %v15182_v23 = vpack.c.bf16 %v15905_v62, %v15904_v2  ;;  %v7493_v47 = vsub.f32 %v7469_v15, %v7485_v39 }
0x268d   : > { %7511 = vadd.xlane.f32.xlu1 %v7510_v56  ;;  %v7507_v9 = vsel %vm1539_vm3, %v16356_v4, 0.0  ;;  %16359 = vpow2.f32 %v7501_v58 }
0x268e   : > { %15179 = vmatprep.subr.bf16.mxu0 %v15178_v20  ;;  %7508 = vadd.xlane.f32.xlu0 %v7507_v9  ;;  %16361 = vpow2.f32 %v7505_v31  ;;  %v7503_v28 = vmul.f32 1.442695, %v7493_v47 }
0x268f   : > { %15181 = vmatpush3.bf16.msra.mxu0 %v15178_v20 }
0x2690   : > { %15183 = vmatprep.subr.bf16.mxu0 %v15182_v23  ;;  %16363 = vpow2.f32 %v7503_v28  ;;  %v16358_v62 = vpop.eup %16357 }
0x2691   : > { %v7513_v56 = vsel %vm1539_vm3, %v16358_v62, 0.0 }
0x2693   : > { %15185 = vmatpush3.bf16.msra.mxu0 %v15182_v23 }
0x2697   : > { %v16360_v2 = vpop.eup %16359 }
0x2698   : > { %v18397_v20 = vpop.eup %16361  ;;  %v7516_v46 = vsel %vm1539_vm3, %v16360_v2, 0.0 }
0x2699   : > { %v7522_v43 = vsel %vm1539_vm3, %v18397_v20, 0.0 }
0x269a   : > { %v16364_v52 = vpop.eup %16363 }
0x269b   : > { %v7519_v15 = vsel %vm1539_vm3, %v16364_v52, 0.0 }
0x269e   : > { %15907 = vrot.lane.b32.xlu1 %v18308_v33, %s20040_s16 }
0x26a4   : > { %15912 = vrot.lane.b32.xlu0 %v18318_v48, %s20040_s16 }
0x26c2   : > { %7514 = vadd.xlane.f32.xlu1 %v7513_v56 }
0x26c3   : > { %7517 = vadd.xlane.f32.xlu0 %v7516_v46 }
0x26c6   : > { %7523 = vadd.xlane.f32.xlu1 %v7522_v43 }
0x26ca   : > { %7520 = vadd.xlane.f32.xlu1 %v7519_v15 }
0x26d9   : > { %15917 = vrot.lane.b32.xlu0 %v18328_v40, %s20040_s16  ;;  %s20096_s16 = smov 16  }
0x26db   : > { %7668 = vrot.lane.b32.xlu1 %v18302_v54, %s20044_s18 }
0x26dd   : > { %7670 = vrot.lane.b32.xlu0 %v18300_v30, %s20044_s18 }
0x26df   : > { %7672 = vrot.lane.b32.xlu1 %v18312_v6, %s20044_s18 }
0x26e1   : > { %7674 = vrot.lane.b32.xlu0 %v18310_v34, %s20044_s18 }
0x26e3   : > { %7676 = vrot.lane.b32.xlu1 %v18322_v3, %s20044_s18 }
0x26e5   : > { %7678 = vrot.lane.b32.xlu0 %v18320_v17, %s20044_s18  ;;  %s20099_s18 = sld [smem:[#allocation7_spill]] }
0x26e9   : > { %15922 = vrot.lane.b32.xlu0 %v18308_v33, %s20091_s10 }
0x271a   : > { %v7512_v5 = vpop.xlane.xlu1 %7511 }
0x271b   : > { %16365 = vrcp.f32 %v7512_v5  ;;  %v7509_v27 = vpop.xlane.xlu0 %7508 }
0x271c   : > { %16367 = vrcp.f32 %v7509_v27 }
0x271e   : > { %v15908_v1 = vpop.permute.xlu1 %15907 }
0x271f   : > { %v15910_v39 = vunpack.i.h.bf16 %v15908_v1  ;;  %v15909_v9 = vunpack.i.l.bf16 %v15908_v1  ;;  %v15913_v32 = vpop.permute.xlu0 %15912 }
0x2720   : > { %v15915_v19 = vunpack.i.h.bf16 %v15913_v32  ;;  %v15914_v58 = vunpack.i.l.bf16 %v15913_v32 }
0x2721   : > { %v15186_v23 = vpack.c.bf16 %v15910_v39, %v15909_v9 }
0x2722   : > { %v15192_v28 = vpack.c.bf16 %v15915_v19, %v15914_v58 }
0x2723   : > { %15188 = vmatprep.subr.msk.bf16.mxu0 %vm17075_vm5, %v15186_v23 }
0x2725   : > { %v16366_v41 = vpop.eup %16365 }
0x2726   : > { %v16368_v36 = vpop.eup %16367  ;;  %v7532_v47 = vmul.f32 %v16366_v41, %v16354_v44 }
0x2727   : > { %v7531_v31 = vmul.f32 %v16368_v36, %v16356_v4 }
0x2729   : > { %14316 = vmatprep.mubr.msk.f32.mxu0 %vm1539_vm3, %v7531_v31 }
0x272a   : > { %14317 = vmatmul.mubr.msk.f32.vlgmr.msra.gmra.mrb[78].mxu0 %vm1539_vm3, %v7532_v47 }
0x272b   : > { %15191 = vmatpush3.bf16.xpose.msk.msra.mxu0 %vm17075_vm5, %v15186_v23 }
0x272c   : > { %15194 = vmatprep.subr.msk.bf16.mxu0 %vm17075_vm5, %v15192_v28 }
0x2733   : > { %15197 = vmatpush3.bf16.xpose.msk.msra.mxu0 %vm17075_vm5, %v15192_v28 }
0x274f   : > { %v7515_v56 = vpop.xlane.xlu1 %7514 }
0x2750   : > { %16369 = vrcp.f32 %v7515_v56  ;;  %v7518_v46 = vpop.xlane.xlu0 %7517 }
0x2751   : > { %16371 = vrcp.f32 %v7518_v46 }
0x2753   : > { %v7524_v4 = vpop.xlane.xlu1 %7523 }
0x2754   : > { %v15918_v44 = vpop.permute.xlu0 %15917  ;;  %16373 = vrcp.f32 %v7524_v4 }
0x2755   : > { %v15920_v43 = vunpack.i.h.bf16 %v15918_v44  ;;  %v15919_v15 = vunpack.i.l.bf16 %v15918_v44 }
0x2757   : > { %v15198_v5 = vpack.c.bf16 %v15920_v43, %v15919_v15  ;;  %v7521_v27 = vpop.xlane.xlu1 %7520 }
0x2758   : > { %16375 = vrcp.f32 %v7521_v27  ;;  %v7671_v1 = vpop.permute.xlu0 %7670 }
0x2759   : > { %15200 = vmatprep.subr.msk.bf16.mxu0 %vm17075_vm5, %v15198_v5 }
0x275a   : > { %v16370_v39 = vpop.eup %16369  ;;  %15203 = vmatpush3.bf16.xpose.msk.msra.mxu0 %vm17075_vm5, %v15198_v5 }
0x275b   : > { %v16372_v9 = vpop.eup %16371  ;;  %v7533_v23 = vmul.f32 %v16370_v39, %v16358_v62  ;;  %v7669_v31 = vpop.permute.xlu1 %7668 }
0x275c   : > { %v7675_v32 = vpop.permute.xlu0 %7674  ;;  %v7534_v41 = vmul.f32 %v16372_v9, %v16360_v2 }
0x275d   : > { %14319 = vmatprep.mubr.msk.f32.mxu0 %vm1539_vm3, %v7533_v23 }
0x275e   : > { %14320 = vmatmul.mubr.msk.f32.gmra.mrb[80].mxu0 %vm1539_vm3, %v7534_v41  ;;  %v16374_v19 = vpop.eup %16373 }
0x275f   : > { %v7536_v56 = vmul.f32 %v16374_v19, %v18397_v20  ;;  %v7673_v2 = vpop.permute.xlu1 %7672 }
0x2760   : > { %v7679_v36 = vpop.permute.xlu0 %7678 }
0x2762   : > { %v16376_v58 = vpop.eup %16375 }
0x2763   : > { %v7535_v47 = vmul.f32 %v16376_v58, %v16364_v52  ;;  %v7677_v52 = vpop.permute.xlu1 %7676 }
0x2764   : > { %v15923_v28 = vpop.permute.xlu0 %15922 }
0x2765   : > { %v15925_v46 = vunpack.i.h.bf16 %v15923_v28  ;;  %v15924_v4 = vunpack.i.l.bf16 %v15923_v28  ;;  %14322 = vmatprep.mubr.msk.f32.mxu0 %vm1539_vm3, %v7535_v47 }
0x2766   : > { %14323 = vmatmul.mubr.msk.f32.gmra.mrb[82].mxu0 %vm1539_vm3, %v7536_v56 }
0x2767   : > { %14337 = vmatprep.mubr.msk.f32.mxu0 %vm1308_vm2, %v7669_v31  ;;  %v15204_v62 = vpack.c.bf16 %v15925_v46, %v15924_v4 }
0x2769   : > { %15205 = vmatprep.subr.bf16.mxu1 %v15204_v62 }
0x276a   : > { %14338 = vmatmul.mubr.msk.f32.vlgmr.msra.gmra.mrb[84].mxu0 %vm1308_vm2, %v7671_v1  ;;  %15207 = vmatpush3.bf16.msra.mxu1 %v15204_v62 }
0x276b   : > { %14340 = vmatprep.mubr.msk.f32.mxu0 %vm1308_vm2, %v7673_v2 }
0x276e   : > { %14341 = vmatmul.mubr.msk.f32.gmra.mrb[86].mxu0 %vm1308_vm2, %v7675_v32 }
0x276f   : > { %14343 = vmatprep.mubr.msk.f32.mxu0 %vm1308_vm2, %v7677_v52 }
0x2772   : > { %14344 = vmatmul.mubr.msk.f32.gmra.mrb[88].mxu0 %vm1308_vm2, %v7679_v36 }
0x27fd   : > { %v18444_v20 = vpop.f32.mrb[78].mxu0 }
0x27fe   : > { %v18446_v44 = vpop.f32.mrb[79].mxu0 }
0x2831   : > { %v18448_v43 = vpop.f32.mrb[80].mxu0 }
0x2832   : > { %v18450_v15 = vpop.f32.mrb[81].mxu0 }
0x2839   : > { %v18452_v5 = vpop.f32.mrb[82].mxu0 }
0x283a   : > { %v18454_v27 = vpop.f32.mrb[83].mxu0 }
0x283d   : > { %v14339_v1 = vpop.f32.mrb[84].mxu0 }
0x283e   : > { %v7812_v39 = vmul.f32 0.35355338, %v14339_v1  ;;  %v7782_v9 = vpop.f32.mrb[85].mxu0 }
0x283f   : > { %v7811_v23 = vmul.f32 0.35355338, %v7782_v9 }
0x2840   : > { %v7818_v32 = vadd.f32 %v7812_v39, %v18357_v11 }
0x2841   : > { %v7817_v41 = vadd.f32 %v7811_v23, %v18360_v57  ;;  %v14342_v36 = vpop.f32.mrb[86].mxu0 }
0x2842   : > { %v7814_v19 = vmul.f32 0.35355338, %v14342_v36  ;;  %v7792_v58 = vpop.f32.mrb[87].mxu0  ;;  %v7826_v31 = vsel %vm1539_vm3, %v7818_v32, -inf }
0x2843   : > { %v7813_v47 = vmul.f32 0.35355338, %v7792_v58  ;;  %7827 = vmax.xlane.f32.xlu0 %v7826_v31  ;;  %v7823_v28 = vsel %vm1539_vm3, %v7817_v41, -inf }
0x2844   : > { %v7820_v56 = vadd.f32 %v7814_v19, %v18365_v21  ;;  %7824 = vmax.xlane.f32.xlu1 %v7823_v28 }
0x2845   : > { %v7819_v46 = vadd.f32 %v7813_v47, %v18368_v18  ;;  %v14345_v4 = vpop.f32.mrb[88].mxu0 }
0x2846   : > { %v7816_v62 = vmul.f32 0.35355338, %v14345_v4  ;;  %v7802_v2 = vpop.f32.mrb[89].mxu0  ;;  %v7832_v52 = vsel %vm1539_vm3, %v7820_v56, -inf }
0x2847   : > { %v7815_v1 = vmul.f32 0.35355338, %v7802_v2  ;;  %v7829_v39 = vsel %vm1539_vm3, %v7819_v46, -inf }
0x2848   : > { %v7822_v9 = vadd.f32 %v7816_v62, %v18375_v0  ;;  %7833 = vmax.xlane.f32.xlu1 %v7832_v52  ;;  %7830 = vmax.xlane.f32.xlu0 %v7829_v39 }
0x2849   : > { %v7821_v23 = vadd.f32 %v7815_v1, %v18378_v13 }
0x284a   : > { %v7838_v36 = vsel %vm1539_vm3, %v7822_v9, -inf }
0x284b   : > { %v7835_v19 = vsel %vm1539_vm3, %v7821_v23, -inf }
0x284c   : > { %7839 = vmax.xlane.f32.xlu1 %v7838_v36  ;;  %7836 = vmax.xlane.f32.xlu0 %v7835_v19 }
0x285d   : > { %15927 = vrot.lane.b32.xlu1 %v18318_v48, %s20091_s10 }
0x2862   : > { %15932 = vrot.lane.b32.xlu0 %v18328_v40, %s20091_s10  ;;  %s20093_s10 = smov 112  }
0x28d0   : > { %v7828_v58 = vpop.xlane.xlu0 %7827 }
0x28d1   : > { %v7842_v31 = vsub.f32 %v7818_v32, %v7828_v58  ;;  %v7825_v47 = vpop.xlane.xlu1 %7824 }
0x28d2   : > { %v7841_v28 = vsub.f32 %v7817_v41, %v7825_v47 }
0x28d3   : > { %v7849_v4 = vmul.f32 1.442695, %v7842_v31 }
0x28d4   : > { %v7847_v62 = vmul.f32 1.442695, %v7841_v28 }
0x28d5   : > { %16377 = vpow2.f32 %v7849_v4  ;;  %v7834_v2 = vpop.xlane.xlu1 %7833  ;;  %v7831_v52 = vpop.xlane.xlu0 %7830 }
0x28d6   : > { %16379 = vpow2.f32 %v7847_v62  ;;  %v7843_v47 = vsub.f32 %v7819_v46, %v7831_v52  ;;  %v7844_v28 = vsub.f32 %v7820_v56, %v7834_v2 }
0x28d8   : > { %v7851_v4 = vmul.f32 1.442695, %v7843_v47 }
0x28d9   : > { %v7840_v1 = vpop.xlane.xlu1 %7839  ;;  %v7837_v39 = vpop.xlane.xlu0 %7836 }
0x28da   : > { %v7846_v62 = vsub.f32 %v7822_v9, %v7840_v1  ;;  %16381 = vpow2.f32 %v7851_v4 }
0x28dd   : > { %v15928_v36 = vpop.permute.xlu1 %15927  ;;  %v15933_v19 = vpop.permute.xlu0 %15932 }
0x28de   : > { %v15930_v24 = vunpack.i.h.bf16 %v15928_v36  ;;  %v15929_v55 = vunpack.i.l.bf16 %v15928_v36  ;;  %v15935_v45 = vunpack.i.h.bf16 %v15933_v19  ;;  %v15934_v42 = vunpack.i.l.bf16 %v15933_v19 }
0x28df   : > { %v18472_v26 = vpop.eup %16377  ;;  %v7845_v36 = vsub.f32 %v7821_v23, %v7837_v39 }
0x28e0   : > { %v16380_v8 = vpop.eup %16379  ;;  %v7862_v32 = vsel %vm1539_vm3, %v18472_v26, 0.0  ;;  %v15208_v41 = vpack.c.bf16 %v15930_v24, %v15929_v55  ;;  %v15212_v31 = vpack.c.bf16 %v15935_v45, %v15934_v42  ;;  %v7853_v24 = vmul.f32 1.442695, %v7844_v28 }
0x28e1   : > { %7863 = vadd.xlane.f32.xlu1 %v7862_v32  ;;  %v7859_v58 = vsel %vm1539_vm3, %v16380_v8, 0.0  ;;  %v7857_v55 = vmul.f32 1.442695, %v7846_v62  ;;  %v7855_v42 = vmul.f32 1.442695, %v7845_v36 }
0x28e2   : > { %15209 = vmatprep.subr.bf16.mxu1 %v15208_v41  ;;  %7860 = vadd.xlane.f32.xlu0 %v7859_v58  ;;  %16383 = vpow2.f32 %v7853_v24 }
0x28e3   : > { %15211 = vmatpush3.bf16.msra.mxu1 %v15208_v41  ;;  %16385 = vpow2.f32 %v7857_v55 }
0x28e4   : > { %15213 = vmatprep.subr.bf16.mxu1 %v15212_v31  ;;  %16387 = vpow2.f32 %v7855_v42  ;;  %v16382_v45 = vpop.eup %16381 }
0x28e5   : > { %v7865_v32 = vsel %vm1539_vm3, %v16382_v45, 0.0 }
0x28e7   : > { %15215 = vmatpush3.bf16.msra.mxu1 %v15212_v31 }
0x28ec   : > { %v16384_v19 = vpop.eup %16383 }
0x28ed   : > { %v18482_v41 = vpop.eup %16385  ;;  %v7868_v46 = vsel %vm1539_vm3, %v16384_v19, 0.0 }
0x28ee   : > { %v7874_v56 = vsel %vm1539_vm3, %v18482_v41, 0.0  ;;  %v18487_v9 = vpop.eup %16387 }
0x28ef   : > { %v7871_v23 = vsel %vm1539_vm3, %v18487_v9, 0.0 }
0x28f2   : > { %15937 = vrot.lane.b32.xlu1 %v18308_v33, %s20092_s2 }
0x28f8   : > { %15942 = vrot.lane.b32.xlu0 %v18318_v48, %s20092_s2 }
0x2916   : > { %7866 = vadd.xlane.f32.xlu1 %v7865_v32 }
0x2917   : > { %7869 = vadd.xlane.f32.xlu0 %v7868_v46 }
0x291a   : > { %7875 = vadd.xlane.f32.xlu1 %v7874_v56 }
0x291e   : > { %7872 = vadd.xlane.f32.xlu1 %v7871_v23 }
0x292d   : > { %15947 = vrot.lane.b32.xlu0 %v18328_v40, %s20092_s2 }
0x292f   : > { %8020 = vrot.lane.b32.xlu1 %v18302_v54, %s20093_s10 }
0x2931   : > { %8022 = vrot.lane.b32.xlu0 %v18300_v30, %s20093_s10 }
0x2933   : > { %8024 = vrot.lane.b32.xlu1 %v18312_v6, %s20093_s10 }
0x2935   : > { %8026 = vrot.lane.b32.xlu0 %v18310_v34, %s20093_s10 }
0x2937   : > { %8028 = vrot.lane.b32.xlu1 %v18322_v3, %s20093_s10 }
0x2939   : > { %8030 = vrot.lane.b32.xlu0 %v18320_v17, %s20093_s10 }
0x293b   : > { %15957 = vrot.lane.b32.xlu1 %v18318_v48, %s20094_s15 }
0x293d   : > { %15952 = vrot.lane.b32.xlu0 %v18308_v33, %s20094_s15 }
0x296e   : > { %v7864_v2 = vpop.xlane.xlu1 %7863 }
0x296f   : > { %16389 = vrcp.f32 %v7864_v2  ;;  %v7861_v52 = vpop.xlane.xlu0 %7860 }
0x2970   : > { %16391 = vrcp.f32 %v7861_v52 }
0x2972   : > { %v15938_v1 = vpop.permute.xlu1 %15937 }
0x2973   : > { %v15940_v39 = vunpack.i.h.bf16 %v15938_v1  ;;  %v15939_v58 = vunpack.i.l.bf16 %v15938_v1  ;;  %v15943_v47 = vpop.permute.xlu0 %15942 }
0x2974   : > { %v15945_v62 = vunpack.i.h.bf16 %v15943_v47  ;;  %v15944_v24 = vunpack.i.l.bf16 %v15943_v47 }
0x2975   : > { %v15216_v31 = vpack.c.bf16 %v15940_v39, %v15939_v58 }
0x2976   : > { %v15222_v42 = vpack.c.bf16 %v15945_v62, %v15944_v24 }
0x2977   : > { %15218 = vmatprep.subr.msk.bf16.mxu1 %vm17075_vm5, %v15216_v31 }
0x2979   : > { %v16390_v28 = vpop.eup %16389 }
0x297a   : > { %v16392_v4 = vpop.eup %16391  ;;  %v7884_v36 = vmul.f32 %v16390_v28, %v18472_v26 }
0x297b   : > { %v7883_v55 = vmul.f32 %v16392_v4, %v16380_v8 }
0x297d   : > { %14358 = vmatprep.mubr.msk.f32.mxu1 %vm1539_vm3, %v7883_v55 }
0x297e   : > { %14359 = vmatmul.mubr.msk.f32.vlgmr.msra.gmra.mrb[120].mxu1 %vm1539_vm3, %v7884_v36 }
0x297f   : > { %15221 = vmatpush3.bf16.xpose.msk.msra.mxu1 %vm17075_vm5, %v15216_v31 }
0x2980   : > { %15224 = vmatprep.subr.msk.bf16.mxu1 %vm17075_vm5, %v15222_v42 }
0x2987   : > { %15227 = vmatpush3.bf16.xpose.msk.msra.mxu1 %vm17075_vm5, %v15222_v42 }
0x29a3   : > { %v7867_v32 = vpop.xlane.xlu1 %7866 }
0x29a4   : > { %16393 = vrcp.f32 %v7867_v32  ;;  %v7870_v46 = vpop.xlane.xlu0 %7869 }
0x29a5   : > { %16395 = vrcp.f32 %v7870_v46 }
0x29a7   : > { %v7876_v8 = vpop.xlane.xlu1 %7875 }
0x29a8   : > { %v15948_v26 = vpop.permute.xlu0 %15947  ;;  %16397 = vrcp.f32 %v7876_v8 }
0x29a9   : > { %v15950_v56 = vunpack.i.h.bf16 %v15948_v26  ;;  %v15949_v23 = vunpack.i.l.bf16 %v15948_v26 }
0x29ab   : > { %v15228_v2 = vpack.c.bf16 %v15950_v56, %v15949_v23  ;;  %v7873_v52 = vpop.xlane.xlu1 %7872 }
0x29ac   : > { %16399 = vrcp.f32 %v7873_v52  ;;  %v8023_v1 = vpop.permute.xlu0 %8022 }
0x29ad   : > { %15230 = vmatprep.subr.msk.bf16.mxu1 %vm17075_vm5, %v15228_v2 }
0x29ae   : > { %v16394_v39 = vpop.eup %16393  ;;  %15233 = vmatpush3.bf16.xpose.msk.msra.mxu1 %vm17075_vm5, %v15228_v2 }
0x29af   : > { %v16396_v58 = vpop.eup %16395  ;;  %v8021_v31 = vpop.permute.xlu1 %8020  ;;  %v7885_v47 = vmul.f32 %v16394_v39, %v16382_v45 }
0x29b0   : > { %v8027_v28 = vpop.permute.xlu0 %8026  ;;  %v7886_v4 = vmul.f32 %v16396_v58, %v16384_v19 }
0x29b1   : > { %14361 = vmatprep.mubr.msk.f32.mxu1 %vm1539_vm3, %v7885_v47 }
0x29b2   : > { %14362 = vmatmul.mubr.msk.f32.gmra.mrb[122].mxu1 %vm1539_vm3, %v7886_v4  ;;  %v16398_v55 = vpop.eup %16397 }
0x29b3   : > { %v8025_v62 = vpop.permute.xlu1 %8024  ;;  %v7888_v8 = vmul.f32 %v16398_v55, %v18482_v41 }
0x29b4   : > { %v8031_v24 = vpop.permute.xlu0 %8030 }
0x29b6   : > { %v16400_v36 = vpop.eup %16399 }
0x29b7   : > { %v8029_v42 = vpop.permute.xlu1 %8028  ;;  %v7887_v32 = vmul.f32 %v16400_v36, %v18487_v9 }
0x29b8   : > { %v15953_v46 = vpop.permute.xlu0 %15952 }
0x29b9   : > { %v15955_v26 = vunpack.i.h.bf16 %v15953_v46  ;;  %v15954_v56 = vunpack.i.l.bf16 %v15953_v46  ;;  %14364 = vmatprep.mubr.msk.f32.mxu1 %vm1539_vm3, %v7887_v32 }
0x29ba   : > { %14365 = vmatmul.mubr.msk.f32.gmra.mrb[124].mxu1 %vm1539_vm3, %v7888_v8 }
0x29bb   : > { %v15958_v45 = vpop.permute.xlu1 %15957  ;;  %14379 = vmatprep.mubr.msk.f32.mxu1 %vm1308_vm2, %v8021_v31  ;;  %v15234_v19 = vpack.c.bf16 %v15955_v26, %v15954_v56 }
0x29bc   : > { %v15960_v23 = vunpack.i.h.bf16 %v15958_v45  ;;  %v15959_v2 = vunpack.i.l.bf16 %v15958_v45 }
0x29bd   : > { %15235 = vmatprep.subr.bf16.mxu0 %v15234_v19 }
0x29be   : > { %14380 = vmatmul.mubr.msk.f32.vlgmr.msra.gmra.mrb[126].mxu1 %vm1308_vm2, %v8023_v1  ;;  %15237 = vmatpush3.bf16.msra.mxu0 %v15234_v19  ;;  %v15238_v9 = vpack.c.bf16 %v15960_v23, %v15959_v2 }
0x29bf   : > { %14382 = vmatprep.mubr.msk.f32.mxu1 %vm1308_vm2, %v8025_v62 }
0x29c0   : > { %15239 = vmatprep.subr.bf16.mxu0 %v15238_v9 }
0x29c2   : > { %14383 = vmatmul.mubr.msk.f32.gmra.mrb[128].mxu1 %vm1308_vm2, %v8027_v28  ;;  %15241 = vmatpush3.bf16.msra.mxu0 %v15238_v9 }
0x29c3   : > { %14385 = vmatprep.mubr.msk.f32.mxu1 %vm1308_vm2, %v8029_v42 }
0x29c6   : > { %14386 = vmatmul.mubr.msk.f32.gmra.mrb[130].mxu1 %vm1308_vm2, %v8031_v24 }
0x2a51   : > { %v18536_v41 = vpop.f32.mrb[120].mxu1 }
0x2a52   : > { %v18538_v52 = vpop.f32.mrb[121].mxu1 }
0x2a85   : > { %v18540_v39 = vpop.f32.mrb[122].mxu1 }
0x2a86   : > { %v18542_v58 = vpop.f32.mrb[123].mxu1 }
0x2a8d   : > { %v18544_v1 = vpop.f32.mrb[124].mxu1 }
0x2a8e   : > { %v18546_v31 = vpop.f32.mrb[125].mxu1 }
0x2a91   : > { %v14381_v47 = vpop.f32.mrb[126].mxu1 }
0x2a92   : > { %v8164_v4 = vmul.f32 0.35355338, %v14381_v47  ;;  %v8134_v28 = vpop.f32.mrb[127].mxu1 }
0x2a93   : > { %v8163_v62 = vmul.f32 0.35355338, %v8134_v28 }
0x2a94   : > { %v8170_v55 = vadd.f32 %v8164_v4, %v18357_v11 }
0x2a95   : > { %v8169_v24 = vadd.f32 %v8163_v62, %v18360_v57  ;;  %v14384_v36 = vpop.f32.mrb[128].mxu1 }
0x2a96   : > { %v8166_v42 = vmul.f32 0.35355338, %v14384_v36  ;;  %v8144_v32 = vpop.f32.mrb[129].mxu1  ;;  %v8178_v46 = vsel %vm1539_vm3, %v8170_v55, -inf }
0x2a97   : > { %v8165_v8 = vmul.f32 0.35355338, %v8144_v32  ;;  %8179 = vmax.xlane.f32.xlu0 %v8178_v46  ;;  %v8175_v26 = vsel %vm1539_vm3, %v8169_v24, -inf }
0x2a98   : > { %v8172_v56 = vadd.f32 %v8166_v42, %v18365_v21  ;;  %8176 = vmax.xlane.f32.xlu1 %v8175_v26 }
0x2a99   : > { %v8171_v45 = vadd.f32 %v8165_v8, %v18368_v18  ;;  %v14387_v19 = vpop.f32.mrb[130].mxu1 }
0x2a9a   : > { %v8168_v23 = vmul.f32 0.35355338, %v14387_v19  ;;  %v8154_v2 = vpop.f32.mrb[131].mxu1  ;;  %v8184_v11 = vsel %vm1539_vm3, %v8172_v56, -inf }
0x2a9b   : > { %v8167_v57 = vmul.f32 0.35355338, %v8154_v2  ;;  %v8181_v9 = vsel %vm1539_vm3, %v8171_v45, -inf }
0x2a9c   : > { %v8174_v47 = vadd.f32 %v8168_v23, %v18375_v0  ;;  %8185 = vmax.xlane.f32.xlu1 %v8184_v11  ;;  %8182 = vmax.xlane.f32.xlu0 %v8181_v9 }
0x2a9d   : > { %v8173_v4 = vadd.f32 %v8167_v57, %v18378_v13 }
0x2a9e   : > { %v8190_v28 = vsel %vm1539_vm3, %v8174_v47, -inf }
0x2a9f   : > { %v8187_v21 = vsel %vm1539_vm3, %v8173_v4, -inf }
0x2aa0   : > { %8191 = vmax.xlane.f32.xlu1 %v8190_v28  ;;  %8188 = vmax.xlane.f32.xlu0 %v8187_v21 }
0x2ab1   : > { %15967 = vrot.lane.b32.xlu1 %v18308_v33, %s20080_s26 }
0x2ab6   : > { %15962 = vrot.lane.b32.xlu0 %v18328_v40, %s20094_s15  ;;  %s20095_s15 = smov 8  }
0x2b24   : > { %v8180_v18 = vpop.xlane.xlu0 %8179 }
0x2b25   : > { %v8194_v62 = vsub.f32 %v8170_v55, %v8180_v18  ;;  %v8177_v36 = vpop.xlane.xlu1 %8176 }
0x2b26   : > { %v8193_v0 = vsub.f32 %v8169_v24, %v8177_v36 }
0x2b27   : > { %v8201_v42 = vmul.f32 1.442695, %v8194_v62 }
0x2b28   : > { %v8199_v32 = vmul.f32 1.442695, %v8193_v0 }
0x2b29   : > { %16401 = vpow2.f32 %v8201_v42  ;;  %v8186_v13 = vpop.xlane.xlu1 %8185  ;;  %v8183_v46 = vpop.xlane.xlu0 %8182 }
0x2b2a   : > { %16403 = vpow2.f32 %v8199_v32  ;;  %v8195_v36 = vsub.f32 %v8171_v45, %v8183_v46  ;;  %v8196_v0 = vsub.f32 %v8172_v56, %v8186_v13 }
0x2b2c   : > { %v8203_v42 = vmul.f32 1.442695, %v8195_v36 }
0x2b2d   : > { %v8192_v8 = vpop.xlane.xlu1 %8191  ;;  %v8189_v26 = vpop.xlane.xlu0 %8188 }
0x2b2e   : > { %v8198_v32 = vsub.f32 %v8174_v47, %v8192_v8  ;;  %16405 = vpow2.f32 %v8203_v42 }
0x2b31   : > { %v15968_v19 = vpop.permute.xlu1 %15967  ;;  %v15963_v23 = vpop.permute.xlu0 %15962 }
0x2b32   : > { %v15965_v2 = vunpack.i.h.bf16 %v15963_v23  ;;  %v15970_v57 = vunpack.i.h.bf16 %v15968_v19  ;;  %v15969_v9 = vunpack.i.l.bf16 %v15968_v19  ;;  %v15964_v28 = vunpack.i.l.bf16 %v15963_v23 }
0x2b33   : > { %v16402_v11 = vpop.eup %16401  ;;  %v8205_v19 = vmul.f32 1.442695, %v8196_v0  ;;  %v8209_v23 = vmul.f32 1.442695, %v8198_v32 }
0x2b34   : > { %v16404_v21 = vpop.eup %16403  ;;  %v8214_v55 = vsel %vm1539_vm3, %v16402_v11, 0.0  ;;  %v15242_v18 = vpack.c.bf16 %v15965_v2, %v15964_v28  ;;  %v15246_v62 = vpack.c.bf16 %v15970_v57, %v15969_v9  ;;  %v8197_v2 = vsub.f32 %v8173_v4, %v8189_v26 }
0x2b35   : > { %8215 = vadd.xlane.f32.xlu1 %v8214_v55  ;;  %v8211_v24 = vsel %vm1539_vm3, %v16404_v21, 0.0  ;;  %16407 = vpow2.f32 %v8205_v19 }
0x2b36   : > { %8212 = vadd.xlane.f32.xlu0 %v8211_v24  ;;  %15243 = vmatprep.subr.bf16.mxu0 %v15242_v18  ;;  %16409 = vpow2.f32 %v8209_v23  ;;  %v8207_v57 = vmul.f32 1.442695, %v8197_v2 }
0x2b37   : > { %15245 = vmatpush3.bf16.msra.mxu0 %v15242_v18 }
0x2b38   : > { %15248 = vmatprep.subr.msk.bf16.mxu0 %vm17075_vm5, %v15246_v62  ;;  %16411 = vpow2.f32 %v8207_v57  ;;  %v16406_v9 = vpop.eup %16405 }
0x2b39   : > { %v8217_v55 = vsel %vm1539_vm3, %v16406_v9, 0.0 }
0x2b3f   : > { %v16408_v28 = vpop.eup %16407 }
0x2b40   : > { %v8220_v24 = vsel %vm1539_vm3, %v16408_v28, 0.0 }
0x2b46   : > { %8372 = vrot.lane.b32.xlu1 %v18302_v54, %s20081_s0  ;;  %v16410_v54 = vpop.eup %16409 }
0x2b47   : > { %v8226_v56 = vsel %vm1539_vm3, %v16410_v54, 0.0  ;;  %v16412_v45 = vpop.eup %16411 }
0x2b48   : > { %v8223_v47 = vsel %vm1539_vm3, %v16412_v45, 0.0 }
0x2b4c   : > { %15972 = vrot.lane.b32.xlu0 %v18318_v48, %s20080_s26 }
0x2b6a   : > { %8218 = vadd.xlane.f32.xlu1 %v8217_v55 }
0x2b6b   : > { %8221 = vadd.xlane.f32.xlu0 %v8220_v24 }
0x2b6e   : > { %8227 = vadd.xlane.f32.xlu1 %v8226_v56 }
0x2b72   : > { %8224 = vadd.xlane.f32.xlu1 %v8223_v47 }
0x2b81   : > { %15977 = vrot.lane.b32.xlu0 %v18328_v40, %s20080_s26 }
0x2b83   : > { %8376 = vrot.lane.b32.xlu1 %v18312_v6, %s20081_s0 }
0x2b85   : > { %8374 = vrot.lane.b32.xlu0 %v18300_v30, %s20081_s0 }
0x2b87   : > { %8380 = vrot.lane.b32.xlu1 %v18322_v3, %s20081_s0 }
0x2b89   : > { %8378 = vrot.lane.b32.xlu0 %v18310_v34, %s20081_s0 }
0x2b8d   : > { %8382 = vrot.lane.b32.xlu0 %v18320_v17, %s20081_s0 }
0x2bc2   : > { %v8216_v4 = vpop.xlane.xlu1 %8215 }
0x2bc3   : > { %16413 = vrcp.f32 %v8216_v4  ;;  %v8213_v13 = vpop.xlane.xlu0 %8212 }
0x2bc4   : > { %16415 = vrcp.f32 %v8213_v13 }
0x2bc6   : > { %v8373_v34 = vpop.permute.xlu1 %8372 }
0x2bc7   : > { %v15973_v46 = vpop.permute.xlu0 %15972 }
0x2bc8   : > { %v15975_v6 = vunpack.i.h.bf16 %v15973_v46  ;;  %v15974_v18 = vunpack.i.l.bf16 %v15973_v46 }
0x2bca   : > { %v15252_v3 = vpack.c.bf16 %v15975_v6, %v15974_v18 }
0x2bcd   : > { %v16414_v8 = vpop.eup %16413 }
0x2bce   : > { %v16416_v26 = vpop.eup %16415  ;;  %v8236_v30 = vmul.f32 %v16414_v8, %v16402_v11 }
0x2bcf   : > { %v8235_v36 = vmul.f32 %v16416_v26, %v16404_v21 }
0x2bd1   : > { %14400 = vmatprep.mubr.msk.f32.mxu0 %vm1539_vm3, %v8235_v36 }
0x2bd2   : > { %14401 = vmatmul.mubr.msk.f32.vlgmr.msra.gmra.mrb[90].mxu0 %vm1539_vm3, %v8236_v30 }
0x2bd3   : > { %15251 = vmatpush3.bf16.xpose.msk.msra.mxu0 %vm17075_vm5, %v15246_v62 }
0x2bd4   : > { %15254 = vmatprep.subr.msk.bf16.mxu0 %vm17075_vm5, %v15252_v3 }
0x2bdb   : > { %15257 = vmatpush3.bf16.xpose.msk.msra.mxu0 %vm17075_vm5, %v15252_v3 }
0x2bf7   : > { %v8219_v17 = vpop.xlane.xlu1 %8218 }
0x2bf8   : > { %16417 = vrcp.f32 %v8219_v17  ;;  %v8222_v0 = vpop.xlane.xlu0 %8221 }
0x2bf9   : > { %16419 = vrcp.f32 %v8222_v0  ;;  %v16647_v0 = vld [vmem:[%s20090_s7 + $0x8] sm:$0xff] }
0x2bfb   : > { %v8228_v11 = vpop.xlane.xlu1 %8227 }
0x2bfc   : > { %v15978_v21 = vpop.permute.xlu0 %15977  ;;  %16421 = vrcp.f32 %v8228_v11 }
0x2bfd   : > { %v15980_v42 = vunpack.i.h.bf16 %v15978_v21  ;;  %v15979_v32 = vunpack.i.l.bf16 %v15978_v21  ;;  %v16648_v21 = vld [vmem:[%s20090_s7] sm:$0xff] }
0x2bff   : > { %v15258_v19 = vpack.c.bf16 %v15980_v42, %v15979_v32  ;;  %v8225_v23 = vpop.xlane.xlu1 %8224 }
0x2c00   : > { %16423 = vrcp.f32 %v8225_v23  ;;  %v8375_v13 = vpop.permute.xlu0 %8374 }
0x2c01   : > { %15260 = vmatprep.subr.msk.bf16.mxu0 %vm17075_vm5, %v15258_v19 }
0x2c02   : > { %v16418_v62 = vpop.eup %16417  ;;  %15263 = vmatpush3.bf16.xpose.msk.msra.mxu0 %vm17075_vm5, %v15258_v19 }
0x2c03   : > { %v16420_v2 = vpop.eup %16419  ;;  %v8237_v57 = vmul.f32 %v16418_v62, %v16406_v9  ;;  %v8377_v46 = vpop.permute.xlu1 %8376 }
0x2c04   : > { %v8238_v55 = vmul.f32 %v16420_v2, %v16408_v28  ;;  %v8379_v9 = vpop.permute.xlu0 %8378 }
0x2c05   : > { %14403 = vmatprep.mubr.msk.f32.mxu0 %vm1539_vm3, %v8237_v57 }
0x2c06   : > { %14404 = vmatmul.mubr.msk.f32.gmra.mrb[92].mxu0 %vm1539_vm3, %v8238_v55  ;;  %v16422_v24 = vpop.eup %16421  ;;  %v16649_v55 = vld [vmem:[%s20090_s7 + $0x18] sm:$0xff] }
0x2c07   : > { %v8240_v4 = vmul.f32 %v16422_v24, %v16410_v54  ;;  %v8381_v28 = vpop.permute.xlu1 %8380 }
0x2c08   : > { %v8383_v54 = vpop.permute.xlu0 %8382 }
0x2c0a   : > { %v16424_v56 = vpop.eup %16423 }
0x2c0b   : > { %v8239_v47 = vmul.f32 %v16424_v56, %v16412_v45  ;;  %v16650_v56 = vld [vmem:[%s20090_s7 + $0x10] sm:$0xff] }
0x2c0d   : > { %14406 = vmatprep.mubr.msk.f32.mxu0 %vm1539_vm3, %v8239_v47 }
0x2c0e   : > { %14407 = vmatmul.mubr.msk.f32.gmra.mrb[94].mxu0 %vm1539_vm3, %v8240_v4 }
0x2c0f   : > { %14421 = vmatprep.mubr.msk.f32.mxu0 %vm1308_vm2, %v8373_v34 }
0x2c12   : > { %14422 = vmatmul.mubr.msk.f32.vlgmr.msra.gmra.mrb[96].mxu0 %vm1308_vm2, %v8375_v13 }
0x2c13   : > { %14424 = vmatprep.mubr.msk.f32.mxu0 %vm1308_vm2, %v8377_v46 }
0x2c16   : > { %14425 = vmatmul.mubr.msk.f32.gmra.mrb[98].mxu0 %vm1308_vm2, %v8379_v9 }
0x2c17   : > { %14427 = vmatprep.mubr.msk.f32.mxu0 %vm1308_vm2, %v8381_v28 }
0x2c1a   : > { %14428 = vmatmul.mubr.msk.f32.gmra.mrb[100].mxu0 %vm1308_vm2, %v8383_v54 }
0x2ca5   : > { %v18610_v45 = vpop.f32.mrb[90].mxu0 }
0x2ca6   : > { %v18612_v8 = vpop.f32.mrb[91].mxu0 }
0x2cd9   : > { %v18614_v26 = vpop.f32.mrb[92].mxu0 }
0x2cda   : > { %v18616_v6 = vpop.f32.mrb[93].mxu0 }
0x2ce1   : > { %v18618_v18 = vpop.f32.mrb[94].mxu0 }
0x2ce2   : > { %v18620_v36 = vpop.f32.mrb[95].mxu0 }
0x2ce5   : > { %v14423_v30 = vpop.f32.mrb[96].mxu0 }
0x2ce6   : > { %v8516_v3 = vmul.f32 0.35355338, %v14423_v30  ;;  %v8486_v34 = vpop.f32.mrb[97].mxu0  ;;  %v16651_v30 = vld [vmem:[%s20090_s7 + $0x28] sm:$0xff] }
0x2ce7   : > { %v8515_v17 = vmul.f32 0.35355338, %v8486_v34  ;;  %v16652_v34 = vld [vmem:[%s20090_s7 + $0x20] sm:$0xff] }
0x2ce8   : > { %v8522_v11 = vadd.f32 %v16647_v0, %v8516_v3 }
0x2ce9   : > { %v8521_v42 = vadd.f32 %v16648_v21, %v8515_v17  ;;  %v14426_v32 = vpop.f32.mrb[98].mxu0 }
0x2cea   : > { %v8518_v19 = vmul.f32 0.35355338, %v14426_v32  ;;  %v8496_v23 = vpop.f32.mrb[99].mxu0  ;;  %v8530_v62 = vsel %vm1539_vm3, %v8522_v11, -inf }
0x2ceb   : > { %v8517_v2 = vmul.f32 0.35355338, %v8496_v23  ;;  %8531 = vmax.xlane.f32.xlu0 %v8530_v62  ;;  %v8527_v57 = vsel %vm1539_vm3, %v8521_v42, -inf }
0x2cec   : > { %v8524_v24 = vadd.f32 %v16649_v55, %v8518_v19  ;;  %8528 = vmax.xlane.f32.xlu1 %v8527_v57 }
0x2ced   : > { %v8523_v47 = vadd.f32 %v16650_v56, %v8517_v2  ;;  %v14429_v4 = vpop.f32.mrb[100].mxu0 }
0x2cee   : > { %v8520_v13 = vmul.f32 0.35355338, %v14429_v4  ;;  %v8506_v46 = vpop.f32.mrb[101].mxu0  ;;  %v8536_v9 = vsel %vm1539_vm3, %v8524_v24, -inf }
0x2cef   : > { %v8519_v28 = vmul.f32 0.35355338, %v8506_v46  ;;  %v8533_v54 = vsel %vm1539_vm3, %v8523_v47, -inf }
0x2cf0   : > { %v8526_v3 = vadd.f32 %v16651_v30, %v8520_v13  ;;  %8537 = vmax.xlane.f32.xlu1 %v8536_v9  ;;  %8534 = vmax.xlane.f32.xlu0 %v8533_v54 }
0x2cf1   : > { %v8525_v17 = vadd.f32 %v16652_v34, %v8519_v28 }
0x2cf2   : > { %v8542_v0 = vsel %vm1539_vm3, %v8526_v3, -inf }
0x2cf3   : > { %v8539_v21 = vsel %vm1539_vm3, %v8525_v17, -inf }
0x2cf4   : > { %8543 = vmax.xlane.f32.xlu1 %v8542_v0  ;;  %8540 = vmax.xlane.f32.xlu0 %v8539_v21 }
0x2d78   : > { %v8532_v32 = vpop.xlane.xlu0 %8531 }
0x2d79   : > { %v8546_v19 = vsub.f32 %v8522_v11, %v8532_v32  ;;  %v8529_v23 = vpop.xlane.xlu1 %8528 }
0x2d7a   : > { %v8545_v62 = vsub.f32 %v8521_v42, %v8529_v23 }
0x2d7b   : > { %v8553_v2 = vmul.f32 1.442695, %v8546_v19 }
0x2d7c   : > { %v8551_v57 = vmul.f32 1.442695, %v8545_v62 }
0x2d7d   : > { %16425 = vpow2.f32 %v8553_v2  ;;  %v8538_v55 = vpop.xlane.xlu1 %8537  ;;  %v8535_v56 = vpop.xlane.xlu0 %8534 }
0x2d7e   : > { %16427 = vpow2.f32 %v8551_v57  ;;  %v8548_v4 = vsub.f32 %v8524_v24, %v8538_v55  ;;  %v8547_v13 = vsub.f32 %v8523_v47, %v8535_v56 }
0x2d80   : > { %v8557_v46 = vmul.f32 1.442695, %v8548_v4  ;;  %v8555_v9 = vmul.f32 1.442695, %v8547_v13 }
0x2d81   : > { %v8544_v28 = vpop.xlane.xlu1 %8543  ;;  %v8541_v54 = vpop.xlane.xlu0 %8540 }
0x2d82   : > { %16429 = vpow2.f32 %v8557_v46  ;;  %v8550_v30 = vsub.f32 %v8526_v3, %v8544_v28  ;;  %v8549_v34 = vsub.f32 %v8525_v17, %v8541_v54 }
0x2d83   : > { %16431 = vpow2.f32 %v8555_v9 }
0x2d84   : > { %v8561_v0 = vmul.f32 1.442695, %v8550_v30  ;;  %v8559_v11 = vmul.f32 1.442695, %v8549_v34 }
0x2d86   : > { %16433 = vpow2.f32 %v8561_v0 }
0x2d87   : > { %v18634_v42 = vpop.eup %16425  ;;  %16435 = vpow2.f32 %v8559_v11 }
0x2d88   : > { %v18636_v21 = vpop.eup %16427  ;;  %v8566_v24 = vsel %vm1539_vm3, %v18634_v42, 0.0 }
0x2d89   : > { %8567 = vadd.xlane.f32.xlu1 %v8566_v24  ;;  %v8563_v47 = vsel %vm1539_vm3, %v18636_v21, 0.0 }
0x2d8a   : > { %8564 = vadd.xlane.f32.xlu0 %v8563_v47 }
0x2d8c   : > { %v18642_v32 = vpop.eup %16429 }
0x2d8d   : > { %v18644_v3 = vpop.eup %16431  ;;  %v8572_v17 = vsel %vm1539_vm3, %v18642_v32, 0.0 }
0x2d8e   : > { %8573 = vadd.xlane.f32.xlu1 %v8572_v17  ;;  %v8569_v19 = vsel %vm1539_vm3, %v18644_v3, 0.0 }
0x2d8f   : > { %8570 = vadd.xlane.f32.xlu0 %v8569_v19 }
0x2d90   : > { %v18650_v23 = vpop.eup %16433 }
0x2d91   : > { %v18652_v62 = vpop.eup %16435  ;;  %v8578_v2 = vsel %vm1539_vm3, %v18650_v23, 0.0 }
0x2d92   : > { %8579 = vadd.xlane.f32.xlu1 %v8578_v2  ;;  %v8575_v57 = vsel %vm1539_vm3, %v18652_v62, 0.0 }
0x2d93   : > { %8576 = vadd.xlane.f32.xlu0 %v8575_v57 }
0x2da3   : > { %15987 = vrot.lane.b32.xlu1 %v18318_v48, %s20082_s23 }
0x2da7   : > { %15992 = vrot.lane.b32.xlu1 %v18328_v40, %s20082_s23 }
0x2da9   : > { %15982 = vrot.lane.b32.xlu0 %v18308_v33, %s20082_s23  ;;  %s20098_s23 = sld [smem:[#allocation15_spill]] }
0x2dab   : > { %8750 = vrot.lane.b32.xlu1 %v18444_v20, %s20095_s15 }
0x2dad   : > { %8748 = vrot.lane.b32.xlu0 %v18446_v44, %s20095_s15 }
0x2daf   : > { %8822 = vrot.lane.b32.xlu1 %v18444_v20, %s20096_s16 }
0x2db1   : > { %8820 = vrot.lane.b32.xlu0 %v18446_v44, %s20096_s16 }
0x2db3   : > { %8894 = vrot.lane.b32.xlu1 %v18444_v20, %s20097_s11 }
0x2db5   : > { %8892 = vrot.lane.b32.xlu0 %v18446_v44, %s20097_s11 }
0x2db7   : > { %8754 = vrot.lane.b32.xlu1 %v18448_v43, %s20095_s15 }
0x2db9   : > { %8752 = vrot.lane.b32.xlu0 %v18450_v15, %s20095_s15 }
0x2dbb   : > { %8826 = vrot.lane.b32.xlu1 %v18448_v43, %s20096_s16 }
0x2dbd   : > { %8824 = vrot.lane.b32.xlu0 %v18450_v15, %s20096_s16 }
0x2dbf   : > { %8898 = vrot.lane.b32.xlu1 %v18448_v43, %s20097_s11 }
0x2dc1   : > { %8896 = vrot.lane.b32.xlu0 %v18450_v15, %s20097_s11 }
0x2dc3   : > { %8758 = vrot.lane.b32.xlu1 %v18452_v5, %s20095_s15 }
0x2dc5   : > { %8756 = vrot.lane.b32.xlu0 %v18454_v27, %s20095_s15 }
0x2dc7   : > { %8830 = vrot.lane.b32.xlu1 %v18452_v5, %s20096_s16 }
0x2dc9   : > { %8828 = vrot.lane.b32.xlu0 %v18454_v27, %s20096_s16 }
0x2dcb   : > { %8902 = vrot.lane.b32.xlu1 %v18452_v5, %s20097_s11 }
0x2dcd   : > { %8900 = vrot.lane.b32.xlu0 %v18454_v27, %s20097_s11 }
0x2dcf   : > { %8762 = vrot.lane.b32.xlu1 %v18536_v41, %s20095_s15 }
0x2dd1   : > { %8760 = vrot.lane.b32.xlu0 %v18538_v52, %s20095_s15 }
0x2dd3   : > { %8834 = vrot.lane.b32.xlu1 %v18536_v41, %s20096_s16 }
0x2dd5   : > { %8832 = vrot.lane.b32.xlu0 %v18538_v52, %s20096_s16 }
0x2dd7   : > { %8906 = vrot.lane.b32.xlu1 %v18536_v41, %s20097_s11 }
0x2dd9   : > { %8904 = vrot.lane.b32.xlu0 %v18538_v52, %s20097_s11 }
0x2ddb   : > { %8766 = vrot.lane.b32.xlu1 %v18540_v39, %s20095_s15 }
0x2ddd   : > { %8764 = vrot.lane.b32.xlu0 %v18542_v58, %s20095_s15 }
0x2ddf   : > { %8838 = vrot.lane.b32.xlu1 %v18540_v39, %s20096_s16 }
0x2de1   : > { %8836 = vrot.lane.b32.xlu0 %v18542_v58, %s20096_s16 }
0x2de3   : > { %8910 = vrot.lane.b32.xlu1 %v18540_v39, %s20097_s11 }
0x2de5   : > { %8908 = vrot.lane.b32.xlu0 %v18542_v58, %s20097_s11 }
0x2de7   : > { %8770 = vrot.lane.b32.xlu1 %v18544_v1, %s20095_s15 }
0x2de9   : > { %8768 = vrot.lane.b32.xlu0 %v18546_v31, %s20095_s15 }
0x2deb   : > { %8842 = vrot.lane.b32.xlu1 %v18544_v1, %s20096_s16 }
0x2ded   : > { %8840 = vrot.lane.b32.xlu0 %v18546_v31, %s20096_s16 }
0x2def   : > { %8914 = vrot.lane.b32.xlu1 %v18544_v1, %s20097_s11 }
0x2df1   : > { %8912 = vrot.lane.b32.xlu0 %v18546_v31, %s20097_s11 }
0x2df3   : > { %8774 = vrot.lane.b32.xlu1 %v18610_v45, %s20095_s15 }
0x2df5   : > { %8772 = vrot.lane.b32.xlu0 %v18612_v8, %s20095_s15 }
0x2df7   : > { %8846 = vrot.lane.b32.xlu1 %v18610_v45, %s20096_s16 }
0x2df9   : > { %8844 = vrot.lane.b32.xlu0 %v18612_v8, %s20096_s16 }
0x2dfb   : > { %8918 = vrot.lane.b32.xlu1 %v18610_v45, %s20097_s11 }
0x2dfd   : > { %8916 = vrot.lane.b32.xlu0 %v18612_v8, %s20097_s11 }
0x2dff   : > { %8778 = vrot.lane.b32.xlu1 %v18614_v26, %s20095_s15 }
0x2e01   : > { %8776 = vrot.lane.b32.xlu0 %v18616_v6, %s20095_s15 }
0x2e03   : > { %8850 = vrot.lane.b32.xlu1 %v18614_v26, %s20096_s16 }
0x2e05   : > { %8848 = vrot.lane.b32.xlu0 %v18616_v6, %s20096_s16 }
0x2e07   : > { %8922 = vrot.lane.b32.xlu1 %v18614_v26, %s20097_s11 }
0x2e09   : > { %8920 = vrot.lane.b32.xlu0 %v18616_v6, %s20097_s11 }
0x2e0b   : > { %8782 = vrot.lane.b32.xlu1 %v18618_v18, %s20095_s15 }
0x2e0d   : > { %8780 = vrot.lane.b32.xlu0 %v18620_v36, %s20095_s15 }
0x2e0f   : > { %8854 = vrot.lane.b32.xlu1 %v18618_v18, %s20096_s16 }
0x2e11   : > { %8852 = vrot.lane.b32.xlu0 %v18620_v36, %s20096_s16 }
0x2e13   : > { %8926 = vrot.lane.b32.xlu1 %v18618_v18, %s20097_s11 }
0x2e15   : > { %8924 = vrot.lane.b32.xlu0 %v18620_v36, %s20097_s11 }
0x2e16   : > { %v8568_v33 = vpop.xlane.xlu1 %8567 }
0x2e17   : > { %v8565_v48 = vpop.xlane.xlu0 %8564 }
0x2e18   : > { %16437 = vrcp.f32 %v8565_v48  ;;  %v9060_v48 = vld [vmem:[%s20098_s23] sm:$0xff] }
0x2e19   : > { %16439 = vrcp.f32 %v8568_v33 }
0x2e1b   : > { %v8574_v40 = vpop.xlane.xlu1 %8573 }
0x2e1c   : > { %v8571_v55 = vpop.xlane.xlu0 %8570 }
0x2e1d   : > { %16441 = vrcp.f32 %v8571_v55 }
0x2e1e   : > { %16443 = vrcp.f32 %v8574_v40 }
0x2e1f   : > { %v8580_v56 = vpop.xlane.xlu1 %8579 }
0x2e20   : > { %v8577_v4 = vpop.xlane.xlu0 %8576 }
0x2e21   : > { %16445 = vrcp.f32 %v8577_v4 }
0x2e22   : > { %v16438_v13 = vpop.eup %16437  ;;  %16447 = vrcp.f32 %v8580_v56 }
0x2e23   : > { %v15988_v46 = vpop.permute.xlu1 %15987  ;;  %v8587_v9 = vmul.f32 %v16438_v13, %v18636_v21  ;;  %v9061_v13 = vld [vmem:[%s20098_s23 + $0x8] sm:$0xff] }
0x2e24   : > { %v15983_v28 = vpop.permute.xlu0 %15982  ;;  %v15990_v54 = vunpack.i.h.bf16 %v15988_v46  ;;  %v15989_v30 = vunpack.i.l.bf16 %v15988_v46  ;;  %v15276_v46 = vpack.c.bf16 %v9061_v13, %v9060_v48 }
0x2e25   : > { %v15985_v34 = vunpack.i.h.bf16 %v15983_v28  ;;  %v15984_v0 = vunpack.i.l.bf16 %v15983_v28  ;;  %14442 = vmatprep.mubr.msk.f32.mxu1 %vm1539_vm3, %v8587_v9  ;;  %v16440_v9 = vpop.eup %16439 }
0x2e26   : > { %v15268_v2 = vpack.c.bf16 %v15990_v54, %v15989_v30  ;;  %v9063_v54 = vld [vmem:[%s20098_s23 + $0x18] sm:$0xff]  ;;  %v8588_v30 = vmul.f32 %v16440_v9, %v18634_v42  ;;  %v7160_v9 = vld [vmem:[%s20099_s18] sm:$0xff] }
0x2e27   : > { %v15993_v11 = vpop.permute.xlu1 %15992  ;;  %v15264_v24 = vpack.c.bf16 %v15985_v34, %v15984_v0  ;;  %v9062_v34 = vld [vmem:[%s20098_s23 + $0x10] sm:$0xff]  ;;  %v16442_v40 = vpop.eup %16441 }
0x2e28   : > { %v8749_v47 = vpop.permute.xlu0 %8748  ;;  %v15995_v17 = vunpack.i.h.bf16 %v15993_v11  ;;  %v15994_v19 = vunpack.i.l.bf16 %v15993_v11  ;;  %v15280_v0 = vpack.c.bf16 %v9063_v54, %v9062_v34  ;;  %v16444_v11 = vpop.eup %16443  ;;  %v8589_v56 = vmul.f32 %v16442_v40, %v18644_v3  ;;  %v7161_v54 = vld [vmem:[%s20099_s18 + $0x8] sm:$0xff] }
0x2e29   : > { %15265 = vmatprep.subr.bf16.mxu1 %v15264_v24  ;;  %v8590_v42 = vmul.f32 %v16444_v11, %v18642_v32 }
0x2e2a   : > { %15267 = vmatpush3.bf16.msra.mxu1 %v15264_v24  ;;  %v15272_v33 = vpack.c.bf16 %v15995_v17, %v15994_v19  ;;  %v8964_v19 = vsel %vm1308_vm2, %v18446_v44, %v8749_v47 }
0x2e2b   : > { %15269 = vmatprep.subr.bf16.mxu1 %v15268_v2  ;;  %v8751_v21 = vpop.permute.xlu1 %8750  ;;  %v16446_v17 = vpop.eup %16445 }
0x2e2c   : > { %v8821_v57 = vpop.permute.xlu0 %8820  ;;  %v16448_v48 = vpop.eup %16447  ;;  %v8591_v3 = vmul.f32 %v16446_v17, %v18652_v62  ;;  %v8965_v44 = vsel %vm1308_vm2, %v18444_v20, %v8751_v21  ;;  %v7162_v20 = vld [vmem:[%s20099_s18 + $0x10] sm:$0xff] }
0x2e2d   : > { %v8988_v13 = vsel %vm3492_vm6, %v8964_v19, %v8821_v57  ;;  %v8592_v62 = vmul.f32 %v16448_v48, %v18650_v23  ;;  %v7164_v48 = vld [vmem:[%s20099_s18 + $0x20] sm:$0xff] }
0x2e2e   : > { %15271 = vmatpush3.bf16.msra.mxu1 %v15268_v2 }
0x2e2f   : > { %15273 = vmatprep.subr.bf16.mxu1 %v15272_v33  ;;  %v8823_v55 = vpop.permute.xlu1 %8822 }
0x2e30   : > { %v8893_v28 = vpop.permute.xlu0 %8892  ;;  %v8989_v32 = vsel %vm3492_vm6, %v8965_v44, %v8823_v55  ;;  %v7165_v44 = vld [vmem:[%s20099_s18 + $0x28] sm:$0xff] }
0x2e31   : > { %v9012_v34 = vsel %vm3499_vm7, %v8988_v13, %v8893_v28 }
0x2e32   : > { %15275 = vmatpush3.bf16.msra.mxu1 %v15272_v33 }
0x2e33   : > { %v8895_v4 = vpop.permute.xlu1 %8894  ;;  %15277 = vmatprep.subr.bf16.mxu1 %v15276_v46 }
0x2e34   : > { %v8753_v24 = vpop.permute.xlu0 %8752  ;;  %v9013_v28 = vsel %vm3499_vm7, %v8989_v32, %v8895_v4 }
0x2e35   : > { %14443 = vmatmul.mubr.msk.f32.vlgmr.msra.gmra.mrb[132].mxu1 %vm1539_vm3, %v8588_v30  ;;  %v8966_v47 = vsel %vm1308_vm2, %v18450_v15, %v8753_v24  ;;  %v7163_v15 = vld [vmem:[%s20099_s18 + $0x18] sm:$0xff]  ;;  %v9037_v23 = vmul.f32 %v9013_v28, %v7161_v54 }
0x2e36   : > { %14445 = vmatprep.mubr.msk.f32.mxu1 %vm1539_vm3, %v8589_v56  ;;  %15279 = vmatpush3.bf16.msra.mxu1 %v15276_v46  ;;  %v9036_v46 = vmul.f32 %v9012_v34, %v7160_v9 }
0x2e37   : > { %v8755_v2 = vpop.permute.xlu1 %8754  ;;  %15281 = vmatprep.subr.bf16.mxu1 %v15280_v0 }
0x2e38   : > { %v8825_v33 = vpop.permute.xlu0 %8824  ;;  %v8967_v55 = vsel %vm1308_vm2, %v18448_v43, %v8755_v2 }
0x2e39   : > { %14446 = vmatmul.mubr.msk.f32.gmra.mrb[134].mxu1 %vm1539_vm3, %v8590_v42  ;;  %v8990_v40 = vsel %vm3492_vm6, %v8966_v47, %v8825_v33 }
0x2e3a   : > { %14448 = vmatprep.mubr.msk.f32.mxu1 %vm1539_vm3, %v8591_v3  ;;  %15283 = vmatpush3.bf16.msra.mxu1 %v15280_v0 }
0x2e3b   : > { %v8827_v57 = vpop.permute.xlu1 %8826 }
0x2e3c   : > { %v8897_v30 = vpop.permute.xlu0 %8896  ;;  %v8991_v0 = vsel %vm3492_vm6, %v8967_v55, %v8827_v57 }
0x2e3d   : > { %v9014_v21 = vsel %vm3499_vm7, %v8990_v40, %v8897_v30  ;;  %14449 = vmatmul.mubr.msk.f32.gmra.mrb[136].mxu1 %vm1539_vm3, %v8592_v62  ;;  %v7166_v40 = vld [vmem:[%s20099_s18 + $0x30] sm:$0xff] }
0x2e3e   : > { %14459 = vmatprep.mubr.msk.f32.mxu1 %vm1898_vm4, %v9036_v46  ;;  %v9038_v4 = vmul.f32 %v9014_v21, %v7162_v20 }
0x2e3f   : > { %v8899_v11 = vpop.permute.xlu1 %8898 }
0x2e40   : > { %v9015_v24 = vsel %vm3499_vm7, %v8991_v0, %v8899_v11  ;;  %v8757_v56 = vpop.permute.xlu0 %8756 }
0x2e41   : > { %v9039_v17 = vmul.f32 %v9015_v24, %v7163_v15  ;;  %14460 = vmatmul.mubr.msk.f32.vlgmr.msra.gmra.mrb[138].mxu1 %vm1898_vm4, %v9037_v23  ;;  %v8968_v2 = vsel %vm1308_vm2, %v18454_v27, %v8757_v56  ;;  %v7167_v23 = vld [vmem:[%s20099_s18 + $0x38] sm:$0xff] }
0x2e42   : > { %14462 = vmatprep.mubr.msk.f32.mxu1 %vm1898_vm4, %v9038_v4 }
0x2e43   : > { %v8759_v19 = vpop.permute.xlu1 %8758 }
0x2e44   : > { %v8829_v43 = vpop.permute.xlu0 %8828  ;;  %v8969_v9 = vsel %vm1308_vm2, %v18452_v5, %v8759_v19 }
0x2e45   : > { %14463 = vmatmul.mubr.msk.f32.gmra.mrb[140].mxu1 %vm1898_vm4, %v9039_v17  ;;  %v8992_v13 = vsel %vm3492_vm6, %v8968_v2, %v8829_v43  ;;  %v7168_v43 = vld [vmem:[%s20099_s18 + $0x40] sm:$0xff] }
0x2e47   : > { %v8831_v42 = vpop.permute.xlu1 %8830 }
0x2e48   : > { %v8901_v33 = vpop.permute.xlu0 %8900  ;;  %v8993_v32 = vsel %vm3492_vm6, %v8969_v9, %v8831_v42 }
0x2e49   : > { %v9016_v3 = vsel %vm3499_vm7, %v8992_v13, %v8901_v33 }
0x2e4a   : > { %v9040_v34 = vmul.f32 %v9016_v3, %v7164_v48  ;;  %v7169_v3 = vld [vmem:[%s20099_s18 + $0x48] sm:$0xff] }
0x2e4b   : > { %v8903_v47 = vpop.permute.xlu1 %8902 }
0x2e4c   : > { %v9017_v57 = vsel %vm3499_vm7, %v8993_v32, %v8903_v47  ;;  %v8761_v27 = vpop.permute.xlu0 %8760  ;;  %14465 = vmatprep.mubr.msk.f32.mxu1 %vm1898_vm4, %v9040_v34 }
0x2e4d   : > { %v9041_v62 = vmul.f32 %v9017_v57, %v7165_v44  ;;  %v8970_v28 = vsel %vm1308_vm2, %v18538_v52, %v8761_v27 }
0x2e4f   : > { %v8763_v46 = vpop.permute.xlu1 %8762  ;;  %14466 = vmatmul.mubr.msk.f32.gmra.mrb[142].mxu1 %vm1898_vm4, %v9041_v62  ;;  %v7170_v62 = vld [vmem:[%s20099_s18 + $0x50] sm:$0xff] }
0x2e50   : > { %v8833_v54 = vpop.permute.xlu0 %8832  ;;  %v8971_v55 = vsel %vm1308_vm2, %v18536_v41, %v8763_v46 }
0x2e51   : > { %v8994_v30 = vsel %vm3492_vm6, %v8970_v28, %v8833_v54 }
0x2e53   : > { %v8835_v5 = vpop.permute.xlu1 %8834 }
0x2e54   : > { %v8905_v20 = vpop.permute.xlu0 %8904  ;;  %v8995_v0 = vsel %vm3492_vm6, %v8971_v55, %v8835_v5 }
0x2e55   : > { %v9018_v21 = vsel %vm3499_vm7, %v8994_v30, %v8905_v20  ;;  %v7171_v30 = vld [vmem:[%s20099_s18 + $0x58] sm:$0xff] }
0x2e56   : > { %v9042_v15 = vmul.f32 %v9018_v21, %v7166_v40 }
0x2e57   : > { %v8907_v11 = vpop.permute.xlu1 %8906 }
0x2e58   : > { %v9019_v4 = vsel %vm3499_vm7, %v8995_v0, %v8907_v11  ;;  %v8765_v52 = vpop.permute.xlu0 %8764  ;;  %14468 = vmatprep.mubr.msk.f32.mxu1 %vm1898_vm4, %v9042_v15 }
0x2e59   : > { %v9043_v24 = vmul.f32 %v9019_v4, %v7167_v23  ;;  %v8972_v19 = vsel %vm1308_vm2, %v18542_v58, %v8765_v52  ;;  %v7172_v4 = vld [vmem:[%s20099_s18 + $0x60] sm:$0xff] }
0x2e5b   : > { %v8767_v56 = vpop.permute.xlu1 %8766  ;;  %14469 = vmatmul.mubr.msk.f32.gmra.mrb[144].mxu1 %vm1898_vm4, %v9043_v24 }
0x2e5c   : > { %v8837_v17 = vpop.permute.xlu0 %8836  ;;  %v8973_v13 = vsel %vm1308_vm2, %v18540_v39, %v8767_v56 }
0x2e5d   : > { %v8996_v2 = vsel %vm3492_vm6, %v8972_v19, %v8837_v17 }
0x2e5f   : > { %v8839_v41 = vpop.permute.xlu1 %8838 }
0x2e60   : > { %v8909_v42 = vpop.permute.xlu0 %8908  ;;  %v8997_v9 = vsel %vm3492_vm6, %v8973_v13, %v8839_v41  ;;  %v7173_v41 = vld [vmem:[%s20099_s18 + $0x68] sm:$0xff] }
0x2e61   : > { %v9020_v48 = vsel %vm3499_vm7, %v8996_v2, %v8909_v42 }
0x2e62   : > { %v9044_v33 = vmul.f32 %v9020_v48, %v7168_v43 }
0x2e63   : > { %v8911_v34 = vpop.permute.xlu1 %8910 }
0x2e64   : > { %v9021_v44 = vsel %vm3499_vm7, %v8997_v9, %v8911_v34  ;;  %v8769_v58 = vpop.permute.xlu0 %8768  ;;  %14471 = vmatprep.mubr.msk.f32.mxu1 %vm1898_vm4, %v9044_v33  ;;  %v7174_v9 = vld [vmem:[%s20099_s18 + $0x70] sm:$0xff] }
0x2e65   : > { %v9045_v32 = vmul.f32 %v9021_v44, %v7169_v3  ;;  %v8974_v27 = vsel %vm1308_vm2, %v18546_v31, %v8769_v58 }
0x2e67   : > { %v8771_v47 = vpop.permute.xlu1 %8770  ;;  %14472 = vmatmul.mubr.msk.f32.gmra.mrb[146].mxu1 %vm1898_vm4, %v9045_v32 }
0x2e68   : > { %v8841_v57 = vpop.permute.xlu0 %8840  ;;  %v8975_v5 = vsel %vm1308_vm2, %v18544_v1, %v8771_v47 }
0x2e69   : > { %v8998_v46 = vsel %vm3492_vm6, %v8974_v27, %v8841_v57  ;;  %v7175_v57 = vld [vmem:[%s20099_s18 + $0x78] sm:$0xff] }
0x2e6b   : > { %v8843_v39 = vpop.permute.xlu1 %8842 }
0x2e6c   : > { %v8913_v54 = vpop.permute.xlu0 %8912  ;;  %v8999_v20 = vsel %vm3492_vm6, %v8975_v5, %v8843_v39 }
0x2e6d   : > { %v9022_v28 = vsel %vm3499_vm7, %v8998_v46, %v8913_v54 }
0x2e6e   : > { %v9046_v40 = vmul.f32 %v9022_v28, %v7170_v62 }
0x2e6f   : > { %v8915_v21 = vpop.permute.xlu1 %8914 }
0x2e70   : > { %v9023_v55 = vsel %vm3499_vm7, %v8999_v20, %v8915_v21  ;;  %v8773_v31 = vpop.permute.xlu0 %8772  ;;  %14474 = vmatprep.mubr.msk.f32.mxu1 %vm1898_vm4, %v9046_v40  ;;  %v7176_v40 = vld [vmem:[%s20099_s18 + $0x80] sm:$0xff] }
0x2e71   : > { %v9047_v15 = vmul.f32 %v9023_v55, %v7171_v30  ;;  %v8976_v11 = vsel %vm1308_vm2, %v18612_v8, %v8773_v31 }
0x2e73   : > { %v8775_v23 = vpop.permute.xlu1 %8774  ;;  %14475 = vmatmul.mubr.msk.f32.gmra.mrb[148].mxu1 %vm1898_vm4, %v9047_v15  ;;  %v7177_v15 = vld [vmem:[%s20099_s18 + $0x88] sm:$0xff] }
0x2e74   : > { %v8845_v0 = vpop.permute.xlu0 %8844  ;;  %v8977_v17 = vsel %vm1308_vm2, %v18610_v45, %v8775_v23 }
0x2e75   : > { %v9000_v52 = vsel %vm3492_vm6, %v8976_v11, %v8845_v0 }
0x2e77   : > { %v8847_v1 = vpop.permute.xlu1 %8846 }
0x2e78   : > { %v8917_v24 = vpop.permute.xlu0 %8916  ;;  %v9001_v43 = vsel %vm3492_vm6, %v8977_v17, %v8847_v1  ;;  %v16713_v1 = vmov 0.0|0.0  }
0x2e79   : > { %v9024_v56 = vsel %vm3499_vm7, %v9000_v52, %v8917_v24  ;;  %15284 = vmatprep.subr.bf16.mxu0 %v16713_v1 }
0x2e7a   : > { %v9048_v19 = vmul.f32 %v9024_v56, %v7172_v4 }
0x2e7b   : > { %v8919_v2 = vpop.permute.xlu1 %8918 }
0x2e7c   : > { %v9025_v42 = vsel %vm3499_vm7, %v9001_v43, %v8919_v2  ;;  %v8777_v8 = vpop.permute.xlu0 %8776  ;;  %14477 = vmatprep.mubr.msk.f32.mxu1 %vm1898_vm4, %v9048_v19 }
0x2e7d   : > { %v9049_v48 = vmul.f32 %v9025_v42, %v7173_v41  ;;  %v8978_v3 = vsel %vm1308_vm2, %v18616_v6, %v8777_v8 }
0x2e7f   : > { %v8779_v13 = vpop.permute.xlu1 %8778  ;;  %14478 = vmatmul.mubr.msk.f32.gmra.mrb[150].mxu1 %vm1898_vm4, %v9049_v48 }
0x2e80   : > { %v8849_v33 = vpop.permute.xlu0 %8848  ;;  %v8979_v32 = vsel %vm1308_vm2, %v18614_v26, %v8779_v13 }
0x2e81   : > { %v9002_v34 = vsel %vm3492_vm6, %v8978_v3, %v8849_v33 }
0x2e83   : > { %v8851_v45 = vpop.permute.xlu1 %8850 }
0x2e84   : > { %v8921_v44 = vpop.permute.xlu0 %8920  ;;  %v9003_v27 = vsel %vm3492_vm6, %v8979_v32, %v8851_v45 }
0x2e85   : > { %v9026_v58 = vsel %vm3499_vm7, %v9002_v34, %v8921_v44  ;;  %v18950_v44 = vld [vmem:[%s16838_s30 + $0x8] sm:$0x3f] }
0x2e86   : > { %v9050_v47 = vmul.f32 %v9026_v58, %v7174_v9  ;;  %v6121_v58 = vrot.slane %v18950_v44, %v17574_v53 }
0x2e87   : > { %v8923_v39 = vpop.permute.xlu1 %8922 }
0x2e88   : > { %v9027_v62 = vsel %vm3499_vm7, %v9003_v27, %v8923_v39  ;;  %v8781_v6 = vpop.permute.xlu0 %8780  ;;  %14480 = vmatprep.mubr.msk.f32.mxu1 %vm1898_vm4, %v9050_v47  ;;  %v6212_v27 = vadd.f32 %v18233_v16, %v6121_v58  ;;  %v6227_v16 = vadd.f32 %v18243_v35, %v6121_v58 }
0x2e89   : > { %v9051_v46 = vmul.f32 %v9027_v62, %v7175_v57  ;;  %v8980_v5 = vsel %vm1308_vm2, %v18620_v36, %v8781_v6  ;;  %v6207_v57 = vadd.f32 %v18235_v7, %v6121_v58  ;;  %v6217_v62 = vadd.f32 %v18239_v29, %v6121_v58 }
0x2e8a   : > { %v6232_v29 = vadd.f32 %v18241_v61, %v6121_v58 }
0x2e8b   : > { %v8783_v54 = vpop.permute.xlu1 %8782  ;;  %14481 = vmatmul.mubr.msk.f32.gmra.mrb[152].mxu1 %vm1898_vm4, %v9051_v46  ;;  %v18958_v39 = vadd.f32 %v6207_v57, %v18150_v22  ;;  %v18962_v46 = vadd.f32 %v6212_v27, %v18153_v51  ;;  %v18968_v7 = vadd.f32 %v6217_v62, %v18159_v60 }
0x2e8c   : > { %v8853_v28 = vpop.permute.xlu0 %8852  ;;  %v8981_v55 = vsel %vm1308_vm2, %v18618_v18, %v8783_v54  ;;  %v18984_v35 = vadd.f32 %v6232_v29, %v18174_v37 }
0x2e8d   : > { %v9004_v30 = vsel %vm3492_vm6, %v8980_v5, %v8853_v28  ;;  %v6241_v28 = vsel %vm1898_vm4, %v18958_v39, 0.0  ;;  %v6222_v5 = vadd.f32 %v18237_v12, %v6121_v58  ;;  %v6244_v22 = vsel %vm1898_vm4, %v18962_v46, 0.0 }
0x2e8e   : > { %v18979_v12 = vadd.f32 %v6227_v16, %v18165_v14  ;;  %v6247_v60 = vsel %vm1898_vm4, %v18968_v7, 0.0 }
0x2e8f   : > { %v8855_v26 = vpop.permute.xlu1 %8854  ;;  %v18975_v51 = vadd.f32 %v6222_v5, %v18168_v38 }
0x2e90   : > { %v8925_v20 = vpop.permute.xlu0 %8924  ;;  %v9005_v23 = vsel %vm3492_vm6, %v8981_v55, %v8855_v26  ;;  %v6253_v38 = vsel %vm1898_vm4, %v18979_v12, 0.0 }
0x2e91   : > { %v9028_v21 = vsel %vm3499_vm7, %v9004_v30, %v8925_v20  ;;  %v6256_v20 = vsel %vm1898_vm4, %v18984_v35, 0.0 }
0x2e92   : > { %v9052_v31 = vmul.f32 %v9028_v21, %v7176_v40  ;;  %v6250_v40 = vsel %vm1898_vm4, %v18975_v51, 0.0 }
0x2e93   : > { %v8927_v0 = vpop.permute.xlu1 %8926 }
0x2e94   : > { %v9029_v11 = vsel %vm3499_vm7, %v9005_v23, %v8927_v0  ;;  %14483 = vmatprep.mubr.msk.f32.mxu1 %vm1898_vm4, %v9052_v31 }
0x2e95   : > { %v9053_v36 = vmul.f32 %v9029_v11, %v7177_v15 }
0x2e97   : > { %14484 = vmatmul.mubr.msk.f32.gmra.mrb[154].mxu1 %vm1898_vm4, %v9053_v36 }
0x2f08   : > { %v18897_v4 = vpop.f32.mrb[132].mxu1 }
0x2f09   : > { %8786 = vrot.lane.b32.xlu1 %v18897_v4, %s20095_s15  ;;  %v18901_v18 = vpop.f32.mrb[133].mxu1 }
0x2f0a   : > { %8784 = vrot.lane.b32.xlu0 %v18901_v18, %s20095_s15 }
0x2f0c   : > { %v18905_v52 = vpop.f32.mrb[134].mxu1 }
0x2f0d   : > { %8858 = vrot.lane.b32.xlu1 %v18897_v4, %s20096_s16  ;;  %v18909_v24 = vpop.f32.mrb[135].mxu1 }
0x2f0e   : > { %8856 = vrot.lane.b32.xlu0 %v18901_v18, %s20096_s16 }
0x2f10   : > { %v18913_v56 = vpop.f32.mrb[136].mxu1 }
0x2f11   : > { %8930 = vrot.lane.b32.xlu1 %v18897_v4, %s20097_s11  ;;  %v18917_v17 = vpop.f32.mrb[137].mxu1 }
0x2f12   : > { %8928 = vrot.lane.b32.xlu0 %v18901_v18, %s20097_s11 }
0x2f14   : > { %v14461_v19 = vpop.f32.mrb[138].mxu1 }
0x2f15   : > { %8790 = vrot.lane.b32.xlu1 %v18905_v52, %s20095_s15  ;;  %v9202_v41 = vpop.f32.mrb[139].mxu1 }
0x2f16   : > { %v15285_v43 = vpack.c.bf16 %v14461_v19, %v9202_v41  ;;  %8788 = vrot.lane.b32.xlu0 %v18909_v24, %s20095_s15 }
0x2f18   : > { %v14464_v2 = vpop.f32.mrb[140].mxu1  ;;  %15286 = vmatpush1.bf16.msra.mxu0 %v15285_v43 }
0x2f19   : > { %8862 = vrot.lane.b32.xlu1 %v18905_v52, %s20096_s16  ;;  %v9212_v42 = vpop.f32.mrb[141].mxu1  ;;  %15287 = vmatprep.subr.bf16.mxu0 %v16713_v1 }
0x2f1a   : > { %v15288_v8 = vpack.c.bf16 %v14464_v2, %v9212_v42  ;;  %8860 = vrot.lane.b32.xlu0 %v18909_v24, %s20096_s16 }
0x2f1c   : > { %15289 = vmatpush1.bf16.msra.mxu0 %v15288_v8  ;;  %v7178_v8 = vld [vmem:[%s20099_s18 + $0x90] sm:$0xff] }
0x2f1d   : > { %8934 = vrot.lane.b32.xlu1 %v18905_v52, %s20097_s11  ;;  %15290 = vmatprep.subr.bf16.mxu0 %v16713_v1 }
0x2f1e   : > { %8932 = vrot.lane.b32.xlu0 %v18909_v24, %s20097_s11 }
0x2f21   : > { %8794 = vrot.lane.b32.xlu1 %v18913_v56, %s20095_s15 }
0x2f22   : > { %8792 = vrot.lane.b32.xlu0 %v18917_v17, %s20095_s15  ;;  %v14467_v48 = vpop.f32.mrb[142].mxu1 }
0x2f23   : > { %v9222_v13 = vpop.f32.mrb[143].mxu1 }
0x2f24   : > { %v15291_v33 = vpack.c.bf16 %v14467_v48, %v9222_v13  ;;  %v7179_v13 = vld [vmem:[%s20099_s18 + $0x98] sm:$0xff] }
0x2f25   : > { %8866 = vrot.lane.b32.xlu1 %v18913_v56, %s20096_s16 }
0x2f26   : > { %8864 = vrot.lane.b32.xlu0 %v18917_v17, %s20096_s16  ;;  %15292 = vmatpush1.bf16.msra.mxu0 %v15291_v33 }
0x2f27   : > { %15293 = vmatprep.subr.bf16.mxu0 %v16713_v1 }
0x2f29   : > { %8938 = vrot.lane.b32.xlu1 %v18913_v56, %s20097_s11 }
0x2f2a   : > { %8936 = vrot.lane.b32.xlu0 %v18917_v17, %s20097_s11 }
0x2f2e   : > { %v14470_v3 = vpop.f32.mrb[144].mxu1 }
0x2f2f   : > { %v9232_v45 = vpop.f32.mrb[145].mxu1 }
0x2f30   : > { %v15294_v9 = vpack.c.bf16 %v14470_v3, %v9232_v45 }
0x2f32   : > { %15295 = vmatpush1.bf16.msra.mxu0 %v15294_v9 }
0x2f33   : > { %15296 = vmatprep.subr.bf16.mxu0 %v16713_v1 }
0x2f3a   : > { %v14473_v34 = vpop.f32.mrb[146].mxu1 }
0x2f3b   : > { %v9242_v32 = vpop.f32.mrb[147].mxu1 }
0x2f3c   : > { %v15297_v47 = vpack.c.bf16 %v14473_v34, %v9242_v32 }
0x2f3e   : > { %15298 = vmatpush1.bf16.msra.mxu0 %v15297_v47 }
0x2f3f   : > { %15299 = vmatprep.subr.bf16.mxu0 %v16713_v1 }
0x2f46   : > { %v14476_v6 = vpop.f32.mrb[148].mxu1 }
0x2f47   : > { %v9252_v54 = vpop.f32.mrb[149].mxu1 }
0x2f48   : > { %v15300_v26 = vpack.c.bf16 %v14476_v6, %v9252_v54  ;;  %v7180_v6 = vld [vmem:[%s20099_s18 + $0xa0] sm:$0xff] }
0x2f49   : > { %6242 = vadd.xlane.f32.xlu0 %v6241_v28  ;;  %v7181_v28 = vld [vmem:[%s20099_s18 + $0xa8] sm:$0xff] }
0x2f4a   : > { %15301 = vmatpush1.bf16.msra.mxu0 %v15300_v26 }
0x2f4b   : > { %15302 = vmatprep.subr.bf16.mxu0 %v16713_v1 }
0x2f4d   : > { %6245 = vadd.xlane.f32.xlu1 %v6244_v22  ;;  %6248 = vadd.xlane.f32.xlu0 %v6247_v60 }
0x2f51   : > { %6251 = vadd.xlane.f32.xlu0 %v6250_v40  ;;  %6254 = vadd.xlane.f32.xlu1 %v6253_v38 }
0x2f52   : > { %v14479_v61 = vpop.f32.mrb[150].mxu1 }
0x2f53   : > { %v9262_v30 = vpop.f32.mrb[151].mxu1 }
0x2f54   : > { %v15303_v14 = vpack.c.bf16 %v14479_v61, %v9262_v30 }
0x2f55   : > { %6257 = vadd.xlane.f32.xlu0 %v6256_v20  ;;  %v7182_v20 = vld [vmem:[%s20099_s18 + $0xb0] sm:$0xff] }
0x2f56   : > { %15304 = vmatpush1.bf16.msra.mxu0 %v15303_v14 }
0x2f57   : > { %15305 = vmatprep.subr.bf16.mxu0 %v16713_v1 }
0x2f5e   : > { %v14482_v37 = vpop.f32.mrb[152].mxu1 }
0x2f5f   : > { %v9272_v21 = vpop.f32.mrb[153].mxu1 }
0x2f60   : > { %v15306_v55 = vpack.c.bf16 %v14482_v37, %v9272_v21  ;;  %v7183_v21 = vld [vmem:[%s20099_s18 + $0xb8] sm:$0xff] }
0x2f62   : > { %15307 = vmatpush1.bf16.msra.mxu0 %v15306_v55 }
0x2f63   : > { %15308 = vmatprep.subr.bf16.mxu0 %v16713_v1 }
0x2f6a   : > { %v14485_v31 = vpop.f32.mrb[154].mxu1 }
0x2f6b   : > { %v9282_v15 = vpop.f32.mrb[155].mxu1 }
0x2f6c   : > { %v15309_v23 = vpack.c.bf16 %v14485_v31, %v9282_v15 }
0x2f6e   : > { %15310 = vmatpush1.bf16.msra.mxu0 %v15309_v23 }
0x2f6f   : > { %15311 = vmatprep.subr.bf16.mxu0 %v16713_v1 }
0x2f7b   : > { %v8787_v0 = vpop.permute.xlu1 %8786 }
0x2f7c   : > { %v8785_v11 = vpop.permute.xlu0 %8784  ;;  %v8983_v41 = vsel %vm1308_vm2, %v18897_v4, %v8787_v0 }
0x2f7d   : > { %v8982_v43 = vsel %vm1308_vm2, %v18901_v18, %v8785_v11 }
0x2f7f   : > { %v8859_v36 = vpop.permute.xlu1 %8858 }
0x2f80   : > { %v8857_v19 = vpop.permute.xlu0 %8856  ;;  %v9007_v2 = vsel %vm3492_vm6, %v8983_v41, %v8859_v36 }
0x2f81   : > { %v9006_v48 = vsel %vm3492_vm6, %v8982_v43, %v8857_v19 }
0x2f83   : > { %v8931_v42 = vpop.permute.xlu1 %8930 }
0x2f84   : > { %v9031_v33 = vsel %vm3499_vm7, %v9007_v2, %v8931_v42  ;;  %v8929_v3 = vpop.permute.xlu0 %8928 }
0x2f85   : > { %v9030_v45 = vsel %vm3499_vm7, %v9006_v48, %v8929_v3  ;;  %v9055_v34 = vmul.f32 %v9031_v33, %v7179_v13 }
0x2f86   : > { %v9054_v9 = vmul.f32 %v9030_v45, %v7178_v8 }
0x2f87   : > { %v8791_v4 = vpop.permute.xlu1 %8790 }
0x2f88   : > { %14486 = vmatprep.mubr.msk.f32.mxu1 %vm1898_vm4, %v9054_v9  ;;  %v8789_v18 = vpop.permute.xlu0 %8788  ;;  %v8985_v47 = vsel %vm1308_vm2, %v18905_v52, %v8791_v4 }
0x2f89   : > { %14487 = vmatmul.mubr.msk.f32.gmra.mrb[156].mxu1 %vm1898_vm4, %v9055_v34  ;;  %v8984_v57 = vsel %vm1308_vm2, %v18909_v24, %v8789_v18 }
0x2f8b   : > { %v8863_v58 = vpop.permute.xlu1 %8862 }
0x2f8c   : > { %v8861_v32 = vpop.permute.xlu0 %8860  ;;  %v9009_v27 = vsel %vm3492_vm6, %v8985_v47, %v8863_v58 }
0x2f8d   : > { %v9008_v54 = vsel %vm3492_vm6, %v8984_v57, %v8861_v32 }
0x2f8f   : > { %v8935_v62 = vpop.permute.xlu1 %8934 }
0x2f90   : > { %v9033_v5 = vsel %vm3499_vm7, %v9009_v27, %v8935_v62  ;;  %v8933_v16 = vpop.permute.xlu0 %8932 }
0x2f91   : > { %v9032_v26 = vsel %vm3499_vm7, %v9008_v54, %v8933_v16  ;;  %v9057_v29 = vmul.f32 %v9033_v5, %v7181_v28 }
0x2f92   : > { %v9056_v22 = vmul.f32 %v9032_v26, %v7180_v6  ;;  %v7185_v6 = vld [vmem:[%s20100_s1 + $0x8] sm:$0xff] }
0x2f93   : > { %v8795_v52 = vpop.permute.xlu1 %8794  ;;  %12817 = vmatprep.mubr.msk.f32.mxu0 %vm9321_vm8, %v7185_v6 }
0x2f94   : > { %14489 = vmatprep.mubr.msk.f32.mxu1 %vm1898_vm4, %v9056_v22  ;;  %v8793_v24 = vpop.permute.xlu0 %8792  ;;  %v8987_v38 = vsel %vm1308_vm2, %v18913_v56, %v8795_v52 }
0x2f95   : > { %14490 = vmatmul.mubr.msk.f32.gmra.mrb[158].mxu1 %vm1898_vm4, %v9057_v29  ;;  %v8986_v61 = vsel %vm1308_vm2, %v18917_v17, %v8793_v24  ;;  %v7184_v24 = vld [vmem:[%s20100_s1] sm:$0xff] }
0x2f97   : > { %v8867_v60 = vpop.permute.xlu1 %8866 }
0x2f98   : > { %v8865_v40 = vpop.permute.xlu0 %8864  ;;  %v9011_v30 = vsel %vm3492_vm6, %v8987_v38, %v8867_v60  ;;  %v7187_v60 = vld [vmem:[%s20100_s1 + $0x18] sm:$0xff]  ;;  %v7189_v38 = vld [vmem:[%s20100_s1 + $0x28] sm:$0xff] }
0x2f99   : > { %v9010_v37 = vsel %vm3492_vm6, %v8986_v61, %v8865_v40  ;;  %v7186_v40 = vld [vmem:[%s20100_s1 + $0x10] sm:$0xff]  ;;  %v7191_v61 = vld [vmem:[%s20100_s1 + $0x38] sm:$0xff] }
0x2f9b   : > { %v8939_v14 = vpop.permute.xlu1 %8938 }
0x2f9c   : > { %v9035_v55 = vsel %vm3499_vm7, %v9011_v30, %v8939_v14  ;;  %v8937_v31 = vpop.permute.xlu0 %8936  ;;  %v7190_v30 = vld [vmem:[%s20100_s1 + $0x30] sm:$0xff]  ;;  %v7193_v14 = vld [vmem:[%s20100_s1 + $0x48] sm:$0xff] }
0x2f9d   : > { %v9034_v15 = vsel %vm3499_vm7, %v9010_v37, %v8937_v31  ;;  %v9059_v0 = vmul.f32 %v9035_v55, %v7183_v21  ;;  %v7195_v37 = vld [vmem:[%s20100_s1 + $0x58] sm:$0xff]  ;;  %v7194_v21 = vld [vmem:[%s20100_s1 + $0x50] sm:$0xff] }
0x2f9e   : > { %v9058_v23 = vmul.f32 %v9034_v15, %v7182_v20  ;;  %v7192_v20 = vld [vmem:[%s20100_s1 + $0x40] sm:$0xff] }
0x2fa0   : > { %14492 = vmatprep.mubr.msk.f32.mxu1 %vm1898_vm4, %v9058_v23 }
0x2fa1   : > { %14493 = vmatmul.mubr.msk.f32.gmra.mrb[160].mxu1 %vm1898_vm4, %v9059_v0 }
0x2fd6   : > { %v6243_v56 = vpop.xlane.xlu0 %6242 }
0x2fd7   : > { %v6259_v17 = vmul.f32 0.03125, %v6243_v56 }
0x2fd9   : > { %v19032_v11 = vsub.f32 %v18958_v39, %v6259_v17 }
0x2fda   : > { %v6246_v36 = vpop.xlane.xlu1 %6245  ;;  %v6249_v19 = vpop.xlane.xlu0 %6248 }
0x2fdb   : > { %v6260_v41 = vmul.f32 0.03125, %v6246_v36  ;;  %v6261_v43 = vmul.f32 0.03125, %v6249_v19  ;;  %v6271_v2 = vmul.f32 %v19032_v11, %v19032_v11  ;;  %v19088_v19 = vld [vmem:[%s16893_s25] sm:$0xff] }
0x2fdd   : > { %v19037_v42 = vsub.f32 %v18962_v46, %v6260_v41  ;;  %v19040_v8 = vsub.f32 %v18968_v7, %v6261_v43  ;;  %v6277_v48 = vsel %vm1898_vm4, %v6271_v2, 0.0 }
0x2fde   : > { %v6252_v13 = vpop.xlane.xlu0 %6251  ;;  %6278 = vadd.xlane.f32.xlu1 %v6277_v48  ;;  %v6255_v33 = vpop.xlane.xlu1 %6254 }
0x2fdf   : > { %v6262_v39 = vmul.f32 0.03125, %v6252_v13  ;;  %v6263_v3 = vmul.f32 0.03125, %v6255_v33  ;;  %v6272_v45 = vmul.f32 %v19037_v42, %v19037_v42  ;;  %v6273_v9 = vmul.f32 %v19040_v8, %v19040_v8 }
0x2fe0   : > { %v9444_v13 = vrot.slane %v19088_v19, %v17474_v10 }
0x2fe1   : > { %v19048_v34 = vsub.f32 %v18975_v51, %v6262_v39  ;;  %v19051_v46 = vsub.f32 %v18979_v12, %v6263_v3  ;;  %v6280_v7 = vsel %vm1898_vm4, %v6272_v45, 0.0  ;;  %v6283_v4 = vsel %vm1898_vm4, %v6273_v9, 0.0 }
0x2fe2   : > { %6281 = vadd.xlane.f32.xlu0 %v6280_v7  ;;  %v6258_v18 = vpop.xlane.xlu0 %6257  ;;  %6284 = vadd.xlane.f32.xlu1 %v6283_v4 }
0x2fe3   : > { %v6264_v58 = vmul.f32 0.03125, %v6258_v18  ;;  %v6274_v32 = vmul.f32 %v19048_v34, %v19048_v34  ;;  %v6275_v47 = vmul.f32 %v19051_v46, %v19051_v46 }
0x2fe5   : > { %v19060_v51 = vsub.f32 %v18984_v35, %v6264_v58  ;;  %v6286_v12 = vsel %vm1898_vm4, %v6274_v32, 0.0  ;;  %v6289_v57 = vsel %vm1898_vm4, %v6275_v47, 0.0 }
0x2fe6   : > { %6287 = vadd.xlane.f32.xlu0 %v6286_v12  ;;  %6290 = vadd.xlane.f32.xlu1 %v6289_v57 }
0x2fe7   : > { %v6276_v27 = vmul.f32 %v19060_v51, %v19060_v51 }
0x2fe9   : > { %v6292_v62 = vsel %vm1898_vm4, %v6276_v27, 0.0 }
0x2fea   : > { %6293 = vadd.xlane.f32.xlu0 %v6292_v62 }
0x305c   : > { %v14488_v35 = vpop.f32.mrb[156].mxu1 }
0x305d   : > { %v9292_v54 = vpop.f32.mrb[157].mxu1 }
0x305e   : > { %v15312_v28 = vpack.c.bf16 %v14488_v35, %v9292_v54 }
0x3060   : > { %15313 = vmatpush1.bf16.msra.mxu0 %v15312_v28 }
0x3061   : > { %15314 = vmatprep.subr.bf16.mxu0 %v16713_v1 }
0x3068   : > { %v14491_v5 = vpop.f32.mrb[158].mxu1 }
0x3069   : > { %v9302_v16 = vpop.f32.mrb[159].mxu1 }
0x306a   : > { %v15315_v26 = vpack.c.bf16 %v14491_v5, %v9302_v16 }
0x306b   : > { %v6279_v55 = vpop.xlane.xlu1 %6278 }
0x306c   : > { %15316 = vmatpush1.bf16.msra.mxu0 %v15315_v26  ;;  %v6295_v15 = vmul.f32 0.03125, %v6279_v55 }
0x306d   : > { %15317 = vmatprep.subr.bf16.mxu0 %v16713_v1  ;;  %v7188_v1 = vld [vmem:[%s20100_s1 + $0x20] sm:$0xff]  ;;  %s20105_s1 = sld [smem:[#allocation16_spill]] }
0x306e   : > { %v6301_v56 = vadd.f32 1e-05, %v6295_v15 }
0x306f   : > { %v6282_v31 = vpop.xlane.xlu0 %6281  ;;  %v6285_v23 = vpop.xlane.xlu1 %6284 }
0x3070   : > { %v6296_v0 = vmul.f32 0.03125, %v6282_v31  ;;  %v6297_v17 = vmul.f32 0.03125, %v6285_v23  ;;  %16449 = vrsqrt.f32 %v6301_v56 }
0x3072   : > { %v6302_v43 = vadd.f32 1e-05, %v6296_v0  ;;  %v6303_v2 = vadd.f32 1e-05, %v6297_v17 }
0x3073   : > { %v6288_v36 = vpop.xlane.xlu0 %6287  ;;  %v6291_v41 = vpop.xlane.xlu1 %6290 }
0x3074   : > { %v14494_v22 = vpop.f32.mrb[160].mxu1  ;;  %v6298_v48 = vmul.f32 0.03125, %v6288_v36  ;;  %v6299_v33 = vmul.f32 0.03125, %v6291_v41  ;;  %16451 = vrsqrt.f32 %v6302_v43  ;;  %v20104_v36 = vld [vmem:[#allocation27_spill] sm:$0xff] }
0x3075   : > { %v9312_v29 = vpop.f32.mrb[161].mxu1  ;;  %16453 = vrsqrt.f32 %v6303_v2 }
0x3076   : > { %v15318_v52 = vpack.c.bf16 %v14494_v22, %v9312_v29  ;;  %v6304_v7 = vadd.f32 1e-05, %v6298_v48  ;;  %v6305_v18 = vadd.f32 1e-05, %v6299_v33  ;;  %v6322_v22 = vrot.slane %v18950_v44, %v16964_v25 }
0x3077   : > { %v6294_v3 = vpop.xlane.xlu0 %6293 }
0x3078   : > { %15319 = vmatpush1.bf16.msra.mxu0 %v15318_v52  ;;  %v6300_v58 = vmul.f32 0.03125, %v6294_v3  ;;  %16455 = vrsqrt.f32 %v6304_v7  ;;  %v20101_v52 = vld [vmem:[#allocation26_spill] sm:$0xff] }
0x3079   : > { %16457 = vrsqrt.f32 %v6305_v18 }
0x307a   : > { %v16450_v6 = vpop.eup %16449 }
0x307b   : > { %9405 = vmatmul.mubr.f32.vlgmr.msra.gmra.mrb[102].mxu0 %v7184_v24  ;;  %v6313_v26 = vmul.f32 %v16450_v6, %v19032_v11  ;;  %v9550_v6 = vld [vmem:[%s20105_s1 + $0x8] sm:$0xff] }
0x307c   : > { %12818 = vmatprep.mubr.msk.f32.mxu0 %vm9321_vm8, %v7187_v60 }
0x307e   : > { %v16452_v5 = vpop.eup %16451 }
0x307f   : > { %9410 = vmatmul.mubr.f32.gmra.mrb[104].mxu0 %v7186_v40  ;;  %v16454_v29 = vpop.eup %16453  ;;  %v6314_v11 = vmul.f32 %v16452_v5, %v19037_v42 }
0x3080   : > { %12819 = vmatprep.mubr.msk.f32.mxu0 %vm9321_vm8, %v7189_v38 }
0x3081   : > { %v6324_v17 = vmul.f32 %v6322_v22, %v6314_v11 }
0x3083   : > { %9415 = vmatmul.mubr.f32.gmra.mrb[106].mxu0 %v7188_v1  ;;  %v6323_v1 = vmul.f32 %v6322_v22, %v6313_v26 }
0x3084   : > { %12820 = vmatprep.mubr.msk.f32.mxu0 %vm9321_vm8, %v7191_v61  ;;  %v20102_v61 = vld [vmem:[#allocation25_spill] sm:$0xff] }
0x3087   : > { %9420 = vmatmul.mubr.f32.gmra.mrb[108].mxu0 %v7190_v30  ;;  %v6332_v30 = vrot.slane %v18950_v44, %v20102_v61 }
0x3088   : > { %12821 = vmatprep.mubr.msk.f32.mxu0 %vm9321_vm8, %v7193_v14  ;;  %v6315_v14 = vmul.f32 %v16454_v29, %v19040_v8 }
0x3089   : > { %v19122_v56 = vadd.f32 %v6332_v30, %v6323_v1  ;;  %v19131_v3 = vadd.f32 %v6332_v30, %v6324_v17 }
0x308a   : > { %v6325_v44 = vmul.f32 %v6322_v22, %v6315_v14 }
0x308b   : > { %9425 = vmatmul.mubr.f32.gmra.mrb[110].mxu0 %v7192_v20  ;;  %v16456_v20 = vpop.eup %16455 }
0x308c   : > { %12822 = vmatprep.mubr.msk.f32.mxu0 %vm9321_vm8, %v7195_v37  ;;  %v20103_v37 = vld [vmem:[#allocation28_spill] sm:$0xff]  ;;  %v16458_v15 = vpop.eup %16457  ;;  %v6316_v43 = vmul.f32 %v16456_v20, %v19048_v34  ;;  %v6344_v34 = vsel %vm1898_vm4, %v19131_v3, 0.0 }
0x308d   : > { %v6317_v2 = vmul.f32 %v16458_v15, %v19051_v46 }
0x308e   : > { %v6326_v7 = vmul.f32 %v6322_v22, %v6316_v43 }
0x308f   : > { %9430 = vmatmul.mubr.f32.gmra.mrb[112].mxu0 %v7194_v21  ;;  %v6327_v18 = vmul.f32 %v6322_v22, %v6317_v2 }
0x314e   : > { %v9406_v39 = vpop.f32.mrb[102].mxu0 }
0x314f   : > { %v9435_v45 = vadd.f32 %v18275_v59, %v9406_v39  ;;  %v9408_v9 = vpop.f32.mrb[103].mxu0  ;;  %v6306_v59 = vadd.f32 1e-05, %v6300_v58  ;;  %v6341_v39 = vsel %vm1898_vm4, %v19122_v56, 0.0 }
0x3151   : > { %v19093_v4 = vadd.f32 %v9444_v13, %v9435_v45  ;;  %16459 = vrsqrt.f32 %v6306_v59  ;;  %v19133_v45 = vadd.f32 %v6332_v30, %v6325_v44 }
0x3152   : > { %v9411_v32 = vpop.f32.mrb[104].mxu0 }
0x3153   : > { %v9436_v47 = vadd.f32 %v18273_v50, %v9411_v32  ;;  %v9413_v12 = vpop.f32.mrb[105].mxu0  ;;  %v9451_v57 = vsel %vm1898_vm4, %v19093_v4, 0.0  ;;  %v6347_v46 = vsel %vm1898_vm4, %v19133_v45, 0.0  ;;  %v19143_v32 = vadd.f32 %v6332_v30, %v6327_v18 }
0x3154   : > { %9452 = vadd.xlane.f32.xlu1 %v9451_v57 }
0x3155   : > { %v19098_v27 = vadd.f32 %v9444_v13, %v9436_v47  ;;  %v6353_v12 = vsel %vm1898_vm4, %v19143_v32, 0.0 }
0x3156   : > { %v9416_v62 = vpop.f32.mrb[106].mxu0 }
0x3157   : > { %v9437_v35 = vadd.f32 %v18285_v63, %v9416_v62  ;;  %v9418_v54 = vpop.f32.mrb[107].mxu0  ;;  %v9454_v28 = vsel %vm1898_vm4, %v19098_v27, 0.0  ;;  %v9549_v62 = vld [vmem:[%s20105_s1] sm:$0xff] }
0x3158   : > { %9455 = vadd.xlane.f32.xlu0 %v9454_v28 }
0x3159   : > { %v19103_v50 = vadd.f32 %v9444_v13, %v9437_v35  ;;  %v15320_v35 = vpack.c.bf16 %v9550_v6, %v9549_v62 }
0x315a   : > { %v9421_v16 = vpop.f32.mrb[108].mxu0 }
0x315b   : > { %v9438_v24 = vadd.f32 %v20101_v52, %v9421_v16  ;;  %v9423_v60 = vpop.f32.mrb[109].mxu0  ;;  %v9457_v63 = vsel %vm1898_vm4, %v19103_v50, 0.0  ;;  %v16460_v48 = vpop.eup %16459  ;;  %15321 = vmatprep.subr.bf16.mxu1 %v15320_v35 }
0x315c   : > { %9458 = vadd.xlane.f32.xlu1 %v9457_v63  ;;  %v6318_v58 = vmul.f32 %v16460_v48, %v19060_v51  ;;  %15323 = vmatpush3.bf16.msra.mxu1 %v15320_v35 }
0x315d   : > { %v19111_v40 = vadd.f32 %v9444_v13, %v9438_v24 }
0x315e   : > { %v9426_v38 = vpop.f32.mrb[110].mxu0  ;;  %v6328_v47 = vmul.f32 %v6322_v22, %v6318_v58 }
0x315f   : > { %v9439_v21 = vadd.f32 %v20103_v37, %v9426_v38  ;;  %v9428_v55 = vpop.f32.mrb[111].mxu0  ;;  %v9460_v31 = vsel %vm1898_vm4, %v19111_v40, 0.0 }
0x3160   : > { %9461 = vadd.xlane.f32.xlu0 %v9460_v31  ;;  %v19149_v57 = vadd.f32 %v6332_v30, %v6328_v47 }
0x3161   : > { %v19120_v23 = vadd.f32 %v9444_v13, %v9439_v21 }
0x3162   : > { %v9431_v0 = vpop.f32.mrb[112].mxu0  ;;  %v6356_v59 = vsel %vm1898_vm4, %v19149_v57, 0.0 }
0x3163   : > { %v9440_v42 = vadd.f32 %v20104_v36, %v9431_v0  ;;  %v9433_v41 = vpop.f32.mrb[113].mxu0  ;;  %v9463_v8 = vsel %vm1898_vm4, %v19120_v23, 0.0 }
0x3164   : > { %9464 = vadd.xlane.f32.xlu1 %v9463_v8 }
0x3165   : > { %v9450_v33 = vadd.f32 %v9444_v13, %v9440_v42  ;;  %v19141_v13 = vadd.f32 %v6332_v30, %v6326_v7 }
0x3167   : > { %v9466_v9 = vsel %vm1898_vm4, %v9450_v33, 0.0  ;;  %v6350_v51 = vsel %vm1898_vm4, %v19141_v13, 0.0 }
0x3168   : > { %9467 = vadd.xlane.f32.xlu0 %v9466_v9  ;;  %6342 = vadd.xlane.f32.xlu1 %v6341_v39 }
0x316c   : > { %6345 = vadd.xlane.f32.xlu0 %v6344_v34  ;;  %6348 = vadd.xlane.f32.xlu1 %v6347_v46 }
0x3170   : > { %6351 = vadd.xlane.f32.xlu0 %v6350_v51  ;;  %6354 = vadd.xlane.f32.xlu1 %v6353_v12 }
0x3174   : > { %6357 = vadd.xlane.f32.xlu0 %v6356_v59 }
0x31e1   : > { %v9453_v54 = vpop.xlane.xlu1 %9452 }
0x31e2   : > { %v9469_v28 = vmul.f32 0.03125, %v9453_v54 }
0x31e4   : > { %v19156_v5 = vsub.f32 %v19093_v4, %v9469_v28 }
0x31e5   : > { %v9456_v16 = vpop.xlane.xlu0 %9455 }
0x31e6   : > { %v9470_v26 = vmul.f32 0.03125, %v9456_v16  ;;  %v9481_v22 = vmul.f32 %v19156_v5, %v19156_v5 }
0x31e8   : > { %v19161_v29 = vsub.f32 %v19098_v27, %v9470_v26  ;;  %v9487_v52 = vsel %vm1898_vm4, %v9481_v22, 0.0  ;;  %v9551_v26 = vld [vmem:[%s20105_s1 + $0x10] sm:$0xff]  ;;  %v9552_v22 = vld [vmem:[%s20105_s1 + $0x18] sm:$0xff]  ;;  %s20107_s1 = sld [smem:[#allocation18_spill]] }
0x31e9   : > { %9488 = vadd.xlane.f32.xlu1 %v9487_v52  ;;  %v9459_v24 = vpop.xlane.xlu1 %9458  ;;  %v15324_v52 = vpack.c.bf16 %v9552_v22, %v9551_v26 }
0x31ea   : > { %v9471_v60 = vmul.f32 0.03125, %v9459_v24  ;;  %v9482_v63 = vmul.f32 %v19161_v29, %v19161_v29  ;;  %v9670_v24 = vld [vmem:[%s20106_s3] sm:$0xff] }
0x31eb   : > { %15325 = vmatprep.subr.bf16.mxu1 %v15324_v52 }
0x31ec   : > { %v19167_v38 = vsub.f32 %v19103_v50, %v9471_v60  ;;  %v9490_v4 = vsel %vm1898_vm4, %v9482_v63, 0.0  ;;  %15327 = vmatpush3.bf16.msra.mxu1 %v15324_v52 }
0x31ed   : > { %v9462_v1 = vpop.xlane.xlu0 %9461  ;;  %9491 = vadd.xlane.f32.xlu0 %v9490_v4 }
0x31ee   : > { %v9472_v30 = vmul.f32 0.03125, %v9462_v1  ;;  %v9483_v27 = vmul.f32 %v19167_v38, %v19167_v38 }
0x31f0   : > { %v19173_v11 = vsub.f32 %v19111_v40, %v9472_v30  ;;  %v9493_v14 = vsel %vm1898_vm4, %v9483_v27, 0.0 }
0x31f1   : > { %9494 = vadd.xlane.f32.xlu1 %v9493_v14  ;;  %v9465_v20 = vpop.xlane.xlu1 %9464 }
0x31f2   : > { %v9473_v37 = vmul.f32 0.03125, %v9465_v20  ;;  %v9484_v50 = vmul.f32 %v19173_v11, %v19173_v11 }
0x31f4   : > { %v19179_v21 = vsub.f32 %v19120_v23, %v9473_v37  ;;  %v9496_v55 = vsel %vm1898_vm4, %v9484_v50, 0.0 }
0x31f5   : > { %9497 = vadd.xlane.f32.xlu0 %v9496_v55  ;;  %v9468_v31 = vpop.xlane.xlu0 %9467  ;;  %v6343_v15 = vpop.xlane.xlu1 %6342 }
0x31f6   : > { %v9474_v0 = vmul.f32 0.03125, %v9468_v31  ;;  %v6359_v17 = vmul.f32 0.03125, %v6343_v15  ;;  %v9485_v40 = vmul.f32 %v19179_v21, %v19179_v21  ;;  %v19232_v15 = vrot.slane %v19088_v19, %v16964_v25 }
0x31f8   : > { %v19184_v44 = vsub.f32 %v9450_v33, %v9474_v0  ;;  %v19187_v36 = vsub.f32 %v19122_v56, %v6359_v17  ;;  %v9499_v42 = vsel %vm1898_vm4, %v9485_v40, 0.0 }
0x31f9   : > { %v6346_v41 = vpop.xlane.xlu0 %6345  ;;  %9500 = vadd.xlane.f32.xlu1 %v9499_v42  ;;  %v6349_v23 = vpop.xlane.xlu1 %6348 }
0x31fa   : > { %v6360_v8 = vmul.f32 0.03125, %v6346_v41  ;;  %v6361_v43 = vmul.f32 0.03125, %v6349_v23  ;;  %v9486_v2 = vmul.f32 %v19184_v44, %v19184_v44  ;;  %v6371_v48 = vmul.f32 %v19187_v36, %v19187_v36 }
0x31fb   : > { %v19237_v41 = vrot.slane %v19088_v19, %v20102_v61 }
0x31fc   : > { %v19195_v39 = vsub.f32 %v19131_v3, %v6360_v8  ;;  %v19198_v33 = vsub.f32 %v19133_v45, %v6361_v43  ;;  %v9502_v56 = vsel %vm1898_vm4, %v9486_v2, 0.0  ;;  %v6377_v9 = vsel %vm1898_vm4, %v6371_v48, 0.0 }
0x31fd   : > { %9503 = vadd.xlane.f32.xlu0 %v9502_v56  ;;  %v6352_v7 = vpop.xlane.xlu0 %6351  ;;  %6378 = vadd.xlane.f32.xlu1 %v6377_v9  ;;  %v6355_v18 = vpop.xlane.xlu1 %6354 }
0x31fe   : > { %v6362_v58 = vmul.f32 0.03125, %v6352_v7  ;;  %v6363_v34 = vmul.f32 0.03125, %v6355_v18  ;;  %v6372_v46 = vmul.f32 %v19195_v39, %v19195_v39  ;;  %v6373_v3 = vmul.f32 %v19198_v33, %v19198_v33  ;;  %v9672_v18 = vld [vmem:[%s20106_s3 + $0x10] sm:$0xff] }
0x3200   : > { %v19207_v47 = vsub.f32 %v19141_v13, %v6362_v58  ;;  %v19210_v45 = vsub.f32 %v19143_v32, %v6363_v34  ;;  %v6380_v51 = vsel %vm1898_vm4, %v6372_v46, 0.0  ;;  %v6383_v12 = vsel %vm1898_vm4, %v6373_v3, 0.0  ;;  %v9673_v58 = vld [vmem:[%s20106_s3 + $0x18] sm:$0xff] }
0x3201   : > { %6381 = vadd.xlane.f32.xlu0 %v6380_v51  ;;  %v6358_v59 = vpop.xlane.xlu0 %6357  ;;  %6384 = vadd.xlane.f32.xlu1 %v6383_v12 }
0x3202   : > { %v6364_v62 = vmul.f32 0.03125, %v6358_v59  ;;  %v6374_v6 = vmul.f32 %v19207_v47, %v19207_v47  ;;  %v6375_v13 = vmul.f32 %v19210_v45, %v19210_v45 }
0x3204   : > { %v19219_v32 = vsub.f32 %v19149_v57, %v6364_v62  ;;  %v6386_v35 = vsel %vm1898_vm4, %v6374_v6, 0.0  ;;  %v6389_v54 = vsel %vm1898_vm4, %v6375_v13, 0.0  ;;  %v9671_v57 = vld [vmem:[%s20106_s3 + $0x8] sm:$0xff]  ;;  %v15332_v62 = vpack.c.bf16 %v9673_v58, %v9672_v18  ;;  %s20108_s3 = smov 120  }
0x3205   : > { %6387 = vadd.xlane.f32.xlu0 %v6386_v35  ;;  %6390 = vadd.xlane.f32.xlu1 %v6389_v54  ;;  %v15328_v60 = vpack.c.bf16 %v9671_v57, %v9670_v24 }
0x3206   : > { %v6376_v28 = vmul.f32 %v19219_v32, %v19219_v32 }
0x3207   : > { %15329 = vmatprep.subr.bf16.mxu1 %v15328_v60 }
0x3208   : > { %v6392_v16 = vsel %vm1898_vm4, %v6376_v28, 0.0 }
0x3209   : > { %6393 = vadd.xlane.f32.xlu0 %v6392_v16 }
0x3276   : > { %v9489_v63 = vpop.xlane.xlu1 %9488 }
0x3277   : > { %v9505_v4 = vmul.f32 0.03125, %v9489_v63 }
0x3279   : > { %v9511_v1 = vadd.f32 1e-05, %v9505_v4 }
0x327a   : > { %v9492_v30 = vpop.xlane.xlu0 %9491 }
0x327b   : > { %16461 = vrsqrt.f32 %v9511_v1  ;;  %v9506_v27 = vmul.f32 0.03125, %v9492_v30 }
0x327d   : > { %v9512_v14 = vadd.f32 1e-05, %v9506_v27 }
0x327e   : > { %v9495_v20 = vpop.xlane.xlu1 %9494 }
0x327f   : > { %16463 = vrsqrt.f32 %v9512_v14  ;;  %v9507_v37 = vmul.f32 0.03125, %v9495_v20 }
0x3281   : > { %v9513_v50 = vadd.f32 1e-05, %v9507_v37 }
0x3282   : > { %v9498_v55 = vpop.xlane.xlu0 %9497 }
0x3283   : > { %16465 = vrsqrt.f32 %v9513_v50  ;;  %v9508_v31 = vmul.f32 0.03125, %v9498_v55 }
0x3285   : > { %v16462_v0 = vpop.eup %16461  ;;  %v9514_v17 = vadd.f32 1e-05, %v9508_v31  ;;  %v12665_v31 = vld [vmem:[%s16898_s17] ss:$0 sm:$0xff] }
0x3286   : > { %v9501_v40 = vpop.xlane.xlu1 %9500  ;;  %v9523_v42 = vmul.f32 %v16462_v0, %v19156_v5 }
0x3287   : > { %16467 = vrsqrt.f32 %v9514_v17  ;;  %v9509_v23 = vmul.f32 0.03125, %v9501_v40 }
0x3288   : > { %v9533_v8 = vmul.f32 %v19232_v15, %v9523_v42  ;;  %v12666_v42 = vld [vmem:[%s16898_s17 + $0x1] ss:$0 sm:$0xff] }
0x3289   : > { %v16464_v43 = vpop.eup %16463  ;;  %v9515_v2 = vadd.f32 1e-05, %v9509_v23 }
0x328a   : > { %v9524_v25 = vmul.f32 %v16464_v43, %v19161_v29  ;;  %v9504_v48 = vpop.xlane.xlu0 %9503  ;;  %v6379_v56 = vpop.xlane.xlu1 %6378  ;;  %v19242_v9 = vadd.f32 %v19237_v41, %v9533_v8 }
0x328b   : > { %16469 = vrsqrt.f32 %v9515_v2  ;;  %v9510_v7 = vmul.f32 0.03125, %v9504_v48  ;;  %v6395_v5 = vmul.f32 0.03125, %v6379_v56 }
0x328c   : > { %v9534_v61 = vmul.f32 %v19232_v15, %v9524_v25  ;;  %14503 = vmatprep.mubr.msk.f32.mxu1 %vm1898_vm4, %v19242_v9 }
0x328d   : > { %v16466_v34 = vpop.eup %16465  ;;  %v9516_v46 = vadd.f32 1e-05, %v9510_v7  ;;  %v6401_v3 = vadd.f32 1e-05, %v6395_v5 }
0x328e   : > { %v6382_v51 = vpop.xlane.xlu0 %6381  ;;  %v6385_v29 = vpop.xlane.xlu1 %6384  ;;  %v19250_v12 = vadd.f32 %v19237_v41, %v9534_v61  ;;  %v9525_v59 = vmul.f32 %v16466_v34, %v19167_v38 }
0x328f   : > { %16471 = vrsqrt.f32 %v9516_v46  ;;  %v6396_v6 = vmul.f32 0.03125, %v6382_v51  ;;  %v6397_v13 = vmul.f32 0.03125, %v6385_v29 }
0x3290   : > { %16473 = vrsqrt.f32 %v6401_v3  ;;  %14504 = vmatmul.mubr.msk.f32.vlgmr.msra.gmra.mrb[162].mxu1 %vm1898_vm4, %v19250_v12  ;;  %v9535_v35 = vmul.f32 %v19232_v15, %v9525_v59 }
0x3291   : > { %v16468_v54 = vpop.eup %16467  ;;  %v6402_v28 = vadd.f32 1e-05, %v6396_v6  ;;  %v6403_v16 = vadd.f32 1e-05, %v6397_v13  ;;  %15331 = vmatpush3.bf16.msra.mxu1 %v15328_v60 }
0x3292   : > { %v6388_v26 = vpop.xlane.xlu0 %6387  ;;  %v6391_v22 = vpop.xlane.xlu1 %6390  ;;  %v19257_v52 = vadd.f32 %v19237_v41, %v9535_v35  ;;  %v9526_v38 = vmul.f32 %v16468_v54, %v19173_v11  ;;  %15333 = vmatprep.subr.bf16.mxu1 %v15332_v62  ;;  %v12829_v54 = vld [vmem:[%s20107_s1] ss:$0 sm:$0xff]  ;;  %s20109_s1 = smov 96  }
0x3293   : > { %16475 = vrsqrt.f32 %v6402_v28  ;;  %v6398_v24 = vmul.f32 0.03125, %v6388_v26  ;;  %v6399_v57 = vmul.f32 0.03125, %v6391_v22 }
0x3294   : > { %16477 = vrsqrt.f32 %v6403_v16  ;;  %14506 = vmatprep.mubr.msk.f32.mxu1 %vm1898_vm4, %v19257_v52  ;;  %v9536_v63 = vmul.f32 %v19232_v15, %v9526_v38 }
0x3295   : > { %v16470_v4 = vpop.eup %16469  ;;  %v6404_v60 = vadd.f32 1e-05, %v6398_v24  ;;  %v6405_v1 = vadd.f32 1e-05, %v6399_v57  ;;  %15335 = vmatpush3.bf16.msra.mxu1 %v15332_v62 }
0x3296   : > { %v6394_v30 = vpop.xlane.xlu0 %6393  ;;  %v19264_v27 = vadd.f32 %v19237_v41, %v9536_v63  ;;  %v9527_v11 = vmul.f32 %v16470_v4, %v19179_v21 }
0x3297   : > { %16479 = vrsqrt.f32 %v6404_v60  ;;  %v6400_v14 = vmul.f32 0.03125, %v6394_v30 }
0x3298   : > { %16481 = vrsqrt.f32 %v6405_v1  ;;  %14507 = vmatmul.mubr.msk.f32.gmra.mrb[164].mxu1 %vm1898_vm4, %v19264_v27  ;;  %v9537_v20 = vmul.f32 %v19232_v15, %v9527_v11 }
0x3299   : > { %v16472_v37 = vpop.eup %16471  ;;  %v6406_v50 = vadd.f32 1e-05, %v6400_v14 }
0x329a   : > { %v16474_v55 = vpop.eup %16473  ;;  %v19272_v0 = vadd.f32 %v19237_v41, %v9537_v20  ;;  %v9528_v17 = vmul.f32 %v16472_v37, %v19184_v44 }
0x329b   : > { %16483 = vrsqrt.f32 %v6406_v50  ;;  %v6413_v21 = vmul.f32 %v16474_v55, %v19187_v36 }
0x329c   : > { %14509 = vmatprep.mubr.msk.f32.mxu1 %vm1898_vm4, %v19272_v0  ;;  %v9538_v40 = vmul.f32 %v19232_v15, %v9528_v17 }
0x329d   : > { %v16476_v23 = vpop.eup %16475  ;;  %v6423_v8 = vmul.f32 %v12665_v31, %v6413_v21 }
0x329e   : > { %v16478_v43 = vpop.eup %16477  ;;  %v6414_v2 = vmul.f32 %v16476_v23, %v19195_v39  ;;  %v19282_v25 = vadd.f32 %v19237_v41, %v9538_v40 }
0x329f   : > { %v6433_v48 = vadd.f32 %v12666_v42, %v6423_v8  ;;  %v6415_v44 = vmul.f32 %v16478_v43, %v19198_v33 }
0x32a0   : > { %v6424_v56 = vmul.f32 %v12665_v31, %v6414_v2  ;;  %14510 = vmatmul.mubr.msk.f32.gmra.mrb[166].mxu1 %vm1898_vm4, %v19282_v25 }
0x32a1   : > { %v16480_v36 = vpop.eup %16479  ;;  %14520 = vmatprep.mubr.msk.f32.mxu1 %vm1898_vm4, %v6433_v48  ;;  %v6425_v15 = vmul.f32 %v12665_v31, %v6415_v44 }
0x32a2   : > { %v16482_v7 = vpop.eup %16481  ;;  %v6434_v5 = vadd.f32 %v12666_v42, %v6424_v56  ;;  %v6416_v18 = vmul.f32 %v16480_v36, %v19207_v47 }
0x32a3   : > { %v6435_v58 = vadd.f32 %v12666_v42, %v6425_v15  ;;  %v6417_v39 = vmul.f32 %v16482_v7, %v19210_v45  ;;  %v9556_v45 = vrot.slane %v19088_v19, %v17574_v53 }
0x32a4   : > { %14521 = vmatmul.mubr.msk.f32.vlgmr.msra.gmra.mrb[168].mxu1 %vm1898_vm4, %v6434_v5  ;;  %v6426_v41 = vmul.f32 %v12665_v31, %v6416_v18 }
0x32a5   : > { %v16484_v61 = vpop.eup %16483  ;;  %14523 = vmatprep.mubr.msk.f32.mxu1 %vm1898_vm4, %v6435_v58  ;;  %v6427_v33 = vmul.f32 %v12665_v31, %v6417_v39 }
0x32a6   : > { %v6436_v34 = vadd.f32 %v12666_v42, %v6426_v41  ;;  %v6418_v46 = vmul.f32 %v16484_v61, %v19219_v32 }
0x32a7   : > { %v6437_v3 = vadd.f32 %v12666_v42, %v6427_v33 }
0x32a8   : > { %14524 = vmatmul.mubr.msk.f32.gmra.mrb[170].mxu1 %vm1898_vm4, %v6436_v34  ;;  %v6428_v51 = vmul.f32 %v12665_v31, %v6418_v46 }
0x32a9   : > { %14526 = vmatprep.mubr.msk.f32.mxu1 %vm1898_vm4, %v6437_v3 }
0x32aa   : > { %v6438_v47 = vadd.f32 %v12666_v42, %v6428_v51 }
0x32ac   : > { %14527 = vmatmul.mubr.msk.f32.gmra.mrb[172].mxu1 %vm1898_vm4, %v6438_v47 }
0x3363   : > { %v14505_v29 = vpop.f32.mrb[162].mxu1 }
0x3364   : > { %v9641_v59 = vpop.f32.mrb[163].mxu1  ;;  %v19317_v37 = vadd.f32 %v14505_v29, %v9556_v45 }
0x3365   : > { %v19298_v62 = vadd.f32 %v9641_v59, %v9556_v45 }
0x3367   : > { %14541 = vmatprep.mubr.msk.f32.mxu0 %vm1308_vm2, %v19298_v62 }
0x336b   : > { %v14508_v32 = vpop.f32.mrb[164].mxu1 }
0x336c   : > { %v9651_v6 = vpop.f32.mrb[165].mxu1  ;;  %v19327_v31 = vadd.f32 %v14508_v32, %v9556_v45 }
0x336d   : > { %v19335_v17 = vadd.f32 %v9651_v6, %v9556_v45 }
0x3373   : > { %v14511_v13 = vpop.f32.mrb[166].mxu1 }
0x3374   : > { %v9661_v35 = vpop.f32.mrb[167].mxu1  ;;  %v19337_v21 = vadd.f32 %v14511_v13, %v9556_v45 }
0x3375   : > { %v19345_v40 = vadd.f32 %v9661_v35, %v9556_v45 }
0x3377   : > { %v14522_v28 = vpop.f32.mrb[168].mxu1 }
0x3378   : > { %v9771_v16 = vadd.f32 %v14522_v28, %v12829_v54  ;;  %v9765_v26 = vpop.f32.mrb[169].mxu1 }
0x3379   : > { %v9766_v22 = vadd.f32 %v12829_v54, %v9765_v26 }
0x337b   : > { %v14525_v38 = vpop.f32.mrb[170].mxu1  ;;  %v19303_v24 = vpack.i.bf16 %v9771_v16, %v9766_v22  ;;  %v15336_v19 = vpack.c.bf16 %v9771_v16, %v9766_v22 }
0x337c   : > { %v9781_v57 = vadd.f32 %v14525_v38, %v12829_v54  ;;  %v9775_v63 = vpop.f32.mrb[171].mxu1 }
0x337d   : > { %v9776_v4 = vadd.f32 %v12829_v54, %v9775_v63  ;;  %15997 = vrot.lane.b32.xlu1 %v19303_v24, %s20108_s3  ;;  %15338 = vmatprep.subr.msk.bf16.mxu0 %vm17075_vm5, %v15336_v19 }
0x337e   : > { %15341 = vmatpush3.bf16.xpose.msk.msra.mxu0 %vm17075_vm5, %v15336_v19 }
0x337f   : > { %v14528_v60 = vpop.f32.mrb[172].mxu1  ;;  %v19311_v1 = vpack.i.bf16 %v9781_v57, %v9776_v4  ;;  %v15342_v30 = vpack.c.bf16 %v9781_v57, %v9776_v4 }
0x3380   : > { %v9791_v11 = vadd.f32 %v14528_v60, %v12829_v54  ;;  %v9785_v14 = vpop.f32.mrb[173].mxu1 }
0x3381   : > { %v9786_v20 = vadd.f32 %v12829_v54, %v9785_v14  ;;  %16002 = vrot.lane.b32.xlu0 %v19311_v1, %s20108_s3  ;;  %15344 = vmatprep.subr.msk.bf16.mxu0 %vm17075_vm5, %v15342_v30 }
0x3383   : > { %v19319_v50 = vpack.i.bf16 %v9791_v11, %v9786_v20  ;;  %v15348_v55 = vpack.c.bf16 %v9791_v11, %v9786_v20 }
0x3385   : > { %10136 = vrot.lane.b32.xlu0 %v19317_v37, %s20108_s3  ;;  %16007 = vrot.lane.b32.xlu1 %v19319_v50, %s20108_s3 }
0x3386   : > { %15347 = vmatpush3.bf16.xpose.msk.msra.mxu0 %vm17075_vm5, %v15342_v30 }
0x3387   : > { %15350 = vmatprep.subr.msk.bf16.mxu0 %vm17075_vm5, %v15348_v55 }
0x3389   : > { %10140 = vrot.lane.b32.xlu0 %v19327_v31, %s20108_s3  ;;  %10134 = vrot.lane.b32.xlu1 %v19298_v62, %s20108_s3 }
0x338d   : > { %10144 = vrot.lane.b32.xlu0 %v19337_v21, %s20108_s3  ;;  %10138 = vrot.lane.b32.xlu1 %v19335_v17, %s20108_s3 }
0x338e   : > { %15353 = vmatpush3.bf16.xpose.msk.msra.mxu0 %vm17075_vm5, %v15348_v55 }
0x3391   : > { %16017 = vrot.lane.b32.xlu0 %v19311_v1, %s20109_s1  ;;  %10142 = vrot.lane.b32.xlu1 %v19345_v40, %s20108_s3  ;;  %s20110_s3 = sld [smem:[#allocation6_spill]] }
0x3395   : > { %16012 = vrot.lane.b32.xlu1 %v19303_v24, %s20109_s1  ;;  %14542 = vmatmul.mubr.msk.f32.vlgmr.msra.gmra.mrb[114].mxu0 %vm1308_vm2, %v19317_v37 }
0x3396   : > { %14544 = vmatprep.mubr.msk.f32.mxu0 %vm1308_vm2, %v19335_v17 }
0x3397   : > { %v19384_v54 = vld [vmem:[%s20110_s3 + $0x8] sm:$0xff]  ;;  %v19387_v26 = vld [vmem:[%s20110_s3] sm:$0xff]  ;;  %v19396_v63 = vld [vmem:[%s20110_s3 + $0x18] sm:$0xff] }
0x3398   : > { %v19399_v30 = vld [vmem:[%s20110_s3 + $0x10] sm:$0xff] }
0x3399   : > { %16022 = vrot.lane.b32.xlu1 %v19319_v50, %s20109_s1  ;;  %14545 = vmatmul.mubr.msk.f32.gmra.mrb[116].mxu0 %vm1308_vm2, %v19327_v31  ;;  %s20111_s1 = smov 88  }
0x339a   : > { %14547 = vmatprep.mubr.msk.f32.mxu0 %vm1308_vm2, %v19345_v40 }
0x339d   : > { %14548 = vmatmul.mubr.msk.f32.gmra.mrb[118].mxu0 %vm1308_vm2, %v19337_v21 }
0x33ef   : > { %v15998_v42 = vpop.permute.xlu1 %15997 }
0x33f0   : > { %v16000_v23 = vunpack.i.h.bf16 %v15998_v42  ;;  %v15999_v8 = vunpack.i.l.bf16 %v15998_v42 }
0x33f2   : > { %v15366_v43 = vpack.c.bf16 %v16000_v23, %v15999_v8  ;;  %v19410_v8 = vld [vmem:[%s20110_s3 + $0x28] sm:$0xff] }
0x33f3   : > { %v16003_v2 = vpop.permute.xlu0 %16002 }
0x33f4   : > { %v16005_v48 = vunpack.i.h.bf16 %v16003_v2  ;;  %v16004_v44 = vunpack.i.l.bf16 %v16003_v2  ;;  %15368 = vmatprep.subr.msk.bf16.mxu0 %vm17075_vm5, %v15366_v43 }
0x33f5   : > { %15371 = vmatpush3.bf16.xpose.msk.msra.mxu0 %vm17075_vm5, %v15366_v43 }
0x33f6   : > { %v15372_v56 = vpack.c.bf16 %v16005_v48, %v16004_v44  ;;  %v19413_v48 = vld [vmem:[%s20110_s3 + $0x20] sm:$0xff] }
0x33f7   : > { %v10137_v36 = vpop.permute.xlu0 %10136  ;;  %v16008_v15 = vpop.permute.xlu1 %16007 }
0x33f8   : > { %v16010_v7 = vunpack.i.h.bf16 %v16008_v15  ;;  %v16009_v5 = vunpack.i.l.bf16 %v16008_v15  ;;  %15374 = vmatprep.subr.msk.bf16.mxu0 %vm17075_vm5, %v15372_v56 }
0x33fa   : > { %v15378_v39 = vpack.c.bf16 %v16010_v7, %v16009_v5 }
0x33fb   : > { %v10141_v18 = vpop.permute.xlu0 %10140  ;;  %v10135_v58 = vpop.permute.xlu1 %10134 }
0x33fc   : > { %14583 = vmatprep.mubr.msk.f32.mxu0 %vm1308_vm2, %v10135_v58 }
0x33fd   : > { %15377 = vmatpush3.bf16.xpose.msk.msra.mxu0 %vm17075_vm5, %v15372_v56 }
0x33fe   : > { %15380 = vmatprep.subr.msk.bf16.mxu0 %vm17075_vm5, %v15378_v39 }
0x33ff   : > { %v10145_v41 = vpop.permute.xlu0 %10144  ;;  %v10139_v61 = vpop.permute.xlu1 %10138 }
0x3403   : > { %v10143_v33 = vpop.permute.xlu1 %10142  ;;  %v16018_v34 = vpop.permute.xlu0 %16017 }
0x3404   : > { %v16020_v3 = vunpack.i.h.bf16 %v16018_v34  ;;  %v16019_v51 = vunpack.i.l.bf16 %v16018_v34 }
0x3405   : > { %15383 = vmatpush3.bf16.xpose.msk.msra.mxu0 %vm17075_vm5, %v15378_v39 }
0x3406   : > { %v15358_v13 = vpack.c.bf16 %v16020_v3, %v16019_v51 }
0x3407   : > { %v16013_v46 = vpop.permute.xlu1 %16012 }
0x3408   : > { %v16015_v47 = vunpack.i.h.bf16 %v16013_v46  ;;  %v16014_v45 = vunpack.i.l.bf16 %v16013_v46 }
0x340a   : > { %v15354_v29 = vpack.c.bf16 %v16015_v47, %v16014_v45 }
0x340b   : > { %v16023_v59 = vpop.permute.xlu1 %16022 }
0x340c   : > { %v16025_v32 = vunpack.i.h.bf16 %v16023_v59  ;;  %v16024_v6 = vunpack.i.l.bf16 %v16023_v59  ;;  %15355 = vmatprep.subr.bf16.mxu1 %v15354_v29  ;;  %14584 = vmatmul.mubr.msk.f32.vlgmr.msra.gmra.mrb[120].mxu0 %vm1308_vm2, %v10137_v36 }
0x340d   : > { %15357 = vmatpush3.bf16.msra.mxu1 %v15354_v29  ;;  %14586 = vmatprep.mubr.msk.f32.mxu0 %vm1308_vm2, %v10139_v61 }
0x340e   : > { %15359 = vmatprep.subr.bf16.mxu1 %v15358_v13  ;;  %v15362_v35 = vpack.c.bf16 %v16025_v32, %v16024_v6 }
0x3410   : > { %14587 = vmatmul.mubr.msk.f32.gmra.mrb[122].mxu0 %vm1308_vm2, %v10141_v18 }
0x3411   : > { %15361 = vmatpush3.bf16.msra.mxu1 %v15358_v13  ;;  %14589 = vmatprep.mubr.msk.f32.mxu0 %vm1308_vm2, %v10143_v33 }
0x3412   : > { %15363 = vmatprep.subr.bf16.mxu1 %v15362_v35 }
0x3414   : > { %14590 = vmatmul.mubr.msk.f32.gmra.mrb[124].mxu0 %vm1308_vm2, %v10145_v41 }
0x3415   : > { %15365 = vmatpush3.bf16.msra.mxu1 %v15362_v35 }
0x3468   : > { %v14543_v28 = vpop.f32.mrb[114].mxu0 }
0x3469   : > { %v9926_v16 = vmul.f32 0.35355338, %v14543_v28  ;;  %v9896_v22 = vpop.f32.mrb[115].mxu0 }
0x346a   : > { %v9925_v38 = vmul.f32 0.35355338, %v9896_v22 }
0x346b   : > { %v19390_v19 = vadd.f32 %v9926_v16, %v19384_v54 }
0x346c   : > { %v19393_v57 = vadd.f32 %v9925_v38, %v19387_v26  ;;  %v14546_v4 = vpop.f32.mrb[116].mxu0 }
0x346d   : > { %v9928_v60 = vmul.f32 0.35355338, %v14546_v4  ;;  %v9906_v11 = vpop.f32.mrb[117].mxu0  ;;  %v9940_v14 = vsel %vm1539_vm3, %v19390_v19, -inf }
0x346e   : > { %v9927_v20 = vmul.f32 0.35355338, %v9906_v11  ;;  %9941 = vmax.xlane.f32.xlu0 %v9940_v14  ;;  %v9937_v55 = vsel %vm1539_vm3, %v19393_v57, -inf }
0x346f   : > { %v19406_v42 = vadd.f32 %v9928_v60, %v19396_v63  ;;  %9938 = vmax.xlane.f32.xlu1 %v9937_v55 }
0x3470   : > { %v9933_v23 = vadd.f32 %v9927_v20, %v19399_v30  ;;  %v14549_v43 = vpop.f32.mrb[118].mxu0 }
0x3471   : > { %v9930_v2 = vmul.f32 0.35355338, %v14549_v43  ;;  %v9916_v44 = vpop.f32.mrb[119].mxu0  ;;  %v9946_v56 = vsel %vm1539_vm3, %v19406_v42, -inf }
0x3472   : > { %v9929_v36 = vmul.f32 0.35355338, %v9916_v44  ;;  %v9943_v15 = vsel %vm1539_vm3, %v9933_v23, -inf }
0x3473   : > { %v9936_v7 = vadd.f32 %v9930_v2, %v19410_v8  ;;  %9947 = vmax.xlane.f32.xlu1 %v9946_v56  ;;  %9944 = vmax.xlane.f32.xlu0 %v9943_v15 }
0x3474   : > { %v9935_v5 = vadd.f32 %v9929_v36, %v19413_v48 }
0x3475   : > { %v9952_v18 = vsel %vm1539_vm3, %v9936_v7, -inf }
0x3476   : > { %v9949_v58 = vsel %vm1539_vm3, %v9935_v5, -inf }
0x3477   : > { %9953 = vmax.xlane.f32.xlu1 %v9952_v18  ;;  %9950 = vmax.xlane.f32.xlu0 %v9949_v58 }
0x34df   : > { %v14585_v39 = vpop.f32.mrb[120].mxu0 }
0x34e0   : > { %v10278_v41 = vmul.f32 0.35355338, %v14585_v39  ;;  %v10248_v61 = vpop.f32.mrb[121].mxu0 }
0x34e1   : > { %v10277_v33 = vmul.f32 0.35355338, %v10248_v61 }
0x34e2   : > { %v19423_v34 = vadd.f32 %v10278_v41, %v19384_v54 }
0x34e3   : > { %v19426_v46 = vadd.f32 %v10277_v33, %v19387_v26  ;;  %v14588_v3 = vpop.f32.mrb[122].mxu0 }
0x34e4   : > { %v10280_v51 = vmul.f32 0.35355338, %v14588_v3  ;;  %v10258_v47 = vpop.f32.mrb[123].mxu0  ;;  %v10292_v45 = vsel %vm1539_vm3, %v19423_v34, -inf }
0x34e5   : > { %v10279_v29 = vmul.f32 0.35355338, %v10258_v47  ;;  %10293 = vmax.xlane.f32.xlu1 %v10292_v45  ;;  %v10289_v59 = vsel %vm1539_vm3, %v19426_v46, -inf }
0x34e6   : > { %v19433_v32 = vadd.f32 %v10280_v51, %v19396_v63  ;;  %10290 = vmax.xlane.f32.xlu0 %v10289_v59 }
0x34e7   : > { %v19436_v6 = vadd.f32 %v10279_v29, %v19399_v30  ;;  %v14591_v13 = vpop.f32.mrb[124].mxu0 }
0x34e8   : > { %v10282_v35 = vmul.f32 0.35355338, %v14591_v13  ;;  %v10268_v28 = vpop.f32.mrb[125].mxu0  ;;  %v10298_v16 = vsel %vm1539_vm3, %v19433_v32, -inf }
0x34e9   : > { %v10281_v22 = vmul.f32 0.35355338, %v10268_v28  ;;  %10299 = vmax.xlane.f32.xlu1 %v10298_v16  ;;  %v10295_v38 = vsel %vm1539_vm3, %v19436_v6, -inf }
0x34ea   : > { %v19443_v4 = vadd.f32 %v10282_v35, %v19410_v8  ;;  %10296 = vmax.xlane.f32.xlu0 %v10295_v38 }
0x34eb   : > { %v19446_v60 = vadd.f32 %v10281_v22, %v19413_v48 }
0x34ec   : > { %v10304_v11 = vsel %vm1539_vm3, %v19443_v4, -inf }
0x34ed   : > { %10305 = vmax.xlane.f32.xlu1 %v10304_v11  ;;  %v10301_v14 = vsel %vm1539_vm3, %v19446_v60, -inf }
0x34ee   : > { %10302 = vmax.xlane.f32.xlu0 %v10301_v14 }
0x34fb   : > { %v9942_v55 = vpop.xlane.xlu0 %9941 }
0x34fc   : > { %v9939_v20 = vpop.xlane.xlu1 %9938  ;;  %v9956_v43 = vsub.f32 %v19390_v19, %v9942_v55 }
0x34fd   : > { %v9955_v44 = vsub.f32 %v19393_v57, %v9939_v20 }
0x34fe   : > { %16032 = vrot.lane.b32.xlu1 %v19311_v1, %s20111_s1  ;;  %v9963_v36 = vmul.f32 1.442695, %v9956_v43 }
0x34ff   : > { %v9961_v15 = vmul.f32 1.442695, %v9955_v44 }
0x3500   : > { %v9948_v2 = vpop.xlane.xlu1 %9947  ;;  %v9945_v56 = vpop.xlane.xlu0 %9944  ;;  %16485 = vpow2.f32 %v9963_v36 }
0x3501   : > { %v9957_v18 = vsub.f32 %v9933_v23, %v9945_v56  ;;  %16487 = vpow2.f32 %v9961_v15  ;;  %v9958_v35 = vsub.f32 %v19406_v42, %v9948_v2 }
0x3503   : > { %v9965_v39 = vmul.f32 1.442695, %v9957_v18  ;;  %v9967_v28 = vmul.f32 1.442695, %v9958_v35 }
0x3504   : > { %16027 = vrot.lane.b32.xlu0 %v19303_v24, %s20111_s1  ;;  %v9954_v58 = vpop.xlane.xlu1 %9953  ;;  %v9951_v61 = vpop.xlane.xlu0 %9950 }
0x3505   : > { %v9960_v41 = vsub.f32 %v9936_v7, %v9954_v58  ;;  %16489 = vpow2.f32 %v9965_v39  ;;  %v9959_v33 = vsub.f32 %v9935_v5, %v9951_v61 }
0x3507   : > { %v9971_v3 = vmul.f32 1.442695, %v9960_v41  ;;  %v9969_v51 = vmul.f32 1.442695, %v9959_v33 }
0x3509   : > { %16491 = vpow2.f32 %v9971_v3 }
0x350a   : > { %v19458_v47 = vpop.eup %16485  ;;  %16493 = vpow2.f32 %v9969_v51 }
0x350b   : > { %v19460_v19 = vpop.eup %16487  ;;  %v9976_v57 = vsel %vm1539_vm3, %v19458_v47, 0.0  ;;  %16495 = vpow2.f32 %v9967_v28 }
0x350c   : > { %v9973_v23 = vsel %vm1539_vm3, %v19460_v19, 0.0 }
0x350f   : > { %v19466_v45 = vpop.eup %16489 }
0x3510   : > { %v9979_v7 = vsel %vm1539_vm3, %v19466_v45, 0.0 }
0x3513   : > { %v19470_v5 = vpop.eup %16491 }
0x3514   : > { %v9988_v29 = vsel %vm1539_vm3, %v19470_v5, 0.0  ;;  %v19474_v59 = vpop.eup %16493 }
0x3515   : > { %v9985_v13 = vsel %vm1539_vm3, %v19474_v59, 0.0  ;;  %v19481_v16 = vpop.eup %16495 }
0x3516   : > { %v9982_v22 = vsel %vm1539_vm3, %v19481_v16, 0.0 }
0x3522   : > { %9977 = vadd.xlane.f32.xlu1 %v9976_v57 }
0x3523   : > { %9974 = vadd.xlane.f32.xlu0 %v9973_v23 }
0x3527   : > { %9980 = vadd.xlane.f32.xlu0 %v9979_v7 }
0x352b   : > { %9989 = vadd.xlane.f32.xlu0 %v9988_v29 }
0x352f   : > { %9986 = vadd.xlane.f32.xlu0 %v9985_v13 }
0x3533   : > { %16037 = vrot.lane.b32.xlu1 %v19319_v50, %s20111_s1  ;;  %s20121_s1 = sld [smem:[#allocation10_spill]] }
0x3557   : > { %9983 = vadd.xlane.f32.xlu1 %v9982_v22 }
0x3572   : > { %v10294_v38 = vpop.xlane.xlu1 %10293 }
0x3573   : > { %v10308_v11 = vsub.f32 %v19423_v34, %v10294_v38  ;;  %v10291_v14 = vpop.xlane.xlu0 %10290 }
0x3574   : > { %v10307_v20 = vsub.f32 %v19426_v46, %v10291_v14 }
0x3575   : > { %v10315_v55 = vmul.f32 1.442695, %v10308_v11 }
0x3576   : > { %v10313_v43 = vmul.f32 1.442695, %v10307_v20  ;;  %v10300_v44 = vpop.xlane.xlu1 %10299 }
0x3577   : > { %16497 = vpow2.f32 %v10315_v55  ;;  %v10310_v42 = vsub.f32 %v19433_v32, %v10300_v44  ;;  %v10297_v2 = vpop.xlane.xlu0 %10296 }
0x3578   : > { %16499 = vpow2.f32 %v10313_v43  ;;  %v10309_v56 = vsub.f32 %v19436_v6, %v10297_v2 }
0x3579   : > { %v10319_v36 = vmul.f32 1.442695, %v10310_v42 }
0x357a   : > { %v10317_v15 = vmul.f32 1.442695, %v10309_v56  ;;  %v10306_v18 = vpop.xlane.xlu1 %10305 }
0x357b   : > { %16501 = vpow2.f32 %v10319_v36  ;;  %v10312_v58 = vsub.f32 %v19443_v4, %v10306_v18  ;;  %v10303_v34 = vpop.xlane.xlu0 %10302 }
0x357c   : > { %16503 = vpow2.f32 %v10317_v15  ;;  %v10311_v46 = vsub.f32 %v19446_v60, %v10303_v34 }
0x357d   : > { %v10323_v39 = vmul.f32 1.442695, %v10312_v58 }
0x357e   : > { %v10321_v41 = vmul.f32 1.442695, %v10311_v46  ;;  %v16033_v38 = vpop.permute.xlu1 %16032 }
0x357f   : > { %16505 = vpow2.f32 %v10323_v39  ;;  %v16028_v61 = vpop.permute.xlu0 %16027  ;;  %v16035_v44 = vunpack.i.h.bf16 %v16033_v38  ;;  %v16034_v42 = vunpack.i.l.bf16 %v16033_v38 }
0x3580   : > { %v16030_v33 = vunpack.i.h.bf16 %v16028_v61  ;;  %v16029_v32 = vunpack.i.l.bf16 %v16028_v61  ;;  %16507 = vpow2.f32 %v10321_v41 }
0x3581   : > { %v19491_v3 = vpop.eup %16497  ;;  %v15388_v34 = vpack.c.bf16 %v16035_v44, %v16034_v42 }
0x3582   : > { %v19493_v6 = vpop.eup %16499  ;;  %v10328_v51 = vsel %vm1539_vm3, %v19491_v3, 0.0  ;;  %v15384_v57 = vpack.c.bf16 %v16030_v33, %v16029_v32 }
0x3583   : > { %10329 = vadd.xlane.f32.xlu0 %v10328_v51  ;;  %v10325_v4 = vsel %vm1539_vm3, %v19493_v6, 0.0 }
0x3584   : > { %10326 = vadd.xlane.f32.xlu1 %v10325_v4  ;;  %15385 = vmatprep.subr.bf16.mxu1 %v15384_v57 }
0x3585   : > { %v19499_v60 = vpop.eup %16501 }
0x3586   : > { %v19501_v23 = vpop.eup %16503  ;;  %v10334_v7 = vsel %vm1539_vm3, %v19499_v60, 0.0 }
0x3587   : > { %10335 = vadd.xlane.f32.xlu0 %v10334_v7  ;;  %v10331_v29 = vsel %vm1539_vm3, %v19501_v23, 0.0 }
0x3588   : > { %10332 = vadd.xlane.f32.xlu1 %v10331_v29 }
0x3589   : > { %v19507_v13 = vpop.eup %16505 }
0x358a   : > { %v10340_v35 = vsel %vm1539_vm3, %v19507_v13, 0.0  ;;  %v19511_v28 = vpop.eup %16507 }
0x358b   : > { %10341 = vadd.xlane.f32.xlu0 %v10340_v35  ;;  %v10337_v22 = vsel %vm1539_vm3, %v19511_v28, 0.0 }
0x358f   : > { %10338 = vadd.xlane.f32.xlu0 %v10337_v22 }
0x3599   : > { %16047 = vrot.lane.b32.xlu1 %v19311_v1, %s20093_s10 }
0x359d   : > { %16052 = vrot.lane.b32.xlu1 %v19319_v50, %s20093_s10 }
0x35a1   : > { %10486 = vrot.lane.b32.xlu1 %v19298_v62, %s20093_s10 }
0x35a5   : > { %10488 = vrot.lane.b32.xlu1 %v19317_v37, %s20093_s10  ;;  %16042 = vrot.lane.b32.xlu0 %v19303_v24, %s20093_s10 }
0x35a9   : > { %10492 = vrot.lane.b32.xlu1 %v19327_v31, %s20093_s10  ;;  %10490 = vrot.lane.b32.xlu0 %v19335_v17, %s20093_s10 }
0x35ad   : > { %10496 = vrot.lane.b32.xlu1 %v19337_v21, %s20093_s10  ;;  %10494 = vrot.lane.b32.xlu0 %v19345_v40, %s20093_s10  ;;  %s16714_s10 = smov 32  }
0x35af   : > { %v9978_v11 = vpop.xlane.xlu1 %9977 }
0x35b0   : > { %16509 = vrcp.f32 %v9978_v11  ;;  %v9975_v14 = vpop.xlane.xlu0 %9974 }
0x35b1   : > { %16511 = vrcp.f32 %v9975_v14 }
0x35b3   : > { %v16038_v2 = vpop.permute.xlu1 %16037 }
0x35b4   : > { %v9981_v20 = vpop.xlane.xlu0 %9980  ;;  %v16040_v18 = vunpack.i.h.bf16 %v16038_v2  ;;  %v16039_v58 = vunpack.i.l.bf16 %v16038_v2 }
0x35b5   : > { %16513 = vrcp.f32 %v9981_v20 }
0x35b6   : > { %v15392_v39 = vpack.c.bf16 %v16040_v18, %v16039_v58 }
0x35ba   : > { %v16510_v55 = vpop.eup %16509 }
0x35bb   : > { %v16512_v43 = vpop.eup %16511  ;;  %v9998_v36 = vmul.f32 %v16510_v55, %v19458_v47 }
0x35bc   : > { %v9997_v56 = vmul.f32 %v16512_v43, %v19460_v19  ;;  %v9990_v19 = vpop.xlane.xlu0 %9989 }
0x35be   : > { %14562 = vmatprep.mubr.msk.f32.mxu1 %vm1539_vm3, %v9997_v56 }
0x35bf   : > { %v16514_v15 = vpop.eup %16513  ;;  %14563 = vmatmul.mubr.msk.f32.vlgmr.msra.gmra.mrb[174].mxu1 %vm1539_vm3, %v9998_v36 }
0x35c0   : > { %15387 = vmatpush3.bf16.msra.mxu1 %v15384_v57  ;;  %v9999_v46 = vmul.f32 %v16514_v15, %v19466_v45  ;;  %v9987_v47 = vpop.xlane.xlu0 %9986 }
0x35c1   : > { %15389 = vmatprep.subr.bf16.mxu1 %v15388_v34  ;;  %16515 = vrcp.f32 %v9987_v47 }
0x35c2   : > { %14565 = vmatprep.mubr.msk.f32.mxu1 %vm1539_vm3, %v9999_v46 }
0x35c4   : > { %15391 = vmatpush3.bf16.msra.mxu1 %v15388_v34 }
0x35c5   : > { %15393 = vmatprep.subr.bf16.mxu1 %v15392_v39 }
0x35c8   : > { %15395 = vmatpush3.bf16.msra.mxu1 %v15392_v39 }
0x35cb   : > { %v16516_v61 = vpop.eup %16515 }
0x35cc   : > { %v10001_v45 = vmul.f32 %v16516_v61, %v19474_v59 }
0x35e4   : > { %v9984_v41 = vpop.xlane.xlu1 %9983 }
0x35e5   : > { %16517 = vrcp.f32 %v9984_v41 }
0x35e6   : > { %16519 = vrcp.f32 %v9990_v19 }
0x35ef   : > { %v16518_v33 = vpop.eup %16517 }
0x35f0   : > { %v10000_v32 = vmul.f32 %v16518_v33, %v19481_v16  ;;  %v16520_v51 = vpop.eup %16519 }
0x35f1   : > { %v10002_v57 = vmul.f32 %v16520_v51, %v19470_v5 }
0x35f2   : > { %14566 = vmatmul.mubr.msk.f32.gmra.mrb[176].mxu1 %vm1539_vm3, %v10000_v32 }
0x35f3   : > { %14568 = vmatprep.mubr.msk.f32.mxu1 %vm1539_vm3, %v10001_v45 }
0x35f6   : > { %14569 = vmatmul.mubr.msk.f32.gmra.mrb[178].mxu1 %vm1539_vm3, %v10002_v57 }
0x3610   : > { %v10330_v4 = vpop.xlane.xlu0 %10329 }
0x3611   : > { %16521 = vrcp.f32 %v10330_v4  ;;  %v10327_v7 = vpop.xlane.xlu1 %10326 }
0x3612   : > { %16523 = vrcp.f32 %v10327_v7 }
0x3614   : > { %v10336_v29 = vpop.xlane.xlu0 %10335 }
0x3615   : > { %16525 = vrcp.f32 %v10336_v29  ;;  %v10333_v35 = vpop.xlane.xlu1 %10332 }
0x3616   : > { %16527 = vrcp.f32 %v10333_v35 }
0x3618   : > { %v10342_v16 = vpop.xlane.xlu0 %10341 }
0x3619   : > { %16529 = vrcp.f32 %v10342_v16  ;;  %v16048_v11 = vpop.permute.xlu1 %16047 }
0x361a   : > { %v16050_v43 = vunpack.i.h.bf16 %v16048_v11  ;;  %v16049_v42 = vunpack.i.l.bf16 %v16048_v11 }
0x361b   : > { %v16522_v22 = vpop.eup %16521 }
0x361c   : > { %v16524_v38 = vpop.eup %16523  ;;  %v10339_v59 = vpop.xlane.xlu0 %10338  ;;  %v10350_v5 = vmul.f32 %v16522_v22, %v19491_v3  ;;  %v15402_v3 = vpack.c.bf16 %v16050_v43, %v16049_v42 }
0x361d   : > { %16531 = vrcp.f32 %v10339_v59  ;;  %v10349_v14 = vmul.f32 %v16524_v38, %v19493_v6  ;;  %v16053_v6 = vpop.permute.xlu1 %16052 }
0x361e   : > { %v16054_v46 = vunpack.i.l.bf16 %v16053_v6 }
0x361f   : > { %v16526_v20 = vpop.eup %16525  ;;  %14604 = vmatprep.mubr.msk.f32.mxu1 %vm1539_vm3, %v10349_v14 }
0x3620   : > { %v16528_v55 = vpop.eup %16527  ;;  %v16043_v44 = vpop.permute.xlu0 %16042  ;;  %14605 = vmatmul.mubr.msk.f32.vlgmr.msra.gmra.mrb[180].mxu1 %vm1539_vm3, %v10350_v5  ;;  %v10352_v15 = vmul.f32 %v16526_v20, %v19499_v60 }
0x3621   : > { %v16045_v2 = vunpack.i.h.bf16 %v16043_v44  ;;  %v16044_v56 = vunpack.i.l.bf16 %v16043_v44  ;;  %v10351_v36 = vmul.f32 %v16528_v55, %v19501_v23  ;;  %v16055_v23 = vunpack.i.h.bf16 %v16053_v6  ;;  %v10487_v19 = vpop.permute.xlu1 %10486 }
0x3623   : > { %v15396_v18 = vpack.c.bf16 %v16045_v2, %v16044_v56  ;;  %14607 = vmatprep.mubr.msk.f32.mxu1 %vm1539_vm3, %v10351_v36  ;;  %v16530_v58 = vpop.eup %16529  ;;  %v15408_v47 = vpack.c.bf16 %v16055_v23, %v16054_v46 }
0x3624   : > { %14608 = vmatmul.mubr.msk.f32.gmra.mrb[182].mxu1 %vm1539_vm3, %v10352_v15  ;;  %v10354_v39 = vmul.f32 %v16530_v58, %v19507_v13  ;;  %v10491_v41 = vpop.permute.xlu0 %10490 }
0x3625   : > { %15398 = vmatprep.subr.msk.bf16.mxu1 %vm17075_vm5, %v15396_v18 }
0x3626   : > { %15401 = vmatpush3.bf16.xpose.msk.msra.mxu1 %vm17075_vm5, %v15396_v18 }
0x3627   : > { %v16532_v34 = vpop.eup %16531  ;;  %15404 = vmatprep.subr.msk.bf16.mxu1 %vm17075_vm5, %v15402_v3 }
0x3628   : > { %v10353_v60 = vmul.f32 %v16532_v34, %v19511_v28  ;;  %v10489_v28 = vpop.permute.xlu1 %10488  ;;  %v10495_v61 = vpop.permute.xlu0 %10494 }
0x362a   : > { %14610 = vmatprep.mubr.msk.f32.mxu1 %vm1539_vm3, %v10353_v60 }
0x362b   : > { %14611 = vmatmul.mubr.msk.f32.gmra.mrb[184].mxu1 %vm1539_vm3, %v10354_v39 }
0x362c   : > { %14625 = vmatprep.mubr.msk.f32.mxu1 %vm1308_vm2, %v10487_v19  ;;  %v10493_v13 = vpop.permute.xlu1 %10492 }
0x362e   : > { %15407 = vmatpush3.bf16.xpose.msk.msra.mxu1 %vm17075_vm5, %v15402_v3 }
0x362f   : > { %15410 = vmatprep.subr.msk.bf16.mxu1 %vm17075_vm5, %v15408_v47 }
0x3630   : > { %v10497_v33 = vpop.permute.xlu1 %10496 }
0x3636   : > { %15413 = vmatpush3.bf16.xpose.msk.msra.mxu1 %vm17075_vm5, %v15408_v47 }
0x363d   : > { %14626 = vmatmul.mubr.msk.f32.vlgmr.msra.gmra.mrb[186].mxu1 %vm1308_vm2, %v10489_v28 }
0x363e   : > { %14628 = vmatprep.mubr.msk.f32.mxu1 %vm1308_vm2, %v10491_v41 }
0x3641   : > { %14629 = vmatmul.mubr.msk.f32.gmra.mrb[188].mxu1 %vm1308_vm2, %v10493_v13 }
0x3642   : > { %14631 = vmatprep.mubr.msk.f32.mxu1 %vm1308_vm2, %v10495_v61 }
0x3645   : > { %14632 = vmatmul.mubr.msk.f32.gmra.mrb[190].mxu1 %vm1308_vm2, %v10497_v33 }
0x3692   : > { %v19575_v32 = vpop.f32.mrb[174].mxu1 }
0x3693   : > { %v19577_v51 = vpop.f32.mrb[175].mxu1 }
0x36c5   : > { %v19579_v45 = vpop.f32.mrb[176].mxu1 }
0x36c6   : > { %v19581_v57 = vpop.f32.mrb[177].mxu1 }
0x36c9   : > { %v19583_v4 = vpop.f32.mrb[178].mxu1 }
0x36ca   : > { %v19585_v7 = vpop.f32.mrb[179].mxu1 }
0x36f3   : > { %v19587_v29 = vpop.f32.mrb[180].mxu1 }
0x36f4   : > { %v19589_v35 = vpop.f32.mrb[181].mxu1 }
0x36f7   : > { %v19591_v16 = vpop.f32.mrb[182].mxu1 }
0x36f8   : > { %v19593_v22 = vpop.f32.mrb[183].mxu1 }
0x36fe   : > { %v19595_v38 = vpop.f32.mrb[184].mxu1 }
0x36ff   : > { %v19597_v59 = vpop.f32.mrb[185].mxu1 }
0x3710   : > { %v14627_v11 = vpop.f32.mrb[186].mxu1 }
0x3711   : > { %v10630_v14 = vmul.f32 0.35355338, %v14627_v11  ;;  %v10600_v5 = vpop.f32.mrb[187].mxu1 }
0x3712   : > { %v10629_v20 = vmul.f32 0.35355338, %v10600_v5 }
0x3713   : > { %v10636_v55 = vadd.f32 %v10630_v14, %v19384_v54 }
0x3714   : > { %v10635_v43 = vadd.f32 %v10629_v20, %v19387_v26  ;;  %v14630_v44 = vpop.f32.mrb[188].mxu1 }
0x3715   : > { %v10632_v42 = vmul.f32 0.35355338, %v14630_v44  ;;  %v10610_v2 = vpop.f32.mrb[189].mxu1  ;;  %v10644_v56 = vsel %vm1539_vm3, %v10636_v55, -inf }
0x3716   : > { %v10631_v36 = vmul.f32 0.35355338, %v10610_v2  ;;  %10645 = vmax.xlane.f32.xlu1 %v10644_v56  ;;  %v10641_v15 = vsel %vm1539_vm3, %v10635_v43, -inf }
0x3717   : > { %v10638_v18 = vadd.f32 %v10632_v42, %v19396_v63  ;;  %10642 = vmax.xlane.f32.xlu0 %v10641_v15 }
0x3718   : > { %v14633_v3 = vpop.f32.mrb[190].mxu1  ;;  %v10637_v34 = vadd.f32 %v10631_v36, %v19399_v30 }
0x3719   : > { %v10620_v6 = vpop.f32.mrb[191].mxu1  ;;  %v10650_v58 = vsel %vm1539_vm3, %v10638_v18, -inf  ;;  %v10634_v60 = vmul.f32 0.35355338, %v14633_v3 }
0x371a   : > { %v10633_v23 = vmul.f32 0.35355338, %v10620_v6  ;;  %v10647_v19 = vsel %vm1539_vm3, %v10637_v34, -inf }
0x371b   : > { %10651 = vmax.xlane.f32.xlu0 %v10650_v58  ;;  %v10640_v39 = vadd.f32 %v10634_v60, %v19410_v8 }
0x371c   : > { %v10639_v46 = vadd.f32 %v10633_v23, %v19413_v48 }
0x371d   : > { %v10656_v28 = vsel %vm1539_vm3, %v10640_v39, -inf }
0x371e   : > { %v10653_v47 = vsel %vm1539_vm3, %v10639_v46, -inf }
0x371f   : > { %10648 = vmax.xlane.f32.xlu0 %v10647_v19  ;;  %10654 = vmax.xlane.f32.xlu1 %v10653_v47 }
0x3723   : > { %10657 = vmax.xlane.f32.xlu0 %v10656_v28 }
0x3730   : > { %16057 = vrot.lane.b32.xlu1 %v19303_v24, %s20092_s2 }
0x3734   : > { %16067 = vrot.lane.b32.xlu1 %v19319_v50, %s20092_s2 }
0x3739   : > { %16062 = vrot.lane.b32.xlu0 %v19311_v1, %s20092_s2  ;;  %s20119_s2 = smov 64  }
0x37a3   : > { %v10646_v41 = vpop.xlane.xlu1 %10645 }
0x37a4   : > { %v10660_v13 = vsub.f32 %v10636_v55, %v10646_v41  ;;  %v10643_v61 = vpop.xlane.xlu0 %10642 }
0x37a5   : > { %v10659_v33 = vsub.f32 %v10635_v43, %v10643_v61 }
0x37a6   : > { %v10667_v11 = vmul.f32 1.442695, %v10660_v13 }
0x37a7   : > { %v10665_v14 = vmul.f32 1.442695, %v10659_v33 }
0x37a8   : > { %16533 = vpow2.f32 %v10667_v11  ;;  %v10652_v5 = vpop.xlane.xlu0 %10651 }
0x37a9   : > { %16535 = vpow2.f32 %v10665_v14  ;;  %v10662_v20 = vsub.f32 %v10638_v18, %v10652_v5 }
0x37ab   : > { %v10671_v44 = vmul.f32 1.442695, %v10662_v20 }
0x37ac   : > { %v10649_v42 = vpop.xlane.xlu0 %10648  ;;  %v10655_v2 = vpop.xlane.xlu1 %10654 }
0x37ad   : > { %16537 = vpow2.f32 %v10671_v44  ;;  %v10661_v56 = vsub.f32 %v10637_v34, %v10649_v42  ;;  %v10663_v15 = vsub.f32 %v10639_v46, %v10655_v2 }
0x37af   : > { %v10669_v36 = vmul.f32 1.442695, %v10661_v56  ;;  %v10673_v19 = vmul.f32 1.442695, %v10663_v15 }
0x37b0   : > { %v10658_v3 = vpop.xlane.xlu0 %10657  ;;  %v16058_v6 = vpop.permute.xlu1 %16057 }
0x37b1   : > { %16539 = vpow2.f32 %v10669_v36  ;;  %v10664_v58 = vsub.f32 %v10640_v39, %v10658_v3  ;;  %v16060_v55 = vunpack.i.h.bf16 %v16058_v6  ;;  %v16059_v60 = vunpack.i.l.bf16 %v16058_v6 }
0x37b2   : > { %v16534_v43 = vpop.eup %16533 }
0x37b3   : > { %v16536_v23 = vpop.eup %16535  ;;  %v10675_v47 = vmul.f32 1.442695, %v10664_v58  ;;  %v10680_v28 = vsel %vm1539_vm3, %v16534_v43, 0.0  ;;  %v15414_v18 = vpack.c.bf16 %v16060_v55, %v16059_v60 }
0x37b4   : > { %10681 = vadd.xlane.f32.xlu0 %v10680_v28  ;;  %v16063_v41 = vpop.permute.xlu0 %16062  ;;  %v16068_v13 = vpop.permute.xlu1 %16067  ;;  %v10677_v34 = vsel %vm1539_vm3, %v16536_v23, 0.0 }
0x37b5   : > { %16541 = vpow2.f32 %v10675_v47  ;;  %v16065_v46 = vunpack.i.h.bf16 %v16063_v41  ;;  %v16064_v61 = vunpack.i.l.bf16 %v16063_v41  ;;  %v16070_v33 = vunpack.i.h.bf16 %v16068_v13  ;;  %10678 = vadd.xlane.f32.xlu1 %v10677_v34  ;;  %15415 = vmatprep.subr.bf16.mxu0 %v15414_v18 }
0x37b6   : > { %v16069_v39 = vunpack.i.l.bf16 %v16068_v13  ;;  %15417 = vmatpush3.bf16.msra.mxu0 %v15414_v18  ;;  %16543 = vpow2.f32 %v10673_v19 }
0x37b7   : > { %v16538_v11 = vpop.eup %16537  ;;  %v15418_v14 = vpack.c.bf16 %v16065_v46, %v16064_v61 }
0x37b8   : > { %v10686_v5 = vsel %vm1539_vm3, %v16538_v11, 0.0  ;;  %v15422_v20 = vpack.c.bf16 %v16070_v33, %v16069_v39 }
0x37b9   : > { %10687 = vadd.xlane.f32.xlu0 %v10686_v5  ;;  %15419 = vmatprep.subr.bf16.mxu0 %v15418_v14 }
0x37ba   : > { %15421 = vmatpush3.bf16.msra.mxu0 %v15418_v14 }
0x37bb   : > { %v16540_v44 = vpop.eup %16539  ;;  %15423 = vmatprep.subr.bf16.mxu0 %v15422_v20 }
0x37bc   : > { %v10683_v42 = vsel %vm1539_vm3, %v16540_v44, 0.0 }
0x37bd   : > { %10684 = vadd.xlane.f32.xlu1 %v10683_v42 }
0x37be   : > { %15425 = vmatpush3.bf16.msra.mxu0 %v15422_v20 }
0x37bf   : > { %v16542_v2 = vpop.eup %16541 }
0x37c0   : > { %v10692_v56 = vsel %vm1539_vm3, %v16542_v2, 0.0  ;;  %v16544_v36 = vpop.eup %16543 }
0x37c1   : > { %10693 = vadd.xlane.f32.xlu0 %v10692_v56  ;;  %v10689_v15 = vsel %vm1539_vm3, %v16544_v36, 0.0 }
0x37c5   : > { %10690 = vadd.xlane.f32.xlu0 %v10689_v15 }
0x37ce   : > { %16077 = vrot.lane.b32.xlu1 %v19311_v1, %s20081_s0 }
0x37d2   : > { %16082 = vrot.lane.b32.xlu1 %v19319_v50, %s20081_s0 }
0x37d6   : > { %10838 = vrot.lane.b32.xlu1 %v19298_v62, %s20081_s0 }
0x37da   : > { %10840 = vrot.lane.b32.xlu1 %v19317_v37, %s20081_s0 }
0x37db   : > { %16072 = vrot.lane.b32.xlu0 %v19303_v24, %s20081_s0 }
0x37de   : > { %10844 = vrot.lane.b32.xlu1 %v19327_v31, %s20081_s0 }
0x37df   : > { %10842 = vrot.lane.b32.xlu0 %v19335_v17, %s20081_s0 }
0x37e2   : > { %10848 = vrot.lane.b32.xlu1 %v19337_v21, %s20081_s0 }
0x37e3   : > { %10846 = vrot.lane.b32.xlu0 %v19345_v40, %s20081_s0  ;;  %s20118_s0 = sld [smem:[#allocation11_spill]] }
0x3841   : > { %v10682_v3 = vpop.xlane.xlu0 %10681 }
0x3842   : > { %16545 = vrcp.f32 %v10682_v3  ;;  %v10679_v62 = vpop.xlane.xlu1 %10678 }
0x3843   : > { %16547 = vrcp.f32 %v10679_v62 }
0x3846   : > { %v10688_v37 = vpop.xlane.xlu0 %10687 }
0x3847   : > { %16549 = vrcp.f32 %v10688_v37 }
0x384a   : > { %v10685_v6 = vpop.xlane.xlu1 %10684 }
0x384b   : > { %16551 = vrcp.f32 %v10685_v6 }
0x384c   : > { %v16546_v58 = vpop.eup %16545 }
0x384d   : > { %v16548_v55 = vpop.eup %16547  ;;  %v10702_v19 = vmul.f32 %v16546_v58, %v16534_v43 }
0x384e   : > { %v10694_v31 = vpop.xlane.xlu0 %10693  ;;  %v10701_v60 = vmul.f32 %v16548_v55, %v16536_v23  ;;  %v16078_v21 = vpop.permute.xlu1 %16077 }
0x384f   : > { %16553 = vrcp.f32 %v10694_v31  ;;  %v16080_v28 = vunpack.i.h.bf16 %v16078_v21  ;;  %v16079_v13 = vunpack.i.l.bf16 %v16078_v21 }
0x3850   : > { %14646 = vmatprep.mubr.msk.f32.mxu0 %vm1539_vm3, %v10701_v60 }
0x3851   : > { %14647 = vmatmul.mubr.msk.f32.vlgmr.msra.gmra.mrb[126].mxu0 %vm1539_vm3, %v10702_v19  ;;  %v16550_v40 = vpop.eup %16549  ;;  %v15432_v23 = vpack.c.bf16 %v16080_v28, %v16079_v13 }
0x3852   : > { %v10691_v17 = vpop.xlane.xlu0 %10690  ;;  %v10704_v61 = vmul.f32 %v16550_v40, %v16538_v11  ;;  %v16083_v33 = vpop.permute.xlu1 %16082 }
0x3853   : > { %16555 = vrcp.f32 %v10691_v17  ;;  %v16085_v11 = vunpack.i.h.bf16 %v16083_v33  ;;  %v16084_v20 = vunpack.i.l.bf16 %v16083_v33 }
0x3855   : > { %v16552_v47 = vpop.eup %16551  ;;  %v15438_v56 = vpack.c.bf16 %v16085_v11, %v16084_v20 }
0x3856   : > { %v16073_v18 = vpop.permute.xlu0 %16072  ;;  %v10703_v41 = vmul.f32 %v16552_v47, %v16540_v44  ;;  %v10839_v42 = vpop.permute.xlu1 %10838 }
0x3857   : > { %v16075_v34 = vunpack.i.h.bf16 %v16073_v18  ;;  %v16074_v46 = vunpack.i.l.bf16 %v16073_v18 }
0x3858   : > { %14649 = vmatprep.mubr.msk.f32.mxu0 %vm1539_vm3, %v10703_v41 }
0x3859   : > { %v15426_v43 = vpack.c.bf16 %v16075_v34, %v16074_v46  ;;  %14650 = vmatmul.mubr.msk.f32.gmra.mrb[128].mxu0 %vm1539_vm3, %v10704_v61  ;;  %v16554_v39 = vpop.eup %16553 }
0x385a   : > { %v10706_v44 = vmul.f32 %v16554_v39, %v16542_v2  ;;  %v10843_v15 = vpop.permute.xlu0 %10842 }
0x385b   : > { %15428 = vmatprep.subr.msk.bf16.mxu0 %vm17075_vm5, %v15426_v43 }
0x385c   : > { %15431 = vmatpush3.bf16.xpose.msk.msra.mxu0 %vm17075_vm5, %v15426_v43 }
0x385d   : > { %v16556_v14 = vpop.eup %16555  ;;  %15434 = vmatprep.subr.msk.bf16.mxu0 %vm17075_vm5, %v15432_v23 }
0x385e   : > { %v10705_v5 = vmul.f32 %v16556_v14, %v16544_v36  ;;  %v10841_v36 = vpop.permute.xlu1 %10840  ;;  %v10847_v3 = vpop.permute.xlu0 %10846 }
0x3860   : > { %14652 = vmatprep.mubr.msk.f32.mxu0 %vm1539_vm3, %v10705_v5 }
0x3861   : > { %14653 = vmatmul.mubr.msk.f32.gmra.mrb[130].mxu0 %vm1539_vm3, %v10706_v44 }
0x3862   : > { %14667 = vmatprep.mubr.msk.f32.mxu0 %vm1308_vm2, %v10839_v42  ;;  %v10845_v2 = vpop.permute.xlu1 %10844 }
0x3864   : > { %15437 = vmatpush3.bf16.xpose.msk.msra.mxu0 %vm17075_vm5, %v15432_v23 }
0x3865   : > { %15440 = vmatprep.subr.msk.bf16.mxu0 %vm17075_vm5, %v15438_v56 }
0x3866   : > { %v10849_v62 = vpop.permute.xlu1 %10848 }
0x386c   : > { %15443 = vmatpush3.bf16.xpose.msk.msra.mxu0 %vm17075_vm5, %v15438_v56 }
0x3873   : > { %14668 = vmatmul.mubr.msk.f32.vlgmr.msra.gmra.mrb[132].mxu0 %vm1308_vm2, %v10841_v36 }
0x3874   : > { %14670 = vmatprep.mubr.msk.f32.mxu0 %vm1308_vm2, %v10843_v15 }
0x3877   : > { %14671 = vmatmul.mubr.msk.f32.gmra.mrb[134].mxu0 %vm1308_vm2, %v10845_v2 }
0x3878   : > { %14673 = vmatprep.mubr.msk.f32.mxu0 %vm1308_vm2, %v10847_v3 }
0x387b   : > { %14674 = vmatmul.mubr.msk.f32.gmra.mrb[136].mxu0 %vm1308_vm2, %v10849_v62 }
0x3924   : > { %v19665_v37 = vpop.f32.mrb[126].mxu0 }
0x3925   : > { %v19667_v6 = vpop.f32.mrb[127].mxu0 }
0x392c   : > { %v19669_v49 = vpop.f32.mrb[128].mxu0 }
0x392d   : > { %v19671_v58 = vpop.f32.mrb[129].mxu0 }
0x3934   : > { %v19673_v55 = vpop.f32.mrb[130].mxu0 }
0x3935   : > { %v19675_v31 = vpop.f32.mrb[131].mxu0 }
0x3946   : > { %v14669_v60 = vpop.f32.mrb[132].mxu0 }
0x3947   : > { %v10982_v19 = vmul.f32 0.35355338, %v14669_v60  ;;  %v10952_v17 = vpop.f32.mrb[133].mxu0 }
0x3948   : > { %v10981_v21 = vmul.f32 0.35355338, %v10952_v17 }
0x3949   : > { %v10988_v40 = vadd.f32 %v10982_v19, %v19384_v54 }
0x394a   : > { %v10987_v47 = vadd.f32 %v10981_v21, %v19387_v26  ;;  %v14672_v28 = vpop.f32.mrb[134].mxu0 }
0x394b   : > { %v10962_v18 = vpop.f32.mrb[135].mxu0  ;;  %v10996_v41 = vsel %vm1539_vm3, %v10988_v40, -inf  ;;  %v10984_v13 = vmul.f32 0.35355338, %v14672_v28 }
0x394c   : > { %v10983_v34 = vmul.f32 0.35355338, %v10962_v18  ;;  %10997 = vmax.xlane.f32.xlu1 %v10996_v41  ;;  %v10993_v46 = vsel %vm1539_vm3, %v10987_v47, -inf }
0x394d   : > { %10994 = vmax.xlane.f32.xlu0 %v10993_v46  ;;  %v10990_v33 = vadd.f32 %v10984_v13, %v19396_v63 }
0x394e   : > { %v10989_v61 = vadd.f32 %v10983_v34, %v19399_v30  ;;  %v14675_v43 = vpop.f32.mrb[136].mxu0 }
0x394f   : > { %v10972_v23 = vpop.f32.mrb[137].mxu0  ;;  %v10986_v39 = vmul.f32 0.35355338, %v14675_v43  ;;  %v11002_v11 = vsel %vm1539_vm3, %v10990_v33, -inf }
0x3950   : > { %v10985_v54 = vmul.f32 0.35355338, %v10972_v23  ;;  %v10999_v26 = vsel %vm1539_vm3, %v10989_v61, -inf }
0x3951   : > { %11000 = vmax.xlane.f32.xlu0 %v10999_v26  ;;  %v10992_v5 = vadd.f32 %v10986_v39, %v19410_v8 }
0x3952   : > { %v10991_v14 = vadd.f32 %v10985_v54, %v19413_v48 }
0x3953   : > { %v11008_v30 = vsel %vm1539_vm3, %v10992_v5, -inf }
0x3954   : > { %v11005_v20 = vsel %vm1539_vm3, %v10991_v14, -inf }
0x3955   : > { %11003 = vmax.xlane.f32.xlu0 %v11002_v11  ;;  %11006 = vmax.xlane.f32.xlu1 %v11005_v20 }
0x3959   : > { %11009 = vmax.xlane.f32.xlu0 %v11008_v30 }
0x3966   : > { %16087 = vrot.lane.b32.xlu1 %v19303_v24, %s20080_s26 }
0x39d9   : > { %v10998_v63 = vpop.xlane.xlu1 %10997 }
0x39da   : > { %v11012_v44 = vsub.f32 %v10988_v40, %v10998_v63  ;;  %v10995_v42 = vpop.xlane.xlu0 %10994 }
0x39db   : > { %v11011_v56 = vsub.f32 %v10987_v47, %v10995_v42 }
0x39dc   : > { %v11019_v36 = vmul.f32 1.442695, %v11012_v44 }
0x39dd   : > { %v11017_v48 = vmul.f32 1.442695, %v11011_v56 }
0x39de   : > { %16557 = vpow2.f32 %v11019_v36  ;;  %v11001_v8 = vpop.xlane.xlu0 %11000 }
0x39df   : > { %16559 = vpow2.f32 %v11017_v48  ;;  %v11013_v15 = vsub.f32 %v10989_v61, %v11001_v8 }
0x39e1   : > { %v11021_v2 = vmul.f32 1.442695, %v11013_v15 }
0x39e2   : > { %v11004_v3 = vpop.xlane.xlu0 %11003  ;;  %v11007_v62 = vpop.xlane.xlu1 %11006 }
0x39e3   : > { %16561 = vpow2.f32 %v11021_v2  ;;  %v11014_v60 = vsub.f32 %v10990_v33, %v11004_v3  ;;  %v11015_v19 = vsub.f32 %v10991_v14, %v11007_v62 }
0x39e5   : > { %v11023_v17 = vmul.f32 1.442695, %v11014_v60  ;;  %v11025_v21 = vmul.f32 1.442695, %v11015_v19 }
0x39e6   : > { %v11010_v28 = vpop.xlane.xlu0 %11009  ;;  %v16088_v24 = vpop.permute.xlu1 %16087 }
0x39e7   : > { %16563 = vpow2.f32 %v11023_v17  ;;  %v11016_v40 = vsub.f32 %v10992_v5, %v11010_v28  ;;  %v16090_v18 = vunpack.i.h.bf16 %v16088_v24  ;;  %v16089_v47 = vunpack.i.l.bf16 %v16088_v24 }
0x39e8   : > { %v19691_v41 = vpop.eup %16557  ;;  %16565 = vpow2.f32 %v11025_v21 }
0x39e9   : > { %v16560_v13 = vpop.eup %16559  ;;  %v11027_v34 = vmul.f32 1.442695, %v11016_v40  ;;  %v15444_v46 = vpack.c.bf16 %v16090_v18, %v16089_v47  ;;  %v11032_v61 = vsel %vm1539_vm3, %v19691_v41, 0.0 }
0x39ea   : > { %11033 = vadd.xlane.f32.xlu0 %v11032_v61  ;;  %v11029_v43 = vsel %vm1539_vm3, %v16560_v13, 0.0 }
0x39eb   : > { %16567 = vpow2.f32 %v11027_v34  ;;  %11030 = vadd.xlane.f32.xlu1 %v11029_v43  ;;  %15445 = vmatprep.subr.bf16.mxu1 %v15444_v46 }
0x39ec   : > { %15447 = vmatpush3.bf16.msra.mxu1 %v15444_v46 }
0x39ed   : > { %v16562_v23 = vpop.eup %16561 }
0x39ee   : > { %v11035_v33 = vsel %vm1539_vm3, %v16562_v23, 0.0 }
0x39ef   : > { %11036 = vadd.xlane.f32.xlu1 %v11035_v33 }
0x39f1   : > { %v16564_v39 = vpop.eup %16563 }
0x39f2   : > { %v16566_v54 = vpop.eup %16565  ;;  %v11038_v26 = vsel %vm1539_vm3, %v16564_v39, 0.0 }
0x39f3   : > { %11039 = vadd.xlane.f32.xlu0 %v11038_v26  ;;  %v11041_v14 = vsel %vm1539_vm3, %v16566_v54, 0.0 }
0x39f4   : > { %11042 = vadd.xlane.f32.xlu1 %v11041_v14 }
0x39f5   : > { %v16568_v5 = vpop.eup %16567 }
0x39f6   : > { %v11044_v11 = vsel %vm1539_vm3, %v16568_v5, 0.0 }
0x39f7   : > { %11045 = vadd.xlane.f32.xlu0 %v11044_v11 }
0x3a05   : > { %16097 = vrot.lane.b32.xlu1 %v19319_v50, %s20080_s26 }
0x3a09   : > { %11196 = vrot.lane.b32.xlu1 %v19589_v35, %s20095_s15 }
0x3a0d   : > { %11220 = vrot.lane.b32.xlu1 %v19667_v6, %s20096_s16  ;;  %16092 = vrot.lane.b32.xlu0 %v19311_v1, %s20080_s26  ;;  %s20116_s26 = sld [smem:[#allocation21_spill]] }
0x3a11   : > { %11200 = vrot.lane.b32.xlu1 %v19593_v22, %s20095_s15  ;;  %11198 = vrot.lane.b32.xlu0 %v19587_v29, %s20095_s15 }
0x3a15   : > { %11224 = vrot.lane.b32.xlu1 %v19671_v58, %s20096_s16  ;;  %11222 = vrot.lane.b32.xlu0 %v19665_v37, %s20096_s16 }
0x3a19   : > { %11204 = vrot.lane.b32.xlu1 %v19597_v59, %s20095_s15  ;;  %11202 = vrot.lane.b32.xlu0 %v19591_v16, %s20095_s15 }
0x3a1d   : > { %11228 = vrot.lane.b32.xlu1 %v19675_v31, %s20096_s16  ;;  %11226 = vrot.lane.b32.xlu0 %v19669_v49, %s20096_s16 }
0x3a21   : > { %11206 = vrot.lane.b32.xlu0 %v19595_v38, %s20095_s15  ;;  %s20120_s15 = sld [smem:[#allocation9_spill]] }
0x3a25   : > { %11230 = vrot.lane.b32.xlu0 %v19673_v55, %s20096_s16  ;;  %s20112_s16 = sld [smem:[#allocation19_spill]] }
0x3a2b   : > { %v11280_v62 = vld [vmem:[%s20112_s16] sm:$0xff]  ;;  %v11281_v60 = vld [vmem:[%s20112_s16 + $0x8] sm:$0xff]  ;;  %v11282_v19 = vld [vmem:[%s20112_s16 + $0x10] sm:$0xff] }
0x3a2c   : > { %v15456_v17 = vpack.c.bf16 %v11281_v60, %v11280_v62  ;;  %v11283_v21 = vld [vmem:[%s20112_s16 + $0x18] sm:$0xff] }
0x3a2d   : > { %v15460_v28 = vpack.c.bf16 %v11283_v21, %v11282_v19 }
0x3a77   : > { %v11034_v50 = vpop.xlane.xlu0 %11033 }
0x3a78   : > { %v11031_v1 = vpop.xlane.xlu1 %11030 }
0x3a79   : > { %16569 = vrcp.f32 %v11031_v1 }
0x3a7a   : > { %16571 = vrcp.f32 %v11034_v50 }
0x3a7c   : > { %v11037_v29 = vpop.xlane.xlu1 %11036 }
0x3a7d   : > { %16573 = vrcp.f32 %v11037_v29 }
0x3a80   : > { %v11040_v35 = vpop.xlane.xlu0 %11039 }
0x3a81   : > { %v11043_v22 = vpop.xlane.xlu1 %11042  ;;  %16575 = vrcp.f32 %v11040_v35 }
0x3a82   : > { %16577 = vrcp.f32 %v11043_v22 }
0x3a83   : > { %v16570_v59 = vpop.eup %16569 }
0x3a84   : > { %v11046_v16 = vpop.xlane.xlu0 %11045  ;;  %v11053_v37 = vmul.f32 %v16570_v59, %v16560_v13  ;;  %v16572_v63 = vpop.eup %16571 }
0x3a85   : > { %v16098_v6 = vpop.permute.xlu1 %16097  ;;  %16579 = vrcp.f32 %v11046_v16  ;;  %v11054_v42 = vmul.f32 %v16572_v63, %v19691_v41 }
0x3a86   : > { %14688 = vmatprep.mubr.msk.f32.mxu1 %vm1539_vm3, %v11053_v37  ;;  %v16100_v58 = vunpack.i.h.bf16 %v16098_v6  ;;  %v16099_v38 = vunpack.i.l.bf16 %v16098_v6 }
0x3a87   : > { %v16574_v44 = vpop.eup %16573 }
0x3a88   : > { %v16093_v49 = vpop.permute.xlu0 %16092  ;;  %v15452_v30 = vpack.c.bf16 %v16100_v58, %v16099_v38  ;;  %v11055_v36 = vmul.f32 %v16574_v44, %v16562_v23 }
0x3a89   : > { %v16095_v31 = vunpack.i.h.bf16 %v16093_v49  ;;  %v16094_v20 = vunpack.i.l.bf16 %v16093_v49  ;;  %v11197_v46 = vpop.permute.xlu1 %11196 }
0x3a8a   : > { %v11262_v1 = vsel %vm1308_vm2, %v19577_v51, %v11197_v46 }
0x3a8b   : > { %v15448_v55 = vpack.c.bf16 %v16095_v31, %v16094_v20  ;;  %v16576_v56 = vpop.eup %16575 }
0x3a8c   : > { %v16578_v48 = vpop.eup %16577  ;;  %v11056_v8 = vmul.f32 %v16576_v56, %v16564_v39  ;;  %v11199_v34 = vpop.permute.xlu0 %11198 }
0x3a8d   : > { %15449 = vmatprep.subr.bf16.mxu1 %v15448_v55  ;;  %v11057_v2 = vmul.f32 %v16578_v48, %v16566_v54  ;;  %v11221_v43 = vpop.permute.xlu1 %11220  ;;  %v11263_v29 = vsel %vm1308_vm2, %v19575_v32, %v11199_v34 }
0x3a8e   : > { %15451 = vmatpush3.bf16.msra.mxu1 %v15448_v55  ;;  %v11268_v35 = vsel %vm3492_vm6, %v11262_v1, %v11221_v43 }
0x3a8f   : > { %15453 = vmatprep.subr.bf16.mxu1 %v15452_v30  ;;  %v16580_v15 = vpop.eup %16579 }
0x3a90   : > { %v11058_v3 = vmul.f32 %v16580_v15, %v16568_v5  ;;  %v11223_v61 = vpop.permute.xlu0 %11222 }
0x3a91   : > { %v11201_v33 = vpop.permute.xlu1 %11200  ;;  %v11269_v59 = vsel %vm3492_vm6, %v11263_v29, %v11223_v61 }
0x3a92   : > { %15455 = vmatpush3.bf16.msra.mxu1 %v15452_v30  ;;  %v11264_v6 = vsel %vm1308_vm2, %v19581_v57, %v11201_v33 }
0x3a93   : > { %15457 = vmatprep.subr.bf16.mxu1 %v15456_v17 }
0x3a94   : > { %v11203_v23 = vpop.permute.xlu0 %11202 }
0x3a95   : > { %14689 = vmatmul.mubr.msk.f32.vlgmr.msra.gmra.mrb[192].mxu1 %vm1539_vm3, %v11054_v42  ;;  %v11225_v54 = vpop.permute.xlu1 %11224  ;;  %v11265_v32 = vsel %vm1308_vm2, %v19579_v45, %v11203_v23 }
0x3a96   : > { %14691 = vmatprep.mubr.msk.f32.mxu1 %vm1539_vm3, %v11055_v36  ;;  %15459 = vmatpush3.bf16.msra.mxu1 %v15456_v17  ;;  %v11270_v49 = vsel %vm3492_vm6, %v11264_v6, %v11225_v54  ;;  %v20113_v36 = vld [vmem:[#allocation23_spill] sm:$0xff] }
0x3a97   : > { %15461 = vmatprep.subr.bf16.mxu1 %v15460_v28 }
0x3a98   : > { %v11227_v39 = vpop.permute.xlu0 %11226 }
0x3a99   : > { %14692 = vmatmul.mubr.msk.f32.gmra.mrb[194].mxu1 %vm1539_vm3, %v11056_v8  ;;  %v11205_v14 = vpop.permute.xlu1 %11204  ;;  %v11271_v38 = vsel %vm3492_vm6, %v11265_v32, %v11227_v39 }
0x3a9a   : > { %14694 = vmatprep.mubr.msk.f32.mxu1 %vm1539_vm3, %v11057_v2  ;;  %15463 = vmatpush3.bf16.msra.mxu1 %v15460_v28  ;;  %v11266_v57 = vsel %vm1308_vm2, %v19585_v7, %v11205_v14  ;;  %v19776_v7 = vld [vmem:[%s16893_s25] sm:$0xff] }
0x3a9b   : > { %v11287_v48 = vrot.slane %v19776_v7, %v20113_v36 }
0x3a9c   : > { %v11207_v26 = vpop.permute.xlu0 %11206 }
0x3a9d   : > { %14695 = vmatmul.mubr.msk.f32.gmra.mrb[196].mxu1 %vm1539_vm3, %v11058_v3  ;;  %v11229_v11 = vpop.permute.xlu1 %11228  ;;  %v11267_v45 = vsel %vm1308_vm2, %v19583_v4, %v11207_v26 }
0x3a9e   : > { %v11272_v30 = vsel %vm3492_vm6, %v11266_v57, %v11229_v11 }
0x3aa0   : > { %v11231_v5 = vpop.permute.xlu0 %11230 }
0x3aa1   : > { %v11273_v44 = vsel %vm3492_vm6, %v11267_v45, %v11231_v5 }
0x3b68   : > { %v14690_v24 = vpop.f32.mrb[192].mxu1 }
0x3b69   : > { %11246 = vrot.lane.b32.xlu0 %v14690_v24, %s20097_s11  ;;  %v11161_v40 = vpop.f32.mrb[193].mxu1 }
0x3b6a   : > { %11244 = vrot.lane.b32.xlu1 %v11161_v40, %s20097_s11 }
0x3b6c   : > { %v14693_v18 = vpop.f32.mrb[194].mxu1 }
0x3b6d   : > { %11250 = vrot.lane.b32.xlu0 %v14693_v18, %s20097_s11  ;;  %v11171_v47 = vpop.f32.mrb[195].mxu1 }
0x3b6e   : > { %11248 = vrot.lane.b32.xlu1 %v11171_v47, %s20097_s11 }
0x3b70   : > { %v14696_v41 = vpop.f32.mrb[196].mxu1 }
0x3b71   : > { %11254 = vrot.lane.b32.xlu0 %v14696_v41, %s20097_s11  ;;  %v11181_v13 = vpop.f32.mrb[197].mxu1 }
0x3b72   : > { %11252 = vrot.lane.b32.xlu1 %v11181_v13, %s20097_s11  ;;  %s20114_s11 = sld [smem:[#allocation20_spill]] }
0x3bdb   : > { %v11247_v50 = vpop.permute.xlu0 %11246 }
0x3bdc   : > { %v11245_v22 = vpop.permute.xlu1 %11244  ;;  %v11275_v37 = vsel %vm3499_vm7, %v11269_v59, %v11247_v50 }
0x3bdd   : > { %v11274_v16 = vsel %vm3499_vm7, %v11268_v35, %v11245_v22 }
0x3bde   : > { %14705 = vmatprep.mubr.msk.f32.mxu1 %vm1898_vm4, %v11274_v16 }
0x3bdf   : > { %14706 = vmatmul.mubr.msk.f32.vlgmr.msra.gmra.mrb[198].mxu1 %vm1898_vm4, %v11275_v37  ;;  %v11251_v51 = vpop.permute.xlu0 %11250 }
0x3be0   : > { %v11249_v58 = vpop.permute.xlu1 %11248  ;;  %v11277_v20 = vsel %vm3499_vm7, %v11271_v38, %v11251_v51 }
0x3be1   : > { %v11276_v31 = vsel %vm3499_vm7, %v11270_v49, %v11249_v58 }
0x3be2   : > { %14708 = vmatprep.mubr.msk.f32.mxu1 %vm1898_vm4, %v11276_v31 }
0x3be3   : > { %14709 = vmatmul.mubr.msk.f32.gmra.mrb[200].mxu1 %vm1898_vm4, %v11277_v20  ;;  %v11255_v55 = vpop.permute.xlu0 %11254 }
0x3be4   : > { %v11253_v63 = vpop.permute.xlu1 %11252  ;;  %v11279_v56 = vsel %vm3499_vm7, %v11273_v44, %v11255_v55 }
0x3be5   : > { %v11278_v42 = vsel %vm3499_vm7, %v11272_v30, %v11253_v63  ;;  %v11505_v30 = vld [vmem:[%s20114_s11] sm:$0xff]  ;;  %v11506_v63 = vld [vmem:[%s20114_s11 + $0x8] sm:$0xff] }
0x3be6   : > { %14711 = vmatprep.mubr.msk.f32.mxu1 %vm1898_vm4, %v11278_v42  ;;  %v15464_v44 = vpack.c.bf16 %v11506_v63, %v11505_v30  ;;  %v11507_v42 = vld [vmem:[%s20114_s11 + $0x10] sm:$0xff] }
0x3be7   : > { %14712 = vmatmul.mubr.msk.f32.gmra.mrb[202].mxu1 %vm1898_vm4, %v11279_v56  ;;  %v11508_v56 = vld [vmem:[%s20114_s11 + $0x18] sm:$0xff] }
0x3be8   : > { %15465 = vmatprep.subr.bf16.mxu0 %v15464_v44  ;;  %v15468_v36 = vpack.c.bf16 %v11508_v56, %v11507_v42 }
0x3be9   : > { %15467 = vmatpush3.bf16.msra.mxu0 %v15464_v44 }
0x3bea   : > { %15469 = vmatprep.subr.bf16.mxu0 %v15468_v36 }
0x3bed   : > { %15471 = vmatpush3.bf16.msra.mxu0 %v15468_v36 }
0x3cb2   : > { %v14707_v8 = vpop.f32.mrb[198].mxu1 }
0x3cb3   : > { %v11378_v4 = vadd.f32 %v14707_v8, %v11287_v48  ;;  %v11372_v15 = vpop.f32.mrb[199].mxu1 }
0x3cb4   : > { %v11373_v2 = vadd.f32 %v11372_v15, %v11287_v48 }
0x3cb5   : > { %v11402_v3 = vadd.f32 %v11378_v4, %v19250_v12 }
0x3cb6   : > { %v11401_v62 = vadd.f32 %v11373_v2, %v19242_v9  ;;  %v14710_v60 = vpop.f32.mrb[200].mxu1 }
0x3cb7   : > { %v11388_v19 = vadd.f32 %v14710_v60, %v11287_v48  ;;  %v11382_v17 = vpop.f32.mrb[201].mxu1  ;;  %v11410_v21 = vsel %vm1898_vm4, %v11402_v3, 0.0 }
0x3cb8   : > { %v11383_v28 = vadd.f32 %v11382_v17, %v11287_v48  ;;  %11411 = vadd.xlane.f32.xlu0 %v11410_v21  ;;  %v11407_v24 = vsel %vm1898_vm4, %v11401_v62, 0.0 }
0x3cb9   : > { %v11404_v40 = vadd.f32 %v11388_v19, %v19264_v27  ;;  %11408 = vadd.xlane.f32.xlu1 %v11407_v24 }
0x3cba   : > { %v11403_v18 = vadd.f32 %v11383_v28, %v19257_v52  ;;  %v14713_v47 = vpop.f32.mrb[202].mxu1 }
0x3cbb   : > { %v11398_v41 = vadd.f32 %v14713_v47, %v11287_v48  ;;  %v11392_v13 = vpop.f32.mrb[203].mxu1  ;;  %v11416_v12 = vsel %vm1898_vm4, %v11404_v40, 0.0 }
0x3cbc   : > { %v11393_v9 = vadd.f32 %v11392_v13, %v11287_v48  ;;  %v11413_v34 = vsel %vm1898_vm4, %v11403_v18, 0.0 }
0x3cbd   : > { %v11406_v46 = vadd.f32 %v11398_v41, %v19282_v25  ;;  %11414 = vadd.xlane.f32.xlu0 %v11413_v34  ;;  %11417 = vadd.xlane.f32.xlu1 %v11416_v12 }
0x3cbe   : > { %v11405_v61 = vadd.f32 %v11393_v9, %v19272_v0 }
0x3cbf   : > { %v11422_v43 = vsel %vm1898_vm4, %v11406_v46, 0.0 }
0x3cc0   : > { %v11419_v27 = vsel %vm1898_vm4, %v11405_v61, 0.0 }
0x3cc1   : > { %11420 = vadd.xlane.f32.xlu0 %v11419_v27  ;;  %11423 = vadd.xlane.f32.xlu1 %v11422_v43 }
0x3d45   : > { %v11412_v52 = vpop.xlane.xlu0 %11411 }
0x3d46   : > { %v11426_v23 = vmul.f32 0.03125, %v11412_v52  ;;  %v11409_v33 = vpop.xlane.xlu1 %11408 }
0x3d47   : > { %v11425_v39 = vmul.f32 0.03125, %v11409_v33 }
0x3d48   : > { %v19792_v54 = vsub.f32 %v11402_v3, %v11426_v23 }
0x3d49   : > { %v19794_v26 = vsub.f32 %v11401_v62, %v11425_v39 }
0x3d4a   : > { %v11415_v14 = vpop.xlane.xlu0 %11414  ;;  %v11418_v25 = vpop.xlane.xlu1 %11417  ;;  %v11438_v5 = vmul.f32 %v19792_v54, %v19792_v54 }
0x3d4b   : > { %v11427_v0 = vmul.f32 0.03125, %v11415_v14  ;;  %v11428_v11 = vmul.f32 0.03125, %v11418_v25  ;;  %v11437_v1 = vmul.f32 %v19794_v26, %v19794_v26 }
0x3d4c   : > { %v11446_v50 = vsel %vm1898_vm4, %v11438_v5, 0.0 }
0x3d4d   : > { %v19801_v29 = vsub.f32 %v11403_v18, %v11427_v0  ;;  %v19803_v35 = vsub.f32 %v11404_v40, %v11428_v11  ;;  %11447 = vadd.xlane.f32.xlu1 %v11446_v50  ;;  %v11443_v22 = vsel %vm1898_vm4, %v11437_v1, 0.0  ;;  %v20115_v18 = vld [vmem:[#allocation22_spill] sm:$0xff] }
0x3d4e   : > { %v11421_v59 = vpop.xlane.xlu0 %11420  ;;  %11444 = vadd.xlane.f32.xlu0 %v11443_v22  ;;  %v11424_v16 = vpop.xlane.xlu1 %11423  ;;  %v11487_v47 = vsub.s32 6, %v20115_v18  ;;  %v11497_v34 = vsub.s32 7, %v20115_v18 }
0x3d4f   : > { %v11429_v37 = vmul.f32 0.03125, %v11421_v59  ;;  %v11430_v6 = vmul.f32 0.03125, %v11424_v16  ;;  %v11439_v51 = vmul.f32 %v19801_v29, %v19801_v29  ;;  %v11440_v32 = vmul.f32 %v19803_v35, %v19803_v35 }
0x3d50   : > { %v11498_v52 = vrot.slane %v19776_v7, %v11497_v34 }
0x3d51   : > { %v19810_v49 = vsub.f32 %v11405_v61, %v11429_v37  ;;  %v19812_v58 = vsub.f32 %v11406_v46, %v11430_v6  ;;  %v11449_v38 = vsel %vm1898_vm4, %v11439_v51, 0.0  ;;  %v11452_v31 = vsel %vm1898_vm4, %v11440_v32, 0.0 }
0x3d52   : > { %11450 = vadd.xlane.f32.xlu0 %v11449_v38  ;;  %11453 = vadd.xlane.f32.xlu1 %v11452_v31  ;;  %v11488_v46 = vrot.slane %v19776_v7, %v11487_v47  ;;  %v11661_v31 = vld [vmem:[%s16888_s14 + $0x10] sm:$0xff] }
0x3d53   : > { %v11441_v20 = vmul.f32 %v19810_v49, %v19810_v49  ;;  %v11442_v57 = vmul.f32 %v19812_v58, %v19812_v58 }
0x3d55   : > { %v11455_v55 = vsel %vm1898_vm4, %v11441_v20, 0.0  ;;  %v11458_v45 = vsel %vm1898_vm4, %v11442_v57, 0.0  ;;  %v11662_v20 = vld [vmem:[%s16888_s14 + $0x18] sm:$0xff] }
0x3d56   : > { %11456 = vadd.xlane.f32.xlu0 %v11455_v55  ;;  %11459 = vadd.xlane.f32.xlu1 %v11458_v45  ;;  %v15476_v57 = vpack.c.bf16 %v11662_v20, %v11661_v31  ;;  %v12914_v55 = vld [vmem:[%s20116_s26] ss:$0 sm:$0xff]  ;;  %s20122_s26 = sld [smem:[#allocation12_spill]] }
0x3dda   : > { %v11448_v48 = vpop.xlane.xlu1 %11447 }
0x3ddb   : > { %v11462_v8 = vmul.f32 0.03125, %v11448_v48  ;;  %v11445_v4 = vpop.xlane.xlu0 %11444 }
0x3ddc   : > { %v11461_v15 = vmul.f32 0.03125, %v11445_v4 }
0x3ddd   : > { %v11468_v2 = vadd.f32 1e-05, %v11462_v8 }
0x3dde   : > { %v11467_v3 = vadd.f32 1e-05, %v11461_v15 }
0x3ddf   : > { %16581 = vrsqrt.f32 %v11468_v2  ;;  %v11451_v62 = vpop.xlane.xlu0 %11450  ;;  %v11454_v60 = vpop.xlane.xlu1 %11453 }
0x3de0   : > { %16583 = vrsqrt.f32 %v11467_v3  ;;  %v11463_v19 = vmul.f32 0.03125, %v11451_v62  ;;  %v11464_v17 = vmul.f32 0.03125, %v11454_v60 }
0x3de2   : > { %v11469_v21 = vadd.f32 1e-05, %v11463_v19  ;;  %v11470_v28 = vadd.f32 1e-05, %v11464_v17 }
0x3de3   : > { %v11457_v24 = vpop.xlane.xlu0 %11456  ;;  %v11460_v40 = vpop.xlane.xlu1 %11459 }
0x3de4   : > { %16585 = vrsqrt.f32 %v11469_v21  ;;  %v11465_v41 = vmul.f32 0.03125, %v11457_v24  ;;  %v11466_v13 = vmul.f32 0.03125, %v11460_v40 }
0x3de5   : > { %16587 = vrsqrt.f32 %v11470_v28 }
0x3de6   : > { %v11471_v12 = vadd.f32 1e-05, %v11465_v41  ;;  %v11472_v9 = vadd.f32 1e-05, %v11466_v13 }
0x3de8   : > { %16589 = vrsqrt.f32 %v11471_v12 }
0x3de9   : > { %v16582_v61 = vpop.eup %16581  ;;  %16591 = vrsqrt.f32 %v11472_v9 }
0x3dea   : > { %v16584_v43 = vpop.eup %16583  ;;  %v11480_v27 = vmul.f32 %v16582_v61, %v19792_v54 }
0x3deb   : > { %v11479_v23 = vmul.f32 %v16584_v43, %v19794_v26 }
0x3dec   : > { %v11490_v33 = vmul.f32 %v11488_v46, %v11480_v27 }
0x3ded   : > { %v11489_v39 = vmul.f32 %v11488_v46, %v11479_v23 }
0x3dee   : > { %v16586_v14 = vpop.eup %16585  ;;  %v19835_v11 = vadd.f32 %v11498_v52, %v11490_v33 }
0x3def   : > { %v16588_v25 = vpop.eup %16587  ;;  %v19832_v5 = vadd.f32 %v11498_v52, %v11489_v39  ;;  %v11481_v0 = vmul.f32 %v16586_v14, %v19801_v29 }
0x3df0   : > { %v11482_v1 = vmul.f32 %v16588_v25, %v19803_v35 }
0x3df1   : > { %14722 = vmatprep.mubr.msk.f32.mxu0 %vm1898_vm4, %v19832_v5  ;;  %v11491_v54 = vmul.f32 %v11488_v46, %v11481_v0 }
0x3df2   : > { %v16590_v50 = vpop.eup %16589  ;;  %14723 = vmatmul.mubr.msk.f32.vlgmr.msra.gmra.mrb[138].mxu0 %vm1898_vm4, %v19835_v11  ;;  %v11492_v26 = vmul.f32 %v11488_v46, %v11482_v1 }
0x3df3   : > { %v16592_v22 = vpop.eup %16591  ;;  %v19842_v59 = vadd.f32 %v11498_v52, %v11491_v54  ;;  %v11483_v29 = vmul.f32 %v16590_v50, %v19810_v49  ;;  %v11659_v49 = vld [vmem:[%s16888_s14] sm:$0xff] }
0x3df4   : > { %v19845_v16 = vadd.f32 %v11498_v52, %v11492_v26  ;;  %v11484_v35 = vmul.f32 %v16592_v22, %v19812_v58  ;;  %v11660_v58 = vld [vmem:[%s16888_s14 + $0x8] sm:$0xff]  ;;  %v20117_v26 = vld [vmem:[#allocation24_spill] sm:$0xff] }
0x3df5   : > { %14725 = vmatprep.mubr.msk.f32.mxu0 %vm1898_vm4, %v19842_v59  ;;  %v11493_v37 = vmul.f32 %v11488_v46, %v11483_v29  ;;  %v15472_v38 = vpack.c.bf16 %v11660_v58, %v11659_v49  ;;  %v11666_v22 = vrot.slane %v19776_v7, %v20117_v26 }
0x3df6   : > { %14726 = vmatmul.mubr.msk.f32.gmra.mrb[140].mxu0 %vm1898_vm4, %v19845_v16  ;;  %v11494_v6 = vmul.f32 %v11488_v46, %v11484_v35 }
0x3df7   : > { %v19852_v51 = vadd.f32 %v11498_v52, %v11493_v37  ;;  %15473 = vmatprep.subr.bf16.mxu1 %v15472_v38 }
0x3df8   : > { %v19854_v32 = vadd.f32 %v11498_v52, %v11494_v6  ;;  %15475 = vmatpush3.bf16.msra.mxu1 %v15472_v38 }
0x3df9   : > { %14728 = vmatprep.mubr.msk.f32.mxu0 %vm1898_vm4, %v19852_v51  ;;  %15477 = vmatprep.subr.bf16.mxu1 %v15476_v57 }
0x3dfa   : > { %14729 = vmatmul.mubr.msk.f32.gmra.mrb[142].mxu0 %vm1898_vm4, %v19854_v32 }
0x3dfc   : > { %15479 = vmatpush3.bf16.msra.mxu1 %v15476_v57 }
0x3ec5   : > { %v14724_v45 = vpop.f32.mrb[138].mxu0 }
0x3ec6   : > { %v11606_v30 = vadd.f32 %v14724_v45, %v12914_v55  ;;  %v11600_v63 = vpop.f32.mrb[139].mxu0 }
0x3ec7   : > { %v11601_v44 = vadd.f32 %v12914_v55, %v11600_v63 }
0x3ec8   : > { %v11636_v42 = vmul.f32 0.70710677, %v11606_v30  ;;  %v11630_v41 = vmul.f32 0.5, %v11606_v30 }
0x3ec9   : > { %v11635_v56 = vmul.f32 0.70710677, %v11601_v44  ;;  %v14727_v36 = vpop.f32.mrb[140].mxu0  ;;  %v11629_v18 = vmul.f32 0.5, %v11601_v44 }
0x3eca   : > { %16593 = verf.f32 %v11636_v42  ;;  %v11616_v48 = vadd.f32 %v14727_v36, %v12914_v55  ;;  %v11610_v8 = vpop.f32.mrb[141].mxu0 }
0x3ecb   : > { %16595 = verf.f32 %v11635_v56  ;;  %v11611_v4 = vadd.f32 %v12914_v55, %v11610_v8 }
0x3ecc   : > { %v11638_v15 = vmul.f32 0.70710677, %v11616_v48  ;;  %v11632_v27 = vmul.f32 0.5, %v11616_v48 }
0x3ecd   : > { %v11637_v2 = vmul.f32 0.70710677, %v11611_v4  ;;  %v14730_v3 = vpop.f32.mrb[142].mxu0  ;;  %v11631_v61 = vmul.f32 0.5, %v11611_v4 }
0x3ece   : > { %16597 = verf.f32 %v11638_v15  ;;  %v11626_v62 = vadd.f32 %v14730_v3, %v12914_v55  ;;  %v11620_v60 = vpop.f32.mrb[143].mxu0 }
0x3ecf   : > { %16599 = verf.f32 %v11637_v2  ;;  %v11621_v19 = vadd.f32 %v12914_v55, %v11620_v60 }
0x3ed0   : > { %v11640_v17 = vmul.f32 0.70710677, %v11626_v62  ;;  %v11634_v1 = vmul.f32 0.5, %v11626_v62 }
0x3ed1   : > { %v11639_v21 = vmul.f32 0.70710677, %v11621_v19  ;;  %v11633_v25 = vmul.f32 0.5, %v11621_v19 }
0x3ed2   : > { %16601 = verf.f32 %v11640_v17 }
0x3ed3   : > { %16603 = verf.f32 %v11639_v21 }
0x3ed4   : > { %v16594_v28 = vpop.eup %16593 }
0x3ed5   : > { %v16596_v24 = vpop.eup %16595  ;;  %v11648_v40 = vadd.f32 1.0, %v16594_v28 }
0x3ed6   : > { %v11647_v47 = vadd.f32 1.0, %v16596_v24 }
0x3ed7   : > { %v11654_v34 = vmul.f32 %v11648_v40, %v11630_v41 }
0x3ed8   : > { %v16598_v13 = vpop.eup %16597  ;;  %v11653_v12 = vmul.f32 %v11647_v47, %v11629_v18 }
0x3ed9   : > { %v16600_v9 = vpop.eup %16599  ;;  %v11650_v46 = vadd.f32 1.0, %v16598_v13 }
0x3eda   : > { %v11649_v43 = vadd.f32 1.0, %v16600_v9  ;;  %14739 = vmatprep.mubr.msk.f32.mxu1 %vm1898_vm4, %v11653_v12 }
0x3edb   : > { %14740 = vmatmul.mubr.msk.f32.vlgmr.msra.gmra.mrb[204].mxu1 %vm1898_vm4, %v11654_v34  ;;  %v11656_v39 = vmul.f32 %v11650_v46, %v11632_v27 }
0x3edc   : > { %v16602_v52 = vpop.eup %16601  ;;  %v11655_v23 = vmul.f32 %v11649_v43, %v11631_v61 }
0x3edd   : > { %v16604_v33 = vpop.eup %16603  ;;  %v11652_v14 = vadd.f32 1.0, %v16602_v52 }
0x3ede   : > { %v11651_v0 = vadd.f32 1.0, %v16604_v33  ;;  %14742 = vmatprep.mubr.msk.f32.mxu1 %vm1898_vm4, %v11655_v23 }
0x3edf   : > { %14743 = vmatmul.mubr.msk.f32.gmra.mrb[206].mxu1 %vm1898_vm4, %v11656_v39  ;;  %v11658_v50 = vmul.f32 %v11652_v14, %v11634_v1 }
0x3ee0   : > { %v11657_v54 = vmul.f32 %v11651_v0, %v11633_v25 }
0x3ee2   : > { %14745 = vmatprep.mubr.msk.f32.mxu1 %vm1898_vm4, %v11657_v54 }
0x3ee3   : > { %14746 = vmatmul.mubr.msk.f32.gmra.mrb[208].mxu1 %vm1898_vm4, %v11658_v50 }
0x3fae   : > { %v14741_v29 = vpop.f32.mrb[204].mxu1 }
0x3faf   : > { %v11757_v35 = vadd.f32 %v14741_v29, %v11666_v22  ;;  %v11751_v37 = vpop.f32.mrb[205].mxu1 }
0x3fb0   : > { %v11752_v6 = vadd.f32 %v11751_v37, %v11666_v22 }
0x3fb1   : > { %v11781_v49 = vadd.f32 %v11757_v35, %v19835_v11 }
0x3fb2   : > { %v11780_v58 = vadd.f32 %v11752_v6, %v19832_v5  ;;  %v14744_v38 = vpop.f32.mrb[206].mxu1 }
0x3fb3   : > { %v11767_v31 = vadd.f32 %v14744_v38, %v11666_v22  ;;  %v11761_v20 = vpop.f32.mrb[207].mxu1  ;;  %v11789_v57 = vsel %vm1898_vm4, %v11781_v49, 0.0 }
0x3fb4   : > { %v11762_v55 = vadd.f32 %v11761_v20, %v11666_v22  ;;  %11790 = vadd.xlane.f32.xlu1 %v11789_v57  ;;  %v11786_v45 = vsel %vm1898_vm4, %v11780_v58, 0.0  ;;  %v7197_v57 = vld [vmem:[%s16893_s25 + $0x8] sm:$0x3] }
0x3fb5   : > { %v11783_v30 = vadd.f32 %v11767_v31, %v19845_v16  ;;  %11787 = vadd.xlane.f32.xlu0 %v11786_v45  ;;  %v11867_v45 = vrot.slane %v7197_v57, %v17474_v10 }
0x3fb6   : > { %v11782_v7 = vadd.f32 %v11762_v55, %v19842_v59  ;;  %v14747_v63 = vpop.f32.mrb[208].mxu1 }
0x3fb7   : > { %v11777_v44 = vadd.f32 %v14747_v63, %v11666_v22  ;;  %v11771_v42 = vpop.f32.mrb[209].mxu1  ;;  %v11795_v11 = vsel %vm1898_vm4, %v11783_v30, 0.0 }
0x3fb8   : > { %v11772_v5 = vadd.f32 %v11771_v42, %v11666_v22  ;;  %11796 = vadd.xlane.f32.xlu1 %v11795_v11  ;;  %v11792_v56 = vsel %vm1898_vm4, %v11782_v7, 0.0 }
0x3fb9   : > { %v11785_v36 = vadd.f32 %v11777_v44, %v19854_v32  ;;  %11793 = vadd.xlane.f32.xlu0 %v11792_v56  ;;  %v11877_v44 = vrot.slane %v7197_v57, %v17574_v53  ;;  %v12050_v57 = vld [vmem:[%s20118_s0] sm:$0xff] }
0x3fba   : > { %v11784_v48 = vadd.f32 %v11772_v5, %v19852_v51 }
0x3fbb   : > { %v11801_v8 = vsel %vm1898_vm4, %v11785_v36, 0.0 }
0x3fbc   : > { %11802 = vadd.xlane.f32.xlu1 %v11801_v8  ;;  %v11798_v16 = vsel %vm1898_vm4, %v11784_v48, 0.0 }
0x3fbd   : > { %11799 = vadd.xlane.f32.xlu0 %v11798_v16 }
0x4041   : > { %v11791_v59 = vpop.xlane.xlu1 %11790 }
0x4042   : > { %v11805_v4 = vmul.f32 0.03125, %v11791_v59  ;;  %v11788_v15 = vpop.xlane.xlu0 %11787 }
0x4043   : > { %v11804_v2 = vmul.f32 0.03125, %v11788_v15 }
0x4044   : > { %v11811_v3 = vsub.f32 %v11781_v49, %v11805_v4 }
0x4045   : > { %v11810_v62 = vsub.f32 %v11780_v58, %v11804_v2  ;;  %v11797_v60 = vpop.xlane.xlu1 %11796 }
0x4046   : > { %v11807_v19 = vmul.f32 0.03125, %v11797_v60  ;;  %v11794_v17 = vpop.xlane.xlu0 %11793  ;;  %v11817_v21 = vmul.f32 %v11811_v3, %v11811_v3 }
0x4047   : > { %v11806_v32 = vmul.f32 0.03125, %v11794_v17  ;;  %v11816_v28 = vmul.f32 %v11810_v62, %v11810_v62 }
0x4048   : > { %v11813_v24 = vsub.f32 %v11783_v30, %v11807_v19  ;;  %v11825_v51 = vsel %vm1898_vm4, %v11817_v21, 0.0 }
0x4049   : > { %v11812_v40 = vsub.f32 %v11782_v7, %v11806_v32  ;;  %11826 = vadd.xlane.f32.xlu1 %v11825_v51  ;;  %v11803_v18 = vpop.xlane.xlu1 %11802  ;;  %v11822_v47 = vsel %vm1898_vm4, %v11816_v28, 0.0 }
0x404a   : > { %v11809_v41 = vmul.f32 0.03125, %v11803_v18  ;;  %11823 = vadd.xlane.f32.xlu0 %v11822_v47  ;;  %v11800_v13 = vpop.xlane.xlu0 %11799  ;;  %v11819_v12 = vmul.f32 %v11813_v24, %v11813_v24 }
0x404b   : > { %v11808_v9 = vmul.f32 0.03125, %v11800_v13  ;;  %v11818_v34 = vmul.f32 %v11812_v40, %v11812_v40 }
0x404c   : > { %v11815_v46 = vsub.f32 %v11785_v36, %v11809_v41  ;;  %v11831_v61 = vsel %vm1898_vm4, %v11819_v12, 0.0 }
0x404d   : > { %v11814_v43 = vsub.f32 %v11784_v48, %v11808_v9  ;;  %11832 = vadd.xlane.f32.xlu1 %v11831_v61  ;;  %v11828_v27 = vsel %vm1898_vm4, %v11818_v34, 0.0 }
0x404e   : > { %11829 = vadd.xlane.f32.xlu0 %v11828_v27  ;;  %v11821_v52 = vmul.f32 %v11815_v46, %v11815_v46 }
0x404f   : > { %v11820_v23 = vmul.f32 %v11814_v43, %v11814_v43 }
0x4050   : > { %v11837_v33 = vsel %vm1898_vm4, %v11821_v52, 0.0 }
0x4051   : > { %11838 = vadd.xlane.f32.xlu1 %v11837_v33  ;;  %v11834_v39 = vsel %vm1898_vm4, %v11820_v23, 0.0 }
0x4052   : > { %11835 = vadd.xlane.f32.xlu0 %v11834_v39 }
0x40d6   : > { %v11827_v14 = vpop.xlane.xlu1 %11826 }
0x40d7   : > { %v11841_v25 = vmul.f32 0.03125, %v11827_v14  ;;  %v11824_v0 = vpop.xlane.xlu0 %11823 }
0x40d8   : > { %v11840_v1 = vmul.f32 0.03125, %v11824_v0 }
0x40d9   : > { %v11847_v54 = vadd.f32 1e-05, %v11841_v25 }
0x40da   : > { %v11846_v50 = vadd.f32 1e-05, %v11840_v1  ;;  %v11833_v26 = vpop.xlane.xlu1 %11832 }
0x40db   : > { %16605 = vrsqrt.f32 %v11847_v54  ;;  %v11843_v22 = vmul.f32 0.03125, %v11833_v26  ;;  %v11830_v29 = vpop.xlane.xlu0 %11829 }
0x40dc   : > { %16607 = vrsqrt.f32 %v11846_v50  ;;  %v11842_v35 = vmul.f32 0.03125, %v11830_v29 }
0x40dd   : > { %v11849_v37 = vadd.f32 1e-05, %v11843_v22 }
0x40de   : > { %v11848_v6 = vadd.f32 1e-05, %v11842_v35  ;;  %v11839_v49 = vpop.xlane.xlu1 %11838 }
0x40df   : > { %16609 = vrsqrt.f32 %v11849_v37  ;;  %v11845_v58 = vmul.f32 0.03125, %v11839_v49  ;;  %v11836_v38 = vpop.xlane.xlu0 %11835 }
0x40e0   : > { %16611 = vrsqrt.f32 %v11848_v6  ;;  %v11844_v31 = vmul.f32 0.03125, %v11836_v38 }
0x40e1   : > { %v11851_v20 = vadd.f32 1e-05, %v11845_v58 }
0x40e2   : > { %v11850_v55 = vadd.f32 1e-05, %v11844_v31 }
0x40e3   : > { %16613 = vrsqrt.f32 %v11851_v20 }
0x40e4   : > { %16615 = vrsqrt.f32 %v11850_v55  ;;  %v12051_v55 = vld [vmem:[%s20118_s0 + $0x8] sm:$0xff] }
0x40e5   : > { %v16606_v30 = vpop.eup %16605 }
0x40e6   : > { %v16608_v7 = vpop.eup %16607  ;;  %v11859_v63 = vmul.f32 %v16606_v30, %v11811_v3  ;;  %v15480_v30 = vpack.c.bf16 %v12051_v55, %v12050_v57 }
0x40e7   : > { %v11858_v42 = vmul.f32 %v16608_v7, %v11810_v62  ;;  %v12053_v7 = vld [vmem:[%s20118_s0 + $0x18] sm:$0xff] }
0x40e8   : > { %v11869_v11 = vmul.f32 %v11867_v45, %v11859_v63  ;;  %15481 = vmatprep.subr.bf16.mxu0 %v15480_v30 }
0x40e9   : > { %v16610_v5 = vpop.eup %16609  ;;  %v11868_v56 = vmul.f32 %v11867_v45, %v11858_v42  ;;  %v12055_v42 = vld [vmem:[%s20118_s0 + $0x28] sm:$0xff]  ;;  %15483 = vmatpush3.bf16.msra.mxu0 %v15480_v30 }
0x40ea   : > { %v16612_v36 = vpop.eup %16611  ;;  %v11879_v48 = vadd.f32 %v11877_v44, %v11869_v11  ;;  %v11861_v8 = vmul.f32 %v16610_v5, %v11813_v24  ;;  %v12056_v5 = vld [vmem:[%s20118_s0 + $0x30] sm:$0xff] }
0x40eb   : > { %v11878_v16 = vadd.f32 %v11877_v44, %v11868_v56  ;;  %v11860_v59 = vmul.f32 %v16612_v36, %v11812_v40  ;;  %v12057_v56 = vld [vmem:[%s20118_s0 + $0x38] sm:$0xff] }
0x40ec   : > { %v11889_v4 = vsel %vm1898_vm4, %v11879_v48, 0.0  ;;  %v11871_v15 = vmul.f32 %v11867_v45, %v11861_v8  ;;  %v15492_v36 = vpack.c.bf16 %v12057_v56, %v12056_v5 }
0x40ed   : > { %v16614_v2 = vpop.eup %16613  ;;  %11890 = vadd.xlane.f32.xlu1 %v11889_v4  ;;  %v11886_v10 = vsel %vm1898_vm4, %v11878_v16, 0.0  ;;  %v11870_v60 = vmul.f32 %v11867_v45, %v11860_v59 }
0x40ee   : > { %v16616_v3 = vpop.eup %16615  ;;  %11887 = vadd.xlane.f32.xlu0 %v11886_v10  ;;  %v11881_v53 = vadd.f32 %v11877_v44, %v11871_v15  ;;  %v11863_v62 = vmul.f32 %v16614_v2, %v11815_v46 }
0x40ef   : > { %v11880_v19 = vadd.f32 %v11877_v44, %v11870_v60  ;;  %v11862_v17 = vmul.f32 %v16616_v3, %v11814_v43 }
0x40f0   : > { %v11895_v21 = vsel %vm1898_vm4, %v11881_v53, 0.0  ;;  %v11873_v32 = vmul.f32 %v11867_v45, %v11863_v62 }
0x40f1   : > { %11896 = vadd.xlane.f32.xlu1 %v11895_v21  ;;  %v11892_v28 = vsel %vm1898_vm4, %v11880_v19, 0.0  ;;  %v11872_v24 = vmul.f32 %v11867_v45, %v11862_v17  ;;  %v12052_v45 = vld [vmem:[%s20118_s0 + $0x10] sm:$0xff] }
0x40f2   : > { %11893 = vadd.xlane.f32.xlu0 %v11892_v28  ;;  %v11883_v51 = vadd.f32 %v11877_v44, %v11873_v32  ;;  %v15484_v63 = vpack.c.bf16 %v12053_v7, %v12052_v45  ;;  %v12058_v32 = vld [vmem:[%s20118_s0 + $0x40] sm:$0xff]  ;;  %v12059_v28 = vld [vmem:[%s20118_s0 + $0x48] sm:$0xff] }
0x40f3   : > { %v11882_v40 = vadd.f32 %v11877_v44, %v11872_v24  ;;  %v12054_v44 = vld [vmem:[%s20118_s0 + $0x20] sm:$0xff]  ;;  %v12039_v7 = vld [vmem:[%s20120_s15 + $0x8] sm:$0xff] }
0x40f4   : > { %v11901_v18 = vsel %vm1898_vm4, %v11883_v51, 0.0  ;;  %15485 = vmatprep.subr.bf16.mxu0 %v15484_v63  ;;  %v15488_v11 = vpack.c.bf16 %v12055_v42, %v12054_v44  ;;  %v12038_v45 = vld [vmem:[%s20120_s15] sm:$0xff] }
0x40f5   : > { %11902 = vadd.xlane.f32.xlu1 %v11901_v18  ;;  %v11898_v47 = vsel %vm1898_vm4, %v11882_v40, 0.0  ;;  %15487 = vmatpush3.bf16.msra.mxu0 %v15484_v63 }
0x40f6   : > { %11899 = vadd.xlane.f32.xlu0 %v11898_v47  ;;  %15489 = vmatprep.subr.bf16.mxu0 %v15488_v11  ;;  %v12060_v47 = vld [vmem:[%s20118_s0 + $0x50] sm:$0xff] }
0x40f9   : > { %15491 = vmatpush3.bf16.msra.mxu0 %v15488_v11 }
0x40fa   : > { %15493 = vmatprep.subr.bf16.mxu0 %v15492_v36 }
0x40fd   : > { %15495 = vmatpush3.bf16.msra.mxu0 %v15492_v36 }
0x417a   : > { %v11891_v41 = vpop.xlane.xlu1 %11890 }
0x417b   : > { %v11905_v13 = vmul.f32 0.03125, %v11891_v41  ;;  %v11888_v12 = vpop.xlane.xlu0 %11887  ;;  %v12061_v41 = vld [vmem:[%s20118_s0 + $0x58] sm:$0xff] }
0x417c   : > { %v11904_v9 = vmul.f32 0.03125, %v11888_v12 }
0x417d   : > { %v19900_v34 = vsub.f32 %v11879_v48, %v11905_v13  ;;  %v15500_v13 = vpack.c.bf16 %v12061_v41, %v12060_v47  ;;  %v12176_v41 = vld [vmem:[%s20121_s1] sm:$0xff] }
0x417e   : > { %v19902_v46 = vsub.f32 %v11878_v16, %v11904_v9  ;;  %v11897_v61 = vpop.xlane.xlu1 %11896  ;;  %v12927_v9 = vld [vmem:[%s16898_s17 + $0x2] ss:$0 sm:$0xff]  ;;  %14793 = vmatprep.mubr.msk.f32.mxu1 %vm1539_vm3, %v12176_v41 }
0x417f   : > { %v11907_v43 = vmul.f32 0.03125, %v11897_v61  ;;  %v11894_v27 = vpop.xlane.xlu0 %11893  ;;  %v11917_v52 = vmul.f32 %v19900_v34, %v19900_v34 }
0x4180   : > { %v11906_v23 = vmul.f32 0.03125, %v11894_v27  ;;  %v11916_v33 = vmul.f32 %v19902_v46, %v19902_v46  ;;  %v12928_v27 = vld [vmem:[%s16898_s17 + $0x3] ss:$0 sm:$0xff] }
0x4181   : > { %v19908_v39 = vsub.f32 %v11881_v53, %v11907_v43  ;;  %v11925_v14 = vsel %vm1898_vm4, %v11917_v52, 0.0 }
0x4182   : > { %v19911_v25 = vsub.f32 %v11880_v19, %v11906_v23  ;;  %11926 = vadd.xlane.f32.xlu1 %v11925_v14  ;;  %v11903_v0 = vpop.xlane.xlu1 %11902  ;;  %v11922_v1 = vsel %vm1898_vm4, %v11916_v33, 0.0 }
0x4183   : > { %v11909_v54 = vmul.f32 0.03125, %v11903_v0  ;;  %11923 = vadd.xlane.f32.xlu0 %v11922_v1  ;;  %v11900_v50 = vpop.xlane.xlu0 %11899  ;;  %v11919_v26 = vmul.f32 %v19908_v39, %v19908_v39 }
0x4184   : > { %v11908_v22 = vmul.f32 0.03125, %v11900_v50  ;;  %v11918_v29 = vmul.f32 %v19911_v25, %v19911_v25 }
0x4185   : > { %v19918_v35 = vsub.f32 %v11883_v51, %v11909_v54  ;;  %v11931_v37 = vsel %vm1898_vm4, %v11919_v26, 0.0  ;;  %v15496_v51 = vpack.c.bf16 %v12059_v28, %v12058_v32 }
0x4186   : > { %v19921_v6 = vsub.f32 %v11882_v40, %v11908_v22  ;;  %11932 = vadd.xlane.f32.xlu1 %v11931_v37  ;;  %v11928_v49 = vsel %vm1898_vm4, %v11918_v29, 0.0 }
0x4187   : > { %11929 = vadd.xlane.f32.xlu0 %v11928_v49  ;;  %v11921_v58 = vmul.f32 %v19918_v35, %v19918_v35  ;;  %15497 = vmatprep.subr.bf16.mxu0 %v15496_v51 }
0x4188   : > { %v11920_v38 = vmul.f32 %v19921_v6, %v19921_v6  ;;  %15499 = vmatpush3.bf16.msra.mxu0 %v15496_v51 }
0x4189   : > { %v11937_v31 = vsel %vm1898_vm4, %v11921_v58, 0.0  ;;  %15501 = vmatprep.subr.bf16.mxu0 %v15500_v13 }
0x418a   : > { %11938 = vadd.xlane.f32.xlu1 %v11937_v31  ;;  %v11934_v20 = vsel %vm1898_vm4, %v11920_v38, 0.0 }
0x418b   : > { %11935 = vadd.xlane.f32.xlu0 %v11934_v20 }
0x418c   : > { %15503 = vmatpush3.bf16.msra.mxu0 %v15500_v13 }
0x420f   : > { %v11927_v48 = vpop.xlane.xlu1 %11926 }
0x4210   : > { %v11941_v8 = vmul.f32 0.03125, %v11927_v48  ;;  %v11924_v16 = vpop.xlane.xlu0 %11923  ;;  %v12041_v48 = vld [vmem:[%s20120_s15 + $0x18] sm:$0xff] }
0x4211   : > { %v11940_v59 = vmul.f32 0.03125, %v11924_v16 }
0x4212   : > { %v11947_v4 = vadd.f32 1e-05, %v11941_v8  ;;  %v12040_v8 = vld [vmem:[%s20120_s15 + $0x10] sm:$0xff] }
0x4213   : > { %v11946_v15 = vadd.f32 1e-05, %v11940_v59  ;;  %v11933_v2 = vpop.xlane.xlu1 %11932 }
0x4214   : > { %16617 = vrsqrt.f32 %v11947_v4  ;;  %v11943_v10 = vmul.f32 0.03125, %v11933_v2  ;;  %v11930_v60 = vpop.xlane.xlu0 %11929 }
0x4215   : > { %16619 = vrsqrt.f32 %v11946_v15  ;;  %v11942_v3 = vmul.f32 0.03125, %v11930_v60 }
0x4216   : > { %v11949_v53 = vadd.f32 1e-05, %v11943_v10 }
0x4217   : > { %v11948_v62 = vadd.f32 1e-05, %v11942_v3  ;;  %v11939_v19 = vpop.xlane.xlu1 %11938 }
0x4218   : > { %16621 = vrsqrt.f32 %v11949_v53  ;;  %v11945_v17 = vmul.f32 0.03125, %v11939_v19  ;;  %v11936_v21 = vpop.xlane.xlu0 %11935  ;;  %v12043_v19 = vld [vmem:[%s20120_s15 + $0x28] sm:$0xff] }
0x4219   : > { %16623 = vrsqrt.f32 %v11948_v62  ;;  %v11944_v24 = vmul.f32 0.03125, %v11936_v21 }
0x421a   : > { %v11951_v40 = vadd.f32 1e-05, %v11945_v17  ;;  %v12042_v17 = vld [vmem:[%s20120_s15 + $0x20] sm:$0xff] }
0x421b   : > { %v11950_v18 = vadd.f32 1e-05, %v11944_v24 }
0x421c   : > { %16625 = vrsqrt.f32 %v11951_v40 }
0x421d   : > { %16627 = vrsqrt.f32 %v11950_v18 }
0x421e   : > { %v16618_v12 = vpop.eup %16617 }
0x421f   : > { %v16620_v61 = vpop.eup %16619  ;;  %v11959_v43 = vmul.f32 %v16618_v12, %v19900_v34 }
0x4220   : > { %v11958_v52 = vmul.f32 %v16620_v61, %v19902_v46 }
0x4221   : > { %v11969_v23 = vmul.f32 %v12927_v9, %v11959_v43 }
0x4222   : > { %v16622_v33 = vpop.eup %16621  ;;  %v11968_v1 = vmul.f32 %v12927_v9, %v11958_v52 }
0x4223   : > { %v16624_v14 = vpop.eup %16623  ;;  %v11979_v0 = vadd.f32 %v12928_v27, %v11969_v23  ;;  %v11961_v54 = vmul.f32 %v16622_v33, %v19908_v39 }
0x4224   : > { %v11960_v50 = vmul.f32 %v16624_v14, %v19911_v25  ;;  %v11978_v34 = vadd.f32 %v12928_v27, %v11968_v1  ;;  %v12177_v14 = vld [vmem:[%s20121_s1 + $0x8] sm:$0xff] }
0x4225   : > { %12010 = vrot.lane.b32.xlu0 %v11979_v0, %s20119_s2  ;;  %11992 = vrot.lane.b32.xlu1 %v11979_v0, %s16714_s10  ;;  %v11971_v29 = vmul.f32 %v12927_v9, %v11961_v54 }
0x4226   : > { %v16626_v26 = vpop.eup %16625  ;;  %v11970_v22 = vmul.f32 %v12927_v9, %v11960_v50 }
0x4227   : > { %v16628_v37 = vpop.eup %16627  ;;  %v11981_v49 = vadd.f32 %v12928_v27, %v11971_v29  ;;  %v11963_v39 = vmul.f32 %v16626_v26, %v19918_v35 }
0x4228   : > { %v11980_v46 = vadd.f32 %v12928_v27, %v11970_v22  ;;  %v11962_v58 = vmul.f32 %v16628_v37, %v19921_v6 }
0x4229   : > { %11990 = vrot.lane.b32.xlu0 %v11978_v34, %s16714_s10  ;;  %12008 = vrot.lane.b32.xlu1 %v11978_v34, %s20119_s2  ;;  %v11973_v38 = vmul.f32 %v12927_v9, %v11963_v39 }
0x422a   : > { %v11972_v25 = vmul.f32 %v12927_v9, %v11962_v58 }
0x422b   : > { %v11983_v20 = vadd.f32 %v12928_v27, %v11973_v38 }
0x422c   : > { %v11982_v31 = vadd.f32 %v12928_v27, %v11972_v25 }
0x422d   : > { %11994 = vrot.lane.b32.xlu1 %v11980_v46, %s16714_s10  ;;  %11996 = vrot.lane.b32.xlu0 %v11981_v49, %s16714_s10 }
0x4231   : > { %12012 = vrot.lane.b32.xlu1 %v11980_v46, %s20119_s2  ;;  %12014 = vrot.lane.b32.xlu0 %v11981_v49, %s20119_s2 }
0x4235   : > { %11998 = vrot.lane.b32.xlu1 %v11982_v31, %s16714_s10  ;;  %12000 = vrot.lane.b32.xlu0 %v11983_v20, %s16714_s10 }
0x4239   : > { %12016 = vrot.lane.b32.xlu1 %v11982_v31, %s20119_s2  ;;  %12018 = vrot.lane.b32.xlu0 %v11983_v20, %s20119_s2  ;;  %s20123_s2 = sadd.s32 4294967295, %s16661_s28  }
0x423a   : > { %s12405_s10 = sshll.u32 %s20123_s2, 1 }
0x423b   : > { %p1163_p4 = scmp.lt.s32.totalorder %s12405_s10, 3 }
0x423d   : > { %s20127_s10 = smov (!%p1163_p4, %s12405_s10), 3 }
0x423e   : > { %s12406_s0 = sshll.u32 %s20127_s10, 3 }
0x423f   : > { %s1166_s3 = scalar_lea.vmem %s16903_s24, %s12406_s0 }
0x4297   : > { %v12011_v6 = vpop.permute.xlu0 %12010  ;;  %v11993_v35 = vpop.permute.xlu1 %11992 }
0x4298   : > { %v12027_v57 = vsel %vm1898_vm4, %v11979_v0, %v11993_v35  ;;  %v12935_v0 = vld [vmem:[%s20122_s26] ss:$0 sm:$0xff] }
0x4299   : > { %v12033_v63 = vsel %vm9321_vm8, %v12027_v57, %v12011_v6 }
0x429a   : > { %v12045_v5 = vmul.f32 %v12039_v7, %v12033_v63 }
0x429b   : > { %v11991_v55 = vpop.permute.xlu0 %11990  ;;  %v12009_v30 = vpop.permute.xlu1 %12008 }
0x429c   : > { %v12026_v44 = vsel %vm1898_vm4, %v11978_v34, %v11991_v55 }
0x429d   : > { %v12032_v42 = vsel %vm9321_vm8, %v12026_v44, %v12009_v30 }
0x429e   : > { %v12044_v11 = vmul.f32 %v12038_v45, %v12032_v42 }
0x429f   : > { %v11997_v56 = vpop.permute.xlu0 %11996  ;;  %v11995_v36 = vpop.permute.xlu1 %11994 }
0x42a0   : > { %14772 = vmatprep.mubr.msk.f32.mxu0 %vm12062_vm9, %v12044_v11  ;;  %v12029_v16 = vsel %vm1898_vm4, %v11981_v49, %v11997_v56  ;;  %v12028_v59 = vsel %vm1898_vm4, %v11980_v46, %v11995_v36 }
0x42a1   : > { %14773 = vmatmul.mubr.msk.f32.vlgmr.msra.gmra.mrb[144].mxu0 %vm12062_vm9, %v12045_v5 }
0x42a3   : > { %v12015_v4 = vpop.permute.xlu0 %12014  ;;  %v12013_v15 = vpop.permute.xlu1 %12012 }
0x42a4   : > { %v12035_v2 = vsel %vm9321_vm8, %v12029_v16, %v12015_v4  ;;  %v12034_v10 = vsel %vm9321_vm8, %v12028_v59, %v12013_v15 }
0x42a5   : > { %v12047_v60 = vmul.f32 %v12041_v48, %v12035_v2  ;;  %v12046_v3 = vmul.f32 %v12040_v8, %v12034_v10 }
0x42a7   : > { %v12001_v53 = vpop.permute.xlu0 %12000  ;;  %14775 = vmatprep.mubr.msk.f32.mxu0 %vm12062_vm9, %v12046_v3  ;;  %v11999_v62 = vpop.permute.xlu1 %11998 }
0x42a8   : > { %14776 = vmatmul.mubr.msk.f32.gmra.mrb[146].mxu0 %vm12062_vm9, %v12047_v60  ;;  %v12031_v21 = vsel %vm1898_vm4, %v11983_v20, %v12001_v53  ;;  %v12030_v32 = vsel %vm1898_vm4, %v11982_v31, %v11999_v62 }
0x42ab   : > { %v12019_v28 = vpop.permute.xlu0 %12018  ;;  %v12017_v24 = vpop.permute.xlu1 %12016 }
0x42ac   : > { %v12037_v51 = vsel %vm9321_vm8, %v12031_v21, %v12019_v28  ;;  %v12036_v40 = vsel %vm9321_vm8, %v12030_v32, %v12017_v24 }
0x42ad   : > { %v12049_v18 = vmul.f32 %v12043_v19, %v12037_v51  ;;  %v12048_v47 = vmul.f32 %v12042_v17, %v12036_v40 }
0x42af   : > { %14778 = vmatprep.mubr.msk.f32.mxu0 %vm12062_vm9, %v12048_v47 }
0x42b0   : > { %14779 = vmatmul.mubr.msk.f32.gmra.mrb[148].mxu0 %vm12062_vm9, %v12049_v18 }
0x4374   : > { %v14774_v13 = vpop.f32.mrb[144].mxu0 }
0x4375   : > { %v12147_v12 = vpop.f32.mrb[145].mxu0 }
0x4376   : > { %v15504_v9 = vpack.c.bf16 %v14774_v13, %v12147_v12 }
0x4378   : > { %15505 = vmatprep.subr.bf16.mxu1 %v15504_v9 }
0x4379   : > { %15507 = vmatpush3.bf16.msra.mxu1 %v15504_v9 }
0x437b   : > { %v14777_v61 = vpop.f32.mrb[146].mxu0 }
0x437c   : > { %v12157_v43 = vpop.f32.mrb[147].mxu0 }
0x437d   : > { %v15508_v27 = vpack.c.bf16 %v14777_v61, %v12157_v43 }
0x437f   : > { %15509 = vmatprep.subr.bf16.mxu1 %v15508_v27 }
0x4380   : > { %15511 = vmatpush3.bf16.msra.mxu1 %v15508_v27 }
0x4383   : > { %v14780_v52 = vpop.f32.mrb[148].mxu0 }
0x4384   : > { %v12167_v23 = vpop.f32.mrb[149].mxu0 }
0x4385   : > { %v15512_v33 = vpack.c.bf16 %v14780_v52, %v12167_v23 }
0x4387   : > { %15513 = vmatprep.subr.bf16.mxu1 %v15512_v33 }
0x4388   : > { %15515 = vmatpush3.bf16.msra.mxu1 %v15512_v33 }
0x438b   : > { %14794 = vmatmul.mubr.msk.f32.vlgmr.msra.gmra.mrb[210].mxu1 %vm1539_vm3, %v12177_v14 }
0x445e   : > { %v14795_v1 = vpop.f32.mrb[210].mxu1 }
0x445f   : > { %v12263_v54 = vadd.f32 %v14795_v1, %v12935_v0  ;;  %v12257_v50 = vpop.f32.mrb[211].mxu1 }
0x4460   : > { %v12258_v26 = vadd.f32 %v12935_v0, %v12257_v50 }
0x4461   : > { %12267 = vst.msk [vmem:[%s1166_s3 + $0x8] sm:$0xff] %vm3499_vm7, %v12263_v54 }
0x4462   : > { %12266 = vst.msk [vmem:[%s1166_s3] sm:$0xff] %vm3499_vm7, %v12258_v26 }
0x4463 PF: > { %s83_s28 = sadd.s32 1, %s16661_s28  }
0x4464   : > { %p80_p5 = scmp.ge.s32.totalorder %s83_s28, 4  }
0x4466   :  { %82 = sbr.rel (!%p80_p5) target bundleno = 64 (0x40), region = 249 }

</bundles_post_ra>
